<compile_context>
chip_gen: v7x
topology: tpu7x:2x2x1
jax: 0.10.0
libtpu: 0.0.40
codegen_flags: <defaults>
</compile_context>

<pallas_src>
import functools

import jax
import jax.numpy as jnp
from jax import lax
from jax.experimental import pallas as pl
from jax.experimental.pallas import tpu as pltpu


def _layer_norm(v, g, b, eps=1e-5):
    mu = jnp.mean(v, axis=-1, keepdims=True)
    var = jnp.mean((v - mu) ** 2, axis=-1, keepdims=True)
    return (v - mu) * jax.lax.rsqrt(var + eps) * g + b


def encoder_layer_kernel(
        x_ref, mask_ref,
        wqkv_ref, bqkv_ref, wo_ref, bo_ref, g1_ref, be1_ref,
        w1_ref, bf1_ref, w2_ref, bf2_ref, g2_ref, be2_ref,
        o_ref,
        x1_f32, x1_bf16, y_acc,
        *, num_heads, batch_block):
    k_step = pl.program_id(1)
    TB = batch_block
    _, S, D = x_ref.shape
    H = num_heads
    hd = D // H
    M = TB * S

    # ---- attention + first residual/LN: once per batch block (k == 0) ----
    @pl.when(k_step == 0)
    def _attention():
        x = x_ref[...].astype(jnp.float32).reshape(M, D)        # residual (f32)
        # Fused QKV projection: one (M, D) @ (D, 3D) matmul, bf16 in / f32 acc.
        # 1/sqrt(head_dim) is folded into the Q columns of wqkv / bqkv.
        qkv = jnp.dot(x.astype(jnp.bfloat16), wqkv_ref[...],
                      preferred_element_type=jnp.float32) + bqkv_ref[...]
        mask = mask_ref[...]                                     # (S, S) additive
        for b in range(TB):                                      # static unroll
            r0 = b * S
            acc = jnp.zeros((S, D), jnp.float32)                 # out-proj accumulator
            for h in range(H):                                   # static unroll
                c = h * hd
                q_h = qkv[r0:r0 + S, c:c + hd].astype(jnp.bfloat16)
                k_h = qkv[r0:r0 + S, D + c:D + c + hd].astype(jnp.bfloat16)
                v_h = qkv[r0:r0 + S, 2 * D + c:2 * D + c + hd].astype(jnp.bfloat16)
                # scores = q @ k^T (contract last dims, no explicit transpose)
                s = lax.dot_general(q_h, k_h, (((1,), (1,)), ((), ())),
                                    preferred_element_type=jnp.float32)
                s = s + mask
                s = s - jnp.max(s, axis=-1, keepdims=True)
                p = jnp.exp(s)
                p = p * pl.reciprocal(jnp.sum(p, axis=-1, keepdims=True),
                                      approx=True)
                o_h = jnp.dot(p.astype(jnp.bfloat16), v_h,
                              preferred_element_type=jnp.float32)
                # output projection accumulated per head: keeps the live f32
                # intermediate at (S, D) instead of (H, S, D)
                acc = acc + jnp.dot(o_h.astype(jnp.bfloat16), wo_ref[h],
                                    preferred_element_type=jnp.float32)
            x1_b = _layer_norm(x[r0:r0 + S, :] + acc + bo_ref[...],
                               g1_ref[...], be1_ref[...])
            x1_f32[r0:r0 + S, :] = x1_b
            x1_bf16[r0:r0 + S, :] = x1_b.astype(jnp.bfloat16)
        y_acc[...] = jnp.zeros_like(y_acc)

    # ---- FFN: one streamed d_ff chunk per grid step, f32 accumulation ----
    h1 = jnp.dot(x1_bf16[...], w1_ref[...],
                 preferred_element_type=jnp.float32) + bf1_ref[...]
    h1 = jnp.maximum(h1, 0.0)                                    # ReLU (dropout p=0.0)
    y_acc[...] += jnp.dot(h1.astype(jnp.bfloat16), w2_ref[...],
                          preferred_element_type=jnp.float32)

    # ---- second residual/LN after the last FFN chunk ----
    @pl.when(k_step == pl.num_programs(1) - 1)
    def _finalize():
        y = y_acc[...] + bf2_ref[...]
        out = _layer_norm(x1_f32[...] + y, g2_ref[...], be2_ref[...])
        o_ref[...] = out.reshape(TB, S, D).astype(o_ref.dtype)


def _pick_batch_block(batch, seq):
    """Largest TB dividing `batch` with TB*seq <= 512, keeping >= 2 batch blocks
    when possible so both v7x TensorCores get work on the 'parallel' axis."""
    best = 1
    for tb in range(1, batch + 1):
        if batch % tb:
            continue
        if tb * seq > 512:
            break
        if tb == batch and batch > 1:
            continue
        best = tb
    return best


def transformer_encoder_layer(x, mask, kparams, num_heads, *,
                              ffn_block=256, batch_block=None,
                              vmem_limit_bytes=48 * 1024 * 1024,
                              single_buffer_weights=True):
    B, S, D = x.shape
    (wqkv, bqkv, wo3, bo, g1, be1, w1_t, b1, w2_t, b2, g2, be2) = kparams
    d_ff = w1_t.shape[1]
    tk = min(ffn_block, d_ff)
    assert d_ff % tk == 0, "d_ff must be a multiple of the FFN chunk size"
    n_k = d_ff // tk

    if batch_block is None:
        batch_block = _pick_batch_block(B, S)
    TB = batch_block
    assert B % TB == 0, "batch must be a multiple of the batch block"
    n_b = B // TB

    kernel = functools.partial(encoder_layer_kernel,
                               num_heads=num_heads, batch_block=TB)

    def build(single_buffer):
        def inv(arr):
            # grid-invariant full block; single-buffered when supported
            nd = arr.ndim
            kwargs = {"pipeline_mode": pl.Buffered(1)} if single_buffer else {}
            return pl.BlockSpec(arr.shape, lambda b, k, _nd=nd: (0,) * _nd,
                                **kwargs)

        in_specs = [
            pl.BlockSpec((TB, S, D), lambda b, k: (b, 0, 0)),     # x
            inv(mask),                                            # (S, S) mask
            inv(wqkv), inv(bqkv),                                 # fused QKV
            inv(wo3), inv(bo),                                    # out-proj
            inv(g1), inv(be1),                                    # LN1
            pl.BlockSpec((D, tk), lambda b, k: (0, k)),           # W1^T chunk
            pl.BlockSpec((1, tk), lambda b, k: (0, k)),           # b1 chunk
            pl.BlockSpec((tk, D), lambda b, k: (k, 0)),           # W2^T chunk
            inv(b2), inv(g2), inv(be2),                           # b2, LN2
        ]
        return pl.pallas_call(
            kernel,
            out_shape=jax.ShapeDtypeStruct((B, S, D), jnp.float32),
            grid_spec=pltpu.PrefetchScalarGridSpec(
                num_scalar_prefetch=0,
                grid=(n_b, n_k),                                  # reduction axis last
                in_specs=in_specs,
                out_specs=pl.BlockSpec((TB, S, D), lambda b, k: (b, 0, 0)),
                scratch_shapes=[pltpu.VMEM((TB * S, D), jnp.float32),   # x1 (f32)
                                pltpu.VMEM((TB * S, D), jnp.bfloat16),  # x1 (bf16)
                                pltpu.VMEM((TB * S, D), jnp.float32)],  # FFN acc
            ),
            compiler_params=pltpu.CompilerParams(
                dimension_semantics=("parallel", "arbitrary"),
                vmem_limit_bytes=vmem_limit_bytes,
            ),
        )

    args = (x, mask, *kparams)
    if single_buffer_weights:
        try:
            return build(True)(*args)
        except Exception:
            # pipeline_mode=pl.Buffered(1) not supported on this jax/libtpu:
            # fall back to default double-buffered invariant operands.
            pass
    return build(False)(*args)


def init_params(key, d_model):
    """Canonical PyTorch-style parameters (all f32, nn.Linear W is (out, in))."""
    keys = jax.random.split(key, 6)

    def linear(k, fan_in, fan_out):
        bound = 1.0 / (fan_in ** 0.5)
        kw, kb = jax.random.split(k)
        w = jax.random.uniform(kw, (fan_out, fan_in), jnp.float32, -bound, bound)
        b = jax.random.uniform(kb, (fan_out,), jnp.float32, -bound, bound)
        return w, b

    wq, bq = linear(keys[0], d_model, d_model)
    wk, bk = linear(keys[1], d_model, d_model)
    wv, bv = linear(keys[2], d_model, d_model)
    wo, bo = linear(keys[3], d_model, d_model)
    w1, b1 = linear(keys[4], d_model, d_model * 2)   # fc1: D -> 2D
    w2, b2 = linear(keys[5], d_model * 2, d_model)   # fc2: 2D -> D
    g1 = jnp.ones((d_model,), jnp.float32)
    be1 = jnp.zeros((d_model,), jnp.float32)
    g2 = jnp.ones((d_model,), jnp.float32)
    be2 = jnp.zeros((d_model,), jnp.float32)
    return (wq, bq, wk, bk, wv, bv, wo, bo, g1, be1, w1, b1, w2, b2, g2, be2)


def prepare_kernel_params(canon, num_heads):
    """Kernel-layout params: Wq/Wk/Wv fused into one (D, 3D) slab (1/sqrt(hd)
    folded into the Q columns), out-proj reshaped to (H, hd, D), matmul weights
    cast to bf16 (f32 accumulation in-kernel); biases/LN params stay f32."""
    (wq, bq, wk, bk, wv, bv, wo, bo, g1, be1, w1, b1, w2, b2, g2, be2) = canon
    D = wq.shape[0]
    H = num_heads
    hd = D // H
    scale = float(hd) ** -0.5

    wqkv = jnp.concatenate([wq.T * scale, wk.T, wv.T], axis=1).astype(jnp.bfloat16)
    bqkv = jnp.concatenate([bq * scale, bk, bv]).reshape(1, 3 * D)
    wo3 = wo.T.reshape(H, hd, D).astype(jnp.bfloat16)             # (H, hd, D)

    def row(v):
        return v.reshape(1, -1)

    return (wqkv, bqkv, wo3, row(bo),
            row(g1), row(be1),
            w1.T.astype(jnp.bfloat16), row(b1),
            w2.T.astype(jnp.bfloat16), row(b2),
            row(g2), row(be2))


def reference_forward(x, mask, canon, num_heads):
    (wq, bq, wk, bk, wv, bv, wo, bo, g1, be1, w1, b1, w2, b2, g2, be2) = canon
    B, S, D = x.shape
    H = num_heads
    hd = D // H
    scale = float(hd) ** -0.5

    q = x @ wq.T + bq
    k = x @ wk.T + bk
    v = x @ wv.T + bv

    def split(t):
        return t.reshape(B, S, H, hd).transpose(0, 2, 1, 3)

    s = jnp.einsum('bhqd,bhkd->bhqk', split(q) * scale, split(k)) + mask
    p = jax.nn.softmax(s, axis=-1)
    a = jnp.einsum('bhqk,bhkd->bhqd', p, split(v)).transpose(0, 2, 1, 3).reshape(B, S, D)
    a = a @ wo.T + bo

    def ln(t, g, b):
        mu = t.mean(-1, keepdims=True)
        var = ((t - mu) ** 2).mean(-1, keepdims=True)
        return (t - mu) * jax.lax.rsqrt(var + 1e-5) * g + b

    x1 = ln(x + a, g1, be1)
    h1 = jax.nn.relu(x1 @ w1.T + b1)
    y = h1 @ w2.T + b2
    return ln(x1 + y, g2, be2)


if __name__ == "__main__":
    # Small but lane/sublane aligned: D % 128 == 0, S % 8 == 0, head_dim = 128.
    B, S, D, H = 4, 64, 256, 2
    key = jax.random.PRNGKey(0)
    kx, kp = jax.random.split(key)

    x = jax.random.normal(kx, (B, S, D), jnp.float32)
    # causal additive mask: 0 where attended, -1e9 where blocked
    mask = jnp.where(jnp.tril(jnp.ones((S, S), dtype=bool)), 0.0, -1e9).astype(jnp.float32)

    canon = init_params(kp, D)
    kparams = prepare_kernel_params(canon, H)

    # batch_block=2 -> grid=(2, 2): two batch blocks ("parallel") x two FFN chunks
    out = transformer_encoder_layer(x, mask, kparams, H,
                                    ffn_block=256, batch_block=2)
    out = jax.block_until_ready(out)

    assert out.shape == (B, S, D)
    assert bool(jnp.all(jnp.isfinite(out)))
    ref = reference_forward(x, mask, canon, H)
    max_err = float(jnp.max(jnp.abs(out - ref)))
    assert max_err < 5e-2, f"max abs error vs reference: {max_err}"

    print("KERNEL_OK")
</pallas_src>

<mosaic_0001>
module attributes {stable_mosaic.version = 11 : i64} {
  func.func @encoder_layer_kernel(%arg0: i32, %arg1: i32, %arg2: memref<2x64x256xf32, #tpu.memory_space<vmem>>, %arg3: memref<64x64xf32, #tpu.memory_space<vmem>>, %arg4: memref<256x768xbf16, #tpu.memory_space<vmem>>, %arg5: memref<1x768xf32, #tpu.memory_space<vmem>>, %arg6: memref<2x128x256xbf16, #tpu.memory_space<vmem>>, %arg7: memref<1x256xf32, #tpu.memory_space<vmem>>, %arg8: memref<1x256xf32, #tpu.memory_space<vmem>>, %arg9: memref<1x256xf32, #tpu.memory_space<vmem>>, %arg10: memref<256x256xbf16, #tpu.memory_space<vmem>>, %arg11: memref<1x256xf32, #tpu.memory_space<vmem>>, %arg12: memref<256x256xbf16, #tpu.memory_space<vmem>>, %arg13: memref<1x256xf32, #tpu.memory_space<vmem>>, %arg14: memref<1x256xf32, #tpu.memory_space<vmem>>, %arg15: memref<1x256xf32, #tpu.memory_space<vmem>>, %arg16: memref<2x64x256xf32, #tpu.memory_space<vmem>>, %arg17: memref<128x256xf32, #tpu.memory_space<vmem>>, %arg18: memref<128x256xbf16, #tpu.memory_space<vmem>>, %arg19: memref<128x256xf32, #tpu.memory_space<vmem>>) attributes {dimension_semantics = [#tpu.dimension_semantics<parallel>, #tpu.dimension_semantics<arbitrary>], iteration_bounds = array<i64: 2, 2>, scalar_prefetch = 0 : i64, scratch_operands = 3 : i64, tpu.core_type = #tpu.core_type<tc>, window_params = [{transform_indices = @transform_0, window_bounds = array<i64: 2, 64, 256>}, {pipeline_mode = #tpu.pipeline_mode<synchronous>, transform_indices = @transform_1, window_bounds = array<i64: 64, 64>}, {pipeline_mode = #tpu.pipeline_mode<synchronous>, transform_indices = @transform_2, window_bounds = array<i64: 256, 768>}, {pipeline_mode = #tpu.pipeline_mode<synchronous>, transform_indices = @transform_3, window_bounds = array<i64: 1, 768>}, {pipeline_mode = #tpu.pipeline_mode<synchronous>, transform_indices = @transform_4, window_bounds = array<i64: 2, 128, 256>}, {pipeline_mode = #tpu.pipeline_mode<synchronous>, transform_indices = @transform_5, window_bounds = array<i64: 1, 256>}, {pipeline_mode = #tpu.pipeline_mode<synchronous>, transform_indices = @transform_6, window_bounds = array<i64: 1, 256>}, {pipeline_mode = #tpu.pipeline_mode<synchronous>, transform_indices = @transform_7, window_bounds = array<i64: 1, 256>}, {transform_indices = @transform_8, window_bounds = array<i64: 256, 256>}, {transform_indices = @transform_9, window_bounds = array<i64: 1, 256>}, {transform_indices = @transform_10, window_bounds = array<i64: 256, 256>}, {pipeline_mode = #tpu.pipeline_mode<synchronous>, transform_indices = @transform_11, window_bounds = array<i64: 1, 256>}, {pipeline_mode = #tpu.pipeline_mode<synchronous>, transform_indices = @transform_12, window_bounds = array<i64: 1, 256>}, {pipeline_mode = #tpu.pipeline_mode<synchronous>, transform_indices = @transform_13, window_bounds = array<i64: 1, 256>}, {transform_indices = @transform_14, window_bounds = array<i64: 2, 64, 256>}]} {
    %c0_i32 = arith.constant 0 : i32
    %0 = arith.cmpi eq, %arg1, %c0_i32 : i32
    %1 = arith.extui %0 : i1 to i32
    %c0_i32_0 = arith.constant 0 : i32
    %2 = arith.cmpi ne, %1, %c0_i32_0 : i32
    scf.if %2 {
      %c0_15 = arith.constant 0 : index
      %c0_16 = arith.constant 0 : index
      %c0_17 = arith.constant 0 : index
      %20 = vector.load %arg2[%c0_15, %c0_16, %c0_17] : memref<2x64x256xf32, #tpu.memory_space<vmem>>, vector<2x64x256xf32>
      %21 = vector.shape_cast %20 : vector<2x64x256xf32> to vector<128x256xf32>
      %22 = arith.truncf %21 : vector<128x256xf32> to vector<128x256xbf16>
      %c0_18 = arith.constant 0 : index
      %c0_19 = arith.constant 0 : index
      %23 = vector.load %arg4[%c0_18, %c0_19] : memref<256x768xbf16, #tpu.memory_space<vmem>>, vector<256x768xbf16>
      %cst_20 = arith.constant dense<0.000000e+00> : vector<128x768xf32>
      %24 = tpu.matmul %22, %23, %cst_20 {dimension_numbers = #tpu.dot_dimension_numbers<[1], [0], [0], [1], [0, 0, 1, 1], [], []>} : vector<128x256xbf16>, vector<256x768xbf16>, vector<128x768xf32> -> vector<128x768xf32>
      %c0_21 = arith.constant 0 : index
      %c0_22 = arith.constant 0 : index
      %25 = vector.load %arg5[%c0_21, %c0_22] : memref<1x768xf32, #tpu.memory_space<vmem>>, vector<1x768xf32>
      %26 = vector.broadcast %25 : vector<1x768xf32> to vector<128x768xf32>
      %27 = arith.addf %24, %26 : vector<128x768xf32>
      %c0_23 = arith.constant 0 : index
      %c0_24 = arith.constant 0 : index
      %28 = vector.load %arg3[%c0_23, %c0_24] : memref<64x64xf32, #tpu.memory_space<vmem>>, vector<64x64xf32>
      %cst_25 = arith.constant 0.000000e+00 : f32
      %29 = vector.broadcast %cst_25 : f32 to vector<64x256xf32>
      %30 = vector.extract_strided_slice %27 {offsets = [0, 0], sizes = [64, 128], strides = [1, 1]} : vector<128x768xf32> to vector<64x128xf32>
      %31 = arith.truncf %30 : vector<64x128xf32> to vector<64x128xbf16>
      %32 = vector.extract_strided_slice %27 {offsets = [0, 256], sizes = [64, 128], strides = [1, 1]} : vector<128x768xf32> to vector<64x128xf32>
      %33 = arith.truncf %32 : vector<64x128xf32> to vector<64x128xbf16>
      %34 = vector.extract_strided_slice %27 {offsets = [0, 512], sizes = [64, 128], strides = [1, 1]} : vector<128x768xf32> to vector<64x128xf32>
      %35 = arith.truncf %34 : vector<64x128xf32> to vector<64x128xbf16>
      %cst_26 = arith.constant dense<0.000000e+00> : vector<64x64xf32>
      %36 = tpu.matmul %31, %33, %cst_26 {dimension_numbers = #tpu.dot_dimension_numbers<[1], [1], [0], [0], [0, 0, 1, 0], [], []>} : vector<64x128xbf16>, vector<64x128xbf16>, vector<64x64xf32> -> vector<64x64xf32>
      %37 = arith.addf %36, %28 : vector<64x64xf32>
      %cst_27 = arith.constant dense<0xFF800000> : vector<64xf32>
      %38 = vector.multi_reduction <maximumf>, %37, %cst_27 [1] : vector<64x64xf32> to vector<64xf32>
      %39 = vector.shape_cast %38 : vector<64xf32> to vector<64x1xf32>
      %40 = vector.broadcast %39 : vector<64x1xf32> to vector<64x64xf32>
      %41 = arith.subf %37, %40 : vector<64x64xf32>
      %42 = math.exp %41 : vector<64x64xf32>
      %cst_28 = arith.constant dense<0.000000e+00> : vector<64xf32>
      %43 = vector.multi_reduction <add>, %42, %cst_28 [1] : vector<64x64xf32> to vector<64xf32>
      %44 = vector.shape_cast %43 : vector<64xf32> to vector<64x1xf32>
      %45 = tpu.reciprocal %44 {approx = true} : vector<64x1xf32> -> vector<64x1xf32>
      %46 = vector.broadcast %45 : vector<64x1xf32> to vector<64x64xf32>
      %47 = arith.mulf %42, %46 : vector<64x64xf32>
      %48 = arith.truncf %47 : vector<64x64xf32> to vector<64x64xbf16>
      %cst_29 = arith.constant dense<0.000000e+00> : vector<64x128xf32>
      %49 = tpu.matmul %48, %35, %cst_29 {dimension_numbers = #tpu.dot_dimension_numbers<[1], [0], [0], [1], [0, 0, 1, 1], [], []>} : vector<64x64xbf16>, vector<64x128xbf16>, vector<64x128xf32> -> vector<64x128xf32>
      %50 = arith.truncf %49 : vector<64x128xf32> to vector<64x128xbf16>
      %c0_30 = arith.constant 0 : index
      %c0_31 = arith.constant 0 : index
      %c0_32 = arith.constant 0 : index
      %51 = vector.load %arg6[%c0_30, %c0_31, %c0_32] : memref<2x128x256xbf16, #tpu.memory_space<vmem>>, vector<1x128x256xbf16>
      %52 = vector.shape_cast %51 : vector<1x128x256xbf16> to vector<128x256xbf16>
      %cst_33 = arith.constant dense<0.000000e+00> : vector<64x256xf32>
      %53 = tpu.matmul %50, %52, %cst_33 {dimension_numbers = #tpu.dot_dimension_numbers<[1], [0], [0], [1], [0, 0, 1, 1], [], []>} : vector<64x128xbf16>, vector<128x256xbf16>, vector<64x256xf32> -> vector<64x256xf32>
      %54 = arith.addf %29, %53 : vector<64x256xf32>
      %55 = vector.extract_strided_slice %27 {offsets = [0, 128], sizes = [64, 128], strides = [1, 1]} : vector<128x768xf32> to vector<64x128xf32>
      %56 = arith.truncf %55 : vector<64x128xf32> to vector<64x128xbf16>
      %57 = vector.extract_strided_slice %27 {offsets = [0, 384], sizes = [64, 128], strides = [1, 1]} : vector<128x768xf32> to vector<64x128xf32>
      %58 = arith.truncf %57 : vector<64x128xf32> to vector<64x128xbf16>
      %59 = vector.extract_strided_slice %27 {offsets = [0, 640], sizes = [64, 128], strides = [1, 1]} : vector<128x768xf32> to vector<64x128xf32>
      %60 = arith.truncf %59 : vector<64x128xf32> to vector<64x128xbf16>
      %cst_34 = arith.constant dense<0.000000e+00> : vector<64x64xf32>
      %61 = tpu.matmul %56, %58, %cst_34 {dimension_numbers = #tpu.dot_dimension_numbers<[1], [1], [0], [0], [0, 0, 1, 0], [], []>} : vector<64x128xbf16>, vector<64x128xbf16>, vector<64x64xf32> -> vector<64x64xf32>
      %62 = arith.addf %61, %28 : vector<64x64xf32>
      %cst_35 = arith.constant dense<0xFF800000> : vector<64xf32>
      %63 = vector.multi_reduction <maximumf>, %62, %cst_35 [1] : vector<64x64xf32> to vector<64xf32>
      %64 = vector.shape_cast %63 : vector<64xf32> to vector<64x1xf32>
      %65 = vector.broadcast %64 : vector<64x1xf32> to vector<64x64xf32>
      %66 = arith.subf %62, %65 : vector<64x64xf32>
      %67 = math.exp %66 : vector<64x64xf32>
      %cst_36 = arith.constant dense<0.000000e+00> : vector<64xf32>
      %68 = vector.multi_reduction <add>, %67, %cst_36 [1] : vector<64x64xf32> to vector<64xf32>
      %69 = vector.shape_cast %68 : vector<64xf32> to vector<64x1xf32>
      %70 = tpu.reciprocal %69 {approx = true} : vector<64x1xf32> -> vector<64x1xf32>
      %71 = vector.broadcast %70 : vector<64x1xf32> to vector<64x64xf32>
      %72 = arith.mulf %67, %71 : vector<64x64xf32>
      %73 = arith.truncf %72 : vector<64x64xf32> to vector<64x64xbf16>
      %cst_37 = arith.constant dense<0.000000e+00> : vector<64x128xf32>
      %74 = tpu.matmul %73, %60, %cst_37 {dimension_numbers = #tpu.dot_dimension_numbers<[1], [0], [0], [1], [0, 0, 1, 1], [], []>} : vector<64x64xbf16>, vector<64x128xbf16>, vector<64x128xf32> -> vector<64x128xf32>
      %75 = arith.truncf %74 : vector<64x128xf32> to vector<64x128xbf16>
      %c1 = arith.constant 1 : index
      %c0_38 = arith.constant 0 : index
      %c0_39 = arith.constant 0 : index
      %76 = vector.load %arg6[%c1, %c0_38, %c0_39] : memref<2x128x256xbf16, #tpu.memory_space<vmem>>, vector<1x128x256xbf16>
      %77 = vector.shape_cast %76 : vector<1x128x256xbf16> to vector<128x256xbf16>
      %cst_40 = arith.constant dense<0.000000e+00> : vector<64x256xf32>
      %78 = tpu.matmul %75, %77, %cst_40 {dimension_numbers = #tpu.dot_dimension_numbers<[1], [0], [0], [1], [0, 0, 1, 1], [], []>} : vector<64x128xbf16>, vector<128x256xbf16>, vector<64x256xf32> -> vector<64x256xf32>
      %79 = arith.addf %54, %78 : vector<64x256xf32>
      %80 = vector.extract_strided_slice %21 {offsets = [0, 0], sizes = [64, 256], strides = [1, 1]} : vector<128x256xf32> to vector<64x256xf32>
      %81 = arith.addf %80, %79 : vector<64x256xf32>
      %c0_41 = arith.constant 0 : index
      %c0_42 = arith.constant 0 : index
      %82 = vector.load %arg7[%c0_41, %c0_42] : memref<1x256xf32, #tpu.memory_space<vmem>>, vector<1x256xf32>
      %83 = vector.broadcast %82 : vector<1x256xf32> to vector<64x256xf32>
      %84 = arith.addf %81, %83 : vector<64x256xf32>
      %c0_43 = arith.constant 0 : index
      %c0_44 = arith.constant 0 : index
      %85 = vector.load %arg8[%c0_43, %c0_44] : memref<1x256xf32, #tpu.memory_space<vmem>>, vector<1x256xf32>
      %c0_45 = arith.constant 0 : index
      %c0_46 = arith.constant 0 : index
      %86 = vector.load %arg9[%c0_45, %c0_46] : memref<1x256xf32, #tpu.memory_space<vmem>>, vector<1x256xf32>
      %cst_47 = arith.constant dense<0.000000e+00> : vector<64xf32>
      %87 = vector.multi_reduction <add>, %84, %cst_47 [1] : vector<64x256xf32> to vector<64xf32>
      %88 = vector.shape_cast %87 : vector<64xf32> to vector<64x1xf32>
      %cst_48 = arith.constant 2.560000e+02 : f32
      %89 = vector.broadcast %cst_48 : f32 to vector<64x1xf32>
      %90 = arith.divf %88, %89 : vector<64x1xf32>
      %91 = vector.broadcast %90 : vector<64x1xf32> to vector<64x256xf32>
      %92 = arith.subf %84, %91 : vector<64x256xf32>
      %93 = arith.mulf %92, %92 : vector<64x256xf32>
      %cst_49 = arith.constant dense<0.000000e+00> : vector<64xf32>
      %94 = vector.multi_reduction <add>, %93, %cst_49 [1] : vector<64x256xf32> to vector<64xf32>
      %95 = vector.shape_cast %94 : vector<64xf32> to vector<64x1xf32>
      %cst_50 = arith.constant 2.560000e+02 : f32
      %96 = vector.broadcast %cst_50 : f32 to vector<64x1xf32>
      %97 = arith.divf %95, %96 : vector<64x1xf32>
      %98 = vector.broadcast %90 : vector<64x1xf32> to vector<64x256xf32>
      %99 = arith.subf %84, %98 : vector<64x256xf32>
      %cst_51 = arith.constant 9.99999974E-6 : f32
      %100 = vector.broadcast %cst_51 : f32 to vector<64x1xf32>
      %101 = arith.addf %97, %100 : vector<64x1xf32>
      %102 = math.rsqrt %101 : vector<64x1xf32>
      %103 = vector.broadcast %102 : vector<64x1xf32> to vector<64x256xf32>
      %104 = arith.mulf %99, %103 : vector<64x256xf32>
      %105 = vector.broadcast %85 : vector<1x256xf32> to vector<64x256xf32>
      %106 = arith.mulf %104, %105 : vector<64x256xf32>
      %107 = vector.broadcast %86 : vector<1x256xf32> to vector<64x256xf32>
      %108 = arith.addf %106, %107 : vector<64x256xf32>
      %c0_52 = arith.constant 0 : index
      %c0_53 = arith.constant 0 : index
      %109 = vector.load %arg17[%c0_52, %c0_53] : memref<128x256xf32, #tpu.memory_space<vmem>>, vector<64x256xf32>
      tpu.vector_store %arg17[%c0_52, %c0_53], %108 {strides = array<i32>} : memref<128x256xf32, #tpu.memory_space<vmem>>, vector<64x256xf32>,
      %110 = arith.truncf %108 : vector<64x256xf32> to vector<64x256xbf16>
      %c0_54 = arith.constant 0 : index
      %c0_55 = arith.constant 0 : index
      %111 = vector.load %arg18[%c0_54, %c0_55] : memref<128x256xbf16, #tpu.memory_space<vmem>>, vector<64x256xbf16>
      tpu.vector_store %arg18[%c0_54, %c0_55], %110 {strides = array<i32>} : memref<128x256xbf16, #tpu.memory_space<vmem>>, vector<64x256xbf16>,
      %cst_56 = arith.constant 0.000000e+00 : f32
      %112 = vector.broadcast %cst_56 : f32 to vector<64x256xf32>
      %113 = vector.extract_strided_slice %27 {offsets = [64, 0], sizes = [64, 128], strides = [1, 1]} : vector<128x768xf32> to vector<64x128xf32>
      %114 = arith.truncf %113 : vector<64x128xf32> to vector<64x128xbf16>
      %115 = vector.extract_strided_slice %27 {offsets = [64, 256], sizes = [64, 128], strides = [1, 1]} : vector<128x768xf32> to vector<64x128xf32>
      %116 = arith.truncf %115 : vector<64x128xf32> to vector<64x128xbf16>
      %117 = vector.extract_strided_slice %27 {offsets = [64, 512], sizes = [64, 128], strides = [1, 1]} : vector<128x768xf32> to vector<64x128xf32>
      %118 = arith.truncf %117 : vector<64x128xf32> to vector<64x128xbf16>
      %cst_57 = arith.constant dense<0.000000e+00> : vector<64x64xf32>
      %119 = tpu.matmul %114, %116, %cst_57 {dimension_numbers = #tpu.dot_dimension_numbers<[1], [1], [0], [0], [0, 0, 1, 0], [], []>} : vector<64x128xbf16>, vector<64x128xbf16>, vector<64x64xf32> -> vector<64x64xf32>
      %120 = arith.addf %119, %28 : vector<64x64xf32>
      %cst_58 = arith.constant dense<0xFF800000> : vector<64xf32>
      %121 = vector.multi_reduction <maximumf>, %120, %cst_58 [1] : vector<64x64xf32> to vector<64xf32>
      %122 = vector.shape_cast %121 : vector<64xf32> to vector<64x1xf32>
      %123 = vector.broadcast %122 : vector<64x1xf32> to vector<64x64xf32>
      %124 = arith.subf %120, %123 : vector<64x64xf32>
      %125 = math.exp %124 : vector<64x64xf32>
      %cst_59 = arith.constant dense<0.000000e+00> : vector<64xf32>
      %126 = vector.multi_reduction <add>, %125, %cst_59 [1] : vector<64x64xf32> to vector<64xf32>
      %127 = vector.shape_cast %126 : vector<64xf32> to vector<64x1xf32>
      %128 = tpu.reciprocal %127 {approx = true} : vector<64x1xf32> -> vector<64x1xf32>
      %129 = vector.broadcast %128 : vector<64x1xf32> to vector<64x64xf32>
      %130 = arith.mulf %125, %129 : vector<64x64xf32>
      %131 = arith.truncf %130 : vector<64x64xf32> to vector<64x64xbf16>
      %cst_60 = arith.constant dense<0.000000e+00> : vector<64x128xf32>
      %132 = tpu.matmul %131, %118, %cst_60 {dimension_numbers = #tpu.dot_dimension_numbers<[1], [0], [0], [1], [0, 0, 1, 1], [], []>} : vector<64x64xbf16>, vector<64x128xbf16>, vector<64x128xf32> -> vector<64x128xf32>
      %133 = arith.truncf %132 : vector<64x128xf32> to vector<64x128xbf16>
      %c0_61 = arith.constant 0 : index
      %c0_62 = arith.constant 0 : index
      %c0_63 = arith.constant 0 : index
      %134 = vector.load %arg6[%c0_61, %c0_62, %c0_63] : memref<2x128x256xbf16, #tpu.memory_space<vmem>>, vector<1x128x256xbf16>
      %135 = vector.shape_cast %134 : vector<1x128x256xbf16> to vector<128x256xbf16>
      %cst_64 = arith.constant dense<0.000000e+00> : vector<64x256xf32>
      %136 = tpu.matmul %133, %135, %cst_64 {dimension_numbers = #tpu.dot_dimension_numbers<[1], [0], [0], [1], [0, 0, 1, 1], [], []>} : vector<64x128xbf16>, vector<128x256xbf16>, vector<64x256xf32> -> vector<64x256xf32>
      %137 = arith.addf %112, %136 : vector<64x256xf32>
      %138 = vector.extract_strided_slice %27 {offsets = [64, 128], sizes = [64, 128], strides = [1, 1]} : vector<128x768xf32> to vector<64x128xf32>
      %139 = arith.truncf %138 : vector<64x128xf32> to vector<64x128xbf16>
      %140 = vector.extract_strided_slice %27 {offsets = [64, 384], sizes = [64, 128], strides = [1, 1]} : vector<128x768xf32> to vector<64x128xf32>
      %141 = arith.truncf %140 : vector<64x128xf32> to vector<64x128xbf16>
      %142 = vector.extract_strided_slice %27 {offsets = [64, 640], sizes = [64, 128], strides = [1, 1]} : vector<128x768xf32> to vector<64x128xf32>
      %143 = arith.truncf %142 : vector<64x128xf32> to vector<64x128xbf16>
      %cst_65 = arith.constant dense<0.000000e+00> : vector<64x64xf32>
      %144 = tpu.matmul %139, %141, %cst_65 {dimension_numbers = #tpu.dot_dimension_numbers<[1], [1], [0], [0], [0, 0, 1, 0], [], []>} : vector<64x128xbf16>, vector<64x128xbf16>, vector<64x64xf32> -> vector<64x64xf32>
      %145 = arith.addf %144, %28 : vector<64x64xf32>
      %cst_66 = arith.constant dense<0xFF800000> : vector<64xf32>
      %146 = vector.multi_reduction <maximumf>, %145, %cst_66 [1] : vector<64x64xf32> to vector<64xf32>
      %147 = vector.shape_cast %146 : vector<64xf32> to vector<64x1xf32>
      %148 = vector.broadcast %147 : vector<64x1xf32> to vector<64x64xf32>
      %149 = arith.subf %145, %148 : vector<64x64xf32>
      %150 = math.exp %149 : vector<64x64xf32>
      %cst_67 = arith.constant dense<0.000000e+00> : vector<64xf32>
      %151 = vector.multi_reduction <add>, %150, %cst_67 [1] : vector<64x64xf32> to vector<64xf32>
      %152 = vector.shape_cast %151 : vector<64xf32> to vector<64x1xf32>
      %153 = tpu.reciprocal %152 {approx = true} : vector<64x1xf32> -> vector<64x1xf32>
      %154 = vector.broadcast %153 : vector<64x1xf32> to vector<64x64xf32>
      %155 = arith.mulf %150, %154 : vector<64x64xf32>
      %156 = arith.truncf %155 : vector<64x64xf32> to vector<64x64xbf16>
      %cst_68 = arith.constant dense<0.000000e+00> : vector<64x128xf32>
      %157 = tpu.matmul %156, %143, %cst_68 {dimension_numbers = #tpu.dot_dimension_numbers<[1], [0], [0], [1], [0, 0, 1, 1], [], []>} : vector<64x64xbf16>, vector<64x128xbf16>, vector<64x128xf32> -> vector<64x128xf32>
      %158 = arith.truncf %157 : vector<64x128xf32> to vector<64x128xbf16>
      %c1_69 = arith.constant 1 : index
      %c0_70 = arith.constant 0 : index
      %c0_71 = arith.constant 0 : index
      %159 = vector.load %arg6[%c1_69, %c0_70, %c0_71] : memref<2x128x256xbf16, #tpu.memory_space<vmem>>, vector<1x128x256xbf16>
      %160 = vector.shape_cast %159 : vector<1x128x256xbf16> to vector<128x256xbf16>
      %cst_72 = arith.constant dense<0.000000e+00> : vector<64x256xf32>
      %161 = tpu.matmul %158, %160, %cst_72 {dimension_numbers = #tpu.dot_dimension_numbers<[1], [0], [0], [1], [0, 0, 1, 1], [], []>} : vector<64x128xbf16>, vector<128x256xbf16>, vector<64x256xf32> -> vector<64x256xf32>
      %162 = arith.addf %137, %161 : vector<64x256xf32>
      %163 = vector.extract_strided_slice %21 {offsets = [64, 0], sizes = [64, 256], strides = [1, 1]} : vector<128x256xf32> to vector<64x256xf32>
      %164 = arith.addf %163, %162 : vector<64x256xf32>
      %c0_73 = arith.constant 0 : index
      %c0_74 = arith.constant 0 : index
      %165 = vector.load %arg7[%c0_73, %c0_74] : memref<1x256xf32, #tpu.memory_space<vmem>>, vector<1x256xf32>
      %166 = vector.broadcast %165 : vector<1x256xf32> to vector<64x256xf32>
      %167 = arith.addf %164, %166 : vector<64x256xf32>
      %c0_75 = arith.constant 0 : index
      %c0_76 = arith.constant 0 : index
      %168 = vector.load %arg8[%c0_75, %c0_76] : memref<1x256xf32, #tpu.memory_space<vmem>>, vector<1x256xf32>
      %c0_77 = arith.constant 0 : index
      %c0_78 = arith.constant 0 : index
      %169 = vector.load %arg9[%c0_77, %c0_78] : memref<1x256xf32, #tpu.memory_space<vmem>>, vector<1x256xf32>
      %cst_79 = arith.constant dense<0.000000e+00> : vector<64xf32>
      %170 = vector.multi_reduction <add>, %167, %cst_79 [1] : vector<64x256xf32> to vector<64xf32>
      %171 = vector.shape_cast %170 : vector<64xf32> to vector<64x1xf32>
      %cst_80 = arith.constant 2.560000e+02 : f32
      %172 = vector.broadcast %cst_80 : f32 to vector<64x1xf32>
      %173 = arith.divf %171, %172 : vector<64x1xf32>
      %174 = vector.broadcast %173 : vector<64x1xf32> to vector<64x256xf32>
      %175 = arith.subf %167, %174 : vector<64x256xf32>
      %176 = arith.mulf %175, %175 : vector<64x256xf32>
      %cst_81 = arith.constant dense<0.000000e+00> : vector<64xf32>
      %177 = vector.multi_reduction <add>, %176, %cst_81 [1] : vector<64x256xf32> to vector<64xf32>
      %178 = vector.shape_cast %177 : vector<64xf32> to vector<64x1xf32>
      %cst_82 = arith.constant 2.560000e+02 : f32
      %179 = vector.broadcast %cst_82 : f32 to vector<64x1xf32>
      %180 = arith.divf %178, %179 : vector<64x1xf32>
      %181 = vector.broadcast %173 : vector<64x1xf32> to vector<64x256xf32>
      %182 = arith.subf %167, %181 : vector<64x256xf32>
      %cst_83 = arith.constant 9.99999974E-6 : f32
      %183 = vector.broadcast %cst_83 : f32 to vector<64x1xf32>
      %184 = arith.addf %180, %183 : vector<64x1xf32>
      %185 = math.rsqrt %184 : vector<64x1xf32>
      %186 = vector.broadcast %185 : vector<64x1xf32> to vector<64x256xf32>
      %187 = arith.mulf %182, %186 : vector<64x256xf32>
      %188 = vector.broadcast %168 : vector<1x256xf32> to vector<64x256xf32>
      %189 = arith.mulf %187, %188 : vector<64x256xf32>
      %190 = vector.broadcast %169 : vector<1x256xf32> to vector<64x256xf32>
      %191 = arith.addf %189, %190 : vector<64x256xf32>
      %c64 = arith.constant 64 : index
      %c0_84 = arith.constant 0 : index
      %192 = vector.load %arg17[%c64, %c0_84] : memref<128x256xf32, #tpu.memory_space<vmem>>, vector<64x256xf32>
      tpu.vector_store %arg17[%c64, %c0_84], %191 {strides = array<i32>} : memref<128x256xf32, #tpu.memory_space<vmem>>, vector<64x256xf32>,
      %193 = arith.truncf %191 : vector<64x256xf32> to vector<64x256xbf16>
      %c64_85 = arith.constant 64 : index
      %c0_86 = arith.constant 0 : index
      %194 = vector.load %arg18[%c64_85, %c0_86] : memref<128x256xbf16, #tpu.memory_space<vmem>>, vector<64x256xbf16>
      tpu.vector_store %arg18[%c64_85, %c0_86], %193 {strides = array<i32>} : memref<128x256xbf16, #tpu.memory_space<vmem>>, vector<64x256xbf16>,
      %cst_87 = arith.constant 0.000000e+00 : f32
      %195 = vector.broadcast %cst_87 : f32 to vector<128x256xf32>
      %c0_88 = arith.constant 0 : index
      %c0_89 = arith.constant 0 : index
      %196 = vector.load %arg19[%c0_88, %c0_89] : memref<128x256xf32, #tpu.memory_space<vmem>>, vector<128x256xf32>
      tpu.vector_store %arg19[%c0_88, %c0_89], %195 {strides = array<i32>} : memref<128x256xf32, #tpu.memory_space<vmem>>, vector<128x256xf32>,
    } else {
    }
    %c0 = arith.constant 0 : index
    %c0_1 = arith.constant 0 : index
    %3 = vector.load %arg18[%c0, %c0_1] : memref<128x256xbf16, #tpu.memory_space<vmem>>, vector<128x256xbf16>
    %c0_2 = arith.constant 0 : index
    %c0_3 = arith.constant 0 : index
    %4 = vector.load %arg10[%c0_2, %c0_3] : memref<256x256xbf16, #tpu.memory_space<vmem>>, vector<256x256xbf16>
    %cst = arith.constant dense<0.000000e+00> : vector<128x256xf32>
    %5 = tpu.matmul %3, %4, %cst {dimension_numbers = #tpu.dot_dimension_numbers<[1], [0], [0], [1], [0, 0, 1, 1], [], []>} : vector<128x256xbf16>, vector<256x256xbf16>, vector<128x256xf32> -> vector<128x256xf32>
    %c0_4 = arith.constant 0 : index
    %c0_5 = arith.constant 0 : index
    %6 = vector.load %arg11[%c0_4, %c0_5] : memref<1x256xf32, #tpu.memory_space<vmem>>, vector<1x256xf32>
    %7 = vector.broadcast %6 : vector<1x256xf32> to vector<128x256xf32>
    %8 = arith.addf %5, %7 : vector<128x256xf32>
    %cst_6 = arith.constant 0.000000e+00 : f32
    %9 = vector.broadcast %cst_6 : f32 to vector<128x256xf32>
    %10 = arith.maximumf %8, %9 : vector<128x256xf32>
    %c0_7 = arith.constant 0 : index
    %c0_8 = arith.constant 0 : index
    %11 = vector.load %arg19[%c0_7, %c0_8] : memref<128x256xf32, #tpu.memory_space<vmem>>, vector<128x256xf32>
    %12 = arith.truncf %10 : vector<128x256xf32> to vector<128x256xbf16>
    %c0_9 = arith.constant 0 : index
    %c0_10 = arith.constant 0 : index
    %13 = vector.load %arg12[%c0_9, %c0_10] : memref<256x256xbf16, #tpu.memory_space<vmem>>, vector<256x256xbf16>
    %cst_11 = arith.constant dense<0.000000e+00> : vector<128x256xf32>
    %14 = tpu.matmul %12, %13, %cst_11 {dimension_numbers = #tpu.dot_dimension_numbers<[1], [0], [0], [1], [0, 0, 1, 1], [], []>} : vector<128x256xbf16>, vector<256x256xbf16>, vector<128x256xf32> -> vector<128x256xf32>
    %15 = arith.addf %11, %14 : vector<128x256xf32>
    %c0_12 = arith.constant 0 : index
    %c0_13 = arith.constant 0 : index
    %16 = vector.load %arg19[%c0_12, %c0_13] : memref<128x256xf32, #tpu.memory_space<vmem>>, vector<128x256xf32>
    tpu.vector_store %arg19[%c0_12, %c0_13], %15 {strides = array<i32>} : memref<128x256xf32, #tpu.memory_space<vmem>>, vector<128x256xf32>,
    %c1_i32 = arith.constant 1 : i32
    %17 = arith.cmpi eq, %arg1, %c1_i32 : i32
    %18 = arith.extui %17 : i1 to i32
    %c0_i32_14 = arith.constant 0 : i32
    %19 = arith.cmpi ne, %18, %c0_i32_14 : i32
    scf.if %19 {
      %c0_15 = arith.constant 0 : index
      %c0_16 = arith.constant 0 : index
      %20 = vector.load %arg19[%c0_15, %c0_16] : memref<128x256xf32, #tpu.memory_space<vmem>>, vector<128x256xf32>
      %c0_17 = arith.constant 0 : index
      %c0_18 = arith.constant 0 : index
      %21 = vector.load %arg13[%c0_17, %c0_18] : memref<1x256xf32, #tpu.memory_space<vmem>>, vector<1x256xf32>
      %22 = vector.broadcast %21 : vector<1x256xf32> to vector<128x256xf32>
      %23 = arith.addf %20, %22 : vector<128x256xf32>
      %c0_19 = arith.constant 0 : index
      %c0_20 = arith.constant 0 : index
      %24 = vector.load %arg17[%c0_19, %c0_20] : memref<128x256xf32, #tpu.memory_space<vmem>>, vector<128x256xf32>
      %25 = arith.addf %24, %23 : vector<128x256xf32>
      %c0_21 = arith.constant 0 : index
      %c0_22 = arith.constant 0 : index
      %26 = vector.load %arg14[%c0_21, %c0_22] : memref<1x256xf32, #tpu.memory_space<vmem>>, vector<1x256xf32>
      %c0_23 = arith.constant 0 : index
      %c0_24 = arith.constant 0 : index
      %27 = vector.load %arg15[%c0_23, %c0_24] : memref<1x256xf32, #tpu.memory_space<vmem>>, vector<1x256xf32>
      %cst_25 = arith.constant dense<0.000000e+00> : vector<128xf32>
      %28 = vector.multi_reduction <add>, %25, %cst_25 [1] : vector<128x256xf32> to vector<128xf32>
      %29 = vector.shape_cast %28 : vector<128xf32> to vector<128x1xf32>
      %cst_26 = arith.constant 2.560000e+02 : f32
      %30 = vector.broadcast %cst_26 : f32 to vector<128x1xf32>
      %31 = arith.divf %29, %30 : vector<128x1xf32>
      %32 = vector.broadcast %31 : vector<128x1xf32> to vector<128x256xf32>
      %33 = arith.subf %25, %32 : vector<128x256xf32>
      %34 = arith.mulf %33, %33 : vector<128x256xf32>
      %cst_27 = arith.constant dense<0.000000e+00> : vector<128xf32>
      %35 = vector.multi_reduction <add>, %34, %cst_27 [1] : vector<128x256xf32> to vector<128xf32>
      %36 = vector.shape_cast %35 : vector<128xf32> to vector<128x1xf32>
      %cst_28 = arith.constant 2.560000e+02 : f32
      %37 = vector.broadcast %cst_28 : f32 to vector<128x1xf32>
      %38 = arith.divf %36, %37 : vector<128x1xf32>
      %39 = vector.broadcast %31 : vector<128x1xf32> to vector<128x256xf32>
      %40 = arith.subf %25, %39 : vector<128x256xf32>
      %cst_29 = arith.constant 9.99999974E-6 : f32
      %41 = vector.broadcast %cst_29 : f32 to vector<128x1xf32>
      %42 = arith.addf %38, %41 : vector<128x1xf32>
      %43 = math.rsqrt %42 : vector<128x1xf32>
      %44 = vector.broadcast %43 : vector<128x1xf32> to vector<128x256xf32>
      %45 = arith.mulf %40, %44 : vector<128x256xf32>
      %46 = vector.broadcast %26 : vector<1x256xf32> to vector<128x256xf32>
      %47 = arith.mulf %45, %46 : vector<128x256xf32>
      %48 = vector.broadcast %27 : vector<1x256xf32> to vector<128x256xf32>
      %49 = arith.addf %47, %48 : vector<128x256xf32>
      %50 = vector.shape_cast %49 : vector<128x256xf32> to vector<2x64x256xf32>
      %c0_30 = arith.constant 0 : index
      %c0_31 = arith.constant 0 : index
      %c0_32 = arith.constant 0 : index
      %51 = vector.load %arg16[%c0_30, %c0_31, %c0_32] : memref<2x64x256xf32, #tpu.memory_space<vmem>>, vector<2x64x256xf32>
      tpu.vector_store %arg16[%c0_30, %c0_31, %c0_32], %50 {strides = array<i32>} : memref<2x64x256xf32, #tpu.memory_space<vmem>>, vector<2x64x256xf32>,
    } else {
    }
    return
  }
  func.func @transform_0(%arg0: i32, %arg1: i32) -> (i32, i32, i32) {
    %c0_i32 = arith.constant 0 : i32
    %c0_i32_0 = arith.constant 0 : i32
    %c0_i32_1 = arith.constant 0 : i32
    return %arg0, %c0_i32, %c0_i32_0 : i32, i32, i32
  }
  func.func @transform_1(%arg0: i32, %arg1: i32) -> (i32, i32) {
    %c0_i32 = arith.constant 0 : i32
    %c0_i32_0 = arith.constant 0 : i32
    %c0_i32_1 = arith.constant 0 : i32
    return %c0_i32, %c0_i32_0 : i32, i32
  }
  func.func @transform_2(%arg0: i32, %arg1: i32) -> (i32, i32) {
    %c0_i32 = arith.constant 0 : i32
    %c0_i32_0 = arith.constant 0 : i32
    %c0_i32_1 = arith.constant 0 : i32
    return %c0_i32, %c0_i32_0 : i32, i32
  }
  func.func @transform_3(%arg0: i32, %arg1: i32) -> (i32, i32) {
    %c0_i32 = arith.constant 0 : i32
    %c0_i32_0 = arith.constant 0 : i32
    %c0_i32_1 = arith.constant 0 : i32
    return %c0_i32, %c0_i32_0 : i32, i32
  }
  func.func @transform_4(%arg0: i32, %arg1: i32) -> (i32, i32, i32) {
    %c0_i32 = arith.constant 0 : i32
    %c0_i32_0 = arith.constant 0 : i32
    %c0_i32_1 = arith.constant 0 : i32
    %c0_i32_2 = arith.constant 0 : i32
    return %c0_i32, %c0_i32_0, %c0_i32_1 : i32, i32, i32
  }
  func.func @transform_5(%arg0: i32, %arg1: i32) -> (i32, i32) {
    %c0_i32 = arith.constant 0 : i32
    %c0_i32_0 = arith.constant 0 : i32
    %c0_i32_1 = arith.constant 0 : i32
    return %c0_i32, %c0_i32_0 : i32, i32
  }
  func.func @transform_6(%arg0: i32, %arg1: i32) -> (i32, i32) {
    %c0_i32 = arith.constant 0 : i32
    %c0_i32_0 = arith.constant 0 : i32
    %c0_i32_1 = arith.constant 0 : i32
    return %c0_i32, %c0_i32_0 : i32, i32
  }
  func.func @transform_7(%arg0: i32, %arg1: i32) -> (i32, i32) {
    %c0_i32 = arith.constant 0 : i32
    %c0_i32_0 = arith.constant 0 : i32
    %c0_i32_1 = arith.constant 0 : i32
    return %c0_i32, %c0_i32_0 : i32, i32
  }
  func.func @transform_8(%arg0: i32, %arg1: i32) -> (i32, i32) {
    %c0_i32 = arith.constant 0 : i32
    %c0_i32_0 = arith.constant 0 : i32
    return %c0_i32, %arg1 : i32, i32
  }
  func.func @transform_9(%arg0: i32, %arg1: i32) -> (i32, i32) {
    %c0_i32 = arith.constant 0 : i32
    %c0_i32_0 = arith.constant 0 : i32
    return %c0_i32, %arg1 : i32, i32
  }
  func.func @transform_10(%arg0: i32, %arg1: i32) -> (i32, i32) {
    %c0_i32 = arith.constant 0 : i32
    %c0_i32_0 = arith.constant 0 : i32
    return %arg1, %c0_i32 : i32, i32
  }
  func.func @transform_11(%arg0: i32, %arg1: i32) -> (i32, i32) {
    %c0_i32 = arith.constant 0 : i32
    %c0_i32_0 = arith.constant 0 : i32
    %c0_i32_1 = arith.constant 0 : i32
    return %c0_i32, %c0_i32_0 : i32, i32
  }
  func.func @transform_12(%arg0: i32, %arg1: i32) -> (i32, i32) {
    %c0_i32 = arith.constant 0 : i32
    %c0_i32_0 = arith.constant 0 : i32
    %c0_i32_1 = arith.constant 0 : i32
    return %c0_i32, %c0_i32_0 : i32, i32
  }
  func.func @transform_13(%arg0: i32, %arg1: i32) -> (i32, i32) {
    %c0_i32 = arith.constant 0 : i32
    %c0_i32_0 = arith.constant 0 : i32
    %c0_i32_1 = arith.constant 0 : i32
    return %c0_i32, %c0_i32_0 : i32, i32
  }
  func.func @transform_14(%arg0: i32, %arg1: i32) -> (i32, i32, i32) {
    %c0_i32 = arith.constant 0 : i32
    %c0_i32_0 = arith.constant 0 : i32
    %c0_i32_1 = arith.constant 0 : i32
    return %arg0, %c0_i32, %c0_i32_0 : i32, i32, i32
  }
}

module attributes {stable_mosaic.version = 11 : i64} {
  func.func @encoder_layer_kernel(%arg0: i32, %arg1: i32, %arg2: memref<2x64x256xf32, #tpu.memory_space<vmem>>, %arg3: memref<64x64xf32, #tpu.memory_space<vmem>>, %arg4: memref<256x768xbf16, #tpu.memory_space<vmem>>, %arg5: memref<1x768xf32, #tpu.memory_space<vmem>>, %arg6: memref<2x128x256xbf16, #tpu.memory_space<vmem>>, %arg7: memref<1x256xf32, #tpu.memory_space<vmem>>, %arg8: memref<1x256xf32, #tpu.memory_space<vmem>>, %arg9: memref<1x256xf32, #tpu.memory_space<vmem>>, %arg10: memref<256x256xbf16, #tpu.memory_space<vmem>>, %arg11: memref<1x256xf32, #tpu.memory_space<vmem>>, %arg12: memref<256x256xbf16, #tpu.memory_space<vmem>>, %arg13: memref<1x256xf32, #tpu.memory_space<vmem>>, %arg14: memref<1x256xf32, #tpu.memory_space<vmem>>, %arg15: memref<1x256xf32, #tpu.memory_space<vmem>>, %arg16: memref<2x64x256xf32, #tpu.memory_space<vmem>>, %arg17: memref<128x256xf32, #tpu.memory_space<vmem>>, %arg18: memref<128x256xbf16, #tpu.memory_space<vmem>>, %arg19: memref<128x256xf32, #tpu.memory_space<vmem>>) attributes {dimension_semantics = [#tpu.dimension_semantics<parallel>, #tpu.dimension_semantics<arbitrary>], iteration_bounds = array<i64: 2, 2>, scalar_prefetch = 0 : i64, scratch_operands = 3 : i64, tpu.core_type = #tpu.core_type<tc>, window_params = [{transform_indices = @transform_0, window_bounds = array<i64: 2, 64, 256>}, {pipeline_mode = #tpu.pipeline_mode<synchronous>, transform_indices = @transform_1, window_bounds = array<i64: 64, 64>}, {pipeline_mode = #tpu.pipeline_mode<synchronous>, transform_indices = @transform_2, window_bounds = array<i64: 256, 768>}, {pipeline_mode = #tpu.pipeline_mode<synchronous>, transform_indices = @transform_3, window_bounds = array<i64: 1, 768>}, {pipeline_mode = #tpu.pipeline_mode<synchronous>, transform_indices = @transform_4, window_bounds = array<i64: 2, 128, 256>}, {pipeline_mode = #tpu.pipeline_mode<synchronous>, transform_indices = @transform_5, window_bounds = array<i64: 1, 256>}, {pipeline_mode = #tpu.pipeline_mode<synchronous>, transform_indices = @transform_6, window_bounds = array<i64: 1, 256>}, {pipeline_mode = #tpu.pipeline_mode<synchronous>, transform_indices = @transform_7, window_bounds = array<i64: 1, 256>}, {transform_indices = @transform_8, window_bounds = array<i64: 256, 256>}, {transform_indices = @transform_9, window_bounds = array<i64: 1, 256>}, {transform_indices = @transform_10, window_bounds = array<i64: 256, 256>}, {pipeline_mode = #tpu.pipeline_mode<synchronous>, transform_indices = @transform_11, window_bounds = array<i64: 1, 256>}, {pipeline_mode = #tpu.pipeline_mode<synchronous>, transform_indices = @transform_12, window_bounds = array<i64: 1, 256>}, {pipeline_mode = #tpu.pipeline_mode<synchronous>, transform_indices = @transform_13, window_bounds = array<i64: 1, 256>}, {transform_indices = @transform_14, window_bounds = array<i64: 2, 64, 256>}]} {
    %c0_i32 = arith.constant 0 : i32
    %0 = arith.cmpi eq, %arg1, %c0_i32 : i32
    %1 = arith.extui %0 : i1 to i32
    %c0_i32_0 = arith.constant 0 : i32
    %2 = arith.cmpi ne, %1, %c0_i32_0 : i32
    scf.if %2 {
      %c0_15 = arith.constant 0 : index
      %c0_16 = arith.constant 0 : index
      %c0_17 = arith.constant 0 : index
      %20 = vector.load %arg2[%c0_15, %c0_16, %c0_17] : memref<2x64x256xf32, #tpu.memory_space<vmem>>, vector<2x64x256xf32>
      %21 = vector.shape_cast %20 : vector<2x64x256xf32> to vector<128x256xf32>
      %22 = arith.truncf %21 : vector<128x256xf32> to vector<128x256xbf16>
      %c0_18 = arith.constant 0 : index
      %c0_19 = arith.constant 0 : index
      %23 = vector.load %arg4[%c0_18, %c0_19] : memref<256x768xbf16, #tpu.memory_space<vmem>>, vector<256x768xbf16>
      %cst_20 = arith.constant dense<0.000000e+00> : vector<128x768xf32>
      %24 = tpu.matmul %22, %23, %cst_20 {dimension_numbers = #tpu.dot_dimension_numbers<[1], [0], [0], [1], [0, 0, 1, 1], [], []>} : vector<128x256xbf16>, vector<256x768xbf16>, vector<128x768xf32> -> vector<128x768xf32>
      %c0_21 = arith.constant 0 : index
      %c0_22 = arith.constant 0 : index
      %25 = vector.load %arg5[%c0_21, %c0_22] : memref<1x768xf32, #tpu.memory_space<vmem>>, vector<1x768xf32>
      %26 = vector.broadcast %25 : vector<1x768xf32> to vector<128x768xf32>
      %27 = arith.addf %24, %26 : vector<128x768xf32>
      %c0_23 = arith.constant 0 : index
      %c0_24 = arith.constant 0 : index
      %28 = vector.load %arg3[%c0_23, %c0_24] : memref<64x64xf32, #tpu.memory_space<vmem>>, vector<64x64xf32>
      %cst_25 = arith.constant 0.000000e+00 : f32
      %29 = vector.broadcast %cst_25 : f32 to vector<64x256xf32>
      %30 = vector.extract_strided_slice %27 {offsets = [0, 0], sizes = [64, 128], strides = [1, 1]} : vector<128x768xf32> to vector<64x128xf32>
      %31 = arith.truncf %30 : vector<64x128xf32> to vector<64x128xbf16>
      %32 = vector.extract_strided_slice %27 {offsets = [0, 256], sizes = [64, 128], strides = [1, 1]} : vector<128x768xf32> to vector<64x128xf32>
      %33 = arith.truncf %32 : vector<64x128xf32> to vector<64x128xbf16>
      %34 = vector.extract_strided_slice %27 {offsets = [0, 512], sizes = [64, 128], strides = [1, 1]} : vector<128x768xf32> to vector<64x128xf32>
      %35 = arith.truncf %34 : vector<64x128xf32> to vector<64x128xbf16>
      %cst_26 = arith.constant dense<0.000000e+00> : vector<64x64xf32>
      %36 = tpu.matmul %31, %33, %cst_26 {dimension_numbers = #tpu.dot_dimension_numbers<[1], [1], [0], [0], [0, 0, 1, 0], [], []>} : vector<64x128xbf16>, vector<64x128xbf16>, vector<64x64xf32> -> vector<64x64xf32>
      %37 = arith.addf %36, %28 : vector<64x64xf32>
      %cst_27 = arith.constant dense<0xFF800000> : vector<64xf32>
      %38 = vector.multi_reduction <maximumf>, %37, %cst_27 [1] : vector<64x64xf32> to vector<64xf32>
      %39 = vector.shape_cast %38 : vector<64xf32> to vector<64x1xf32>
      %40 = vector.broadcast %39 : vector<64x1xf32> to vector<64x64xf32>
      %41 = arith.subf %37, %40 : vector<64x64xf32>
      %42 = math.exp %41 : vector<64x64xf32>
      %cst_28 = arith.constant dense<0.000000e+00> : vector<64xf32>
      %43 = vector.multi_reduction <add>, %42, %cst_28 [1] : vector<64x64xf32> to vector<64xf32>
      %44 = vector.shape_cast %43 : vector<64xf32> to vector<64x1xf32>
      %45 = tpu.reciprocal %44 {approx = true} : vector<64x1xf32> -> vector<64x1xf32>
      %46 = vector.broadcast %45 : vector<64x1xf32> to vector<64x64xf32>
      %47 = arith.mulf %42, %46 : vector<64x64xf32>
      %48 = arith.truncf %47 : vector<64x64xf32> to vector<64x64xbf16>
      %cst_29 = arith.constant dense<0.000000e+00> : vector<64x128xf32>
      %49 = tpu.matmul %48, %35, %cst_29 {dimension_numbers = #tpu.dot_dimension_numbers<[1], [0], [0], [1], [0, 0, 1, 1], [], []>} : vector<64x64xbf16>, vector<64x128xbf16>, vector<64x128xf32> -> vector<64x128xf32>
      %50 = arith.truncf %49 : vector<64x128xf32> to vector<64x128xbf16>
      %c0_30 = arith.constant 0 : index
      %c0_31 = arith.constant 0 : index
      %c0_32 = arith.constant 0 : index
      %51 = vector.load %arg6[%c0_30, %c0_31, %c0_32] : memref<2x128x256xbf16, #tpu.memory_space<vmem>>, vector<1x128x256xbf16>
      %52 = vector.shape_cast %51 : vector<1x128x256xbf16> to vector<128x256xbf16>
      %cst_33 = arith.constant dense<0.000000e+00> : vector<64x256xf32>
      %53 = tpu.matmul %50, %52, %cst_33 {dimension_numbers = #tpu.dot_dimension_numbers<[1], [0], [0], [1], [0, 0, 1, 1], [], []>} : vector<64x128xbf16>, vector<128x256xbf16>, vector<64x256xf32> -> vector<64x256xf32>
      %54 = arith.addf %29, %53 : vector<64x256xf32>
      %55 = vector.extract_strided_slice %27 {offsets = [0, 128], sizes = [64, 128], strides = [1, 1]} : vector<128x768xf32> to vector<64x128xf32>
      %56 = arith.truncf %55 : vector<64x128xf32> to vector<64x128xbf16>
      %57 = vector.extract_strided_slice %27 {offsets = [0, 384], sizes = [64, 128], strides = [1, 1]} : vector<128x768xf32> to vector<64x128xf32>
      %58 = arith.truncf %57 : vector<64x128xf32> to vector<64x128xbf16>
      %59 = vector.extract_strided_slice %27 {offsets = [0, 640], sizes = [64, 128], strides = [1, 1]} : vector<128x768xf32> to vector<64x128xf32>
      %60 = arith.truncf %59 : vector<64x128xf32> to vector<64x128xbf16>
      %cst_34 = arith.constant dense<0.000000e+00> : vector<64x64xf32>
      %61 = tpu.matmul %56, %58, %cst_34 {dimension_numbers = #tpu.dot_dimension_numbers<[1], [1], [0], [0], [0, 0, 1, 0], [], []>} : vector<64x128xbf16>, vector<64x128xbf16>, vector<64x64xf32> -> vector<64x64xf32>
      %62 = arith.addf %61, %28 : vector<64x64xf32>
      %cst_35 = arith.constant dense<0xFF800000> : vector<64xf32>
      %63 = vector.multi_reduction <maximumf>, %62, %cst_35 [1] : vector<64x64xf32> to vector<64xf32>
      %64 = vector.shape_cast %63 : vector<64xf32> to vector<64x1xf32>
      %65 = vector.broadcast %64 : vector<64x1xf32> to vector<64x64xf32>
      %66 = arith.subf %62, %65 : vector<64x64xf32>
      %67 = math.exp %66 : vector<64x64xf32>
      %cst_36 = arith.constant dense<0.000000e+00> : vector<64xf32>
      %68 = vector.multi_reduction <add>, %67, %cst_36 [1] : vector<64x64xf32> to vector<64xf32>
      %69 = vector.shape_cast %68 : vector<64xf32> to vector<64x1xf32>
      %70 = tpu.reciprocal %69 {approx = true} : vector<64x1xf32> -> vector<64x1xf32>
      %71 = vector.broadcast %70 : vector<64x1xf32> to vector<64x64xf32>
      %72 = arith.mulf %67, %71 : vector<64x64xf32>
      %73 = arith.truncf %72 : vector<64x64xf32> to vector<64x64xbf16>
      %cst_37 = arith.constant dense<0.000000e+00> : vector<64x128xf32>
      %74 = tpu.matmul %73, %60, %cst_37 {dimension_numbers = #tpu.dot_dimension_numbers<[1], [0], [0], [1], [0, 0, 1, 1], [], []>} : vector<64x64xbf16>, vector<64x128xbf16>, vector<64x128xf32> -> vector<64x128xf32>
      %75 = arith.truncf %74 : vector<64x128xf32> to vector<64x128xbf16>
      %c1 = arith.constant 1 : index
      %c0_38 = arith.constant 0 : index
      %c0_39 = arith.constant 0 : index
      %76 = vector.load %arg6[%c1, %c0_38, %c0_39] : memref<2x128x256xbf16, #tpu.memory_space<vmem>>, vector<1x128x256xbf16>
      %77 = vector.shape_cast %76 : vector<1x128x256xbf16> to vector<128x256xbf16>
      %cst_40 = arith.constant dense<0.000000e+00> : vector<64x256xf32>
      %78 = tpu.matmul %75, %77, %cst_40 {dimension_numbers = #tpu.dot_dimension_numbers<[1], [0], [0], [1], [0, 0, 1, 1], [], []>} : vector<64x128xbf16>, vector<128x256xbf16>, vector<64x256xf32> -> vector<64x256xf32>
      %79 = arith.addf %54, %78 : vector<64x256xf32>
      %80 = vector.extract_strided_slice %21 {offsets = [0, 0], sizes = [64, 256], strides = [1, 1]} : vector<128x256xf32> to vector<64x256xf32>
      %81 = arith.addf %80, %79 : vector<64x256xf32>
      %c0_41 = arith.constant 0 : index
      %c0_42 = arith.constant 0 : index
      %82 = vector.load %arg7[%c0_41, %c0_42] : memref<1x256xf32, #tpu.memory_space<vmem>>, vector<1x256xf32>
      %83 = vector.broadcast %82 : vector<1x256xf32> to vector<64x256xf32>
      %84 = arith.addf %81, %83 : vector<64x256xf32>
      %c0_43 = arith.constant 0 : index
      %c0_44 = arith.constant 0 : index
      %85 = vector.load %arg8[%c0_43, %c0_44] : memref<1x256xf32, #tpu.memory_space<vmem>>, vector<1x256xf32>
      %c0_45 = arith.constant 0 : index
      %c0_46 = arith.constant 0 : index
      %86 = vector.load %arg9[%c0_45, %c0_46] : memref<1x256xf32, #tpu.memory_space<vmem>>, vector<1x256xf32>
      %cst_47 = arith.constant dense<0.000000e+00> : vector<64xf32>
      %87 = vector.multi_reduction <add>, %84, %cst_47 [1] : vector<64x256xf32> to vector<64xf32>
      %88 = vector.shape_cast %87 : vector<64xf32> to vector<64x1xf32>
      %cst_48 = arith.constant 2.560000e+02 : f32
      %89 = vector.broadcast %cst_48 : f32 to vector<64x1xf32>
      %90 = arith.divf %88, %89 : vector<64x1xf32>
      %91 = vector.broadcast %90 : vector<64x1xf32> to vector<64x256xf32>
      %92 = arith.subf %84, %91 : vector<64x256xf32>
      %93 = arith.mulf %92, %92 : vector<64x256xf32>
      %cst_49 = arith.constant dense<0.000000e+00> : vector<64xf32>
      %94 = vector.multi_reduction <add>, %93, %cst_49 [1] : vector<64x256xf32> to vector<64xf32>
      %95 = vector.shape_cast %94 : vector<64xf32> to vector<64x1xf32>
      %cst_50 = arith.constant 2.560000e+02 : f32
      %96 = vector.broadcast %cst_50 : f32 to vector<64x1xf32>
      %97 = arith.divf %95, %96 : vector<64x1xf32>
      %98 = vector.broadcast %90 : vector<64x1xf32> to vector<64x256xf32>
      %99 = arith.subf %84, %98 : vector<64x256xf32>
      %cst_51 = arith.constant 9.99999974E-6 : f32
      %100 = vector.broadcast %cst_51 : f32 to vector<64x1xf32>
      %101 = arith.addf %97, %100 : vector<64x1xf32>
      %102 = math.rsqrt %101 : vector<64x1xf32>
      %103 = vector.broadcast %102 : vector<64x1xf32> to vector<64x256xf32>
      %104 = arith.mulf %99, %103 : vector<64x256xf32>
      %105 = vector.broadcast %85 : vector<1x256xf32> to vector<64x256xf32>
      %106 = arith.mulf %104, %105 : vector<64x256xf32>
      %107 = vector.broadcast %86 : vector<1x256xf32> to vector<64x256xf32>
      %108 = arith.addf %106, %107 : vector<64x256xf32>
      %c0_52 = arith.constant 0 : index
      %c0_53 = arith.constant 0 : index
      %109 = vector.load %arg17[%c0_52, %c0_53] : memref<128x256xf32, #tpu.memory_space<vmem>>, vector<64x256xf32>
      tpu.vector_store %arg17[%c0_52, %c0_53], %108 {strides = array<i32>} : memref<128x256xf32, #tpu.memory_space<vmem>>, vector<64x256xf32>,
      %110 = arith.truncf %108 : vector<64x256xf32> to vector<64x256xbf16>
      %c0_54 = arith.constant 0 : index
      %c0_55 = arith.constant 0 : index
      %111 = vector.load %arg18[%c0_54, %c0_55] : memref<128x256xbf16, #tpu.memory_space<vmem>>, vector<64x256xbf16>
      tpu.vector_store %arg18[%c0_54, %c0_55], %110 {strides = array<i32>} : memref<128x256xbf16, #tpu.memory_space<vmem>>, vector<64x256xbf16>,
      %cst_56 = arith.constant 0.000000e+00 : f32
      %112 = vector.broadcast %cst_56 : f32 to vector<64x256xf32>
      %113 = vector.extract_strided_slice %27 {offsets = [64, 0], sizes = [64, 128], strides = [1, 1]} : vector<128x768xf32> to vector<64x128xf32>
      %114 = arith.truncf %113 : vector<64x128xf32> to vector<64x128xbf16>
      %115 = vector.extract_strided_slice %27 {offsets = [64, 256], sizes = [64, 128], strides = [1, 1]} : vector<128x768xf32> to vector<64x128xf32>
      %116 = arith.truncf %115 : vector<64x128xf32> to vector<64x128xbf16>
      %117 = vector.extract_strided_slice %27 {offsets = [64, 512], sizes = [64, 128], strides = [1, 1]} : vector<128x768xf32> to vector<64x128xf32>
      %118 = arith.truncf %117 : vector<64x128xf32> to vector<64x128xbf16>
      %cst_57 = arith.constant dense<0.000000e+00> : vector<64x64xf32>
      %119 = tpu.matmul %114, %116, %cst_57 {dimension_numbers = #tpu.dot_dimension_numbers<[1], [1], [0], [0], [0, 0, 1, 0], [], []>} : vector<64x128xbf16>, vector<64x128xbf16>, vector<64x64xf32> -> vector<64x64xf32>
      %120 = arith.addf %119, %28 : vector<64x64xf32>
      %cst_58 = arith.constant dense<0xFF800000> : vector<64xf32>
      %121 = vector.multi_reduction <maximumf>, %120, %cst_58 [1] : vector<64x64xf32> to vector<64xf32>
      %122 = vector.shape_cast %121 : vector<64xf32> to vector<64x1xf32>
      %123 = vector.broadcast %122 : vector<64x1xf32> to vector<64x64xf32>
      %124 = arith.subf %120, %123 : vector<64x64xf32>
      %125 = math.exp %124 : vector<64x64xf32>
      %cst_59 = arith.constant dense<0.000000e+00> : vector<64xf32>
      %126 = vector.multi_reduction <add>, %125, %cst_59 [1] : vector<64x64xf32> to vector<64xf32>
      %127 = vector.shape_cast %126 : vector<64xf32> to vector<64x1xf32>
      %128 = tpu.reciprocal %127 {approx = true} : vector<64x1xf32> -> vector<64x1xf32>
      %129 = vector.broadcast %128 : vector<64x1xf32> to vector<64x64xf32>
      %130 = arith.mulf %125, %129 : vector<64x64xf32>
      %131 = arith.truncf %130 : vector<64x64xf32> to vector<64x64xbf16>
      %cst_60 = arith.constant dense<0.000000e+00> : vector<64x128xf32>
      %132 = tpu.matmul %131, %118, %cst_60 {dimension_numbers = #tpu.dot_dimension_numbers<[1], [0], [0], [1], [0, 0, 1, 1], [], []>} : vector<64x64xbf16>, vector<64x128xbf16>, vector<64x128xf32> -> vector<64x128xf32>
      %133 = arith.truncf %132 : vector<64x128xf32> to vector<64x128xbf16>
      %c0_61 = arith.constant 0 : index
      %c0_62 = arith.constant 0 : index
      %c0_63 = arith.constant 0 : index
      %134 = vector.load %arg6[%c0_61, %c0_62, %c0_63] : memref<2x128x256xbf16, #tpu.memory_space<vmem>>, vector<1x128x256xbf16>
      %135 = vector.shape_cast %134 : vector<1x128x256xbf16> to vector<128x256xbf16>
      %cst_64 = arith.constant dense<0.000000e+00> : vector<64x256xf32>
      %136 = tpu.matmul %133, %135, %cst_64 {dimension_numbers = #tpu.dot_dimension_numbers<[1], [0], [0], [1], [0, 0, 1, 1], [], []>} : vector<64x128xbf16>, vector<128x256xbf16>, vector<64x256xf32> -> vector<64x256xf32>
      %137 = arith.addf %112, %136 : vector<64x256xf32>
      %138 = vector.extract_strided_slice %27 {offsets = [64, 128], sizes = [64, 128], strides = [1, 1]} : vector<128x768xf32> to vector<64x128xf32>
      %139 = arith.truncf %138 : vector<64x128xf32> to vector<64x128xbf16>
      %140 = vector.extract_strided_slice %27 {offsets = [64, 384], sizes = [64, 128], strides = [1, 1]} : vector<128x768xf32> to vector<64x128xf32>
      %141 = arith.truncf %140 : vector<64x128xf32> to vector<64x128xbf16>
      %142 = vector.extract_strided_slice %27 {offsets = [64, 640], sizes = [64, 128], strides = [1, 1]} : vector<128x768xf32> to vector<64x128xf32>
      %143 = arith.truncf %142 : vector<64x128xf32> to vector<64x128xbf16>
      %cst_65 = arith.constant dense<0.000000e+00> : vector<64x64xf32>
      %144 = tpu.matmul %139, %141, %cst_65 {dimension_numbers = #tpu.dot_dimension_numbers<[1], [1], [0], [0], [0, 0, 1, 0], [], []>} : vector<64x128xbf16>, vector<64x128xbf16>, vector<64x64xf32> -> vector<64x64xf32>
      %145 = arith.addf %144, %28 : vector<64x64xf32>
      %cst_66 = arith.constant dense<0xFF800000> : vector<64xf32>
      %146 = vector.multi_reduction <maximumf>, %145, %cst_66 [1] : vector<64x64xf32> to vector<64xf32>
      %147 = vector.shape_cast %146 : vector<64xf32> to vector<64x1xf32>
      %148 = vector.broadcast %147 : vector<64x1xf32> to vector<64x64xf32>
      %149 = arith.subf %145, %148 : vector<64x64xf32>
      %150 = math.exp %149 : vector<64x64xf32>
      %cst_67 = arith.constant dense<0.000000e+00> : vector<64xf32>
      %151 = vector.multi_reduction <add>, %150, %cst_67 [1] : vector<64x64xf32> to vector<64xf32>
      %152 = vector.shape_cast %151 : vector<64xf32> to vector<64x1xf32>
      %153 = tpu.reciprocal %152 {approx = true} : vector<64x1xf32> -> vector<64x1xf32>
      %154 = vector.broadcast %153 : vector<64x1xf32> to vector<64x64xf32>
      %155 = arith.mulf %150, %154 : vector<64x64xf32>
      %156 = arith.truncf %155 : vector<64x64xf32> to vector<64x64xbf16>
      %cst_68 = arith.constant dense<0.000000e+00> : vector<64x128xf32>
      %157 = tpu.matmul %156, %143, %cst_68 {dimension_numbers = #tpu.dot_dimension_numbers<[1], [0], [0], [1], [0, 0, 1, 1], [], []>} : vector<64x64xbf16>, vector<64x128xbf16>, vector<64x128xf32> -> vector<64x128xf32>
      %158 = arith.truncf %157 : vector<64x128xf32> to vector<64x128xbf16>
      %c1_69 = arith.constant 1 : index
      %c0_70 = arith.constant 0 : index
      %c0_71 = arith.constant 0 : index
      %159 = vector.load %arg6[%c1_69, %c0_70, %c0_71] : memref<2x128x256xbf16, #tpu.memory_space<vmem>>, vector<1x128x256xbf16>
      %160 = vector.shape_cast %159 : vector<1x128x256xbf16> to vector<128x256xbf16>
      %cst_72 = arith.constant dense<0.000000e+00> : vector<64x256xf32>
      %161 = tpu.matmul %158, %160, %cst_72 {dimension_numbers = #tpu.dot_dimension_numbers<[1], [0], [0], [1], [0, 0, 1, 1], [], []>} : vector<64x128xbf16>, vector<128x256xbf16>, vector<64x256xf32> -> vector<64x256xf32>
      %162 = arith.addf %137, %161 : vector<64x256xf32>
      %163 = vector.extract_strided_slice %21 {offsets = [64, 0], sizes = [64, 256], strides = [1, 1]} : vector<128x256xf32> to vector<64x256xf32>
      %164 = arith.addf %163, %162 : vector<64x256xf32>
      %c0_73 = arith.constant 0 : index
      %c0_74 = arith.constant 0 : index
      %165 = vector.load %arg7[%c0_73, %c0_74] : memref<1x256xf32, #tpu.memory_space<vmem>>, vector<1x256xf32>
      %166 = vector.broadcast %165 : vector<1x256xf32> to vector<64x256xf32>
      %167 = arith.addf %164, %166 : vector<64x256xf32>
      %c0_75 = arith.constant 0 : index
      %c0_76 = arith.constant 0 : index
      %168 = vector.load %arg8[%c0_75, %c0_76] : memref<1x256xf32, #tpu.memory_space<vmem>>, vector<1x256xf32>
      %c0_77 = arith.constant 0 : index
      %c0_78 = arith.constant 0 : index
      %169 = vector.load %arg9[%c0_77, %c0_78] : memref<1x256xf32, #tpu.memory_space<vmem>>, vector<1x256xf32>
      %cst_79 = arith.constant dense<0.000000e+00> : vector<64xf32>
      %170 = vector.multi_reduction <add>, %167, %cst_79 [1] : vector<64x256xf32> to vector<64xf32>
      %171 = vector.shape_cast %170 : vector<64xf32> to vector<64x1xf32>
      %cst_80 = arith.constant 2.560000e+02 : f32
      %172 = vector.broadcast %cst_80 : f32 to vector<64x1xf32>
      %173 = arith.divf %171, %172 : vector<64x1xf32>
      %174 = vector.broadcast %173 : vector<64x1xf32> to vector<64x256xf32>
      %175 = arith.subf %167, %174 : vector<64x256xf32>
      %176 = arith.mulf %175, %175 : vector<64x256xf32>
      %cst_81 = arith.constant dense<0.000000e+00> : vector<64xf32>
      %177 = vector.multi_reduction <add>, %176, %cst_81 [1] : vector<64x256xf32> to vector<64xf32>
      %178 = vector.shape_cast %177 : vector<64xf32> to vector<64x1xf32>
      %cst_82 = arith.constant 2.560000e+02 : f32
      %179 = vector.broadcast %cst_82 : f32 to vector<64x1xf32>
      %180 = arith.divf %178, %179 : vector<64x1xf32>
      %181 = vector.broadcast %173 : vector<64x1xf32> to vector<64x256xf32>
      %182 = arith.subf %167, %181 : vector<64x256xf32>
      %cst_83 = arith.constant 9.99999974E-6 : f32
      %183 = vector.broadcast %cst_83 : f32 to vector<64x1xf32>
      %184 = arith.addf %180, %183 : vector<64x1xf32>
      %185 = math.rsqrt %184 : vector<64x1xf32>
      %186 = vector.broadcast %185 : vector<64x1xf32> to vector<64x256xf32>
      %187 = arith.mulf %182, %186 : vector<64x256xf32>
      %188 = vector.broadcast %168 : vector<1x256xf32> to vector<64x256xf32>
      %189 = arith.mulf %187, %188 : vector<64x256xf32>
      %190 = vector.broadcast %169 : vector<1x256xf32> to vector<64x256xf32>
      %191 = arith.addf %189, %190 : vector<64x256xf32>
      %c64 = arith.constant 64 : index
      %c0_84 = arith.constant 0 : index
      %192 = vector.load %arg17[%c64, %c0_84] : memref<128x256xf32, #tpu.memory_space<vmem>>, vector<64x256xf32>
      tpu.vector_store %arg17[%c64, %c0_84], %191 {strides = array<i32>} : memref<128x256xf32, #tpu.memory_space<vmem>>, vector<64x256xf32>,
      %193 = arith.truncf %191 : vector<64x256xf32> to vector<64x256xbf16>
      %c64_85 = arith.constant 64 : index
      %c0_86 = arith.constant 0 : index
      %194 = vector.load %arg18[%c64_85, %c0_86] : memref<128x256xbf16, #tpu.memory_space<vmem>>, vector<64x256xbf16>
      tpu.vector_store %arg18[%c64_85, %c0_86], %193 {strides = array<i32>} : memref<128x256xbf16, #tpu.memory_space<vmem>>, vector<64x256xbf16>,
      %cst_87 = arith.constant 0.000000e+00 : f32
      %195 = vector.broadcast %cst_87 : f32 to vector<128x256xf32>
      %c0_88 = arith.constant 0 : index
      %c0_89 = arith.constant 0 : index
      %196 = vector.load %arg19[%c0_88, %c0_89] : memref<128x256xf32, #tpu.memory_space<vmem>>, vector<128x256xf32>
      tpu.vector_store %arg19[%c0_88, %c0_89], %195 {strides = array<i32>} : memref<128x256xf32, #tpu.memory_space<vmem>>, vector<128x256xf32>,
    } else {
    }
    %c0 = arith.constant 0 : index
    %c0_1 = arith.constant 0 : index
    %3 = vector.load %arg18[%c0, %c0_1] : memref<128x256xbf16, #tpu.memory_space<vmem>>, vector<128x256xbf16>
    %c0_2 = arith.constant 0 : index
    %c0_3 = arith.constant 0 : index
    %4 = vector.load %arg10[%c0_2, %c0_3] : memref<256x256xbf16, #tpu.memory_space<vmem>>, vector<256x256xbf16>
    %cst = arith.constant dense<0.000000e+00> : vector<128x256xf32>
    %5 = tpu.matmul %3, %4, %cst {dimension_numbers = #tpu.dot_dimension_numbers<[1], [0], [0], [1], [0, 0, 1, 1], [], []>} : vector<128x256xbf16>, vector<256x256xbf16>, vector<128x256xf32> -> vector<128x256xf32>
    %c0_4 = arith.constant 0 : index
    %c0_5 = arith.constant 0 : index
    %6 = vector.load %arg11[%c0_4, %c0_5] : memref<1x256xf32, #tpu.memory_space<vmem>>, vector<1x256xf32>
    %7 = vector.broadcast %6 : vector<1x256xf32> to vector<128x256xf32>
    %8 = arith.addf %5, %7 : vector<128x256xf32>
    %cst_6 = arith.constant 0.000000e+00 : f32
    %9 = vector.broadcast %cst_6 : f32 to vector<128x256xf32>
    %10 = arith.maximumf %8, %9 : vector<128x256xf32>
    %c0_7 = arith.constant 0 : index
    %c0_8 = arith.constant 0 : index
    %11 = vector.load %arg19[%c0_7, %c0_8] : memref<128x256xf32, #tpu.memory_space<vmem>>, vector<128x256xf32>
    %12 = arith.truncf %10 : vector<128x256xf32> to vector<128x256xbf16>
    %c0_9 = arith.constant 0 : index
    %c0_10 = arith.constant 0 : index
    %13 = vector.load %arg12[%c0_9, %c0_10] : memref<256x256xbf16, #tpu.memory_space<vmem>>, vector<256x256xbf16>
    %cst_11 = arith.constant dense<0.000000e+00> : vector<128x256xf32>
    %14 = tpu.matmul %12, %13, %cst_11 {dimension_numbers = #tpu.dot_dimension_numbers<[1], [0], [0], [1], [0, 0, 1, 1], [], []>} : vector<128x256xbf16>, vector<256x256xbf16>, vector<128x256xf32> -> vector<128x256xf32>
    %15 = arith.addf %11, %14 : vector<128x256xf32>
    %c0_12 = arith.constant 0 : index
    %c0_13 = arith.constant 0 : index
    %16 = vector.load %arg19[%c0_12, %c0_13] : memref<128x256xf32, #tpu.memory_space<vmem>>, vector<128x256xf32>
    tpu.vector_store %arg19[%c0_12, %c0_13], %15 {strides = array<i32>} : memref<128x256xf32, #tpu.memory_space<vmem>>, vector<128x256xf32>,
    %c1_i32 = arith.constant 1 : i32
    %17 = arith.cmpi eq, %arg1, %c1_i32 : i32
    %18 = arith.extui %17 : i1 to i32
    %c0_i32_14 = arith.constant 0 : i32
    %19 = arith.cmpi ne, %18, %c0_i32_14 : i32
    scf.if %19 {
      %c0_15 = arith.constant 0 : index
      %c0_16 = arith.constant 0 : index
      %20 = vector.load %arg19[%c0_15, %c0_16] : memref<128x256xf32, #tpu.memory_space<vmem>>, vector<128x256xf32>
      %c0_17 = arith.constant 0 : index
      %c0_18 = arith.constant 0 : index
      %21 = vector.load %arg13[%c0_17, %c0_18] : memref<1x256xf32, #tpu.memory_space<vmem>>, vector<1x256xf32>
      %22 = vector.broadcast %21 : vector<1x256xf32> to vector<128x256xf32>
      %23 = arith.addf %20, %22 : vector<128x256xf32>
      %c0_19 = arith.constant 0 : index
      %c0_20 = arith.constant 0 : index
      %24 = vector.load %arg17[%c0_19, %c0_20] : memref<128x256xf32, #tpu.memory_space<vmem>>, vector<128x256xf32>
      %25 = arith.addf %24, %23 : vector<128x256xf32>
      %c0_21 = arith.constant 0 : index
      %c0_22 = arith.constant 0 : index
      %26 = vector.load %arg14[%c0_21, %c0_22] : memref<1x256xf32, #tpu.memory_space<vmem>>, vector<1x256xf32>
      %c0_23 = arith.constant 0 : index
      %c0_24 = arith.constant 0 : index
      %27 = vector.load %arg15[%c0_23, %c0_24] : memref<1x256xf32, #tpu.memory_space<vmem>>, vector<1x256xf32>
      %cst_25 = arith.constant dense<0.000000e+00> : vector<128xf32>
      %28 = vector.multi_reduction <add>, %25, %cst_25 [1] : vector<128x256xf32> to vector<128xf32>
      %29 = vector.shape_cast %28 : vector<128xf32> to vector<128x1xf32>
      %cst_26 = arith.constant 2.560000e+02 : f32
      %30 = vector.broadcast %cst_26 : f32 to vector<128x1xf32>
      %31 = arith.divf %29, %30 : vector<128x1xf32>
      %32 = vector.broadcast %31 : vector<128x1xf32> to vector<128x256xf32>
      %33 = arith.subf %25, %32 : vector<128x256xf32>
      %34 = arith.mulf %33, %33 : vector<128x256xf32>
      %cst_27 = arith.constant dense<0.000000e+00> : vector<128xf32>
      %35 = vector.multi_reduction <add>, %34, %cst_27 [1] : vector<128x256xf32> to vector<128xf32>
      %36 = vector.shape_cast %35 : vector<128xf32> to vector<128x1xf32>
      %cst_28 = arith.constant 2.560000e+02 : f32
      %37 = vector.broadcast %cst_28 : f32 to vector<128x1xf32>
      %38 = arith.divf %36, %37 : vector<128x1xf32>
      %39 = vector.broadcast %31 : vector<128x1xf32> to vector<128x256xf32>
      %40 = arith.subf %25, %39 : vector<128x256xf32>
      %cst_29 = arith.constant 9.99999974E-6 : f32
      %41 = vector.broadcast %cst_29 : f32 to vector<128x1xf32>
      %42 = arith.addf %38, %41 : vector<128x1xf32>
      %43 = math.rsqrt %42 : vector<128x1xf32>
      %44 = vector.broadcast %43 : vector<128x1xf32> to vector<128x256xf32>
      %45 = arith.mulf %40, %44 : vector<128x256xf32>
      %46 = vector.broadcast %26 : vector<1x256xf32> to vector<128x256xf32>
      %47 = arith.mulf %45, %46 : vector<128x256xf32>
      %48 = vector.broadcast %27 : vector<1x256xf32> to vector<128x256xf32>
      %49 = arith.addf %47, %48 : vector<128x256xf32>
      %50 = vector.shape_cast %49 : vector<128x256xf32> to vector<2x64x256xf32>
      %c0_30 = arith.constant 0 : index
      %c0_31 = arith.constant 0 : index
      %c0_32 = arith.constant 0 : index
      %51 = vector.load %arg16[%c0_30, %c0_31, %c0_32] : memref<2x64x256xf32, #tpu.memory_space<vmem>>, vector<2x64x256xf32>
      tpu.vector_store %arg16[%c0_30, %c0_31, %c0_32], %50 {strides = array<i32>} : memref<2x64x256xf32, #tpu.memory_space<vmem>>, vector<2x64x256xf32>,
    } else {
    }
    return
  }
  func.func @transform_0(%arg0: i32, %arg1: i32) -> (i32, i32, i32) {
    %c0_i32 = arith.constant 0 : i32
    %c0_i32_0 = arith.constant 0 : i32
    %c0_i32_1 = arith.constant 0 : i32
    return %arg0, %c0_i32, %c0_i32_0 : i32, i32, i32
  }
  func.func @transform_1(%arg0: i32, %arg1: i32) -> (i32, i32) {
    %c0_i32 = arith.constant 0 : i32
    %c0_i32_0 = arith.constant 0 : i32
    %c0_i32_1 = arith.constant 0 : i32
    return %c0_i32, %c0_i32_0 : i32, i32
  }
  func.func @transform_2(%arg0: i32, %arg1: i32) -> (i32, i32) {
    %c0_i32 = arith.constant 0 : i32
    %c0_i32_0 = arith.constant 0 : i32
    %c0_i32_1 = arith.constant 0 : i32
    return %c0_i32, %c0_i32_0 : i32, i32
  }
  func.func @transform_3(%arg0: i32, %arg1: i32) -> (i32, i32) {
    %c0_i32 = arith.constant 0 : i32
    %c0_i32_0 = arith.constant 0 : i32
    %c0_i32_1 = arith.constant 0 : i32
    return %c0_i32, %c0_i32_0 : i32, i32
  }
  func.func @transform_4(%arg0: i32, %arg1: i32) -> (i32, i32, i32) {
    %c0_i32 = arith.constant 0 : i32
    %c0_i32_0 = arith.constant 0 : i32
    %c0_i32_1 = arith.constant 0 : i32
    %c0_i32_2 = arith.constant 0 : i32
    return %c0_i32, %c0_i32_0, %c0_i32_1 : i32, i32, i32
  }
  func.func @transform_5(%arg0: i32, %arg1: i32) -> (i32, i32) {
    %c0_i32 = arith.constant 0 : i32
    %c0_i32_0 = arith.constant 0 : i32
    %c0_i32_1 = arith.constant 0 : i32
    return %c0_i32, %c0_i32_0 : i32, i32
  }
  func.func @transform_6(%arg0: i32, %arg1: i32) -> (i32, i32) {
    %c0_i32 = arith.constant 0 : i32
    %c0_i32_0 = arith.constant 0 : i32
    %c0_i32_1 = arith.constant 0 : i32
    return %c0_i32, %c0_i32_0 : i32, i32
  }
  func.func @transform_7(%arg0: i32, %arg1: i32) -> (i32, i32) {
    %c0_i32 = arith.constant 0 : i32
    %c0_i32_0 = arith.constant 0 : i32
    %c0_i32_1 = arith.constant 0 : i32
    return %c0_i32, %c0_i32_0 : i32, i32
  }
  func.func @transform_8(%arg0: i32, %arg1: i32) -> (i32, i32) {
    %c0_i32 = arith.constant 0 : i32
    %c0_i32_0 = arith.constant 0 : i32
    return %c0_i32, %arg1 : i32, i32
  }
  func.func @transform_9(%arg0: i32, %arg1: i32) -> (i32, i32) {
    %c0_i32 = arith.constant 0 : i32
    %c0_i32_0 = arith.constant 0 : i32
    return %c0_i32, %arg1 : i32, i32
  }
  func.func @transform_10(%arg0: i32, %arg1: i32) -> (i32, i32) {
    %c0_i32 = arith.constant 0 : i32
    %c0_i32_0 = arith.constant 0 : i32
    return %arg1, %c0_i32 : i32, i32
  }
  func.func @transform_11(%arg0: i32, %arg1: i32) -> (i32, i32) {
    %c0_i32 = arith.constant 0 : i32
    %c0_i32_0 = arith.constant 0 : i32
    %c0_i32_1 = arith.constant 0 : i32
    return %c0_i32, %c0_i32_0 : i32, i32
  }
  func.func @transform_12(%arg0: i32, %arg1: i32) -> (i32, i32) {
    %c0_i32 = arith.constant 0 : i32
    %c0_i32_0 = arith.constant 0 : i32
    %c0_i32_1 = arith.constant 0 : i32
    return %c0_i32, %c0_i32_0 : i32, i32
  }
  func.func @transform_13(%arg0: i32, %arg1: i32) -> (i32, i32) {
    %c0_i32 = arith.constant 0 : i32
    %c0_i32_0 = arith.constant 0 : i32
    %c0_i32_1 = arith.constant 0 : i32
    return %c0_i32, %c0_i32_0 : i32, i32
  }
  func.func @transform_14(%arg0: i32, %arg1: i32) -> (i32, i32, i32) {
    %c0_i32 = arith.constant 0 : i32
    %c0_i32_0 = arith.constant 0 : i32
    %c0_i32_1 = arith.constant 0 : i32
    return %arg0, %c0_i32, %c0_i32_0 : i32, i32, i32
  }
}

</mosaic_0001>

<bundles_post_ra>
// kernel: tpu_custom_call.1
= control target key start
LH: loop header
LB: loop body
LE: loop exit
PB: predicated region body
PF: predicated region fallthrough
CT: control target
= control target key end

     0   :  { %s9339_s0 = inlined_call_operand.hbm [shape: f32[4,64,256], index: 0, kind: input, shape index: {}]   ;;  %s9340_s1 = inlined_call_operand.hbm [shape: f32[64,64], index: 1, kind: input, shape index: {}]   ;;  %s9341_s2 = inlined_call_operand.hbm [shape: bf16[256,768], index: 2, kind: input, shape index: {}]   ;;  %s9342_s3 = inlined_call_operand.vmem [shape: f32[1,768], index: 3, kind: input, shape index: {}]   ;;  %s9343_s4 = inlined_call_operand.hbm [shape: bf16[2,128,256], index: 4, kind: input, shape index: {}]   ;;  %s9344_s5 = inlined_call_operand.vmem [shape: f32[1,256], index: 5, kind: input, shape index: {}]   ;;  %s9345_s6 = inlined_call_operand.vmem [shape: f32[1,256], index: 6, kind: input, shape index: {}]   ;;  %s9346_s7 = inlined_call_operand.vmem [shape: f32[1,256], index: 7, kind: input, shape index: {}]   ;;  %s9347_s8 = inlined_call_operand.hbm [shape: bf16[256,512], index: 8, kind: input, shape index: {}]   ;;  %s9348_s9 = inlined_call_operand.vmem [shape: f32[1,512], index: 9, kind: input, shape index: {}]   ;;  %s9349_s10 = inlined_call_operand.hbm [shape: bf16[512,256], index: 10, kind: input, shape index: {}]   ;;  %s9350_s11 = inlined_call_operand.vmem [shape: f32[1,256], index: 11, kind: input, shape index: {}]   ;;  %s9351_s12 = inlined_call_operand.vmem [shape: f32[1,256], index: 12, kind: input, shape index: {}]   ;;  %s9352_s13 = inlined_call_operand.vmem [shape: f32[1,256], index: 13, kind: input, shape index: {}]   ;;  %s9353_s14 = inlined_call_operand.hbm [shape: f32[4,64,256], index: 14, kind: output, shape index: {}]  }
   0x1   :  { %9415 = sst [smem:[#allocation57_spill]] %s9339_s0 }
   0x2   :  { %9416 = sst [smem:[#allocation58_spill]] %s9340_s1 }
   0x3   :  { %9417 = sst [smem:[#allocation59_spill]] %s9342_s3 }
   0x4   :  { %9418 = sst [smem:[#allocation60_spill]] %s9344_s5 }
   0x5   :  { %9419 = sst [smem:[#allocation61_spill]] %s9345_s6 }
   0x6   :  { %9420 = sst [smem:[#allocation62_spill]] %s9346_s7 }
   0x7   :  { %9421 = sst [smem:[#allocation63_spill]] %s9347_s8 }
   0x8   :  { %9422 = sst [smem:[#allocation64_spill]] %s9348_s9 }
   0x9   :  { %9423 = sst [smem:[#allocation65_spill]] %s9350_s11 }
   0xa   :  { %9424 = sst [smem:[#allocation66_spill]] %s9351_s12 }
   0xb   :  { %9425 = sst [smem:[#allocation67_spill]] %s9352_s13 }
   0xc   :  { %9426 = sst [smem:[#allocation68_spill]] %s9353_s14 }
   0xd   :  { %19 = vsyncpa [#allocation6], 0 }
   0xe   :  { %21 = vsyncpa [#allocation6 + $0x1], 0 }
   0xf   :  { %22 = vsyncpa [#allocation9], 0 }
  0x10   :  { %23 = vsyncpa [#allocation12], 0 }
  0x11   :  { %24 = vsyncpa [#allocation7], 0 }
  0x12   :  { %26 = vsyncpa [#allocation7 + $0x1], 0  ;;  %s6973_s29 = smov 0   ;;  %s6975_s30 = smov 0  }
  0x13   :  { %s6977_s15 = smov 0   ;;  %s6979_s16 = smov 0  }
  0x14   :  { %s6981_s17 = smov 0   ;;  %s6983_s18 = smov 0  }
  0x15   :  { %s6985_s19 = smov 0   ;;  %s6987_s20 = smov 0  }
  0x16   :  { %s6989_s21 = smov 0   ;;  %s6991_s22 = smov 0  }
  0x17   :  { %s6993_s23 = smov 0  }
  0x18 LB: > { %9427 = sst [smem:[#allocation21_spill]] %s6847_s15  ;;  %s41_s24 = sadd.s32 1, %s6871_s21  ;;  %s6879_s23 = sphi %s6993_s23, %s32_s23   ;;  %s6875_s22 = sphi %s6991_s22, %s9563_s22   ;;  %s6871_s21 = sphi %s6989_s21, %s9569_s21   ;;  %s6867_s20 = sphi %s6987_s20, %s9561_s20   ;;  %s6863_s19 = sphi %s6985_s19, %s9568_s19   ;;  %s6859_s18 = sphi %s6983_s18, %s9560_s18   ;;  %s6855_s17 = sphi %s6981_s17, %s9567_s17   ;;  %s6851_s16 = sphi %s6979_s16, %s9566_s16   ;;  %s6847_s15 = sphi %s6977_s15, %s9558_s15   ;;  %s6843_s30 = sphi %s6975_s30, %s9565_s30   ;;  %s6839_s29 = sphi %s6973_s29, %s9564_s29  }
  0x19   : > { %9428 = sst [smem:[#allocation22_spill]] %s6851_s16  ;;  %s44_s25 = sadd.s32 1, %s6875_s22 }
  0x1a   : > { %9429 = sst [smem:[#allocation23_spill]] %s6859_s18  ;;  %p42_p0 = scmp.ge.s32.totalorder %s41_s24, 2 }
  0x1b   : > { %9430 = sst [smem:[#allocation24_spill]] %s6867_s20  ;;  %s51_s26 = sadd.s32 1, %s6859_s18 }
  0x1c   : > { %9431 = sst [smem:[#allocation25_spill]] %s6875_s22  ;;  %p9360_p1 = scmp.ne.s32.totalorder %s6859_s18, %s6855_s17 }
  0x1d   : > { %9432 = sst [smem:[#allocation26_spill]] %s6879_s23  ;;  %p9361_p2 = scmp.eq.s32.totalorder %s6879_s23, 0 }
  0x1e   : > { %s9571_s24 = smov (%p42_p0, %s41_s24), 0  ;;  %s9573_s25 = smov (!%p42_p0, %s44_s25), %s6875_s22 }
  0x1f   : > { %9433 = sst [smem:[#allocation27_spill]] %s9571_s24  ;;  %p7042_p3 = por %p9361_p2, %p9360_p1 }
  0x20   : > { %s221_s28 = ssub.s32 %s6871_s21, %s9571_s24  ;;  %p46_p4 = scmp.ge.s32.totalorder %s9573_s25, 2 }
  0x21   : > { %p7048_p5 = scmp.eq.s32.totalorder %s221_s28, 0  ;;  %p9359_p6 = scmp.lt.s32.totalorder %s6879_s23, 4 }
  0x22   : > { %s9575_s25 = smov (%p46_p4, %s9573_s25), 0  ;;  %s462_s20 = sand.u32 1, %s6879_s23  }
  0x23   : > { %9436 = sst [smem:[#allocation28_spill]] %s9575_s25  ;;  %s464_s13 = sand.u32 1, %s6859_s18  }
  0x24   : > { %s48_s12 = ssub.s32 %s6875_s22, %s9575_s25  ;;  %s5367_s11 = sshll.u32 %s464_s13, 8 }
  0x25   : > { %p49_p7 = scmp.eq.s32.totalorder %s48_s12, 0  ;;  %s5636_s7 = sshll.u32 %s6875_s22, 12 }
  0x26   : > { %s9438_s0 = sld [smem:[#allocation57_spill]]  ;;  %s466_s28 = scalar_lea.vmem [#allocation5], %s5367_s11 }
  0x27   : > { %s7061_s6 = scalar_select %p49_p7, %s6859_s18, %s51_s26  }
  0x28   : > { %s474_s9 = sshll.u32 %s466_s28, 4  ;;  %p7074_p8 = pnand %p9359_p6, %p7042_p3  ;;  %s7068_s9 = int_to_ptr.vmem [resolvable:$true] %s474_s9 }
  0x29   : > { %9437 = sst [smem:[#allocation29_spill]] %s7061_s6  ;;  %s7078_s13 = scalar_lea.sflag [#allocation6], %s462_s20 }
  0x2a   : > { %p6573_p10 = pneg %p7074_p8 }
  0x2c   : > { %s7066_s3 = scalar_lea.hbm %s9438_s0, %s5636_s7  ;;  %s6576_s24 = scalar_lea.hbm %s9438_s0, 8192 }
  0x2d   : > { %s6571_s5 = scalar_lea.hbm %s7066_s3, 4096  ;;  %p6577_p13 = scmp.lt.u32.totalorder %s7066_s3, %s9438_s0 }
  0x2e   : > { %p6572_p9 = scmp.ne.s32.totalorder %s7066_s3, %s6571_s5  ;;  %p6578_p0 = scmp.lt.u32.totalorder %s6576_s24, %s6571_s5 }
  0x2f   : > { %p6580_p4 = scmp.lt.u32.totalorder %s6571_s5, %s7066_s3 }
  0x30   : > { %p6574_p11 = pnand %p6573_p10, %p6572_p9  ;;  %p6579_p3 = por %p6578_p0, %p6577_p13 }
  0x32   : > { %p6575_p12 = pneg %p6574_p11  ;;  %p6581_p7 = por %p6580_p4, %p6579_p3 }
  0x34   : > { %p6582_p6 = pnand %p6581_p7, %p6575_p12 }
  0x36   : > { %6585 = shalt.err (!%p6582_p6)
}
  0x37   : > { %s6586_s20 = scalar_lea.vmem %s7068_s9, 4096  ;;  %s6881_s28 = smov [#allocation5]  }
  0x38   : > { %p6587_p9 = scmp.ne.s32.totalorder %s7068_s9, %s6586_s20  ;;  %s6591_s7 = sshll.u32 %s6881_s28, 4  ;;  %s6592_s7 = int_to_ptr.vmem [resolvable:$false] %s6591_s7 }
  0x39   : > { %s6593_s11 = scalar_lea.vmem %s6592_s7, 8192  ;;  %p6594_p2 = scmp.lt.s32.totalorder %s7068_s9, %s6592_s7 }
  0x3a   : > { %p6589_p11 = pnand %p6587_p9, %p6573_p10  ;;  %p6595_p13 = scmp.lt.s32.totalorder %s6593_s11, %s6586_s20 }
  0x3c   : > { %p6590_p1 = pneg %p6589_p11  ;;  %p6596_p0 = por %p6595_p13, %p6594_p2 }
  0x3e   : > { %p6597_p3 = pnand %p6596_p0, %p6590_p1 }
  0x40   : > { %6600 = shalt.err (!%p6597_p3)
}
  0x41   : > { %s9363_s5 = smov 256   ;;  %s6883_s24 = smov 16  }
  0x42   : > { %5931 = dma.hbm_to_vmem [thread:$0]  (!%p7074_p8), %s7066_s3, 4096, %s7068_s9, %s7078_s13, %s9363_s5, %s9363_s5, %s6883_s24  }
  0x43   : > { %s7109_s26 = sadd.s32 4294967295, %s6879_s23   ;;  %s5361_s27 = sadd.s32 4294967294, %s6879_s23  }
  0x44   : > { %p64_p1 = scmp.ne.s32.totalorder %s6855_s17, %s6851_s16  ;;  %p9370_p2 = scmp.eq.s32.totalorder %s7109_s26, 0 }
  0x45   : > { %s224_s20 = sadd.s32 1, %s6847_s15  ;;  %p231_p8 = scmp.ne.s32.totalorder %s6847_s15, %s6843_s30 }
  0x46   : > { %s7119_s28 = scalar_select %p7048_p5, %s6847_s15, %s224_s20  }
  0x47   : > { %p7123_p6 = por %p9370_p2, %p64_p1  ;;  %p237_p10 = scmp.ne.s32.totalorder %s6843_s30, %s6839_s29 }
  0x48   : > { %9440 = sst [smem:[#allocation30_spill]] %s7119_s28  ;;  %p376_p12 = scmp.eq.s32.totalorder %s7109_s26, 3 }
  0x49   : > { %s9441_s12 = scalar_select %p7123_p6, 1, 0 }
  0x4a   : > { %p9442_p4 = scmp.eq.s32.totalorder %s6879_s23, 0  ;;  %p382_p9 = scmp.eq.s32.totalorder %s5361_s27, 3 }
  0x4b   : > { %p7136_p11 = por %p237_p10, %p9370_p2  ;;  %p9444_p5 = scmp.ne.s32.totalorder %s6859_s18, %s6855_s17 }
  0x4c   : > { %p233_p7 = por %p231_p8, %p9442_p4  ;;  %p7147_p0 = por %p382_p9, %p64_p1 }
  0x4d   : > { %s9443_s3 = scalar_select %p7136_p11, 1, 0 }
  0x4e   : > { %p7143_p13 = por %p376_p12, %p9444_p5  ;;  %p5362_p3 = scmp.ge.s32.totalorder %s6879_s23, 1 }
  0x4f   : > { %s9447_s14 = scalar_select %p7147_p0, 1, 0 }
  0x50   : > { %s9445_s9 = scalar_select %p7143_p13, 1, 0 }
  0x51   : > { %9448 = sst [smem:[#allocation32_spill]] %s9447_s14  ;;  %p389_p6 = scmp.lt.s32.totalorder %s6879_s23, 5 }
  0x52   : > { %9446 = sst [smem:[#allocation31_spill]] %s9445_s9  ;;  %s6884_s7 = smov [#allocation8]  }
  0x53   : > { %p7153_p4 = pnand %p5362_p3, %p389_p6  ;;  %s401_s11 = sshll.u32 %s6884_s7, 4  ;;  %s7157_s11 = int_to_ptr.vmem [resolvable:$true] %s401_s11 }
  0x54   : > { %p9450_p10 = scmp.lt.s32.totalorder %s6879_s23, 4  ;;  %s486_s27 = sand.u32 1, %s6847_s15  }
  0x55   : > { %s9449_s29 = scalar_select %p7153_p4, 1, 0 }
  0x56   : > { %p5918_p8 = pneg %p7153_p4  ;;  %p7163_p12 = pnand %p9450_p10, %p233_p7 }
  0x57   : > { %s5637_s20 = sshll.u32 %s6871_s21, 7  ;;  %s7175_s0 = sshll.u32 %s486_s27, 8 }
  0x58   : > { %s9451_s24 = scalar_select %p7163_p12, 1, 0 }
  0x59   : > { %p7171_p1 = pnand %p5918_p8, %p9370_p2  ;;  %s9453_s8 = sld [smem:[#allocation63_spill]] }
  0x5a   : > { %s9454_s1 = sld [smem:[#allocation58_spill]] }
  0x5b   : > { %s9452_s5 = scalar_select %p7171_p1, 1, 0 }
  0x5c   : > { %p7190_p7 = pneg %p7171_p1 }
  0x5f   : > { %s7180_s22 = scalar_lea.hbm %s9453_s8, %s5637_s20 }
  0x60   : > { %s6601_s28 = scalar_lea.hbm %s9454_s1, 1024 }
  0x61   : > { %p6602_p6 = scmp.ne.s32.totalorder %s9454_s1, %s6601_s28  ;;  %p6608_p3 = scmp.lt.u32.totalorder %s6601_s28, %s9454_s1 }
  0x63   : > { %p6604_p9 = pnand %p7190_p7, %p6602_p6 }
  0x65   : > { %p6605_p5 = pneg %p6604_p9 }
  0x67   : > { %p6610_p8 = pnand %p6608_p3, %p6605_p5 }
  0x69   : > { %6613 = shalt.err (!%p6610_p8)
}
  0x6a   : > { %s6614_s6 = scalar_lea.vmem %s7157_s11, 1024  ;;  %p6622_p13 = scmp.lt.s32.totalorder %s7157_s11, %s7157_s11 }
  0x6b   : > { %p6615_p10 = scmp.ne.s32.totalorder %s7157_s11, %s6614_s6  ;;  %p6623_p11 = scmp.lt.s32.totalorder %s6614_s6, %s6614_s6 }
  0x6d   : > { %p6617_p2 = pnand %p6615_p10, %p7190_p7  ;;  %p6624_p6 = por %p6623_p11, %p6622_p13 }
  0x6f   : > { %p6618_p0 = pneg %p6617_p2 }
  0x71   : > { %p6625_p9 = pnand %p6624_p6, %p6618_p0 }
  0x73   : > { %6628 = shalt.err (!%p6625_p9)
}
  0x74   : > { %s9381_s15 = smov 128   ;;  %s9383_s18 = smov 8  }
  0x75   : > { %5921 = dma.hbm_to_vmem [thread:$0]  (!%p7171_p1), %s9454_s1, 1024, %s7157_s11, [#allocation9], %s9381_s15, %s9381_s15, %s9383_s18  }
  0x76   : > { %s488_s20 = scalar_lea.vmem [#allocation13], %s7175_s0  ;;  %s6887_s25 = smov [#allocation10]  }
  0x77   : > { %s495_s7 = sshll.u32 %s488_s20, 4  ;;  %s7217_s27 = sshll.u32 %s6887_s25, 4  ;;  %s7215_s7 = int_to_ptr.vmem [resolvable:$true] %s495_s7  ;;  %s415_s27 = int_to_ptr.vmem [resolvable:$true] %s7217_s27 }
  0x78   : > { %s6629_s6 = scalar_lea.hbm %s7180_s22, 4096  ;;  %p9380_p11 = pneg %p7163_p12 }
  0x79   : > { %p6630_p2 = scmp.ne.s32.totalorder %s7180_s22, %s6629_s6  ;;  %s6634_s28 = scalar_lea.hbm %s9453_s8, 8192 }
  0x7a   : > { %p6635_p5 = scmp.lt.u32.totalorder %s7180_s22, %s9453_s8  ;;  %p6636_p3 = scmp.lt.u32.totalorder %s6634_s28, %s6629_s6 }
  0x7b   : > { %p6632_p13 = pnand %p9380_p11, %p6630_p2  ;;  %p6638_p10 = scmp.lt.u32.totalorder %s6629_s6, %s7180_s22 }
  0x7c   : > { %p6637_p8 = por %p6636_p3, %p6635_p5 }
  0x7d   : > { %p6633_p0 = pneg %p6632_p13 }
  0x7e   : > { %p6639_p6 = por %p6638_p10, %p6637_p8 }
  0x80   : > { %p6640_p9 = pnand %p6639_p6, %p6633_p0 }
  0x82   : > { %6643 = shalt.err (!%p6640_p9)
}
  0x83   : > { %s6644_s20 = scalar_lea.vmem %s7215_s7, 4096  ;;  %s6888_s23 = smov [#allocation13]  }
  0x84   : > { %p6645_p2 = scmp.ne.s32.totalorder %s7215_s7, %s6644_s20  ;;  %s6649_s9 = sshll.u32 %s6888_s23, 4  ;;  %s6650_s9 = int_to_ptr.vmem [resolvable:$false] %s6649_s9 }
  0x85   : > { %s6651_s25 = scalar_lea.vmem %s6650_s9, 8192  ;;  %p6652_p1 = scmp.lt.s32.totalorder %s7215_s7, %s6650_s9 }
  0x86   : > { %p6647_p13 = pnand %p6645_p2, %p9380_p11  ;;  %p6653_p5 = scmp.lt.s32.totalorder %s6651_s25, %s6644_s20 }
  0x88   : > { %p6648_p4 = pneg %p6647_p13  ;;  %p6654_p3 = por %p6653_p5, %p6652_p1 }
  0x8a   : > { %p6655_p8 = pnand %p6654_p3, %p6648_p4 }
  0x8c   : > { %6658 = shalt.err (!%p6655_p8)
}
  0x8d   : > { %s9456_s6 = smov 256   ;;  %s6659_s14 = scalar_lea.hbm %s9341_s2, 12288 }
  0x8e   : > { %5934 = dma.hbm_to_vmem [thread:$0]  (!%p7163_p12), %s7180_s22, 4096, %s7215_s7, %s7078_s13, %s9456_s6, %s9381_s15, %s9383_s18  }
  0x8f   : > { %p6660_p4 = scmp.ne.s32.totalorder %s9341_s2, %s6659_s14  ;;  %p6666_p10 = scmp.lt.u32.totalorder %s6659_s14, %s9341_s2 }
  0x91   : > { %p6662_p1 = pnand %p6660_p4, %p7190_p7 }
  0x93   : > { %p6663_p0 = pneg %p6662_p1 }
  0x95   : > { %p6668_p6 = pnand %p6666_p10, %p6663_p0 }
  0x97   : > { %6671 = shalt.err (!%p6668_p6)
}
  0x98   : > { %s6672_s1 = scalar_lea.vmem %s415_s27, 12288  ;;  %p6680_p5 = scmp.lt.s32.totalorder %s415_s27, %s415_s27 }
  0x99   : > { %p6673_p9 = scmp.ne.s32.totalorder %s415_s27, %s6672_s1  ;;  %p6681_p3 = scmp.lt.s32.totalorder %s6672_s1, %s6672_s1 }
  0x9b   : > { %p6675_p2 = pnand %p6673_p9, %p7190_p7  ;;  %p6682_p8 = por %p6681_p3, %p6680_p5 }
  0x9d   : > { %p6676_p13 = pneg %p6675_p2 }
  0x9f   : > { %p6683_p11 = pnand %p6682_p8, %p6676_p13 }
  0xa1   : > { %6686 = shalt.err (!%p6683_p11)
}
  0xa2   : > { %s6889_s22 = smov 384   ;;  %s6890_s7 = smov 24  }
  0xa3   : > { %p9457_p4 = scmp.ne.s32.totalorder %s9452_s5, 0  ;;  %s6891_s11 = smov [#allocation11]  }
  0xa4   : > { %s430_s14 = sshll.u32 %s6891_s11, 4  ;;  %s5639_s20 = sshll.u32 %s6871_s21, 12  ;;  %s431_s14 = int_to_ptr.vmem [resolvable:$true] %s430_s14 }
  0xa5   : > { %5924 = dma.hbm_to_vmem [thread:$0]  (!%p9457_p4), %s9341_s2, 12288, %s415_s27, [#allocation9], %s6889_s22, %s6889_s22, %s6890_s7  }
  0xa6   : > { %s6687_s1 = scalar_lea.hbm %s9343_s4, 4096 }
  0xa7   : > { %p6688_p11 = scmp.ne.s32.totalorder %s9343_s4, %s6687_s1  ;;  %p6694_p10 = scmp.lt.u32.totalorder %s6687_s1, %s9343_s4 }
  0xa9   : > { %p6690_p1 = pnand %p6688_p11, %p7190_p7 }
  0xab   : > { %p6691_p0 = pneg %p6690_p1 }
  0xad   : > { %p6696_p6 = pnand %p6694_p10, %p6691_p0 }
  0xaf   : > { %6699 = shalt.err (!%p6696_p6)
}
  0xb0   : > { %s6700_s27 = scalar_lea.vmem %s431_s14, 4096  ;;  %p6708_p5 = scmp.lt.s32.totalorder %s431_s14, %s431_s14 }
  0xb1   : > { %p6701_p9 = scmp.ne.s32.totalorder %s431_s14, %s6700_s27  ;;  %p6709_p3 = scmp.lt.s32.totalorder %s6700_s27, %s6700_s27 }
  0xb3   : > { %p6703_p2 = pnand %p6701_p9, %p7190_p7  ;;  %p6710_p8 = por %p6709_p3, %p6708_p5 }
  0xb5   : > { %p6704_p13 = pneg %p6703_p2 }
  0xb7   : > { %p6711_p12 = pnand %p6710_p8, %p6704_p13 }
  0xb9   : > { %6714 = shalt.err (!%p6711_p12)
}
  0xba   : > { %s9458_s15 = smov 8   ;;  %s9459_s22 = smov 128  }
  0xbb   : > { %5927 = dma.hbm_to_vmem [thread:$0]  (!%p9457_p4), %s9343_s4, 4096, %s431_s14, [#allocation12], %s9459_s22, %s9459_s22, %s9458_s15  }
  0xbc   : > { %s7292_s6 = scalar_lea.hbm %s9349_s10, %s5639_s20  ;;  %s517_s28 = scalar_lea.vmem [#allocation14], %s7175_s0 }
  0xbd   : > { %s525_s5 = sshll.u32 %s517_s28, 4  ;;  %s6715_s11 = scalar_lea.hbm %s7292_s6, 4096  ;;  %s7295_s5 = int_to_ptr.vmem [resolvable:$true] %s525_s5 }
  0xbe   : > { %p6716_p12 = scmp.ne.s32.totalorder %s7292_s6, %s6715_s11  ;;  %p9460_p7 = scmp.ne.s32.totalorder %s9451_s24, 0 }
  0xbf   : > { %s6720_s9 = scalar_lea.hbm %s9349_s10, 8192  ;;  %p6721_p4 = scmp.lt.u32.totalorder %s7292_s6, %s9349_s10 }
  0xc0   : > { %p9461_p11 = pneg %p9460_p7  ;;  %p6722_p10 = scmp.lt.u32.totalorder %s6720_s9, %s6715_s11 }
  0xc1   : > { %p6724_p9 = scmp.lt.u32.totalorder %s6715_s11, %s7292_s6 }
  0xc2   : > { %p6718_p1 = pnand %p6716_p12, %p9461_p11  ;;  %p6723_p6 = por %p6722_p10, %p6721_p4 }
  0xc4   : > { %p6719_p0 = pneg %p6718_p1  ;;  %p6725_p2 = por %p6724_p9, %p6723_p6 }
  0xc6   : > { %p6726_p13 = pnand %p6725_p2, %p6719_p0 }
  0xc8   : > { %6729 = shalt.err (!%p6726_p13)
}
  0xc9   : > { %s6730_s0 = scalar_lea.vmem %s7295_s5, 4096  ;;  %p9462_p3 = pmov %p9461_p11 }
  0xca   : > { %p6731_p5 = scmp.ne.s32.totalorder %s7295_s5, %s6730_s0  ;;  %s6892_s25 = smov [#allocation14]  }
  0xcb   : > { %s6735_s27 = sshll.u32 %s6892_s25, 4  ;;  %s6736_s27 = int_to_ptr.vmem [resolvable:$false] %s6735_s27 }
  0xcc   : > { %p6733_p8 = pnand %p6731_p5, %p9462_p3  ;;  %s6737_s8 = scalar_lea.vmem %s6736_s27, 8192 }
  0xcd   : > { %p6738_p11 = scmp.lt.s32.totalorder %s7295_s5, %s6736_s27  ;;  %p6739_p1 = scmp.lt.s32.totalorder %s6737_s8, %s6730_s0 }
  0xce   : > { %p6734_p12 = pneg %p6733_p8 }
  0xcf   : > { %p6740_p4 = por %p6739_p1, %p6738_p11 }
  0xd1   : > { %p6741_p10 = pnand %p6740_p4, %p6734_p12 }
  0xd3   : > { %6744 = shalt.err (!%p6741_p10)
}
  0xd4   : > { %5937 = dma.hbm_to_vmem [thread:$0]  (!%p9460_p7), %s7292_s6, 4096, %s7295_s5, %s7078_s13, %s9459_s22, %s9459_s22, %s9458_s15  }
  0xd5   : > { %p9463_p0 = scmp.ne.s32.totalorder %s9449_s29, 0 }
  0xd6   : > { %s539_s18 = sand.u32 (!%p9463_p0), 1, %s7109_s26   ;;  %s541_s7 = sand.u32 (!%p9463_p0), 1, %s6855_s17  }
  0xd7   : > { %537 = sbr.rel (%p9463_p0) target bundleno = 4546 (0x11c2), region = 76  ;;  %s5379_s16 = sshll.u32 (!%p9463_p0), %s541_s7, 8 }
  0xd8   : > { %s540_s28 = scalar_lea.sflag (!%p9463_p0), [#allocation6], %s539_s18  ;;  %s7330_s24 = scalar_lea.vmem (!%p9463_p0), [#allocation5], %s5379_s16 }
  0xd9   : > { %p9464_p6 = scmp.ne.s32.totalorder (!%p9463_p0), %s9441_s12, 0 }
  0xde   : > { %6818 = dma.done.wait (%p9464_p6), %s540_s28, 4096  }
  0xdf   : > { %6820 = vsyncadd (%p9464_p6), %s540_s28, 4294963200  ;;  %p9465_p7 = scmp.eq.s32.totalorder %s7109_s26, 0 }
  0xe1   : > { %6822 = dma.done.wait (%p9465_p7), [#allocation9], 13312   ;;  %p9466_p9 = pmov %p9465_p7 }
  0xe2   : > { %p9467_p2 = pmov %p9465_p7 }
  0xe3   : > { %6824 = vsyncadd (%p9466_p9), [#allocation9], 4294953984 }
  0xe4   : > { %6826 = dma.done.wait (%p9467_p2), [#allocation12], 4096   ;;  %p9468_p13 = pmov %p9467_p2 }
  0xe5   : > { %s562_s13 = sand.u32 1, %s6843_s30   ;;  %p9469_p5 = scmp.ne.s32.totalorder %s9443_s3, 0 }
  0xe6   : > { %6828 = vsyncadd (%p9468_p13), [#allocation12], 4294963200  ;;  %s5383_s29 = sshll.u32 %s562_s13, 8 }
  0xe7   : > { %s7345_s15 = scalar_lea.vmem [#allocation13], %s5383_s29 }
  0xe8   : > { %6830 = dma.done.wait (%p9469_p5), %s540_s28, 8192  }
  0xe9   : > { %6832 = vsyncadd (%p9469_p5), %s540_s28, 4294959104  ;;  %s5386_s12 = sshll.u32 %s6863_s19, 1  ;;  %s9470_s6 = sld [smem:[#allocation64_spill]] }
  0xea   : > { %p635_p3 = scmp.lt.s32.totalorder %s5386_s12, 3  ;;  %s7358_s11 = scalar_lea.vmem [#allocation14], %s5383_s29 }
  0xeb   : > { %s7360_s14 = scalar_lea.vmem [#allocation15], %s5379_s16  ;;  %p5387_p8 = scmp.ne.s32.totalorder %s6863_s19, 0 }
  0xec   : > { %s9577_s12 = smov (!%p635_p3, %s5386_s12), 3 }
  0xed   : > { %645 = sbr.rel (%p5387_p8) target bundleno = 3616 (0xe20), region = 104 }
  0xef   : > { %s637_s5 = scalar_lea.vmem %s9470_s6, %s9577_s12 }
  0xf4   : > { %v6051_v0 = vld [vmem:[#allocation10 + $0x4] ss:$24 sps:$4 sm:$0xff]   ;;  %v6055_v2 = vld [vmem:[#allocation10] ss:$24 sps:$4 sm:$0xff]   ;;  %v6057_v4 = vld [vmem:[#allocation10 + $0x34] ss:$24 sps:$4 sm:$0xff]  }
  0xf5   : > { %v6053_v1 = vld [vmem:[#allocation10 + $0xc] ss:$24 sps:$4 sm:$0xff]   ;;  %1302 = vmatprep.subr.bf16.mxu0 %v6051_v0  ;;  %v6056_v3 = vld [vmem:[#allocation10 + $0x8] ss:$24 sps:$4 sm:$0xff]   ;;  %v6059_v5 = vld [vmem:[#allocation10 + $0x3c] ss:$24 sps:$4 sm:$0xff]  }
  0xf6   : > { %1415 = vmatprep.subr.bf16.mxu1 %v6053_v1  ;;  %1303 = vmatpush1.bf16.msra.mxu0 %v6055_v2  ;;  %v6061_v6 = vld [vmem:[#allocation10 + $0x30] ss:$24 sps:$4 sm:$0xff]   ;;  %v6063_v8 = vld [vmem:[#allocation10 + $0x64] ss:$24 sps:$4 sm:$0xff]   ;;  %v6067_v10 = vld [vmem:[#allocation10 + $0x60] ss:$24 sps:$4 sm:$0xff]  }
  0xf7   : > { %1416 = vmatpush1.bf16.msra.mxu1 %v6056_v3  ;;  %1304 = vmatprep.subr.bf16.mxu0 %v6057_v4  ;;  %v6062_v7 = vld [vmem:[#allocation10 + $0x38] ss:$24 sps:$4 sm:$0xff]   ;;  %v6065_v9 = vld [vmem:[#allocation10 + $0x6c] ss:$24 sps:$4 sm:$0xff]   ;;  %v6068_v11 = vld [vmem:[#allocation10 + $0x68] ss:$24 sps:$4 sm:$0xff]  }
  0xf8   : > { %1417 = vmatprep.subr.bf16.mxu1 %v6059_v5  ;;  %v6069_v12 = vld [vmem:[#allocation10 + $0x94] ss:$24 sps:$4 sm:$0xff]   ;;  %v6073_v14 = vld [vmem:[#allocation10 + $0x90] ss:$24 sps:$4 sm:$0xff]   ;;  %v6075_v16 = vld [vmem:[#allocation10 + $0xc4] ss:$24 sps:$4 sm:$0xff]  }
  0xf9   : > { %v6071_v13 = vld [vmem:[#allocation10 + $0x9c] ss:$24 sps:$4 sm:$0xff]   ;;  %v6074_v15 = vld [vmem:[#allocation10 + $0x98] ss:$24 sps:$4 sm:$0xff]   ;;  %v6077_v17 = vld [vmem:[#allocation10 + $0xcc] ss:$24 sps:$4 sm:$0xff]  }
  0xfa   : > { %1305 = vmatpush1.bf16.msra.mxu0 %v6061_v6  ;;  %v6079_v18 = vld [vmem:[#allocation10 + $0xc0] ss:$24 sps:$4 sm:$0xff]   ;;  %v6081_v20 = vld [vmem:[#allocation10 + $0xf4] ss:$24 sps:$4 sm:$0xff]   ;;  %v6085_v22 = vld [vmem:[#allocation10 + $0xf0] ss:$24 sps:$4 sm:$0xff]  }
  0xfb   : > { %1418 = vmatpush1.bf16.msra.mxu1 %v6062_v7  ;;  %1306 = vmatprep.subr.bf16.mxu0 %v6063_v8  ;;  %v6080_v19 = vld [vmem:[#allocation10 + $0xc8] ss:$24 sps:$4 sm:$0xff]   ;;  %v6083_v21 = vld [vmem:[#allocation10 + $0xfc] ss:$24 sps:$4 sm:$0xff]   ;;  %v6086_v23 = vld [vmem:[#allocation10 + $0xf8] ss:$24 sps:$4 sm:$0xff]  }
  0xfc   : > { %1419 = vmatprep.subr.bf16.mxu1 %v6065_v9  ;;  %v6087_v24 = vld [vmem:[#allocation10 + $0x124] ss:$24 sps:$4 sm:$0xff]   ;;  %v6091_v26 = vld [vmem:[#allocation10 + $0x120] ss:$24 sps:$4 sm:$0xff]   ;;  %v6093_v28 = vld [vmem:[#allocation10 + $0x154] ss:$24 sps:$4 sm:$0xff]  }
  0xfd   : > { %v6089_v25 = vld [vmem:[#allocation10 + $0x12c] ss:$24 sps:$4 sm:$0xff]   ;;  %v6092_v27 = vld [vmem:[#allocation10 + $0x128] ss:$24 sps:$4 sm:$0xff]   ;;  %v6095_v29 = vld [vmem:[#allocation10 + $0x15c] ss:$24 sps:$4 sm:$0xff]  }
  0xfe   : > { %1307 = vmatpush1.bf16.msra.mxu0 %v6067_v10  ;;  %v6097_v30 = vld [vmem:[#allocation10 + $0x150] ss:$24 sps:$4 sm:$0xff]   ;;  %v6099_v32 = vld [vmem:[#allocation10 + $0x184] ss:$24 sps:$4 sm:$0xff]   ;;  %v6103_v34 = vld [vmem:[#allocation10 + $0x180] ss:$24 sps:$4 sm:$0xff]  }
  0xff   : > { %1420 = vmatpush1.bf16.msra.mxu1 %v6068_v11  ;;  %1308 = vmatprep.subr.bf16.mxu0 %v6069_v12  ;;  %v6098_v31 = vld [vmem:[#allocation10 + $0x158] ss:$24 sps:$4 sm:$0xff]   ;;  %v6101_v33 = vld [vmem:[#allocation10 + $0x18c] ss:$24 sps:$4 sm:$0xff]   ;;  %v6104_v35 = vld [vmem:[#allocation10 + $0x188] ss:$24 sps:$4 sm:$0xff]  }
 0x100   : > { %1421 = vmatprep.subr.bf16.mxu1 %v6071_v13  ;;  %v6105_v36 = vld [vmem:[#allocation10 + $0x1b4] ss:$24 sps:$4 sm:$0xff]   ;;  %v6109_v38 = vld [vmem:[#allocation10 + $0x1b0] ss:$24 sps:$4 sm:$0xff]   ;;  %v6111_v40 = vld [vmem:[#allocation10 + $0x1e4] ss:$24 sps:$4 sm:$0xff]  }
 0x101   : > { %v6107_v37 = vld [vmem:[#allocation10 + $0x1bc] ss:$24 sps:$4 sm:$0xff]   ;;  %v6110_v39 = vld [vmem:[#allocation10 + $0x1b8] ss:$24 sps:$4 sm:$0xff]   ;;  %v6113_v41 = vld [vmem:[#allocation10 + $0x1ec] ss:$24 sps:$4 sm:$0xff]  }
 0x102   : > { %1309 = vmatpush1.bf16.msra.mxu0 %v6073_v14  ;;  %v6115_v42 = vld [vmem:[#allocation10 + $0x1e0] ss:$24 sps:$4 sm:$0xff]   ;;  %v6117_v44 = vld [vmem:[#allocation10 + $0x214] ss:$24 sps:$4 sm:$0xff]   ;;  %v6121_v47 = vld [vmem:[#allocation10 + $0x210] ss:$24 sps:$4 sm:$0xff]  }
 0x103   : > { %1422 = vmatpush1.bf16.msra.mxu1 %v6074_v15  ;;  %1310 = vmatprep.subr.bf16.mxu0 %v6075_v16  ;;  %v6116_v43 = vld [vmem:[#allocation10 + $0x1e8] ss:$24 sps:$4 sm:$0xff]   ;;  %v6119_v45 = vld [vmem:[#allocation10 + $0x21c] ss:$24 sps:$4 sm:$0xff]   ;;  %v6122_v48 = vld [vmem:[#allocation10 + $0x218] ss:$24 sps:$4 sm:$0xff]  }
 0x104   : > { %1423 = vmatprep.subr.bf16.mxu1 %v6077_v17  ;;  %v647_v46 = vld [vmem:[%s7330_s24 + $0x8] sm:$0xff]  ;;  %v649_v49 = vld [vmem:[%s7330_s24 + $0x18] sm:$0xff]  ;;  %v646_v3 = vld [vmem:[%s7330_s24] sm:$0xff]  ;;  %s9473_s9 = sld [smem:[#allocation59_spill]]  ;;  %vm1726_vm0 = vcmask 523264   ;;  %s9533_s0 = sld [smem:[#allocation60_spill]] }
 0x105   : > { %v6123_v50 = vld [vmem:[#allocation10 + $0x244] ss:$24 sps:$4 sm:$0xff]   ;;  %v7365_v51 = vpack.c.bf16 %v649_v49, %v647_v46  ;;  %v6127_v53 = vld [vmem:[#allocation10 + $0x240] ss:$24 sps:$4 sm:$0xff]   ;;  %v6129_v55 = vld [vmem:[#allocation10 + $0x274] ss:$24 sps:$4 sm:$0xff]  }
 0x106   : > { %1311 = vmatpush1.bf16.msra.mxu0 %v6079_v18  ;;  %v6125_v52 = vld [vmem:[#allocation10 + $0x24c] ss:$24 sps:$4 sm:$0xff]   ;;  %v6128_v54 = vld [vmem:[#allocation10 + $0x248] ss:$24 sps:$4 sm:$0xff]   ;;  %v6131_v56 = vld [vmem:[#allocation10 + $0x27c] ss:$24 sps:$4 sm:$0xff]  }
 0x107   : > { %1424 = vmatpush1.bf16.msra.mxu1 %v6080_v19  ;;  %1312 = vmatprep.subr.bf16.mxu0 %v6081_v20  ;;  %v6133_v57 = vld [vmem:[#allocation10 + $0x270] ss:$24 sps:$4 sm:$0xff]   ;;  %v6135_v59 = vld [vmem:[#allocation10 + $0x2a4] ss:$24 sps:$4 sm:$0xff]   ;;  %v6139_v61 = vld [vmem:[#allocation10 + $0x2a0] ss:$24 sps:$4 sm:$0xff]  }
 0x108   : > { %1425 = vmatprep.subr.bf16.mxu1 %v6083_v21  ;;  %1334 = vmatprep.mubr.bf16.mxu0 %v7365_v51  ;;  %v6134_v58 = vld [vmem:[#allocation10 + $0x278] ss:$24 sps:$4 sm:$0xff]   ;;  %v6137_v60 = vld [vmem:[#allocation10 + $0x2ac] ss:$24 sps:$4 sm:$0xff]   ;;  %v6140_v62 = vld [vmem:[#allocation10 + $0x2a8] ss:$24 sps:$4 sm:$0xff]  }
 0x109   : > { %1447 = vmatprep.mubr.bf16.mxu1 %v7365_v51  ;;  %v6141_v63 = vld [vmem:[#allocation10 + $0x2d4] ss:$24 sps:$4 sm:$0xff]   ;;  %v6145_v1 = vld [vmem:[#allocation10 + $0x2d0] ss:$24 sps:$4 sm:$0xff]   ;;  %v653_v7 = vld [vmem:[%s7330_s24 + $0x38] sm:$0xff]  ;;  %s9541_s16 = sld [smem:[#allocation61_spill]] }
 0x10a   : > { %1313 = vmatpush1.bf16.msra.mxu0 %v6085_v22  ;;  %v6143_v0 = vld [vmem:[#allocation10 + $0x2dc] ss:$24 sps:$4 sm:$0xff]   ;;  %v6146_v2 = vld [vmem:[#allocation10 + $0x2d8] ss:$24 sps:$4 sm:$0xff]   ;;  %v651_v6 = vld [vmem:[%s7330_s24 + $0x28] sm:$0xff]  ;;  %s9543_s29 = sld [smem:[#allocation62_spill]] }
 0x10b   : > { %1426 = vmatpush1.bf16.msra.mxu1 %v6086_v23  ;;  %1314 = vmatprep.subr.bf16.mxu0 %v6087_v24  ;;  %v648_v4 = vld [vmem:[%s7330_s24 + $0x10] sm:$0xff]  ;;  %v7375_v10 = vpack.c.bf16 %v653_v7, %v651_v6  ;;  %v6152_v11 = vld [vmem:[#allocation10 + $0x44] ss:$24 sps:$4 sm:$0xff]   ;;  %v6150_v12 = vld [vmem:[#allocation10 + $0x40] ss:$24 sps:$4 sm:$0xff]  }
 0x10c   : > { %1427 = vmatprep.subr.bf16.mxu1 %v6089_v25  ;;  %v6149_v5 = vld [vmem:[#allocation10 + $0x14] ss:$24 sps:$4 sm:$0xff]   ;;  %v7373_v8 = vpack.c.bf16 %v648_v4, %v646_v3  ;;  %v6147_v9 = vld [vmem:[#allocation10 + $0x10] ss:$24 sps:$4 sm:$0xff]   ;;  %v650_v13 = vld [vmem:[%s7330_s24 + $0x20] sm:$0xff] }
 0x10d   : > { %v652_v14 = vld [vmem:[%s7330_s24 + $0x30] sm:$0xff]  ;;  %v655_v16 = vld [vmem:[%s7330_s24 + $0x48] sm:$0xff]  ;;  %v657_v17 = vld [vmem:[%s7330_s24 + $0x58] sm:$0xff] }
 0x10e   : > { %1315 = vmatpush1.bf16.msra.mxu0 %v6091_v26  ;;  %v6155_v15 = vld [vmem:[#allocation10 + $0x74] ss:$24 sps:$4 sm:$0xff]   ;;  %v7385_v18 = vpack.c.bf16 %v652_v14, %v650_v13  ;;  %v6153_v19 = vld [vmem:[#allocation10 + $0x70] ss:$24 sps:$4 sm:$0xff]   ;;  %v7387_v20 = vpack.c.bf16 %v657_v17, %v655_v16  ;;  %v6158_v21 = vld [vmem:[#allocation10 + $0xa4] ss:$24 sps:$4 sm:$0xff]  }
 0x10f   : > { %1428 = vmatpush1.bf16.msra.mxu1 %v6092_v27  ;;  %1316 = vmatprep.subr.bf16.mxu0 %v6093_v28  ;;  %v6156_v22 = vld [vmem:[#allocation10 + $0xa0] ss:$24 sps:$4 sm:$0xff]   ;;  %v656_v24 = vld [vmem:[%s7330_s24 + $0x50] sm:$0xff]  ;;  %v659_v26 = vld [vmem:[%s7330_s24 + $0x68] sm:$0xff]  ;;  %s9542_s28 = smov %s9541_s16 }
 0x110   : > { %1429 = vmatprep.subr.bf16.mxu1 %v6095_v29  ;;  %v654_v23 = vld [vmem:[%s7330_s24 + $0x40] sm:$0xff]  ;;  %v6161_v25 = vld [vmem:[#allocation10 + $0xd4] ss:$24 sps:$4 sm:$0xff]   ;;  %v661_v27 = vld [vmem:[%s7330_s24 + $0x78] sm:$0xff]  ;;  %s9544_s26 = smov %s9543_s29 }
 0x111   : > { %v6159_v28 = vld [vmem:[#allocation10 + $0xd0] ss:$24 sps:$4 sm:$0xff]   ;;  %v7397_v29 = vpack.c.bf16 %v656_v24, %v654_v23  ;;  %v677_v4 = vld [vmem:[%s7330_s24 + $0xf8] sm:$0xff]  ;;  %v6191_v14 = vld [vmem:[#allocation10 + $0x2b4] ss:$24 sps:$4 sm:$0xff]  }
 0x112   : > { %1317 = vmatpush1.bf16.msra.mxu0 %v6097_v30  ;;  %v6164_v30 = vld [vmem:[#allocation10 + $0x104] ss:$24 sps:$4 sm:$0xff]   ;;  %v667_v46 = vld [vmem:[%s7330_s24 + $0xa8] sm:$0xff]  ;;  %v676_v13 = vld [vmem:[%s7330_s24 + $0xf0] sm:$0xff] }
 0x113   : > { %1430 = vmatpush1.bf16.msra.mxu1 %v6098_v31  ;;  %1318 = vmatprep.subr.bf16.mxu0 %v6099_v32  ;;  %v7399_v31 = vpack.c.bf16 %v661_v27, %v659_v26  ;;  %v6162_v32 = vld [vmem:[#allocation10 + $0x100] ss:$24 sps:$4 sm:$0xff]   ;;  %v6171_v49 = vld [vmem:[#allocation10 + $0x190] ss:$24 sps:$4 sm:$0xff]   ;;  %v6194_v17 = vld [vmem:[#allocation10 + $0x2e4] ss:$24 sps:$4 sm:$0xff]  }
 0x114   : > { %1431 = vmatprep.subr.bf16.mxu1 %v6101_v33  ;;  %v658_v33 = vld [vmem:[%s7330_s24 + $0x60] sm:$0xff]  ;;  %v675_v3 = vld [vmem:[%s7330_s24 + $0xe8] sm:$0xff] }
 0x115   : > { %v6183_v6 = vld [vmem:[#allocation10 + $0x250] ss:$24 sps:$4 sm:$0xff]   ;;  %v693_v7 = vpack.c.bf16 %v677_v4, %v675_v3 }
 0x116   : > { %1319 = vmatpush1.bf16.msra.mxu0 %v6103_v34  ;;  %v660_v34 = vld [vmem:[%s7330_s24 + $0x70] sm:$0xff] }
 0x117   : > { %1432 = vmatpush1.bf16.msra.mxu1 %v6104_v35  ;;  %1320 = vmatprep.subr.bf16.mxu0 %v6105_v36  ;;  %v6167_v35 = vld [vmem:[#allocation10 + $0x134] ss:$24 sps:$4 sm:$0xff]   ;;  %v6189_v16 = vld [vmem:[#allocation10 + $0x2b0] ss:$24 sps:$4 sm:$0xff]  }
 0x118   : > { %1433 = vmatprep.subr.bf16.mxu1 %v6107_v37  ;;  %v663_v36 = vld [vmem:[%s7330_s24 + $0x88] sm:$0xff]  ;;  %v665_v37 = vld [vmem:[%s7330_s24 + $0x98] sm:$0xff] }
 0x11a   : > { %1321 = vmatpush1.bf16.msra.mxu0 %v6109_v38  ;;  %v7409_v38 = vpack.c.bf16 %v660_v34, %v658_v33 }
 0x11b   : > { %1434 = vmatpush1.bf16.msra.mxu1 %v6110_v39  ;;  %1322 = vmatprep.subr.bf16.mxu0 %v6111_v40  ;;  %v6165_v39 = vld [vmem:[#allocation10 + $0x130] ss:$24 sps:$4 sm:$0xff]   ;;  %v7411_v40 = vpack.c.bf16 %v665_v37, %v663_v36 }
 0x11c   : > { %1435 = vmatprep.subr.bf16.mxu1 %v6113_v41  ;;  %v6170_v41 = vld [vmem:[#allocation10 + $0x164] ss:$24 sps:$4 sm:$0xff]  }
 0x11e   : > { %1323 = vmatpush1.bf16.msra.mxu0 %v6115_v42  ;;  %v6168_v42 = vld [vmem:[#allocation10 + $0x160] ss:$24 sps:$4 sm:$0xff]  }
 0x11f   : > { %1436 = vmatpush1.bf16.msra.mxu1 %v6116_v43  ;;  %1324 = vmatprep.subr.bf16.mxu0 %v6117_v44  ;;  %v662_v43 = vld [vmem:[%s7330_s24 + $0x80] sm:$0xff]  ;;  %v664_v44 = vld [vmem:[%s7330_s24 + $0x90] sm:$0xff] }
 0x120   : > { %1437 = vmatprep.subr.bf16.mxu1 %v6119_v45  ;;  %v6173_v45 = vld [vmem:[#allocation10 + $0x194] ss:$24 sps:$4 sm:$0xff]  }
 0x122   : > { %1325 = vmatpush1.bf16.msra.mxu0 %v6121_v47  ;;  %v669_v47 = vld [vmem:[%s7330_s24 + $0xb8] sm:$0xff] }
 0x123   : > { %1438 = vmatpush1.bf16.msra.mxu1 %v6122_v48  ;;  %1326 = vmatprep.subr.bf16.mxu0 %v6123_v50  ;;  %v7421_v48 = vpack.c.bf16 %v664_v44, %v662_v43  ;;  %v7423_v50 = vpack.c.bf16 %v669_v47, %v667_v46 }
 0x124   : > { %1439 = vmatprep.subr.bf16.mxu1 %v6125_v52  ;;  %v6176_v52 = vld [vmem:[#allocation10 + $0x1c4] ss:$24 sps:$4 sm:$0xff]  }
 0x126   : > { %1327 = vmatpush1.bf16.msra.mxu0 %v6127_v53  ;;  %v6174_v53 = vld [vmem:[#allocation10 + $0x1c0] ss:$24 sps:$4 sm:$0xff]  }
 0x127   : > { %1440 = vmatpush1.bf16.msra.mxu1 %v6128_v54  ;;  %1328 = vmatprep.subr.bf16.mxu0 %v6129_v55  ;;  %v666_v54 = vld [vmem:[%s7330_s24 + $0xa0] sm:$0xff]  ;;  %v668_v55 = vld [vmem:[%s7330_s24 + $0xb0] sm:$0xff] }
 0x128   : > { %1441 = vmatprep.subr.bf16.mxu1 %v6131_v56  ;;  %v6179_v56 = vld [vmem:[#allocation10 + $0x1f4] ss:$24 sps:$4 sm:$0xff]  }
 0x12a   : > { %1329 = vmatpush1.bf16.msra.mxu0 %v6133_v57  ;;  %v671_v57 = vld [vmem:[%s7330_s24 + $0xc8] sm:$0xff] }
 0x12b   : > { %1442 = vmatpush1.bf16.msra.mxu1 %v6134_v58  ;;  %1330 = vmatprep.subr.bf16.mxu0 %v6135_v59  ;;  %v673_v58 = vld [vmem:[%s7330_s24 + $0xd8] sm:$0xff]  ;;  %v7433_v59 = vpack.c.bf16 %v668_v55, %v666_v54 }
 0x12c   : > { %1443 = vmatprep.subr.bf16.mxu1 %v6137_v60  ;;  %v6177_v60 = vld [vmem:[#allocation10 + $0x1f0] ss:$24 sps:$4 sm:$0xff]  }
 0x12e   : > { %1331 = vmatpush1.bf16.msra.mxu0 %v6139_v61  ;;  %v7435_v61 = vpack.c.bf16 %v673_v58, %v671_v57 }
 0x12f   : > { %1444 = vmatpush1.bf16.msra.mxu1 %v6140_v62  ;;  %1332 = vmatprep.subr.bf16.mxu0 %v6141_v63  ;;  %v6182_v62 = vld [vmem:[#allocation10 + $0x224] ss:$24 sps:$4 sm:$0xff]   ;;  %v6180_v63 = vld [vmem:[#allocation10 + $0x220] ss:$24 sps:$4 sm:$0xff]  }
 0x130   : > { %1445 = vmatprep.subr.bf16.mxu1 %v6143_v0  ;;  %v670_v0 = vld [vmem:[%s7330_s24 + $0xc0] sm:$0xff] }
 0x132   : > { %1333 = vmatpush1.bf16.msra.mxu0 %v6145_v1  ;;  %v672_v1 = vld [vmem:[%s7330_s24 + $0xd0] sm:$0xff] }
 0x133   : > { %1446 = vmatpush1.bf16.msra.mxu1 %v6146_v2  ;;  %1528 = vmatprep.subr.bf16.mxu0 %v6149_v5  ;;  %v6185_v2 = vld [vmem:[#allocation10 + $0x254] ss:$24 sps:$4 sm:$0xff]  }
 0x134   : > { %5834 = vmatprep.subr.bf16.mxu1 %v6149_v5  ;;  %v690_v5 = vpack.c.bf16 %v672_v1, %v670_v0 }
 0x135   : > { %1335 = vmatmul.mubr.bf16.vlgmr.msra.gmra.mrb[0].mxu0 %v7373_v8 }
 0x136   : > { %1448 = vmatmul.mubr.bf16.vlgmr.msra.gmra.mrb[0].mxu1 %v7373_v8  ;;  %1529 = vmatpush1.bf16.msra.mxu0 %v6147_v9 }
 0x137   : > { %1344 = vmatprep.mubr.bf16.mxu0 %v7375_v10  ;;  %1530 = vmatprep.subr.bf16.mxu0 %v6152_v11 }
 0x138   : > { %1457 = vmatprep.mubr.bf16.mxu1 %v7375_v10  ;;  %5850 = vmatpush1.bf16.msra.mxu1 %v6147_v9  ;;  %v6188_v9 = vld [vmem:[#allocation10 + $0x284] ss:$24 sps:$4 sm:$0xff]  }
 0x139   : > { %5835 = vmatprep.subr.bf16.mxu1 %v6152_v11  ;;  %v6186_v11 = vld [vmem:[#allocation10 + $0x280] ss:$24 sps:$4 sm:$0xff]  }
 0x13a   : > { %1531 = vmatpush1.bf16.msra.mxu0 %v6150_v12 }
 0x13b   : > { %1532 = vmatprep.subr.bf16.mxu0 %v6155_v15 }
 0x13c   : > { %5851 = vmatpush1.bf16.msra.mxu1 %v6150_v12  ;;  %v674_v12 = vld [vmem:[%s7330_s24 + $0xe0] sm:$0xff] }
 0x13d   : > { %1345 = vmatmul.mubr.bf16.gmra.mrb[4].mxu0 %v7385_v18  ;;  %5836 = vmatprep.subr.bf16.mxu1 %v6155_v15  ;;  %v692_v15 = vpack.c.bf16 %v676_v13, %v674_v12 }
 0x13e   : > { %1458 = vmatmul.mubr.bf16.gmra.mrb[4].mxu1 %v7385_v18  ;;  %1533 = vmatpush1.bf16.msra.mxu0 %v6153_v19 }
 0x13f   : > { %1354 = vmatprep.mubr.bf16.mxu0 %v7387_v20  ;;  %1534 = vmatprep.subr.bf16.mxu0 %v6158_v21 }
 0x140   : > { %1467 = vmatprep.mubr.bf16.mxu1 %v7387_v20  ;;  %5852 = vmatpush1.bf16.msra.mxu1 %v6153_v19  ;;  %v6192_v19 = vld [vmem:[#allocation10 + $0x2e0] ss:$24 sps:$4 sm:$0xff]  }
 0x141   : > { %5837 = vmatprep.subr.bf16.mxu1 %v6158_v21  ;;  %v7472_v21 = vld [vmem:[%s9473_s9] sm:$0x3f] }
 0x142   : > { %1535 = vmatpush1.bf16.msra.mxu0 %v6156_v22 }
 0x143   : > { %1536 = vmatprep.subr.bf16.mxu0 %v6161_v25 }
 0x144   : > { %5853 = vmatpush1.bf16.msra.mxu1 %v6156_v22 }
 0x145   : > { %1355 = vmatmul.mubr.bf16.gmra.mrb[8].mxu0 %v7397_v29  ;;  %5838 = vmatprep.subr.bf16.mxu1 %v6161_v25 }
 0x146   : > { %1468 = vmatmul.mubr.bf16.gmra.mrb[8].mxu1 %v7397_v29  ;;  %1537 = vmatpush1.bf16.msra.mxu0 %v6159_v28 }
 0x147   : > { %1364 = vmatprep.mubr.bf16.mxu0 %v7399_v31  ;;  %1538 = vmatprep.subr.bf16.mxu0 %v6164_v30 }
 0x148   : > { %1477 = vmatprep.mubr.bf16.mxu1 %v7399_v31  ;;  %5854 = vmatpush1.bf16.msra.mxu1 %v6159_v28 }
 0x149   : > { %5839 = vmatprep.subr.bf16.mxu1 %v6164_v30 }
 0x14a   : > { %1539 = vmatpush1.bf16.msra.mxu0 %v6162_v32 }
 0x14b   : > { %1540 = vmatprep.subr.bf16.mxu0 %v6167_v35 }
 0x14c   : > { %5855 = vmatpush1.bf16.msra.mxu1 %v6162_v32 }
 0x14d   : > { %1365 = vmatmul.mubr.bf16.gmra.mrb[12].mxu0 %v7409_v38  ;;  %5840 = vmatprep.subr.bf16.mxu1 %v6167_v35 }
 0x14e   : > { %1478 = vmatmul.mubr.bf16.gmra.mrb[12].mxu1 %v7409_v38  ;;  %1541 = vmatpush1.bf16.msra.mxu0 %v6165_v39 }
 0x14f   : > { %1374 = vmatprep.mubr.bf16.mxu0 %v7411_v40  ;;  %1542 = vmatprep.subr.bf16.mxu0 %v6170_v41 }
 0x150   : > { %1487 = vmatprep.mubr.bf16.mxu1 %v7411_v40  ;;  %5856 = vmatpush1.bf16.msra.mxu1 %v6165_v39 }
 0x151   : > { %5841 = vmatprep.subr.bf16.mxu1 %v6170_v41 }
 0x152   : > { %1543 = vmatpush1.bf16.msra.mxu0 %v6168_v42 }
 0x153   : > { %1544 = vmatprep.subr.bf16.mxu0 %v6173_v45 }
 0x154   : > { %5857 = vmatpush1.bf16.msra.mxu1 %v6168_v42 }
 0x155   : > { %1375 = vmatmul.mubr.bf16.gmra.mrb[16].mxu0 %v7421_v48  ;;  %5842 = vmatprep.subr.bf16.mxu1 %v6173_v45 }
 0x156   : > { %1545 = vmatpush1.bf16.msra.mxu0 %v6171_v49  ;;  %1384 = vmatprep.mubr.bf16.mxu0 %v7423_v50 }
 0x157   : > { %1546 = vmatprep.subr.bf16.mxu0 %v6176_v52  ;;  %1488 = vmatmul.mubr.bf16.gmra.mrb[16].mxu1 %v7421_v48 }
 0x158   : > { %1497 = vmatprep.mubr.bf16.mxu1 %v7423_v50  ;;  %5858 = vmatpush1.bf16.msra.mxu1 %v6171_v49 }
 0x159   : > { %5843 = vmatprep.subr.bf16.mxu1 %v6176_v52 }
 0x15a   : > { %1547 = vmatpush1.bf16.msra.mxu0 %v6174_v53 }
 0x15b   : > { %1548 = vmatprep.subr.bf16.mxu0 %v6179_v56 }
 0x15c   : > { %5859 = vmatpush1.bf16.msra.mxu1 %v6174_v53 }
 0x15d   : > { %1385 = vmatmul.mubr.bf16.gmra.mrb[20].mxu0 %v7433_v59  ;;  %5844 = vmatprep.subr.bf16.mxu1 %v6179_v56 }
 0x15e   : > { %1549 = vmatpush1.bf16.msra.mxu0 %v6177_v60  ;;  %1394 = vmatprep.mubr.bf16.mxu0 %v7435_v61 }
 0x15f   : > { %1550 = vmatprep.subr.bf16.mxu0 %v6182_v62  ;;  %1498 = vmatmul.mubr.bf16.gmra.mrb[20].mxu1 %v7433_v59 }
 0x160   : > { %1507 = vmatprep.mubr.bf16.mxu1 %v7435_v61  ;;  %5860 = vmatpush1.bf16.msra.mxu1 %v6177_v60 }
 0x161   : > { %5845 = vmatprep.subr.bf16.mxu1 %v6182_v62 }
 0x162   : > { %1551 = vmatpush1.bf16.msra.mxu0 %v6180_v63 }
 0x163   : > { %1552 = vmatprep.subr.bf16.mxu0 %v6185_v2 }
 0x164   : > { %5861 = vmatpush1.bf16.msra.mxu1 %v6180_v63 }
 0x165   : > { %1395 = vmatmul.mubr.bf16.gmra.mrb[24].mxu0 %v690_v5  ;;  %5846 = vmatprep.subr.bf16.mxu1 %v6185_v2 }
 0x166   : > { %1553 = vmatpush1.bf16.msra.mxu0 %v6183_v6  ;;  %1404 = vmatprep.mubr.bf16.mxu0 %v693_v7 }
 0x167   : > { %1554 = vmatprep.subr.bf16.mxu0 %v6188_v9  ;;  %1508 = vmatmul.mubr.bf16.gmra.mrb[24].mxu1 %v690_v5 }
 0x168   : > { %1517 = vmatprep.mubr.bf16.mxu1 %v693_v7  ;;  %5862 = vmatpush1.bf16.msra.mxu1 %v6183_v6 }
 0x169   : > { %5847 = vmatprep.subr.bf16.mxu1 %v6188_v9 }
 0x16a   : > { %1555 = vmatpush1.bf16.msra.mxu0 %v6186_v11 }
 0x16b   : > { %1556 = vmatprep.subr.bf16.mxu0 %v6191_v14 }
 0x16c   : > { %5863 = vmatpush1.bf16.msra.mxu1 %v6186_v11 }
 0x16d   : > { %1405 = vmatmul.mubr.bf16.gmra.mrb[28].mxu0 %v692_v15  ;;  %5848 = vmatprep.subr.bf16.mxu1 %v6191_v14 }
 0x16e   : > { %1557 = vmatpush1.bf16.msra.mxu0 %v6189_v16  ;;  %1560 = vmatprep.mubr.bf16.mxu0 %v7365_v51  ;;  %v792_v51 = vlaneseq }
 0x16f   : > { %1558 = vmatprep.subr.bf16.mxu0 %v6194_v17  ;;  %1518 = vmatmul.mubr.bf16.gmra.mrb[28].mxu1 %v692_v15 }
 0x170   : > { %1590 = vmatprep.mubr.bf16.mxu1 %v7399_v31  ;;  %5864 = vmatpush1.bf16.msra.mxu1 %v6189_v16 }
 0x171   : > { %5849 = vmatprep.subr.bf16.mxu1 %v6194_v17 }
 0x172   : > { %1559 = vmatpush1.bf16.msra.mxu0 %v6192_v19 }
 0x174   : > { %5865 = vmatpush1.bf16.msra.mxu1 %v6192_v19 }
 0x175   : > { %1561 = vmatmul.mubr.bf16.vlgmr.msra.gmra.mrb[32].mxu0 %v7373_v8  ;;  %v7460_v8 = vshrl.u32 %v792_v51, 7 }
 0x176   : > { %1570 = vmatprep.mubr.bf16.mxu0 %v7375_v10 }
 0x177   : > { %1591 = vmatmul.mubr.bf16.vlgmr.msra.gmra.mrb[32].mxu1 %v7409_v38  ;;  %v7463_v10 = vsub.s32 0, %v7460_v8  ;;  %v806_v22 = vsub.s32 3, %v7460_v8 }
 0x178   : > { %1600 = vmatprep.mubr.bf16.mxu1 %v7411_v40 }
 0x179   : > { %9471 = vst [vmem:[#allocation33_spill] sm:$0xff] %v7463_v10  ;;  %v7477_v23 = vrot.slane %v7472_v21, %v7463_v10  ;;  %v7487_v27 = vrot.slane %v7472_v21, %v806_v22 }
 0x17d   : > { %1571 = vmatmul.mubr.bf16.gmra.mrb[36].mxu0 %v7385_v18  ;;  %v7466_v18 = vsub.s32 1, %v7460_v8 }
 0x17e   : > { %1580 = vmatprep.mubr.bf16.mxu0 %v7387_v20  ;;  %v802_v20 = vsub.s32 2, %v7460_v8 }
 0x17f   : > { %1601 = vmatmul.mubr.bf16.gmra.mrb[36].mxu1 %v7421_v48  ;;  %9472 = vst [vmem:[#allocation34_spill] sm:$0xff] %v7466_v18  ;;  %v7481_v24 = vrot.slane %v7472_v21, %v7466_v18 }
 0x180   : > { %1610 = vmatprep.mubr.bf16.mxu1 %v7423_v50  ;;  %v7484_v25 = vrot.slane %v7472_v21, %v802_v20 }
 0x185   : > { %1581 = vmatmul.mubr.bf16.gmra.mrb[40].mxu0 %v7397_v29 }
 0x187   : > { %1611 = vmatmul.mubr.bf16.gmra.mrb[40].mxu1 %v7433_v59 }
 0x188   : > { %1620 = vmatprep.mubr.bf16.mxu1 %v7435_v61 }
 0x18f   : > { %1621 = vmatmul.mubr.bf16.gmra.mrb[44].mxu1 %v690_v5 }
 0x190   : > { %1630 = vmatprep.mubr.bf16.mxu1 %v693_v7 }
 0x197   : > { %1631 = vmatmul.mubr.bf16.gmra.mrb[48].mxu1 %v692_v15 }
 0x208   : > { %v1336_v28 = vpop.f32.mrb[0].mxu0 }
 0x209   : > { %v1449_v26 = vpop.f32.mrb[0].mxu1  ;;  %v1337_v30 = vadd.f32 %v1336_v28, %v7477_v23  ;;  %v1338_v31 = vpop.f32.mrb[1].mxu0 }
 0x20a   : > { %v1451_v29 = vpop.f32.mrb[1].mxu1  ;;  %v7491_v33 = vadd.f32 %v1338_v31, %v7481_v24  ;;  %v1340_v34 = vpop.f32.mrb[2].mxu0  ;;  %v1450_v35 = vadd.f32 %v1449_v26, %v7484_v25 }
 0x20b   : > { %v1453_v32 = vpop.f32.mrb[2].mxu1  ;;  %v1341_v38 = vadd.f32 %v1340_v34, %v7477_v23  ;;  %v1342_v39 = vpop.f32.mrb[3].mxu0  ;;  %v1452_v40 = vadd.f32 %v1451_v29, %v7487_v27 }
 0x20c   : > { %v1454_v36 = vadd.f32 %v1453_v32, %v7484_v25  ;;  %v1455_v37 = vpop.f32.mrb[3].mxu1  ;;  %v7499_v42 = vadd.f32 %v1342_v39, %v7481_v24 }
 0x20d   : > { %v1456_v41 = vadd.f32 %v1455_v37, %v7487_v27  ;;  %v1649_v44 = vpack.c.bf16 %v1341_v38, %v1337_v30  ;;  %v7733_v30 = vld [vmem:[#allocation8 + $0x20] sm:$0xff] }
 0x20e   : > { %v1653_v43 = vpack.c.bf16 %v1454_v36, %v1450_v35 }
 0x20f   : > { %v7501_v45 = vpack.c.bf16 %v1456_v41, %v1452_v40  ;;  %5714 = vmatprep.mubr.bf16.mxu1 %v1649_v44 }
 0x210   : > { %5706 = vmatprep.subr.bf16.mxu1 %v1653_v43  ;;  %v1346_v48 = vpop.f32.mrb[4].mxu0 }
 0x211   : > { %v1459_v47 = vpop.f32.mrb[4].mxu1  ;;  %5707 = vmatpush3.bf16.xpose.msra.mxu1 %v1653_v43  ;;  %v7506_v50 = vadd.f32 %v1346_v48, %v7477_v23  ;;  %v1348_v52 = vpop.f32.mrb[5].mxu0 }
 0x212   : > { %v1461_v49 = vpop.f32.mrb[5].mxu1  ;;  %v7510_v55 = vadd.f32 %v1348_v52, %v7481_v24  ;;  %v1350_v56 = vpop.f32.mrb[6].mxu0  ;;  %v1460_v57 = vadd.f32 %v1459_v47, %v7484_v25 }
 0x213   : > { %v1462_v53 = vadd.f32 %v1461_v49, %v7487_v27  ;;  %v1463_v54 = vpop.f32.mrb[6].mxu1  ;;  %v7515_v60 = vadd.f32 %v1350_v56, %v7477_v23  ;;  %v1352_v61 = vpop.f32.mrb[7].mxu0 }
 0x214   : > { %v1464_v58 = vadd.f32 %v1463_v54, %v7484_v25  ;;  %v1465_v59 = vpop.f32.mrb[7].mxu1  ;;  %v7519_v63 = vadd.f32 %v1352_v61, %v7481_v24 }
 0x215   : > { %v1466_v62 = vadd.f32 %v1465_v59, %v7487_v27  ;;  %v1650_v1 = vpack.c.bf16 %v7515_v60, %v7506_v50 }
 0x216   : > { %v1654_v0 = vpack.c.bf16 %v1464_v58, %v1460_v57 }
 0x217   : > { %v7523_v2 = vpack.c.bf16 %v1466_v62, %v1462_v53 }
 0x218   : > { %5708 = vmatprep.subr.bf16.mxu1 %v1654_v0  ;;  %v1356_v5 = vpop.f32.mrb[8].mxu0 }
 0x219   : > { %v1469_v4 = vpop.f32.mrb[8].mxu1  ;;  %5709 = vmatpush3.bf16.xpose.msra.mxu1 %v1654_v0  ;;  %v1357_v7 = vadd.f32 %v1356_v5, %v7477_v23  ;;  %v1358_v9 = vpop.f32.mrb[9].mxu0 }
 0x21a   : > { %v1471_v6 = vpop.f32.mrb[9].mxu1  ;;  %v7530_v13 = vadd.f32 %v1358_v9, %v7481_v24  ;;  %v1360_v14 = vpop.f32.mrb[10].mxu0  ;;  %v1470_v15 = vadd.f32 %v1469_v4, %v7484_v25 }
 0x21b   : > { %v1472_v11 = vadd.f32 %v1471_v6, %v7487_v27  ;;  %v1473_v12 = vpop.f32.mrb[10].mxu1  ;;  %v1361_v19 = vadd.f32 %v1360_v14, %v7477_v23  ;;  %v1362_v51 = vpop.f32.mrb[11].mxu0 }
 0x21c   : > { %v1474_v16 = vadd.f32 %v1473_v12, %v7484_v25  ;;  %v1475_v17 = vpop.f32.mrb[11].mxu1  ;;  %v7537_v22 = vadd.f32 %v1362_v51, %v7481_v24 }
 0x21d   : > { %v1476_v20 = vadd.f32 %v1475_v17, %v7487_v27  ;;  %v1651_v28 = vpack.c.bf16 %v1361_v19, %v1357_v7 }
 0x21e   : > { %v1655_v26 = vpack.c.bf16 %v1474_v16, %v1470_v15 }
 0x21f   : > { %v7539_v29 = vpack.c.bf16 %v1476_v20, %v1472_v11 }
 0x220   : > { %5710 = vmatprep.subr.bf16.mxu1 %v1655_v26  ;;  %v1366_v32 = vpop.f32.mrb[12].mxu0 }
 0x221   : > { %v1479_v31 = vpop.f32.mrb[12].mxu1  ;;  %5711 = vmatpush3.bf16.xpose.msra.mxu1 %v1655_v26  ;;  %v1367_v35 = vadd.f32 %v1366_v32, %v7477_v23  ;;  %v1368_v36 = vpop.f32.mrb[13].mxu0 }
 0x222   : > { %v1481_v34 = vpop.f32.mrb[13].mxu1  ;;  %v7546_v39 = vadd.f32 %v1368_v36, %v7481_v24  ;;  %v1370_v40 = vpop.f32.mrb[14].mxu0  ;;  %v1480_v41 = vadd.f32 %v1479_v31, %v7484_v25 }
 0x223   : > { %v1482_v37 = vadd.f32 %v1481_v34, %v7487_v27  ;;  %v1483_v38 = vpop.f32.mrb[14].mxu1  ;;  %v1371_v47 = vadd.f32 %v1370_v40, %v7477_v23  ;;  %v1372_v48 = vpop.f32.mrb[15].mxu0 }
 0x224   : > { %v1484_v43 = vadd.f32 %v1483_v38, %v7484_v25  ;;  %v1485_v44 = vpop.f32.mrb[15].mxu1  ;;  %v7553_v52 = vadd.f32 %v1372_v48, %v7481_v24 }
 0x225   : > { %v1486_v49 = vadd.f32 %v1485_v44, %v7487_v27  ;;  %v1652_v54 = vpack.c.bf16 %v1371_v47, %v1367_v35 }
 0x226   : > { %v1656_v53 = vpack.c.bf16 %v1484_v43, %v1480_v41 }
 0x227   : > { %v7555_v56 = vpack.c.bf16 %v1486_v49, %v1482_v37 }
 0x228   : > { %5712 = vmatprep.subr.bf16.mxu1 %v1656_v53  ;;  %v1376_v58 = vpop.f32.mrb[16].mxu0 }
 0x229   : > { %5713 = vmatpush3.bf16.xpose.msra.mxu1 %v1656_v53  ;;  %v7560_v59 = vadd.f32 %v1376_v58, %v7477_v23  ;;  %v1378_v61 = vpop.f32.mrb[17].mxu0 }
 0x22a   : > { %v7563_v62 = vadd.f32 %v1378_v61, %v7481_v24  ;;  %v1380_v0 = vpop.f32.mrb[18].mxu0  ;;  %v1489_v4 = vpop.f32.mrb[16].mxu1 }
 0x22b   : > { %v7566_v5 = vadd.f32 %v1380_v0, %v7477_v23  ;;  %v1382_v6 = vpop.f32.mrb[19].mxu0  ;;  %v1490_v7 = vadd.f32 %v1489_v4, %v7484_v25  ;;  %v1491_v9 = vpop.f32.mrb[17].mxu1 }
 0x22c   : > { %9474 = vst [vmem:[#allocation35_spill] sm:$0xff] %v7563_v62  ;;  %v7570_v11 = vadd.f32 %v1382_v6, %v7481_v24  ;;  %v1492_v12 = vadd.f32 %v1491_v9, %v7487_v27  ;;  %v1493_v14 = vpop.f32.mrb[18].mxu1 }
 0x22d   : > { %v1494_v16 = vadd.f32 %v1493_v14, %v7484_v25  ;;  %v1495_v17 = vpop.f32.mrb[19].mxu1 }
 0x22e   : > { %9475 = vst [vmem:[#allocation36_spill] sm:$0xff] %v7570_v11  ;;  %v1496_v51 = vadd.f32 %v1495_v17, %v7487_v27 }
 0x22f   : > { %v7582_v20 = vpack.c.bf16 %v1494_v16, %v1490_v7 }
 0x230   : > { %5715 = vmatmul.mubr.bf16.vlgmr.msra.gmra.mrb[52].mxu1 %v1650_v1  ;;  %v1386_v26 = vpop.f32.mrb[20].mxu0  ;;  %v7584_v31 = vpack.c.bf16 %v1496_v51, %v1492_v12 }
 0x231   : > { %5718 = vmatprep.mubr.bf16.mxu1 %v1651_v28  ;;  %v7587_v32 = vadd.f32 %v1386_v26, %v7477_v23  ;;  %v1388_v34 = vpop.f32.mrb[21].mxu0 }
 0x232   : > { %v7590_v35 = vadd.f32 %v1388_v34, %v7481_v24  ;;  %v1390_v36 = vpop.f32.mrb[22].mxu0  ;;  %v1499_v37 = vpop.f32.mrb[20].mxu1 }
 0x233   : > { %v7593_v38 = vadd.f32 %v1390_v36, %v7477_v23  ;;  %v1392_v50 = vpop.f32.mrb[23].mxu0  ;;  %v1500_v60 = vadd.f32 %v1499_v37, %v7484_v25  ;;  %v1501_v1 = vpop.f32.mrb[21].mxu1 }
 0x234   : > { %9476 = vst [vmem:[#allocation37_spill] sm:$0xff] %v7590_v35  ;;  %v7597_v28 = vadd.f32 %v1392_v50, %v7481_v24  ;;  %v1502_v40 = vadd.f32 %v1501_v1, %v7487_v27  ;;  %v1503_v41 = vpop.f32.mrb[22].mxu1 }
 0x235   : > { %v1504_v44 = vadd.f32 %v1503_v41, %v7484_v25  ;;  %v1505_v47 = vpop.f32.mrb[23].mxu1 }
 0x236   : > { %9477 = vst [vmem:[#allocation38_spill] sm:$0xff] %v7597_v28  ;;  %v1506_v49 = vadd.f32 %v1505_v47, %v7487_v27 }
 0x237   : > { %v7606_v53 = vpack.c.bf16 %v1504_v44, %v1500_v60 }
 0x238   : > { %5719 = vmatmul.mubr.bf16.gmra.mrb[56].mxu1 %v1652_v54  ;;  %v1396_v58 = vpop.f32.mrb[24].mxu0  ;;  %v7608_v61 = vpack.c.bf16 %v1506_v49, %v1502_v40  ;;  %v810_v49 = vsub.s32 4, %v7460_v8 }
 0x239   : > { %v7611_v0 = vadd.f32 %v1396_v58, %v7477_v23  ;;  %v1398_v4 = vpop.f32.mrb[25].mxu0 }
 0x23a   : > { %9478 = vst [vmem:[#allocation39_spill] sm:$0xff] %v7608_v61  ;;  %v7614_v6 = vadd.f32 %v1398_v4, %v7481_v24  ;;  %v1400_v7 = vpop.f32.mrb[26].mxu0  ;;  %v1509_v9 = vpop.f32.mrb[24].mxu1 }
 0x23b   : > { %v7617_v12 = vadd.f32 %v1400_v7, %v7477_v23  ;;  %v1402_v14 = vpop.f32.mrb[27].mxu0  ;;  %v1510_v54 = vadd.f32 %v1509_v9, %v7484_v25  ;;  %v1511_v16 = vpop.f32.mrb[25].mxu1  ;;  %v814_v7 = vsub.s32 5, %v7460_v8 }
 0x23c   : > { %9479 = vst [vmem:[#allocation40_spill] sm:$0xff] %v7614_v6  ;;  %v7621_v17 = vadd.f32 %v1402_v14, %v7481_v24  ;;  %v1512_v51 = vadd.f32 %v1511_v16, %v7487_v27  ;;  %v1513_v26 = vpop.f32.mrb[26].mxu1 }
 0x23d   : > { %v1514_v36 = vadd.f32 %v1513_v26, %v7484_v25  ;;  %v1515_v37 = vpop.f32.mrb[27].mxu1 }
 0x23e   : > { %9480 = vst [vmem:[#allocation41_spill] sm:$0xff] %v7621_v17  ;;  %v1516_v60 = vadd.f32 %v1515_v37, %v7487_v27 }
 0x23f   : > { %v7630_v1 = vpack.c.bf16 %v1514_v36, %v1510_v54 }
 0x240   : > { %v1406_v40 = vpop.f32.mrb[28].mxu0  ;;  %v7632_v41 = vpack.c.bf16 %v1516_v60, %v1512_v51 }
 0x241   : > { %v7635_v44 = vadd.f32 %v1406_v40, %v7477_v23  ;;  %v1408_v47 = vpop.f32.mrb[29].mxu0  ;;  %v7653_v40 = vrot.slane %v7472_v21, %v810_v49 }
 0x242   : > { %9481 = vst [vmem:[#allocation42_spill] sm:$0xff] %v7632_v41  ;;  %v7639_v58 = vadd.f32 %v1408_v47, %v7481_v24  ;;  %v1410_v4 = vpop.f32.mrb[30].mxu0  ;;  %v1519_v9 = vpop.f32.mrb[28].mxu1 }
 0x243   : > { %v7643_v14 = vadd.f32 %v1410_v4, %v7477_v23  ;;  %v1412_v54 = vpop.f32.mrb[31].mxu0  ;;  %v1520_v16 = vadd.f32 %v1519_v9, %v7484_v25  ;;  %v1521_v51 = vpop.f32.mrb[29].mxu1  ;;  %v7659_v4 = vrot.slane %v7472_v21, %v814_v7 }
 0x244   : > { %9482 = vst [vmem:[#allocation43_spill] sm:$0xff] %v7639_v58  ;;  %v7647_v26 = vadd.f32 %v1412_v54, %v7481_v24  ;;  %v1522_v36 = vadd.f32 %v1521_v51, %v7487_v27  ;;  %v1523_v37 = vpop.f32.mrb[30].mxu1 }
 0x245   : > { %v1524_v8 = vadd.f32 %v1523_v37, %v7484_v25  ;;  %v1525_v23 = vpop.f32.mrb[31].mxu1 }
 0x246   : > { %9483 = vst [vmem:[#allocation44_spill] sm:$0xff] %v7647_v26  ;;  %v1526_v24 = vadd.f32 %v1525_v23, %v7487_v27 }
 0x247   : > { %v7662_v9 = vpack.c.bf16 %v1524_v8, %v1520_v16 }
 0x248   : > { %v1562_v54 = vpop.f32.mrb[32].mxu0  ;;  %v7664_v51 = vpack.c.bf16 %v1526_v24, %v1522_v36 }
 0x249   : > { %v1563_v50 = vadd.f32 %v1562_v54, %v7653_v40  ;;  %v1564_v49 = vpop.f32.mrb[33].mxu0 }
 0x24a   : > { %9484 = vst [vmem:[#allocation45_spill] sm:$0xff] %v7664_v51  ;;  %v1565_v48 = vadd.f32 %v1564_v49, %v7659_v4  ;;  %v1566_v25 = vpop.f32.mrb[34].mxu0  ;;  %v1592_v60 = vpop.f32.mrb[32].mxu1 }
 0x24b   : > { %v1567_v37 = vadd.f32 %v1566_v25, %v7653_v40  ;;  %v1568_v19 = vpop.f32.mrb[35].mxu0  ;;  %v1593_v27 = vadd.f32 %v1592_v60, %v7653_v40  ;;  %v1594_v16 = vpop.f32.mrb[33].mxu1 }
 0x24c   : > { %v1569_v47 = vadd.f32 %v1568_v19, %v7659_v4  ;;  %v1595_v8 = vadd.f32 %v1594_v16, %v7659_v4  ;;  %v1596_v23 = vpop.f32.mrb[34].mxu1 }
 0x24d   : > { %v1657_v21 = vpack.c.bf16 %v1567_v37, %v1563_v50  ;;  %v1597_v49 = vadd.f32 %v1596_v23, %v7653_v40  ;;  %v1598_v19 = vpop.f32.mrb[35].mxu1 }
 0x24e   : > { %v1924_v7 = vpack.c.bf16 %v1569_v47, %v1565_v48  ;;  %v1599_v47 = vadd.f32 %v1598_v19, %v7659_v4 }
 0x24f   : > { %5722 = vmatprep.subr.bf16.mxu1 %v1657_v21  ;;  %v1660_v37 = vpack.c.bf16 %v1597_v49, %v1593_v27 }
 0x250   : > { %v1572_v36 = vpop.f32.mrb[36].mxu0  ;;  %5723 = vmatpush3.bf16.msra.mxu1 %v1657_v21  ;;  %5754 = vmatprep.subr.bf16.mxu0 %v1924_v7  ;;  %v1927_v16 = vpack.c.bf16 %v1599_v47, %v1595_v8 }
 0x251   : > { %v1573_v24 = vadd.f32 %v1572_v36, %v7653_v40  ;;  %v1574_v54 = vpop.f32.mrb[37].mxu0  ;;  %5755 = vmatpush3.bf16.msra.mxu0 %v1924_v7 }
 0x252   : > { %v1575_v48 = vadd.f32 %v1574_v54, %v7659_v4  ;;  %v1576_v50 = vpop.f32.mrb[38].mxu0  ;;  %v1602_v36 = vpop.f32.mrb[36].mxu1 }
 0x253   : > { %v1577_v60 = vadd.f32 %v1576_v50, %v7653_v40  ;;  %v1578_v25 = vpop.f32.mrb[39].mxu0  ;;  %v1603_v23 = vadd.f32 %v1602_v36, %v7653_v40  ;;  %v1604_v7 = vpop.f32.mrb[37].mxu1 }
 0x254   : > { %v1579_v21 = vadd.f32 %v1578_v25, %v7659_v4  ;;  %v1605_v54 = vadd.f32 %v1604_v7, %v7659_v4  ;;  %v1606_v19 = vpop.f32.mrb[38].mxu1 }
 0x255   : > { %v1658_v34 = vpack.c.bf16 %v1577_v60, %v1573_v24  ;;  %v1607_v27 = vadd.f32 %v1606_v19, %v7653_v40  ;;  %v1608_v8 = vpop.f32.mrb[39].mxu1 }
 0x256   : > { %v1925_v43 = vpack.c.bf16 %v1579_v21, %v1575_v48  ;;  %v1609_v48 = vadd.f32 %v1608_v8, %v7659_v4 }
 0x257   : > { %5724 = vmatprep.subr.bf16.mxu1 %v1658_v34 }
 0x258   : > { %v1582_v15 = vpop.f32.mrb[40].mxu0  ;;  %5725 = vmatpush3.bf16.msra.mxu1 %v1658_v34  ;;  %5756 = vmatprep.subr.bf16.mxu0 %v1925_v43  ;;  %v7685_v34 = vpack.c.bf16 %v1607_v27, %v1603_v23  ;;  %v7688_v21 = vpack.c.bf16 %v1609_v48, %v1605_v54 }
 0x259   : > { %v1583_v50 = vadd.f32 %v1582_v15, %v7653_v40  ;;  %v1584_v57 = vpop.f32.mrb[41].mxu0  ;;  %5757 = vmatpush3.bf16.msra.mxu0 %v1925_v43 }
 0x25a   : > { %v1585_v24 = vadd.f32 %v1584_v57, %v7659_v4  ;;  %v1586_v49 = vpop.f32.mrb[42].mxu0  ;;  %v1612_v43 = vpop.f32.mrb[40].mxu1 }
 0x25b   : > { %v1587_v47 = vadd.f32 %v1586_v49, %v7653_v40  ;;  %v1588_v60 = vpop.f32.mrb[43].mxu0  ;;  %v1613_v7 = vadd.f32 %v1612_v43, %v7653_v40  ;;  %v1614_v19 = vpop.f32.mrb[41].mxu1 }
 0x25c   : > { %v1589_v25 = vadd.f32 %v1588_v60, %v7659_v4  ;;  %v1615_v57 = vadd.f32 %v1614_v19, %v7659_v4  ;;  %v1616_v8 = vpop.f32.mrb[42].mxu1 }
 0x25d   : > { %v1659_v15 = vpack.c.bf16 %v1587_v47, %v1583_v50  ;;  %v1617_v23 = vadd.f32 %v1616_v8, %v7653_v40  ;;  %v1618_v27 = vpop.f32.mrb[43].mxu1 }
 0x25e   : > { %v1926_v36 = vpack.c.bf16 %v1589_v25, %v1585_v24  ;;  %v1619_v54 = vadd.f32 %v1618_v27, %v7659_v4 }
 0x25f   : > { %5726 = vmatprep.subr.bf16.mxu1 %v1659_v15  ;;  %v7694_v50 = vpack.c.bf16 %v1617_v23, %v1613_v7 }
 0x260   : > { %5727 = vmatpush3.bf16.msra.mxu1 %v1659_v15  ;;  %5758 = vmatprep.subr.bf16.mxu0 %v1926_v36  ;;  %v7696_v24 = vpack.c.bf16 %v1619_v54, %v1615_v57 }
 0x261   : > { %5728 = vmatprep.subr.bf16.mxu1 %v1660_v37  ;;  %5759 = vmatpush3.bf16.msra.mxu0 %v1926_v36 }
 0x262   : > { %5760 = vmatprep.subr.bf16.mxu0 %v1927_v16  ;;  %v1622_v49 = vpop.f32.mrb[44].mxu1 }
 0x263   : > { %v1623_v48 = vadd.f32 %v1622_v49, %v7653_v40  ;;  %v1624_v47 = vpop.f32.mrb[45].mxu1 }
 0x264   : > { %5729 = vmatpush3.bf16.msra.mxu1 %v1660_v37  ;;  %v1625_v60 = vadd.f32 %v1624_v47, %v7659_v4  ;;  %v1626_v25 = vpop.f32.mrb[46].mxu1 }
 0x265   : > { %5738 = vmatprep.subr.bf16.mxu1 %v7501_v45  ;;  %5761 = vmatpush3.bf16.msra.mxu0 %v1927_v16  ;;  %v1627_v15 = vadd.f32 %v1626_v25, %v7653_v40  ;;  %v1628_v36 = vpop.f32.mrb[47].mxu1 }
 0x266   : > { %5770 = vmatprep.subr.bf16.mxu0 %v7582_v20  ;;  %v1629_v43 = vadd.f32 %v1628_v36, %v7659_v4  ;;  %v7720_v36 = vld [vmem:[#allocation8 + $0x18] sm:$0xff] }
 0x267   : > { %v7704_v37 = vpack.c.bf16 %v1627_v15, %v1623_v48  ;;  %v7716_v48 = vld [vmem:[#allocation8 + $0x10] sm:$0xff] }
 0x268   : > { %v7706_v7 = vpack.c.bf16 %v1629_v43, %v1625_v60  ;;  %v7718_v60 = vld [vmem:[#allocation8] sm:$0xff] }
 0x26a   : > { %9485 = vst [vmem:[#allocation46_spill] sm:$0xff] %v7706_v7  ;;  %v1632_v19 = vpop.f32.mrb[48].mxu1 }
 0x26b   : > { %v1633_v16 = vadd.f32 %v1632_v19, %v7653_v40  ;;  %v1634_v57 = vpop.f32.mrb[49].mxu1 }
 0x26c   : > { %v1635_v8 = vadd.f32 %v1634_v57, %v7659_v4  ;;  %v1636_v23 = vpop.f32.mrb[50].mxu1  ;;  %v7723_v57 = vld [vmem:[#allocation8 + $0x8] sm:$0xff] }
 0x26d   : > { %v1637_v27 = vadd.f32 %v1636_v23, %v7653_v40  ;;  %v1638_v54 = vpop.f32.mrb[51].mxu1 }
 0x26e   : > { %v1639_v49 = vadd.f32 %v1638_v54, %v7659_v4 }
 0x26f   : > { %v7712_v47 = vpack.c.bf16 %v1637_v27, %v1633_v16 }
 0x270   : > { %v7714_v25 = vpack.c.bf16 %v1639_v49, %v1635_v8 }
 0x272   : > { %9486 = vst [vmem:[#allocation47_spill] sm:$0xff] %v7714_v25 }
 0x303   : > { %v5716_v15 = vpop.f32.mrb[52].mxu1 }
 0x304   : > { %v1704_v43 = vadd.f32 %v5716_v15, %v7716_v48  ;;  %v1695_v19 = vpop.f32.mrb[53].mxu1  ;;  %v7731_v15 = vld [vmem:[#allocation8 + $0x30] sm:$0xff] }
 0x305   : > { %v1696_v40 = vadd.f32 %v1695_v19, %v7718_v60  ;;  %v5717_v4 = vpop.f32.mrb[54].mxu1 }
 0x306   : > { %v1733_v16 = vsel %vm1726_vm0, %v1704_v43, -inf  ;;  %v1707_v8 = vadd.f32 %v5717_v4, %v7720_v36  ;;  %v1698_v23 = vpop.f32.mrb[55].mxu1  ;;  %v7736_v4 = vld [vmem:[#allocation8 + $0x38] sm:$0xff] }
 0x307   : > { %1734 = vmax.xlane.f32.xlu1 %v1733_v16  ;;  %v1699_v27 = vadd.f32 %v1698_v23, %v7723_v57  ;;  %v1727_v54 = vsel %vm1726_vm0, %v1696_v40, -inf  ;;  %v7738_v16 = vld [vmem:[#allocation8 + $0x28] sm:$0xff] }
 0x308   : > { %1728 = vmax.xlane.f32.xlu0 %v1727_v54  ;;  %v1736_v49 = vsel %vm1726_vm0, %v1707_v8, -inf }
 0x309   : > { %v1730_v3 = vsel %vm1726_vm0, %v1699_v27, -inf }
 0x30b   : > { %1737 = vmax.xlane.f32.xlu1 %v1736_v49  ;;  %v5720_v19 = vpop.f32.mrb[56].mxu1 }
 0x30c   : > { %v1711_v46 = vpop.f32.mrb[57].mxu1  ;;  %1731 = vmax.xlane.f32.xlu0 %v1730_v3  ;;  %v1720_v23 = vadd.f32 %v5720_v19, %v7731_v15 }
 0x30d   : > { %v1712_v54 = vadd.f32 %v1711_v46, %v7733_v30  ;;  %v5721_v18 = vpop.f32.mrb[58].mxu1 }
 0x30e   : > { %v1714_v10 = vpop.f32.mrb[59].mxu1  ;;  %v1723_v58 = vadd.f32 %v5721_v18, %v7736_v4  ;;  %v1745_v3 = vsel %vm1726_vm0, %v1720_v23, -inf }
 0x30f   : > { %v1715_v26 = vadd.f32 %v1714_v10, %v7738_v16  ;;  %v1739_v49 = vsel %vm1726_vm0, %v1712_v54, -inf }
 0x310   : > { %1740 = vmax.xlane.f32.xlu0 %v1739_v49  ;;  %v1748_v17 = vsel %vm1726_vm0, %v1723_v58, -inf }
 0x311   : > { %v1742_v6 = vsel %vm1726_vm0, %v1715_v26, -inf }
 0x312   : > { %1743 = vmax.xlane.f32.xlu1 %v1742_v6 }
 0x314   : > { %1746 = vmax.xlane.f32.xlu0 %v1745_v3 }
 0x316   : > { %1749 = vmax.xlane.f32.xlu1 %v1748_v17 }
 0x394   : > { %v1735_v19 = vpop.xlane.xlu1 %1734 }
 0x395   : > { %v1753_v46 = vsub.f32 %v1704_v43, %v1735_v19  ;;  %v1729_v35 = vpop.xlane.xlu0 %1728 }
 0x396   : > { %v1751_v28 = vsub.f32 %v1696_v40, %v1729_v35 }
 0x397   : > { %v1763_v51 = vmul.f32 1.442695, %v1753_v46 }
 0x398   : > { %v1759_v18 = vmul.f32 1.442695, %v1751_v28  ;;  %v1738_v41 = vpop.xlane.xlu1 %1737 }
 0x399   : > { %v1754_v10 = vsub.f32 %v1707_v8, %v1738_v41  ;;  %v1732_v62 = vpop.xlane.xlu0 %1731 }
 0x39a   : > { %6243 = vpow2.f32 %v1759_v18  ;;  %v1752_v49 = vsub.f32 %v1699_v27, %v1732_v62 }
 0x39b   : > { %6245 = vpow2.f32 %v1763_v51  ;;  %v1765_v11 = vmul.f32 1.442695, %v1754_v10 }
 0x39c   : > { %v1761_v61 = vmul.f32 1.442695, %v1752_v49 }
 0x39d   : > { %v1741_v25 = vpop.xlane.xlu0 %1740 }
 0x39e   : > { %6247 = vpow2.f32 %v1761_v61  ;;  %v1755_v6 = vsub.f32 %v1712_v54, %v1741_v25 }
 0x39f   : > { %v1744_v7 = vpop.xlane.xlu1 %1743  ;;  %6249 = vpow2.f32 %v1765_v11 }
 0x3a0   : > { %v1767_v17 = vmul.f32 1.442695, %v1755_v6  ;;  %v1756_v3 = vsub.f32 %v1715_v26, %v1744_v7 }
 0x3a1   : > { %v1747_v43 = vpop.xlane.xlu0 %1746 }
 0x3a2   : > { %6251 = vpow2.f32 %v1767_v17  ;;  %v1769_v35 = vmul.f32 1.442695, %v1756_v3  ;;  %v1757_v40 = vsub.f32 %v1720_v23, %v1747_v43 }
 0x3a3   : > { %v1750_v28 = vpop.xlane.xlu1 %1749 }
 0x3a4   : > { %v6244_v19 = vpop.eup %6243  ;;  %6253 = vpow2.f32 %v1769_v35  ;;  %v1771_v41 = vmul.f32 1.442695, %v1757_v40  ;;  %v1758_v8 = vsub.f32 %v1723_v58, %v1750_v28 }
 0x3a5   : > { %v1775_v62 = vsel %vm1726_vm0, %v6244_v19, 0.0  ;;  %v6246_v51 = vpop.eup %6245 }
 0x3a6   : > { %6255 = vpow2.f32 %v1771_v41  ;;  %v1773_v27 = vmul.f32 1.442695, %v1758_v8  ;;  %1776 = vadd.xlane.f32.xlu0 %v1775_v62  ;;  %v1781_v11 = vsel %vm1726_vm0, %v6246_v51, 0.0 }
 0x3a8   : > { %v6248_v61 = vpop.eup %6247  ;;  %6257 = vpow2.f32 %v1773_v27 }
 0x3a9   : > { %v1778_v26 = vsel %vm1726_vm0, %v6248_v61, 0.0  ;;  %v6250_v7 = vpop.eup %6249 }
 0x3aa   : > { %1782 = vadd.xlane.f32.xlu0 %v1781_v11  ;;  %1779 = vadd.xlane.f32.xlu1 %v1778_v26  ;;  %v1784_v23 = vsel %vm1726_vm0, %v6250_v7, 0.0 }
 0x3ac   : > { %v6252_v25 = vpop.eup %6251 }
 0x3ad   : > { %v1787_v58 = vsel %vm1726_vm0, %v6252_v25, 0.0 }
 0x3ae   : > { %v6254_v54 = vpop.eup %6253  ;;  %1785 = vadd.xlane.f32.xlu1 %v1784_v23  ;;  %1788 = vadd.xlane.f32.xlu0 %v1787_v58 }
 0x3af   : > { %v1790_v18 = vsel %vm1726_vm0, %v6254_v54, 0.0 }
 0x3b0   : > { %v6256_v46 = vpop.eup %6255 }
 0x3b1   : > { %v1793_v10 = vsel %vm1726_vm0, %v6256_v46, 0.0 }
 0x3b2   : > { %v6258_v49 = vpop.eup %6257  ;;  %1791 = vadd.xlane.f32.xlu1 %v1790_v18  ;;  %1794 = vadd.xlane.f32.xlu0 %v1793_v10 }
 0x3b3   : > { %v1796_v6 = vsel %vm1726_vm0, %v6258_v49, 0.0 }
 0x3b6   : > { %1797 = vadd.xlane.f32.xlu1 %v1796_v6 }
 0x433   : > { %v1777_v17 = vpop.xlane.xlu0 %1776 }
 0x434   : > { %6259 = vrcp.f32 %v1777_v17 }
 0x437   : > { %v1780_v3 = vpop.xlane.xlu1 %1779  ;;  %v1783_v43 = vpop.xlane.xlu0 %1782 }
 0x438   : > { %6261 = vrcp.f32 %v1780_v3 }
 0x439   : > { %6263 = vrcp.f32 %v1783_v43 }
 0x43b   : > { %v1786_v35 = vpop.xlane.xlu1 %1785  ;;  %v1789_v40 = vpop.xlane.xlu0 %1788 }
 0x43c   : > { %6265 = vrcp.f32 %v1786_v35 }
 0x43d   : > { %6267 = vrcp.f32 %v1789_v40 }
 0x43e   : > { %v6260_v8 = vpop.eup %6259 }
 0x43f   : > { %v1792_v28 = vpop.xlane.xlu1 %1791  ;;  %v1795_v41 = vpop.xlane.xlu0 %1794  ;;  %v1807_v11 = vmul.f32 %v6260_v8, %v6244_v19 }
 0x440   : > { %6269 = vrcp.f32 %v1792_v28 }
 0x441   : > { %6271 = vrcp.f32 %v1795_v41 }
 0x442   : > { %v6262_v62 = vpop.eup %6261 }
 0x443   : > { %v1798_v27 = vpop.xlane.xlu1 %1797  ;;  %v1808_v26 = vmul.f32 %v6262_v62, %v6248_v61  ;;  %v6264_v23 = vpop.eup %6263 }
 0x444   : > { %6273 = vrcp.f32 %v1798_v27  ;;  %v1809_v10 = vmul.f32 %v6264_v23, %v6246_v51 }
 0x445   : > { %v1815_v58 = vpack.c.bf16 %v1808_v26, %v1807_v11 }
 0x446   : > { %v6266_v18 = vpop.eup %6265 }
 0x447   : > { %v1810_v6 = vmul.f32 %v6266_v18, %v6250_v7  ;;  %5730 = vmatprep.mubr.msk.bf16.mxu1 %vm1726_vm0, %v1815_v58  ;;  %v6268_v17 = vpop.eup %6267 }
 0x448   : > { %v1811_v35 = vmul.f32 %v6268_v17, %v6252_v25  ;;  %v9487_v25 = vpack.c.bf16 %v7499_v42, %v7491_v33  ;;  %v9490_v33 = vpack.c.bf16 %v7553_v52, %v7546_v39 }
 0x449   : > { %v1816_v3 = vpack.c.bf16 %v1810_v6, %v1809_v10 }
 0x44a   : > { %v6270_v43 = vpop.eup %6269 }
 0x44b   : > { %5731 = vmatmul.mubr.msk.bf16.vlgmr.msra.gmra.mrb[60].mxu1 %vm1726_vm0, %v1816_v3  ;;  %v1812_v40 = vmul.f32 %v6270_v43, %v6254_v54  ;;  %v6272_v28 = vpop.eup %6271  ;;  %v9489_v54 = vpack.c.bf16 %v7537_v22, %v7530_v13 }
 0x44c   : > { %5739 = vmatpush3.bf16.xpose.msra.mxu1 %v7501_v45  ;;  %v1813_v51 = vmul.f32 %v6272_v28, %v6256_v46  ;;  %v9488_v45 = vpack.c.bf16 %v7519_v63, %v7510_v55 }
 0x44d   : > { %5740 = vmatprep.subr.bf16.mxu1 %v7523_v2  ;;  %v1817_v19 = vpack.c.bf16 %v1812_v40, %v1811_v35 }
 0x44e   : > { %v6274_v61 = vpop.eup %6273 }
 0x44f   : > { %5734 = vmatprep.mubr.msk.bf16.mxu1 %vm1726_vm0, %v1817_v19  ;;  %v1814_v7 = vmul.f32 %v6274_v61, %v6258_v49 }
 0x451   : > { %v1818_v41 = vpack.c.bf16 %v1814_v7, %v1813_v51 }
 0x453   : > { %5735 = vmatmul.mubr.msk.bf16.gmra.mrb[64].mxu1 %vm1726_vm0, %v1818_v41 }
 0x454   : > { %5741 = vmatpush3.bf16.xpose.msra.mxu1 %v7523_v2  ;;  %5746 = vmatprep.mubr.bf16.mxu1 %v9487_v25 }
 0x455   : > { %5742 = vmatprep.subr.bf16.mxu1 %v7539_v29 }
 0x45c   : > { %5743 = vmatpush3.bf16.xpose.msra.mxu1 %v7539_v29 }
 0x45d   : > { %5744 = vmatprep.subr.bf16.mxu1 %v7555_v56 }
 0x464   : > { %5745 = vmatpush3.bf16.xpose.msra.mxu1 %v7555_v56 }
 0x46b   : > { %5747 = vmatmul.mubr.bf16.vlgmr.msra.gmra.mrb[68].mxu1 %v9488_v45 }
 0x46c   : > { %5750 = vmatprep.mubr.bf16.mxu1 %v9489_v54 }
 0x473   : > { %5751 = vmatmul.mubr.bf16.gmra.mrb[72].mxu1 %v9490_v33 }
 0x51e   : > { %v7779_v42 = vpop.f32.mrb[60].mxu1 }
 0x51f   : > { %v7781_v2 = vpop.f32.mrb[61].mxu1 }
 0x520   : > { %v7783_v29 = vpop.f32.mrb[62].mxu1 }
 0x521   : > { %v7787_v46 = vpop.f32.mrb[63].mxu1 }
 0x526   : > { %v7791_v63 = vpop.f32.mrb[64].mxu1 }
 0x527   : > { %v7793_v13 = vpop.f32.mrb[65].mxu1 }
 0x528   : > { %v7795_v22 = vpop.f32.mrb[66].mxu1 }
 0x529   : > { %v7799_v52 = vpop.f32.mrb[67].mxu1 }
 0x53e   : > { %v5748_v8 = vpop.f32.mrb[68].mxu1 }
 0x53f   : > { %v1962_v62 = vpop.f32.mrb[69].mxu1  ;;  %v1971_v23 = vadd.f32 %v5748_v8, %v7716_v48 }
 0x540   : > { %v1963_v27 = vadd.f32 %v1962_v62, %v7718_v60  ;;  %v5749_v11 = vpop.f32.mrb[70].mxu1 }
 0x541   : > { %v1965_v26 = vpop.f32.mrb[71].mxu1  ;;  %v1974_v10 = vadd.f32 %v5749_v11, %v7720_v36  ;;  %v1999_v3 = vsel %vm1726_vm0, %v1971_v23, -inf }
 0x542   : > { %v1966_v58 = vadd.f32 %v1965_v26, %v7723_v57  ;;  %v1993_v18 = vsel %vm1726_vm0, %v1963_v27, -inf }
 0x543   : > { %1994 = vmax.xlane.f32.xlu0 %v1993_v18  ;;  %v2002_v28 = vsel %vm1726_vm0, %v1974_v10, -inf }
 0x544   : > { %v1996_v6 = vsel %vm1726_vm0, %v1966_v58, -inf }
 0x545   : > { %1997 = vmax.xlane.f32.xlu1 %v1996_v6 }
 0x546   : > { %v5752_v17 = vpop.f32.mrb[72].mxu1 }
 0x547   : > { %v1978_v43 = vpop.f32.mrb[73].mxu1  ;;  %2000 = vmax.xlane.f32.xlu0 %v1999_v3  ;;  %v1987_v61 = vadd.f32 %v5752_v17, %v7731_v15 }
 0x548   : > { %v1979_v35 = vadd.f32 %v1978_v43, %v7733_v30  ;;  %v5753_v40 = vpop.f32.mrb[74].mxu1 }
 0x549   : > { %v1981_v19 = vpop.f32.mrb[75].mxu1  ;;  %2003 = vmax.xlane.f32.xlu1 %v2002_v28  ;;  %v1990_v41 = vadd.f32 %v5753_v40, %v7736_v4  ;;  %v2011_v45 = vsel %vm1726_vm0, %v1987_v61, -inf }
 0x54a   : > { %v1982_v51 = vadd.f32 %v1981_v19, %v7738_v16  ;;  %v2005_v7 = vsel %vm1726_vm0, %v1979_v35, -inf }
 0x54b   : > { %2006 = vmax.xlane.f32.xlu0 %v2005_v7  ;;  %v2014_v54 = vsel %vm1726_vm0, %v1990_v41, -inf }
 0x54c   : > { %v2008_v25 = vsel %vm1726_vm0, %v1982_v51, -inf }
 0x54d   : > { %2009 = vmax.xlane.f32.xlu1 %v2008_v25 }
 0x54f   : > { %2012 = vmax.xlane.f32.xlu0 %v2011_v45 }
 0x551   : > { %2015 = vmax.xlane.f32.xlu1 %v2014_v54 }
 0x5d0   : > { %v1995_v33 = vpop.xlane.xlu0 %1994 }
 0x5d1   : > { %v2017_v8 = vsub.f32 %v1963_v27, %v1995_v33 }
 0x5d2   : > { %v1998_v62 = vpop.xlane.xlu1 %1997 }
 0x5d3   : > { %v2025_v11 = vmul.f32 1.442695, %v2017_v8  ;;  %v2018_v26 = vsub.f32 %v1966_v58, %v1998_v62 }
 0x5d4   : > { %v2001_v18 = vpop.xlane.xlu0 %2000 }
 0x5d5   : > { %6275 = vpow2.f32 %v2025_v11  ;;  %v2027_v6 = vmul.f32 1.442695, %v2018_v26  ;;  %v2019_v17 = vsub.f32 %v1971_v23, %v2001_v18 }
 0x5d6   : > { %v2004_v3 = vpop.xlane.xlu1 %2003 }
 0x5d7   : > { %6277 = vpow2.f32 %v2027_v6  ;;  %v2029_v43 = vmul.f32 1.442695, %v2019_v17  ;;  %v2020_v40 = vsub.f32 %v1974_v10, %v2004_v3 }
 0x5d8   : > { %v2007_v28 = vpop.xlane.xlu0 %2006 }
 0x5d9   : > { %6279 = vpow2.f32 %v2029_v43  ;;  %v2031_v19 = vmul.f32 1.442695, %v2020_v40  ;;  %v2021_v7 = vsub.f32 %v1979_v35, %v2007_v28 }
 0x5da   : > { %v2010_v25 = vpop.xlane.xlu1 %2009 }
 0x5db   : > { %6281 = vpow2.f32 %v2031_v19  ;;  %v2033_v45 = vmul.f32 1.442695, %v2021_v7  ;;  %v2022_v54 = vsub.f32 %v1982_v51, %v2010_v25 }
 0x5dc   : > { %v2013_v27 = vpop.xlane.xlu0 %2012 }
 0x5dd   : > { %6283 = vpow2.f32 %v2033_v45  ;;  %v2035_v33 = vmul.f32 1.442695, %v2022_v54  ;;  %v2023_v58 = vsub.f32 %v1987_v61, %v2013_v27  ;;  %v7851_v45 = vld [vmem:[#allocation11 + $0x80] ss:$8 sps:$4 sm:$0xff]   ;;  %v7853_v54 = vld [vmem:[#allocation11 + $0x84] ss:$8 sps:$4 sm:$0xff]  }
 0x5de   : > { %v2016_v8 = vpop.xlane.xlu1 %2015  ;;  %v7855_v27 = vld [vmem:[#allocation11 + $0x94] ss:$8 sps:$4 sm:$0xff]   ;;  %2263 = vmatprep.subr.bf16.mxu1 %v7853_v54 }
 0x5df   : > { %v7819_v62 = vpop.eup %6275  ;;  %6285 = vpow2.f32 %v2035_v33  ;;  %v2037_v23 = vmul.f32 1.442695, %v2023_v58  ;;  %v2024_v11 = vsub.f32 %v1990_v41, %v2016_v8  ;;  %2264 = vmatpush1.bf16.msra.mxu1 %v7851_v45  ;;  %v7859_v33 = vld [vmem:[#allocation11 + $0x90] ss:$8 sps:$4 sm:$0xff]   ;;  %v7862_v58 = vld [vmem:[#allocation11 + $0xa4] ss:$8 sps:$4 sm:$0xff]  }
 0x5e0   : > { %v2041_v10 = vsel %vm1726_vm0, %v7819_v62, 0.0  ;;  %2265 = vmatprep.subr.bf16.mxu1 %v7855_v27  ;;  %v7865_v8 = vld [vmem:[#allocation11 + $0xa0] ss:$8 sps:$4 sm:$0xff]  }
 0x5e1   : > { %v7823_v26 = vpop.eup %6277  ;;  %6287 = vpow2.f32 %v2037_v23  ;;  %v2039_v35 = vmul.f32 1.442695, %v2024_v11  ;;  %2042 = vadd.xlane.f32.xlu0 %v2041_v10  ;;  %v7868_v23 = vld [vmem:[#allocation11 + $0xb4] ss:$8 sps:$4 sm:$0xff]   ;;  %v7871_v11 = vld [vmem:[#allocation11 + $0xb0] ss:$8 sps:$4 sm:$0xff]  }
 0x5e2   : > { %v2044_v51 = vsel %vm1726_vm0, %v7823_v26, 0.0  ;;  %9491 = vst [vmem:[#allocation48_spill] sm:$0xff] %v7871_v11  ;;  %v7874_v10 = vld [vmem:[#allocation11 + $0xc4] ss:$8 sps:$4 sm:$0xff]  }
 0x5e3   : > { %v7827_v18 = vpop.eup %6279  ;;  %6289 = vpow2.f32 %v2039_v35  ;;  %2045 = vadd.xlane.f32.xlu1 %v2044_v51  ;;  %2266 = vmatpush1.bf16.msra.mxu1 %v7859_v33  ;;  %9492 = vst [vmem:[#allocation49_spill] sm:$0xff] %v7874_v10  ;;  %v7877_v35 = vld [vmem:[#allocation11 + $0xc0] ss:$8 sps:$4 sm:$0xff]   ;;  %v7880_v51 = vld [vmem:[#allocation11 + $0xd4] ss:$8 sps:$4 sm:$0xff]  }
 0x5e4   : > { %v2047_v61 = vsel %vm1726_vm0, %v7827_v18, 0.0  ;;  %2267 = vmatprep.subr.bf16.mxu1 %v7862_v58  ;;  %9493 = vst [vmem:[#allocation50_spill] sm:$0xff] %v7877_v35  ;;  %9494 = vst [vmem:[#allocation51_spill] sm:$0xff] %v7880_v51 }
 0x5e5   : > { %v7831_v6 = vpop.eup %6281  ;;  %2048 = vadd.xlane.f32.xlu0 %v2047_v61  ;;  %v7883_v61 = vld [vmem:[#allocation11 + $0xd0] ss:$8 sps:$4 sm:$0xff]  }
 0x5e6   : > { %v2050_v41 = vsel %vm1726_vm0, %v7831_v6, 0.0  ;;  %9495 = vst [vmem:[#allocation52_spill] sm:$0xff] %v7883_v61 }
 0x5e7   : > { %v7835_v17 = vpop.eup %6283  ;;  %2051 = vadd.xlane.f32.xlu1 %v2050_v41  ;;  %2268 = vmatpush1.bf16.msra.mxu1 %v7865_v8  ;;  %v7886_v41 = vld [vmem:[#allocation11 + $0xe4] ss:$8 sps:$4 sm:$0xff]  }
 0x5e8   : > { %v2053_v3 = vsel %vm1726_vm0, %v7835_v17, 0.0  ;;  %2269 = vmatprep.subr.bf16.mxu1 %v7868_v23  ;;  %9496 = vst [vmem:[#allocation53_spill] sm:$0xff] %v7886_v41 }
 0x5e9   : > { %v7839_v43 = vpop.eup %6285  ;;  %2054 = vadd.xlane.f32.xlu0 %v2053_v3  ;;  %v7889_v3 = vld [vmem:[#allocation11 + $0xe0] ss:$8 sps:$4 sm:$0xff]  }
 0x5ea   : > { %v2056_v40 = vsel %vm1726_vm0, %v7839_v43, 0.0  ;;  %9497 = vst [vmem:[#allocation54_spill] sm:$0xff] %v7889_v3 }
 0x5eb   : > { %v7843_v28 = vpop.eup %6287  ;;  %2057 = vadd.xlane.f32.xlu1 %v2056_v40  ;;  %2270 = vmatpush1.bf16.msra.mxu1 %v7871_v11 }
 0x5ec   : > { %v2059_v19 = vsel %vm1726_vm0, %v7843_v28, 0.0  ;;  %2271 = vmatprep.subr.bf16.mxu1 %v7874_v10 }
 0x5ed   : > { %v7847_v7 = vpop.eup %6289  ;;  %2060 = vadd.xlane.f32.xlu0 %v2059_v19 }
 0x5ee   : > { %v2062_v25 = vsel %vm1726_vm0, %v7847_v7, 0.0 }
 0x5ef   : > { %2063 = vadd.xlane.f32.xlu1 %v2062_v25  ;;  %2272 = vmatpush1.bf16.msra.mxu1 %v7877_v35 }
 0x5f0   : > { %2273 = vmatprep.subr.bf16.mxu1 %v7880_v51 }
 0x5f3   : > { %2274 = vmatpush1.bf16.msra.mxu1 %v7883_v61 }
 0x5f4   : > { %2275 = vmatprep.subr.bf16.mxu1 %v7886_v41 }
 0x5f7   : > { %2276 = vmatpush1.bf16.msra.mxu1 %v7889_v3 }
 0x66e   : > { %v2043_v40 = vpop.xlane.xlu0 %2042 }
 0x66f   : > { %6291 = vrcp.f32 %v2043_v40 }
 0x670   : > { %v2046_v19 = vpop.xlane.xlu1 %2045 }
 0x671   : > { %6293 = vrcp.f32 %v2046_v19 }
 0x672   : > { %v2049_v25 = vpop.xlane.xlu0 %2048 }
 0x673   : > { %6295 = vrcp.f32 %v2049_v25 }
 0x674   : > { %v2052_v39 = vpop.xlane.xlu1 %2051 }
 0x675   : > { %6297 = vrcp.f32 %v2052_v39 }
 0x676   : > { %v2055_v49 = vpop.xlane.xlu0 %2054 }
 0x677   : > { %6299 = vrcp.f32 %v2055_v49 }
 0x678   : > { %v2058_v56 = vpop.xlane.xlu1 %2057 }
 0x679   : > { %v6292_v55 = vpop.eup %6291  ;;  %6301 = vrcp.f32 %v2058_v56 }
 0x67a   : > { %v2061_v61 = vpop.xlane.xlu0 %2060  ;;  %v2073_v41 = vmul.f32 %v6292_v55, %v7819_v62 }
 0x67b   : > { %v6294_v51 = vpop.eup %6293  ;;  %6303 = vrcp.f32 %v2061_v61 }
 0x67c   : > { %v2064_v35 = vpop.xlane.xlu1 %2063  ;;  %v2074_v3 = vmul.f32 %v6294_v51, %v7823_v26 }
 0x67d   : > { %v6296_v40 = vpop.eup %6295  ;;  %6305 = vrcp.f32 %v2064_v35 }
 0x67e   : > { %v2081_v19 = vpack.c.bf16 %v2074_v3, %v2073_v41  ;;  %v2075_v25 = vmul.f32 %v6296_v40, %v7827_v18  ;;  %v7955_v3 = vld [vmem:[#allocation11 + $0x20] ss:$8 sps:$4 sm:$0xff]  }
 0x67f   : > { %v6298_v10 = vpop.eup %6297 }
 0x680   : > { %v2076_v39 = vmul.f32 %v6298_v10, %v7831_v6  ;;  %5762 = vmatprep.mubr.msk.bf16.mxu0 %vm1726_vm0, %v2081_v19  ;;  %v7958_v19 = vld [vmem:[#allocation11 + $0x34] ss:$8 sps:$4 sm:$0xff]  }
 0x681   : > { %v6300_v49 = vpop.eup %6299 }
 0x682   : > { %v2082_v56 = vpack.c.bf16 %v2076_v39, %v2075_v25  ;;  %v2077_v61 = vmul.f32 %v6300_v49, %v7835_v17  ;;  %v9498_v17 = vpack.c.bf16 %v7566_v5, %v7560_v59  ;;  %v9501_v59 = vpack.c.bf16 %v7643_v14, %v7635_v44  ;;  %v7933_v5 = vld [vmem:[#allocation11 + $0xf4] ss:$8 sps:$4 sm:$0xff]   ;;  %v7961_v25 = vld [vmem:[#allocation11 + $0x30] ss:$8 sps:$4 sm:$0xff]   ;;  %v7965_v39 = vld [vmem:[#allocation11 + $0x44] ss:$8 sps:$4 sm:$0xff]  }
 0x683   : > { %v6302_v11 = vpop.eup %6301  ;;  %2277 = vmatprep.subr.bf16.mxu1 %v7933_v5  ;;  %v7968_v49 = vld [vmem:[#allocation11 + $0x40] ss:$8 sps:$4 sm:$0xff]  }
 0x684   : > { %5763 = vmatmul.mubr.msk.bf16.vlgmr.msra.gmra.mrb[44].mxu0 %vm1726_vm0, %v2082_v56  ;;  %v2078_v55 = vmul.f32 %v6302_v11, %v7839_v43  ;;  %v7971_v56 = vld [vmem:[#allocation11 + $0x54] ss:$8 sps:$4 sm:$0xff]  }
 0x685   : > { %v6304_v62 = vpop.eup %6303  ;;  %5771 = vmatpush3.bf16.xpose.msra.mxu0 %v7582_v20  ;;  %v9499_v20 = vpack.c.bf16 %v7593_v38, %v7587_v32  ;;  %v7935_v32 = vld [vmem:[#allocation11 + $0xf0] ss:$8 sps:$4 sm:$0xff]   ;;  %v7939_v38 = vld [vmem:[#allocation11 + $0x4] ss:$8 sps:$4 sm:$0xff]  }
 0x686   : > { %5772 = vmatprep.subr.bf16.mxu0 %v7606_v53  ;;  %v2083_v26 = vpack.c.bf16 %v2078_v55, %v2077_v61  ;;  %v2079_v6 = vmul.f32 %v6304_v62, %v7843_v28  ;;  %2278 = vmatpush1.bf16.msra.mxu1 %v7935_v32  ;;  %v7952_v28 = vld [vmem:[#allocation11 + $0x24] ss:$8 sps:$4 sm:$0xff]   ;;  %v7974_v61 = vld [vmem:[#allocation11 + $0x50] ss:$8 sps:$4 sm:$0xff]   ;;  %v7981_v62 = vld [vmem:[#allocation11 + $0x60] ss:$8 sps:$4 sm:$0xff]  }
 0x687   : > { %v6306_v18 = vpop.eup %6305  ;;  %2416 = vmatprep.subr.bf16.mxu1 %v7939_v38  ;;  %v7978_v55 = vld [vmem:[#allocation11 + $0x64] ss:$8 sps:$4 sm:$0xff]  }
 0x688   : > { %5766 = vmatprep.mubr.msk.bf16.mxu0 %vm1726_vm0, %v2083_v26  ;;  %v2080_v10 = vmul.f32 %v6306_v18, %v7847_v7  ;;  %v7984_v26 = vld [vmem:[#allocation11 + $0x74] ss:$8 sps:$4 sm:$0xff]   ;;  %v7987_v18 = vld [vmem:[#allocation11 + $0x70] ss:$8 sps:$4 sm:$0xff]  }
 0x689   : > { %9502 = vst [vmem:[#allocation55_spill] sm:$0xff] %v7984_v26  ;;  %9503 = vst [vmem:[#allocation56_spill] sm:$0xff] %v7987_v18 }
 0x68a   : > { %v2084_v35 = vpack.c.bf16 %v2080_v10, %v2079_v6 }
 0x68c   : > { %5767 = vmatmul.mubr.msk.bf16.gmra.mrb[48].mxu0 %vm1726_vm0, %v2084_v35 }
 0x68d   : > { %5773 = vmatpush3.bf16.xpose.msra.mxu0 %v7606_v53  ;;  %5778 = vmatprep.mubr.bf16.mxu0 %v9498_v17  ;;  %v9500_v53 = vpack.c.bf16 %v7617_v12, %v7611_v0  ;;  %v9411_v0 = vmov 0  }
 0x68e   : > { %5774 = vmatprep.subr.bf16.mxu0 %v7630_v1  ;;  %2295 = vmatprep.mubr.bf16.mxu1 %v9411_v0 }
 0x695   : > { %5775 = vmatpush3.bf16.xpose.msra.mxu0 %v7630_v1 }
 0x696   : > { %5776 = vmatprep.subr.bf16.mxu0 %v7662_v9 }
 0x69d   : > { %5777 = vmatpush3.bf16.xpose.msra.mxu0 %v7662_v9 }
 0x69e   : > { %5786 = vmatprep.subr.bf16.mxu0 %v7685_v34 }
 0x6a4   : > { %5779 = vmatmul.mubr.bf16.vlgmr.msra.gmra.mrb[52].mxu0 %v9499_v20 }
 0x6a5   : > { %5782 = vmatprep.mubr.bf16.mxu0 %v9500_v53  ;;  %5787 = vmatpush3.bf16.msra.mxu0 %v7685_v34  ;;  %v7943_v34 = vld [vmem:[#allocation11] ss:$8 sps:$4 sm:$0xff]  }
 0x6a6   : > { %5788 = vmatprep.subr.bf16.mxu0 %v7694_v50 }
 0x6a9   : > { %5789 = vmatpush3.bf16.msra.mxu0 %v7694_v50 }
 0x6aa   : > { %5790 = vmatprep.subr.bf16.mxu0 %v7704_v37 }
 0x6ac   : > { %5783 = vmatmul.mubr.bf16.gmra.mrb[56].mxu0 %v9501_v59 }
 0x6ad   : > { %5791 = vmatpush3.bf16.msra.mxu0 %v7704_v37  ;;  %v7945_v37 = vld [vmem:[#allocation11 + $0x14] ss:$8 sps:$4 sm:$0xff]  }
 0x6ae   : > { %5792 = vmatprep.subr.bf16.mxu0 %v7712_v47 }
 0x6b1   : > { %5793 = vmatpush3.bf16.msra.mxu0 %v7712_v47  ;;  %v7948_v47 = vld [vmem:[#allocation11 + $0x10] ss:$8 sps:$4 sm:$0xff]  }
 0x6b2   : > { %5802 = vmatprep.subr.bf16.mxu0 %v7584_v31 }
 0x757   : > { %v5764_v12 = vpop.f32.mrb[44].mxu0 }
 0x758   : > { %v2131_v1 = vpop.f32.mrb[45].mxu0 }
 0x759   : > { %v5765_v44 = vpop.f32.mrb[46].mxu0 }
 0x75a   : > { %v2163_v14 = vpack.c.bf16 %v5765_v44, %v5764_v12  ;;  %v2134_v9 = vpop.f32.mrb[47].mxu0 }
 0x75b   : > { %v2162_v50 = vpack.c.bf16 %v2134_v9, %v2131_v1 }
 0x75d   : > { %2296 = vmatmul.mubr.bf16.vlgmr.msra.gmra.mrb[76].mxu1 %v2162_v50 }
 0x75e   : > { %2417 = vmatpush1.bf16.msra.mxu1 %v7943_v34  ;;  %2305 = vmatprep.mubr.bf16.mxu1 %v9411_v0 }
 0x75f   : > { %v5768_v43 = vpop.f32.mrb[48].mxu0  ;;  %2418 = vmatprep.subr.bf16.mxu1 %v7945_v37 }
 0x760   : > { %v2147_v7 = vpop.f32.mrb[49].mxu0 }
 0x761   : > { %v5769_v11 = vpop.f32.mrb[50].mxu0 }
 0x762   : > { %v2165_v51 = vpack.c.bf16 %v5769_v11, %v5768_v43  ;;  %2419 = vmatpush1.bf16.msra.mxu1 %v7948_v47  ;;  %v2150_v41 = vpop.f32.mrb[51].mxu0 }
 0x763   : > { %v2164_v40 = vpack.c.bf16 %v2150_v41, %v2147_v7  ;;  %2420 = vmatprep.subr.bf16.mxu1 %v7952_v28 }
 0x765   : > { %2306 = vmatmul.mubr.bf16.gmra.mrb[80].mxu1 %v2163_v14 }
 0x766   : > { %2421 = vmatpush1.bf16.msra.mxu1 %v7955_v3  ;;  %2315 = vmatprep.mubr.bf16.mxu1 %v9411_v0 }
 0x767   : > { %2422 = vmatprep.subr.bf16.mxu1 %v7958_v19 }
 0x76a   : > { %2423 = vmatpush1.bf16.msra.mxu1 %v7961_v25 }
 0x76b   : > { %2424 = vmatprep.subr.bf16.mxu1 %v7965_v39 }
 0x76d   : > { %2316 = vmatmul.mubr.bf16.gmra.mrb[84].mxu1 %v2164_v40 }
 0x76e   : > { %2425 = vmatpush1.bf16.msra.mxu1 %v7968_v49  ;;  %2325 = vmatprep.mubr.bf16.mxu1 %v9411_v0 }
 0x76f   : > { %2426 = vmatprep.subr.bf16.mxu1 %v7971_v56 }
 0x772   : > { %2427 = vmatpush1.bf16.msra.mxu1 %v7974_v61 }
 0x773   : > { %2428 = vmatprep.subr.bf16.mxu1 %v7978_v55 }
 0x775   : > { %2326 = vmatmul.mubr.bf16.gmra.mrb[88].mxu1 %v2165_v51  ;;  %v9506_v51 = vpack.c.bf16 %v7783_v29, %v7779_v42  ;;  %v9509_v42 = vpack.c.bf16 %v7795_v22, %v7791_v63 }
 0x776   : > { %2429 = vmatpush1.bf16.msra.mxu1 %v7981_v62  ;;  %2448 = vmatprep.mubr.bf16.mxu1 %v9411_v0 }
 0x777   : > { %v5780_v6 = vpop.f32.mrb[52].mxu0  ;;  %2430 = vmatprep.subr.bf16.mxu1 %v7984_v26 }
 0x778   : > { %v2796_v10 = vpop.f32.mrb[53].mxu0  ;;  %v2805_v53 = vadd.f32 %v5780_v6, %v7716_v48 }
 0x779   : > { %v2797_v35 = vadd.f32 %v2796_v10, %v7718_v60  ;;  %v5781_v17 = vpop.f32.mrb[54].mxu0  ;;  %v9504_v60 = vpack.c.bf16 %v7787_v46, %v7781_v2  ;;  %v9505_v46 = vld [vmem:[#allocation46_spill] sm:$0xff] }
 0x77a   : > { %2431 = vmatpush1.bf16.msra.mxu1 %v7987_v18  ;;  %v2799_v20 = vpop.f32.mrb[55].mxu0  ;;  %v2808_v1 = vadd.f32 %v5781_v17, %v7720_v36  ;;  %v2833_v48 = vsel %vm1726_vm0, %v2805_v53, -inf }
 0x77b   : > { %v2800_v59 = vadd.f32 %v2799_v20, %v7723_v57  ;;  %5818 = vmatprep.subr.bf16.mxu1 %v7688_v21  ;;  %v2827_v12 = vsel %vm1726_vm0, %v2797_v35, -inf }
 0x77c   : > { %2828 = vmax.xlane.f32.xlu0 %v2827_v12  ;;  %v2836_v50 = vsel %vm1726_vm0, %v2808_v1, -inf }
 0x77d   : > { %v2830_v44 = vsel %vm1726_vm0, %v2800_v59, -inf  ;;  %2449 = vmatmul.mubr.bf16.vlgmr.msra.gmra.mrb[76].mxu1 %v9504_v60 }
 0x77e   : > { %2831 = vmax.xlane.f32.xlu1 %v2830_v44  ;;  %5819 = vmatpush3.bf16.msra.mxu1 %v7688_v21 }
 0x77f   : > { %v5784_v14 = vpop.f32.mrb[56].mxu0  ;;  %5820 = vmatprep.subr.bf16.mxu1 %v7696_v24  ;;  %2458 = vmatprep.mubr.bf16.mxu1 %v9411_v0 }
 0x780   : > { %v2812_v57 = vpop.f32.mrb[57].mxu0  ;;  %2834 = vmax.xlane.f32.xlu0 %v2833_v48  ;;  %v2821_v21 = vadd.f32 %v5784_v14, %v7731_v15 }
 0x781   : > { %v2813_v36 = vadd.f32 %v2812_v57, %v7733_v30  ;;  %v5785_v9 = vpop.f32.mrb[58].mxu0 }
 0x782   : > { %v2815_v43 = vpop.f32.mrb[59].mxu0  ;;  %2837 = vmax.xlane.f32.xlu1 %v2836_v50  ;;  %5821 = vmatpush3.bf16.msra.mxu1 %v7696_v24  ;;  %v2824_v11 = vadd.f32 %v5785_v9, %v7736_v4  ;;  %v9507_v24 = vld [vmem:[#allocation47_spill] sm:$0xff]  ;;  %v2845_v15 = vsel %vm1726_vm0, %v2821_v21, -inf  ;;  %v9508_v4 = vpack.c.bf16 %v7799_v52, %v7793_v13 }
 0x783   : > { %v2816_v2 = vadd.f32 %v2815_v43, %v7738_v16  ;;  %5822 = vmatprep.subr.bf16.mxu1 %v9505_v46  ;;  %v2839_v7 = vsel %vm1726_vm0, %v2813_v36, -inf }
 0x784   : > { %2840 = vmax.xlane.f32.xlu0 %v2839_v7  ;;  %v2848_v16 = vsel %vm1726_vm0, %v2824_v11, -inf }
 0x785   : > { %v2842_v30 = vsel %vm1726_vm0, %v2816_v2, -inf  ;;  %2459 = vmatmul.mubr.bf16.gmra.mrb[80].mxu1 %v9506_v51 }
 0x786   : > { %2843 = vmax.xlane.f32.xlu1 %v2842_v30  ;;  %5823 = vmatpush3.bf16.msra.mxu1 %v9505_v46 }
 0x787   : > { %5824 = vmatprep.subr.bf16.mxu1 %v9507_v24  ;;  %2468 = vmatprep.mubr.bf16.mxu1 %v9411_v0 }
 0x788   : > { %2846 = vmax.xlane.f32.xlu0 %v2845_v15 }
 0x78a   : > { %2849 = vmax.xlane.f32.xlu1 %v2848_v16  ;;  %5825 = vmatpush3.bf16.msra.mxu1 %v9507_v24 }
 0x78d   : > { %2469 = vmatmul.mubr.bf16.gmra.mrb[84].mxu1 %v9508_v4 }
 0x78e   : > { %2478 = vmatprep.mubr.bf16.mxu1 %v9411_v0 }
 0x795   : > { %2479 = vmatmul.mubr.bf16.gmra.mrb[88].mxu1 %v9509_v42 }
 0x809   : > { %v2829_v29 = vpop.xlane.xlu0 %2828 }
 0x80a   : > { %v2851_v41 = vsub.f32 %v2797_v35, %v2829_v29 }
 0x80b   : > { %v2832_v40 = vpop.xlane.xlu1 %2831 }
 0x80c   : > { %v2859_v6 = vmul.f32 1.442695, %v2851_v41  ;;  %v2852_v10 = vsub.f32 %v2800_v59, %v2832_v40 }
 0x80d   : > { %v2835_v17 = vpop.xlane.xlu0 %2834 }
 0x80e   : > { %6307 = vpow2.f32 %v2859_v6  ;;  %v2861_v20 = vmul.f32 1.442695, %v2852_v10  ;;  %v2853_v12 = vsub.f32 %v2805_v53, %v2835_v17 }
 0x80f   : > { %v2838_v44 = vpop.xlane.xlu1 %2837 }
 0x810   : > { %6309 = vpow2.f32 %v2861_v20  ;;  %v2863_v60 = vmul.f32 1.442695, %v2853_v12  ;;  %v2854_v13 = vsub.f32 %v2808_v1, %v2838_v44 }
 0x811   : > { %v2841_v52 = vpop.xlane.xlu0 %2840 }
 0x812   : > { %6311 = vpow2.f32 %v2863_v60  ;;  %v2865_v14 = vmul.f32 1.442695, %v2854_v13  ;;  %v2855_v48 = vsub.f32 %v2813_v36, %v2841_v52 }
 0x813   : > { %v2844_v57 = vpop.xlane.xlu1 %2843 }
 0x814   : > { %6313 = vpow2.f32 %v2865_v14  ;;  %v2867_v63 = vmul.f32 1.442695, %v2855_v48  ;;  %v2856_v22 = vsub.f32 %v2816_v2, %v2844_v57 }
 0x815   : > { %v2847_v35 = vpop.xlane.xlu0 %2846 }
 0x816   : > { %6315 = vpow2.f32 %v2867_v63  ;;  %v2869_v9 = vmul.f32 1.442695, %v2856_v22  ;;  %v2857_v59 = vsub.f32 %v2821_v21, %v2847_v35 }
 0x817   : > { %v2850_v50 = vpop.xlane.xlu1 %2849 }
 0x818   : > { %v8031_v43 = vpop.eup %6307  ;;  %6317 = vpow2.f32 %v2869_v9  ;;  %v2871_v53 = vmul.f32 1.442695, %v2857_v59  ;;  %v2858_v46 = vsub.f32 %v2824_v11, %v2850_v50 }
 0x819   : > { %v2875_v1 = vsel %vm1726_vm0, %v8031_v43, 0.0 }
 0x81a   : > { %v6310_v7 = vpop.eup %6309  ;;  %6319 = vpow2.f32 %v2871_v53  ;;  %v2873_v36 = vmul.f32 1.442695, %v2858_v46  ;;  %2876 = vadd.xlane.f32.xlu0 %v2875_v1 }
 0x81b   : > { %v2878_v30 = vsel %vm1726_vm0, %v6310_v7, 0.0 }
 0x81c   : > { %v6312_v2 = vpop.eup %6311  ;;  %6321 = vpow2.f32 %v2873_v36  ;;  %2879 = vadd.xlane.f32.xlu1 %v2878_v30 }
 0x81d   : > { %v2881_v21 = vsel %vm1726_vm0, %v6312_v2, 0.0 }
 0x81e   : > { %v6314_v51 = vpop.eup %6313  ;;  %2882 = vadd.xlane.f32.xlu0 %v2881_v21 }
 0x81f   : > { %v2884_v24 = vsel %vm1726_vm0, %v6314_v51, 0.0 }
 0x820   : > { %v6316_v15 = vpop.eup %6315  ;;  %2885 = vadd.xlane.f32.xlu1 %v2884_v24 }
 0x821   : > { %v2887_v11 = vsel %vm1726_vm0, %v6316_v15, 0.0 }
 0x822   : > { %v6318_v16 = vpop.eup %6317  ;;  %2888 = vadd.xlane.f32.xlu0 %v2887_v11 }
 0x823   : > { %v2890_v4 = vsel %vm1726_vm0, %v6318_v16, 0.0 }
 0x824   : > { %v6320_v42 = vpop.eup %6319  ;;  %2891 = vadd.xlane.f32.xlu1 %v2890_v4 }
 0x825   : > { %v2893_v29 = vsel %vm1726_vm0, %v6320_v42, 0.0 }
 0x826   : > { %v6322_v41 = vpop.eup %6321  ;;  %2894 = vadd.xlane.f32.xlu0 %v2893_v29 }
 0x827   : > { %v2896_v40 = vsel %vm1726_vm0, %v6322_v41, 0.0 }
 0x828   : > { %2897 = vadd.xlane.f32.xlu1 %v2896_v40 }
 0x850   : > { %v8042_v6 = vpop.f32.mrb[76].mxu1 }
 0x851   : > { %v8044_v10 = vpop.f32.mrb[77].mxu1 }
 0x852   : > { %v8046_v17 = vpop.f32.mrb[78].mxu1 }
 0x853   : > { %v8048_v20 = vpop.f32.mrb[79].mxu1 }
 0x858   : > { %v8050_v12 = vpop.f32.mrb[80].mxu1 }
 0x859   : > { %v8052_v44 = vpop.f32.mrb[81].mxu1 }
 0x85a   : > { %v8054_v60 = vpop.f32.mrb[82].mxu1 }
 0x85b   : > { %v8056_v13 = vpop.f32.mrb[83].mxu1 }
 0x860   : > { %v8058_v52 = vpop.f32.mrb[84].mxu1 }
 0x861   : > { %v8060_v14 = vpop.f32.mrb[85].mxu1 }
 0x862   : > { %v8062_v48 = vpop.f32.mrb[86].mxu1 }
 0x863   : > { %v8064_v57 = vpop.f32.mrb[87].mxu1 }
 0x868   : > { %v8066_v63 = vpop.f32.mrb[88].mxu1 }
 0x869   : > { %v8068_v22 = vpop.f32.mrb[89].mxu1 }
 0x86a   : > { %v8070_v35 = vpop.f32.mrb[90].mxu1 }
 0x86b   : > { %v8072_v9 = vpop.f32.mrb[91].mxu1 }
 0x8a7   : > { %v2877_v59 = vpop.xlane.xlu0 %2876 }
 0x8a8   : > { %6323 = vrcp.f32 %v2877_v59 }
 0x8a9   : > { %v2880_v50 = vpop.xlane.xlu1 %2879 }
 0x8aa   : > { %6325 = vrcp.f32 %v2880_v50 }
 0x8ab   : > { %v2883_v53 = vpop.xlane.xlu0 %2882 }
 0x8ac   : > { %6327 = vrcp.f32 %v2883_v53 }
 0x8ad   : > { %v2886_v46 = vpop.xlane.xlu1 %2885 }
 0x8ae   : > { %6329 = vrcp.f32 %v2886_v46 }
 0x8af   : > { %v2889_v1 = vpop.xlane.xlu0 %2888 }
 0x8b0   : > { %6331 = vrcp.f32 %v2889_v1 }
 0x8b1   : > { %v2892_v36 = vpop.xlane.xlu1 %2891 }
 0x8b2   : > { %v6324_v30 = vpop.eup %6323  ;;  %6333 = vrcp.f32 %v2892_v36 }
 0x8b3   : > { %v2895_v21 = vpop.xlane.xlu0 %2894  ;;  %v2907_v4 = vmul.f32 %v6324_v30, %v8031_v43  ;;  %v9510_v43 = vld [vmem:[#allocation39_spill] sm:$0xff] }
 0x8b4   : > { %v6326_v24 = vpop.eup %6325  ;;  %6335 = vrcp.f32 %v2895_v21 }
 0x8b5   : > { %v2898_v11 = vpop.xlane.xlu1 %2897  ;;  %v2908_v29 = vmul.f32 %v6326_v24, %v6310_v7 }
 0x8b6   : > { %v6328_v40 = vpop.eup %6327  ;;  %6337 = vrcp.f32 %v2898_v11  ;;  %v9512_v11 = vld [vmem:[#allocation35_spill] sm:$0xff] }
 0x8b7   : > { %v2915_v59 = vpack.c.bf16 %v2908_v29, %v2907_v4  ;;  %v2909_v0 = vmul.f32 %v6328_v40, %v6312_v2  ;;  %v9520_v4 = vld [vmem:[#allocation40_spill] sm:$0xff] }
 0x8b8   : > { %v6330_v50 = vpop.eup %6329  ;;  %v9522_v40 = vld [vmem:[#allocation44_spill] sm:$0xff] }
 0x8b9   : > { %v2910_v53 = vmul.f32 %v6330_v50, %v6314_v51  ;;  %5794 = vmatprep.mubr.msk.bf16.mxu0 %vm1726_vm0, %v2915_v59  ;;  %v9523_v59 = vld [vmem:[#allocation43_spill] sm:$0xff] }
 0x8ba   : > { %v6332_v46 = vpop.eup %6331  ;;  %v9524_v50 = vpack.c.bf16 %v9522_v40, %v9523_v59 }
 0x8bb   : > { %v2916_v1 = vpack.c.bf16 %v2910_v53, %v2909_v0  ;;  %v2911_v36 = vmul.f32 %v6332_v46, %v6316_v15  ;;  %v9511_v0 = vld [vmem:[#allocation36_spill] sm:$0xff]  ;;  %v9527_v46 = vld [vmem:[#allocation49_spill] sm:$0xff] }
 0x8bc   : > { %v6334_v18 = vpop.eup %6333  ;;  %v9513_v15 = vpack.c.bf16 %v9511_v0, %v9512_v11  ;;  %v9526_v53 = vld [vmem:[#allocation48_spill] sm:$0xff]  ;;  %v6403_v11 = vld [vmem:[#allocation8] sm:$0xff] }
 0x8bd   : > { %5795 = vmatmul.mubr.msk.bf16.vlgmr.msra.gmra.mrb[60].mxu0 %vm1726_vm0, %v2916_v1  ;;  %v2912_v26 = vmul.f32 %v6334_v18, %v6318_v16  ;;  %v9514_v18 = vld [vmem:[#allocation42_spill] sm:$0xff]  ;;  %v9517_v16 = vld [vmem:[#allocation37_spill] sm:$0xff] }
 0x8be   : > { %v6336_v21 = vpop.eup %6335  ;;  %5803 = vmatpush3.bf16.xpose.msra.mxu0 %v7584_v31  ;;  %v9515_v31 = vld [vmem:[#allocation45_spill] sm:$0xff]  ;;  %v9532_v1 = vld [vmem:[#allocation54_spill] sm:$0xff] }
 0x8bf   : > { %5804 = vmatprep.subr.bf16.mxu0 %v9510_v43  ;;  %v2917_v7 = vpack.c.bf16 %v2912_v26, %v2911_v36  ;;  %v2913_v2 = vmul.f32 %v6336_v21, %v6320_v42  ;;  %v9516_v26 = vld [vmem:[#allocation38_spill] sm:$0xff] }
 0x8c0   : > { %v6338_v30 = vpop.eup %6337  ;;  %v9518_v42 = vpack.c.bf16 %v9516_v26, %v9517_v16  ;;  %v6404_v26 = vld [vmem:[#allocation8 + $0x10] sm:$0xff] }
 0x8c1   : > { %5798 = vmatprep.mubr.msk.bf16.mxu0 %vm1726_vm0, %v2917_v7  ;;  %v2914_v51 = vmul.f32 %v6338_v30, %v6322_v41  ;;  %v9519_v41 = vld [vmem:[#allocation41_spill] sm:$0xff] }
 0x8c2   : > { %v9521_v29 = vpack.c.bf16 %v9519_v41, %v9520_v4 }
 0x8c3   : > { %v2918_v24 = vpack.c.bf16 %v2914_v51, %v2913_v2 }
 0x8c5   : > { %5799 = vmatmul.mubr.msk.bf16.gmra.mrb[64].mxu0 %vm1726_vm0, %v2918_v24 }
 0x8c6   : > { %5805 = vmatpush3.bf16.xpose.msra.mxu0 %v9510_v43  ;;  %5810 = vmatprep.mubr.bf16.mxu0 %v9513_v15 }
 0x8c7   : > { %5806 = vmatprep.subr.bf16.mxu0 %v9514_v18 }
 0x8ce   : > { %5807 = vmatpush3.bf16.xpose.msra.mxu0 %v9514_v18 }
 0x8cf   : > { %5808 = vmatprep.subr.bf16.mxu0 %v9515_v31 }
 0x8d6   : > { %5809 = vmatpush3.bf16.xpose.msra.mxu0 %v9515_v31 }
 0x8d7   : > { %3362 = vmatprep.subr.bf16.mxu0 %v7853_v54  ;;  %v9525_v54 = vmov 0  }
 0x8dd   : > { %5811 = vmatmul.mubr.bf16.vlgmr.msra.gmra.mrb[68].mxu0 %v9518_v42  ;;  %v6405_v42 = vld [vmem:[#allocation8 + $0x8] sm:$0xff] }
 0x8de   : > { %5814 = vmatprep.mubr.bf16.mxu0 %v9521_v29  ;;  %3363 = vmatpush1.bf16.msra.mxu0 %v7851_v45  ;;  %v9528_v45 = vld [vmem:[#allocation50_spill] sm:$0xff]  ;;  %v6406_v29 = vld [vmem:[#allocation8 + $0x18] sm:$0xff] }
 0x8df   : > { %3364 = vmatprep.subr.bf16.mxu0 %v7855_v27  ;;  %v9529_v27 = vld [vmem:[#allocation51_spill] sm:$0xff] }
 0x8e2   : > { %3365 = vmatpush1.bf16.msra.mxu0 %v7859_v33  ;;  %v9530_v33 = vld [vmem:[#allocation52_spill] sm:$0xff] }
 0x8e3   : > { %3366 = vmatprep.subr.bf16.mxu0 %v7862_v58  ;;  %v9531_v58 = vld [vmem:[#allocation53_spill] sm:$0xff] }
 0x8e5   : > { %5815 = vmatmul.mubr.bf16.gmra.mrb[72].mxu0 %v9524_v50 }
 0x8e6   : > { %3367 = vmatpush1.bf16.msra.mxu0 %v7865_v8  ;;  %3394 = vmatprep.mubr.bf16.mxu0 %v9525_v54 }
 0x8e7   : > { %3368 = vmatprep.subr.bf16.mxu0 %v7868_v23 }
 0x8ea   : > { %3369 = vmatpush1.bf16.msra.mxu0 %v9526_v53 }
 0x8eb   : > { %3370 = vmatprep.subr.bf16.mxu0 %v9527_v46 }
 0x8ee   : > { %3371 = vmatpush1.bf16.msra.mxu0 %v9528_v45  ;;  %v6407_v45 = vld [vmem:[#allocation8 + $0x20] sm:$0xff] }
 0x8ef   : > { %3372 = vmatprep.subr.bf16.mxu0 %v9529_v27 }
 0x8f2   : > { %3373 = vmatpush1.bf16.msra.mxu0 %v9530_v33 }
 0x8f3   : > { %3374 = vmatprep.subr.bf16.mxu0 %v9531_v58 }
 0x8f6   : > { %3375 = vmatpush1.bf16.msra.mxu0 %v9532_v1 }
 0x8f7   : > { %3376 = vmatprep.subr.bf16.mxu0 %v7933_v5 }
 0x8fa   : > { %3377 = vmatpush1.bf16.msra.mxu0 %v7935_v32 }
 0x8fb   : > { %3515 = vmatprep.subr.bf16.mxu0 %v7939_v38 }
 0x990   : > { %v8116_v8 = vpop.f32.mrb[60].mxu0 }
 0x991   : > { %v8118_v23 = vpop.f32.mrb[61].mxu0 }
 0x992   : > { %v8120_v36 = vpop.f32.mrb[62].mxu0 }
 0x993   : > { %v8124_v43 = vpop.f32.mrb[63].mxu0 }
 0x994   : > { %v2996_v7 = vpack.c.bf16 %v8124_v43, %v8118_v23 }
 0x998   : > { %v8128_v30 = vpop.f32.mrb[64].mxu0 }
 0x999   : > { %v8130_v5 = vpop.f32.mrb[65].mxu0 }
 0x99a   : > { %v8132_v32 = vpop.f32.mrb[66].mxu0 }
 0x99b   : > { %v8136_v2 = vpop.f32.mrb[67].mxu0 }
 0x9b0   : > { %v5812_v24 = vpop.f32.mrb[68].mxu0 }
 0x9b1   : > { %v3062_v0 = vpop.f32.mrb[69].mxu0  ;;  %v3071_v16 = vadd.f32 %v6404_v26, %v5812_v24  ;;  %v6408_v24 = vld [vmem:[#allocation8 + $0x30] sm:$0xff]  ;;  %v6410_v26 = vld [vmem:[#allocation8 + $0x38] sm:$0xff] }
 0x9b2   : > { %v3063_v15 = vadd.f32 %v6403_v11, %v3062_v0  ;;  %v5813_v18 = vpop.f32.mrb[70].mxu0  ;;  %v6409_v11 = vld [vmem:[#allocation8 + $0x28] sm:$0xff] }
 0x9b3   : > { %v3065_v31 = vpop.f32.mrb[71].mxu0  ;;  %v3074_v40 = vadd.f32 %v6406_v29, %v5813_v18  ;;  %v3099_v53 = vsel %vm1726_vm0, %v3071_v16, -inf }
 0x9b4   : > { %v3066_v41 = vadd.f32 %v6405_v42, %v3065_v31  ;;  %v3093_v4 = vsel %vm1726_vm0, %v3063_v15, -inf }
 0x9b5   : > { %3094 = vmax.xlane.f32.xlu0 %v3093_v4  ;;  %v3102_v58 = vsel %vm1726_vm0, %v3074_v40, -inf }
 0x9b6   : > { %v3096_v59 = vsel %vm1726_vm0, %v3066_v41, -inf }
 0x9b7   : > { %3097 = vmax.xlane.f32.xlu1 %v3096_v59 }
 0x9b8   : > { %v5816_v50 = vpop.f32.mrb[72].mxu0 }
 0x9b9   : > { %v3078_v46 = vpop.f32.mrb[73].mxu0  ;;  %3100 = vmax.xlane.f32.xlu0 %v3099_v53  ;;  %v3087_v0 = vadd.f32 %v6408_v24, %v5816_v50 }
 0x9ba   : > { %v3079_v27 = vadd.f32 %v6407_v45, %v3078_v46  ;;  %v5817_v33 = vpop.f32.mrb[74].mxu0 }
 0x9bb   : > { %v3081_v1 = vpop.f32.mrb[75].mxu0  ;;  %3103 = vmax.xlane.f32.xlu1 %v3102_v58  ;;  %v3090_v42 = vadd.f32 %v6410_v26, %v5817_v33  ;;  %v3111_v29 = vsel %vm1726_vm0, %v3087_v0, -inf }
 0x9bc   : > { %v3082_v31 = vadd.f32 %v6409_v11, %v3081_v1  ;;  %v3105_v18 = vsel %vm1726_vm0, %v3079_v27, -inf }
 0x9bd   : > { %3106 = vmax.xlane.f32.xlu0 %v3105_v18  ;;  %v3114_v59 = vsel %vm1726_vm0, %v3090_v42, -inf }
 0x9be   : > { %v3108_v4 = vsel %vm1726_vm0, %v3082_v31, -inf }
 0x9bf   : > { %3109 = vmax.xlane.f32.xlu1 %v3108_v4 }
 0x9c1   : > { %3112 = vmax.xlane.f32.xlu0 %v3111_v29 }
 0x9c3   : > { %3115 = vmax.xlane.f32.xlu1 %v3114_v59 }
 0xa42   : > { %v3095_v53 = vpop.xlane.xlu0 %3094 }
 0xa43   : > { %v3117_v46 = vsub.f32 %v3063_v15, %v3095_v53 }
 0xa44   : > { %v3098_v45 = vpop.xlane.xlu1 %3097 }
 0xa45   : > { %v3125_v50 = vmul.f32 1.442695, %v3117_v46  ;;  %v3118_v58 = vsub.f32 %v3066_v41, %v3098_v45 }
 0xa46   : > { %v3101_v1 = vpop.xlane.xlu0 %3100 }
 0xa47   : > { %6339 = vpow2.f32 %v3125_v50  ;;  %v3127_v24 = vmul.f32 1.442695, %v3118_v58  ;;  %v3119_v11 = vsub.f32 %v3071_v16, %v3101_v1 }
 0xa48   : > { %v3104_v18 = vpop.xlane.xlu1 %3103 }
 0xa49   : > { %6341 = vpow2.f32 %v3127_v24  ;;  %v3129_v33 = vmul.f32 1.442695, %v3119_v11  ;;  %v3120_v26 = vsub.f32 %v3074_v40, %v3104_v18  ;;  %v6411_v24 = vld [vmem:[%s7330_s24] sm:$0xff] }
 0xa4a   : > { %v3107_v4 = vpop.xlane.xlu0 %3106  ;;  %v2489_v11 = vadd.f32 %v6411_v24, %v8042_v6  ;;  %v9534_v18 = vld [vmem:[#allocation33_spill] sm:$0xff] }
 0xa4b   : > { %6343 = vpow2.f32 %v3129_v33  ;;  %v3131_v38 = vmul.f32 1.442695, %v3120_v26  ;;  %v3121_v29 = vsub.f32 %v3079_v27, %v3107_v4  ;;  %v2505_v27 = vld [vmem:[%s9533_s0] sm:$0x3]  ;;  %v6412_v26 = vld [vmem:[%s7330_s24 + $0x8] sm:$0xff] }
 0xa4c   : > { %v3110_v51 = vpop.xlane.xlu1 %3109  ;;  %v8172_v33 = vrot.slane %v2505_v27, %v9534_v18  ;;  %v2490_v4 = vadd.f32 %v6412_v26, %v8044_v10 }
 0xa4d   : > { %6345 = vpow2.f32 %v3131_v38  ;;  %v3133_v59 = vmul.f32 1.442695, %v3121_v29  ;;  %v3122_v21 = vsub.f32 %v3082_v31, %v3110_v51  ;;  %v9535_v29 = vld [vmem:[#allocation34_spill] sm:$0xff] }
 0xa4e   : > { %v3113_v15 = vpop.xlane.xlu0 %3112 }
 0xa4f   : > { %6347 = vpow2.f32 %v3133_v59  ;;  %v3135_v53 = vmul.f32 1.442695, %v3122_v21  ;;  %v3123_v41 = vsub.f32 %v3087_v0, %v3113_v15  ;;  %v8177_v59 = vrot.slane %v2505_v27, %v9535_v29 }
 0xa50   : > { %v3116_v46 = vpop.xlane.xlu1 %3115 }
 0xa51   : > { %v8148_v45 = vpop.eup %6339  ;;  %6349 = vpow2.f32 %v3135_v53  ;;  %v3137_v16 = vmul.f32 1.442695, %v3123_v41  ;;  %v3124_v50 = vsub.f32 %v3090_v42, %v3116_v46  ;;  %v6413_v41 = vld [vmem:[%s7330_s24 + $0x10] sm:$0xff]  ;;  %v6414_v46 = vld [vmem:[%s7330_s24 + $0x18] sm:$0xff] }
 0xa52   : > { %v3141_v40 = vsel %vm1726_vm0, %v8148_v45, 0.0  ;;  %v2491_v6 = vadd.f32 %v6413_v41, %v8046_v17  ;;  %v8199_v17 = vadd.f32 %v8177_v59, %v2490_v4  ;;  %v6419_v41 = vld [vmem:[%s7330_s24 + $0x40] sm:$0xff] }
 0xa53   : > { %v8152_v58 = vpop.eup %6341  ;;  %6351 = vpow2.f32 %v3137_v16  ;;  %v3139_v38 = vmul.f32 1.442695, %v3124_v50  ;;  %3142 = vadd.xlane.f32.xlu0 %v3141_v40  ;;  %v2492_v16 = vadd.f32 %v6414_v46, %v8048_v20  ;;  %v6415_v50 = vld [vmem:[%s7330_s24 + $0x20] sm:$0xff]  ;;  %v6416_v40 = vld [vmem:[%s7330_s24 + $0x28] sm:$0xff]  ;;  %v6417_v20 = vld [vmem:[%s7330_s24 + $0x30] sm:$0xff]  ;;  %v2497_v46 = vadd.f32 %v6419_v41, %v8058_v52 }
 0xa54   : > { %v3144_v21 = vsel %vm1726_vm0, %v8152_v58, 0.0  ;;  %v2493_v10 = vadd.f32 %v6415_v50, %v8050_v12  ;;  %v2495_v12 = vadd.f32 %v6417_v20, %v8054_v60  ;;  %v6422_v52 = vld [vmem:[%s7330_s24 + $0x58] sm:$0xff] }
 0xa55   : > { %v8156_v51 = vpop.eup %6343  ;;  %6353 = vpow2.f32 %v3139_v38  ;;  %3145 = vadd.xlane.f32.xlu1 %v3144_v21  ;;  %v2494_v38 = vadd.f32 %v6416_v40, %v8052_v44  ;;  %v8213_v4 = vadd.f32 %v8177_v59, %v2492_v16  ;;  %v2500_v20 = vadd.f32 %v6422_v52, %v8064_v57 }
 0xa56   : > { %v3147_v0 = vsel %vm1726_vm0, %v8156_v51, 0.0 }
 0xa57   : > { %v8163_v31 = vpop.eup %6345  ;;  %3148 = vadd.xlane.f32.xlu0 %v3147_v0  ;;  %v8196_v0 = vadd.f32 %v8172_v33, %v2489_v11  ;;  %v8210_v11 = vadd.f32 %v8172_v33, %v2491_v6  ;;  %v8219_v60 = vadd.f32 %v8177_v59, %v2494_v38  ;;  %v6420_v6 = vld [vmem:[%s7330_s24 + $0x48] sm:$0xff]  ;;  %v6421_v38 = vld [vmem:[%s7330_s24 + $0x50] sm:$0xff] }
 0xa58   : > { %v3150_v42 = vsel %vm1726_vm0, %v8163_v31, 0.0  ;;  %v2498_v50 = vadd.f32 %v6420_v6, %v8060_v14 }
 0xa59   : > { %v8167_v1 = vpop.eup %6347  ;;  %3151 = vadd.xlane.f32.xlu1 %v3150_v42  ;;  %v6418_v42 = vld [vmem:[%s7330_s24 + $0x38] sm:$0xff]  ;;  %v2535_v16 = vadd.f32 %v8199_v17, %v8196_v0  ;;  %v2538_v14 = vadd.f32 %v8213_v4, %v8210_v11 }
 0xa5a   : > { %v3153_v15 = vsel %vm1726_vm0, %v8167_v1, 0.0  ;;  %v2496_v44 = vadd.f32 %v6418_v42, %v8056_v13 }
 0xa5b   : > { %v8181_v53 = vpop.eup %6349  ;;  %3154 = vadd.xlane.f32.xlu0 %v3153_v15  ;;  %v8216_v15 = vadd.f32 %v8172_v33, %v2493_v10  ;;  %v8230_v10 = vadd.f32 %v8172_v33, %v2495_v12  ;;  %v8244_v12 = vadd.f32 %v8172_v33, %v2497_v46  ;;  %v6425_v46 = vld [vmem:[%s7330_s24 + $0x70] sm:$0xff] }
 0xa5c   : > { %v3156_v21 = vsel %vm1726_vm0, %v8181_v53, 0.0  ;;  %v8233_v40 = vadd.f32 %v8177_v59, %v2496_v44  ;;  %v8247_v44 = vadd.f32 %v8177_v59, %v2498_v50  ;;  %v2503_v50 = vadd.f32 %v6425_v46, %v8070_v35 }
 0xa5d   : > { %v8193_v27 = vpop.eup %6351  ;;  %3157 = vadd.xlane.f32.xlu1 %v3156_v21  ;;  %v2499_v21 = vadd.f32 %v6421_v38, %v8062_v48  ;;  %v2541_v42 = vadd.f32 %v8219_v60, %v8216_v15  ;;  %v6426_v38 = vld [vmem:[%s7330_s24 + $0x78] sm:$0xff] }
 0xa5e   : > { %v3159_v24 = vsel %vm1726_vm0, %v8193_v27, 0.0  ;;  %v2544_v41 = vadd.f32 %v8233_v40, %v8230_v10  ;;  %v2504_v52 = vadd.f32 %v6426_v38, %v8072_v9 }
 0xa5f   : > { %v8207_v26 = vpop.eup %6353  ;;  %3160 = vadd.xlane.f32.xlu0 %v3159_v24  ;;  %v6423_v24 = vld [vmem:[%s7330_s24 + $0x60] sm:$0xff]  ;;  %v8256_v6 = vadd.f32 %v8172_v33, %v2499_v21  ;;  %v2547_v21 = vadd.f32 %v8247_v44, %v8244_v12 }
 0xa60   : > { %v3162_v13 = vsel %vm1726_vm0, %v8207_v26, 0.0  ;;  %v2501_v48 = vadd.f32 %v6423_v24, %v8066_v63 }
 0xa61   : > { %3163 = vadd.xlane.f32.xlu1 %v3162_v13  ;;  %v6424_v13 = vld [vmem:[%s7330_s24 + $0x68] sm:$0xff] }
 0xa62   : > { %v2502_v57 = vadd.f32 %v6424_v13, %v8068_v22  ;;  %v8266_v63 = vadd.f32 %v8172_v33, %v2501_v48 }
 0xa63   : > { %2536 = vadd.xlane.f32.xlu0 %v2535_v16  ;;  %v8259_v16 = vadd.f32 %v8177_v59, %v2500_v20  ;;  %v8274_v20 = vadd.f32 %v8172_v33, %v2503_v50 }
 0xa64   : > { %v8269_v22 = vadd.f32 %v8177_v59, %v2502_v57 }
 0xa65   : > { %2539 = vadd.xlane.f32.xlu1 %v2538_v14  ;;  %v8277_v14 = vadd.f32 %v8177_v59, %v2504_v52  ;;  %v2550_v35 = vadd.f32 %v8259_v16, %v8256_v6 }
 0xa66   : > { %v2553_v9 = vadd.f32 %v8269_v22, %v8266_v63 }
 0xa67   : > { %2542 = vadd.xlane.f32.xlu0 %v2541_v42  ;;  %v2556_v42 = vadd.f32 %v8277_v14, %v8274_v20 }
 0xa69   : > { %2545 = vadd.xlane.f32.xlu1 %v2544_v41 }
 0xa6b   : > { %2548 = vadd.xlane.f32.xlu0 %v2547_v21 }
 0xa6d   : > { %2551 = vadd.xlane.f32.xlu1 %v2550_v35 }
 0xa6f   : > { %2554 = vadd.xlane.f32.xlu0 %v2553_v9 }
 0xa71   : > { %2557 = vadd.xlane.f32.xlu1 %v2556_v42 }
 0xae0   : > { %v3143_v24 = vpop.xlane.xlu0 %3142 }
 0xae1   : > { %6355 = vrcp.f32 %v3143_v24 }
 0xae2   : > { %v3146_v33 = vpop.xlane.xlu1 %3145 }
 0xae3   : > { %6357 = vrcp.f32 %v3146_v33 }
 0xae4   : > { %v3149_v48 = vpop.xlane.xlu0 %3148 }
 0xae5   : > { %6359 = vrcp.f32 %v3149_v48 }
 0xae6   : > { %v3152_v59 = vpop.xlane.xlu1 %3151 }
 0xae7   : > { %6361 = vrcp.f32 %v3152_v59 }
 0xae8   : > { %v3155_v13 = vpop.xlane.xlu0 %3154 }
 0xae9   : > { %6363 = vrcp.f32 %v3155_v13 }
 0xaea   : > { %v3158_v57 = vpop.xlane.xlu1 %3157 }
 0xaeb   : > { %v6356_v41 = vpop.eup %6355  ;;  %6365 = vrcp.f32 %v3158_v57 }
 0xaec   : > { %v3161_v46 = vpop.xlane.xlu0 %3160  ;;  %v3173_v52 = vmul.f32 %v6356_v41, %v8148_v45 }
 0xaed   : > { %v6358_v50 = vpop.eup %6357  ;;  %6367 = vrcp.f32 %v3161_v46 }
 0xaee   : > { %v3164_v38 = vpop.xlane.xlu1 %3163  ;;  %v3174_v21 = vmul.f32 %v6358_v50, %v8152_v58 }
 0xaef   : > { %v6360_v35 = vpop.eup %6359  ;;  %6369 = vrcp.f32 %v3164_v38 }
 0xaf0   : > { %v3181_v9 = vpack.c.bf16 %v3174_v21, %v3173_v52  ;;  %v3175_v24 = vmul.f32 %v6360_v35, %v8156_v51 }
 0xaf1   : > { %v6362_v42 = vpop.eup %6361 }
 0xaf2   : > { %v3176_v33 = vmul.f32 %v6362_v42, %v8163_v31  ;;  %5826 = vmatprep.mubr.msk.bf16.mxu1 %vm1726_vm0, %v3181_v9 }
 0xaf3   : > { %v6364_v48 = vpop.eup %6363 }
 0xaf4   : > { %v3182_v59 = vpack.c.bf16 %v3176_v33, %v3175_v24  ;;  %v3177_v57 = vmul.f32 %v6364_v48, %v8167_v1 }
 0xaf5   : > { %v6366_v13 = vpop.eup %6365 }
 0xaf6   : > { %5827 = vmatmul.mubr.msk.bf16.vlgmr.msra.gmra.mrb[92].mxu1 %vm1726_vm0, %v3182_v59  ;;  %v3178_v45 = vmul.f32 %v6366_v13, %v8181_v53 }
 0xaf7   : > { %v6368_v58 = vpop.eup %6367 }
 0xaf8   : > { %v3183_v41 = vpack.c.bf16 %v3178_v45, %v3177_v57  ;;  %v3179_v51 = vmul.f32 %v6368_v58, %v8193_v27  ;;  %v6431_v45 = vld [vmem:[%s7330_s24 + $0xa0] sm:$0xff] }
 0xaf9   : > { %v6370_v46 = vpop.eup %6369 }
 0xafa   : > { %5830 = vmatprep.mubr.msk.bf16.mxu1 %vm1726_vm0, %v3183_v41  ;;  %v3180_v31 = vmul.f32 %v6370_v46, %v8207_v26  ;;  %v6432_v46 = vld [vmem:[%s7330_s24 + $0xa8] sm:$0xff] }
 0xafc   : > { %v3184_v50 = vpack.c.bf16 %v3180_v31, %v3179_v51 }
 0xafe   : > { %5831 = vmatmul.mubr.msk.bf16.gmra.mrb[96].mxu1 %vm1726_vm0, %v3184_v50 }
 0xbc9   : > { %v5828_v38 = vpop.f32.mrb[92].mxu1 }
 0xbca   : > { %v3231_v52 = vpop.f32.mrb[93].mxu1 }
 0xbcb   : > { %v5829_v21 = vpop.f32.mrb[94].mxu1 }
 0xbcc   : > { %v3263_v35 = vpack.c.bf16 %v5829_v21, %v5828_v38  ;;  %v3234_v9 = vpop.f32.mrb[95].mxu1  ;;  %v6433_v38 = vld [vmem:[%s7330_s24 + $0xb0] sm:$0xff] }
 0xbcd   : > { %v3262_v1 = vpack.c.bf16 %v3234_v9, %v3231_v52  ;;  %v6434_v9 = vld [vmem:[%s7330_s24 + $0xb8] sm:$0xff] }
 0xbcf   : > { %3395 = vmatmul.mubr.bf16.vlgmr.msra.gmra.mrb[76].mxu0 %v3262_v1 }
 0xbd0   : > { %3516 = vmatpush1.bf16.msra.mxu0 %v7943_v34  ;;  %3404 = vmatprep.mubr.bf16.mxu0 %v9525_v54  ;;  %v9536_v34 = vld [vmem:[#allocation55_spill] sm:$0xff] }
 0xbd1   : > { %v5832_v53 = vpop.f32.mrb[96].mxu1  ;;  %3517 = vmatprep.subr.bf16.mxu0 %v7945_v37  ;;  %v9537_v37 = vld [vmem:[#allocation56_spill] sm:$0xff] }
 0xbd2   : > { %v3247_v27 = vpop.f32.mrb[97].mxu1 }
 0xbd3   : > { %v5833_v42 = vpop.f32.mrb[98].mxu1 }
 0xbd4   : > { %v3265_v26 = vpack.c.bf16 %v5833_v42, %v5832_v53  ;;  %v3250_v24 = vpop.f32.mrb[99].mxu1  ;;  %3518 = vmatpush1.bf16.msra.mxu0 %v7948_v47  ;;  %v9538_v47 = vpack.c.bf16 %v8120_v36, %v8116_v8  ;;  %v6429_v36 = vld [vmem:[%s7330_s24 + $0x90] sm:$0xff]  ;;  %v2537_v53 = vpop.xlane.xlu0 %2536 }
 0xbd5   : > { %v3264_v33 = vpack.c.bf16 %v3250_v24, %v3247_v27  ;;  %3519 = vmatprep.subr.bf16.mxu0 %v7952_v28  ;;  %v9539_v28 = vpack.c.bf16 %v8136_v2, %v8130_v5  ;;  %v6430_v5 = vld [vmem:[%s7330_s24 + $0x98] sm:$0xff]  ;;  %v2540_v24 = vpop.xlane.xlu1 %2539 }
 0xbd7   : > { %3405 = vmatmul.mubr.bf16.gmra.mrb[80].mxu0 %v3263_v35 }
 0xbd8   : > { %3520 = vmatpush1.bf16.msra.mxu0 %v7955_v3  ;;  %3414 = vmatprep.mubr.bf16.mxu0 %v9525_v54  ;;  %v9540_v3 = vpack.c.bf16 %v8132_v32, %v8128_v30 }
 0xbd9   : > { %3521 = vmatprep.subr.bf16.mxu0 %v7958_v19  ;;  %v3604_v19 = vld [vmem:[%s9533_s0] sm:$0x3] }
 0xbdc   : > { %3522 = vmatpush1.bf16.msra.mxu0 %v7961_v25  ;;  %v8335_v25 = vrot.slane %v3604_v19, %v9534_v18 }
 0xbdd   : > { %3523 = vmatprep.subr.bf16.mxu0 %v7965_v39 }
 0xbdf   : > { %3415 = vmatmul.mubr.bf16.gmra.mrb[84].mxu0 %v3264_v33 }
 0xbe0   : > { %3524 = vmatpush1.bf16.msra.mxu0 %v7968_v49  ;;  %3424 = vmatprep.mubr.bf16.mxu0 %v9525_v54  ;;  %v8338_v49 = vrot.slane %v3604_v19, %v9535_v29 }
 0xbe1   : > { %3525 = vmatprep.subr.bf16.mxu0 %v7971_v56  ;;  %v6427_v56 = vld [vmem:[%s7330_s24 + $0x80] sm:$0xff] }
 0xbe4   : > { %3526 = vmatpush1.bf16.msra.mxu0 %v7974_v61 }
 0xbe5   : > { %3527 = vmatprep.subr.bf16.mxu0 %v7978_v55 }
 0xbe7   : > { %3425 = vmatmul.mubr.bf16.gmra.mrb[88].mxu0 %v3265_v26 }
 0xbe8   : > { %3528 = vmatpush1.bf16.msra.mxu0 %v7981_v62  ;;  %3547 = vmatprep.mubr.bf16.mxu0 %v9525_v54  ;;  %v6428_v62 = vld [vmem:[%s7330_s24 + $0x88] sm:$0xff] }
 0xbe9   : > { %3529 = vmatprep.subr.bf16.mxu0 %v9536_v34 }
 0xbec   : > { %3530 = vmatpush1.bf16.msra.mxu0 %v9537_v37  ;;  %v6435_v37 = vld [vmem:[%s7330_s24 + $0xc0] sm:$0xff] }
 0xbef   : > { %3548 = vmatmul.mubr.bf16.vlgmr.msra.gmra.mrb[76].mxu0 %v2996_v7 }
 0xbf0   : > { %3557 = vmatprep.mubr.bf16.mxu0 %v9525_v54 }
 0xbf7   : > { %3558 = vmatmul.mubr.bf16.gmra.mrb[80].mxu0 %v9538_v47 }
 0xbf8   : > { %3567 = vmatprep.mubr.bf16.mxu0 %v9525_v54 }
 0xbff   : > { %3568 = vmatmul.mubr.bf16.gmra.mrb[84].mxu0 %v9539_v28 }
 0xc00   : > { %3577 = vmatprep.mubr.bf16.mxu0 %v9525_v54 }
 0xc07   : > { %3578 = vmatmul.mubr.bf16.gmra.mrb[88].mxu0 %v9540_v3  ;;  %v6436_v3 = vld [vmem:[%s7330_s24 + $0xc8] sm:$0xff] }
 0xcc2   : > { %v3549_v39 = vpop.f32.mrb[76].mxu0 }
 0xcc3   : > { %v3588_v61 = vadd.f32 %v6427_v56, %v3549_v39  ;;  %v3551_v55 = vpop.f32.mrb[77].mxu0  ;;  %v2543_v56 = vpop.xlane.xlu0 %2542 }
 0xcc4   : > { %v3589_v54 = vadd.f32 %v6428_v62, %v3551_v55  ;;  %v3553_v8 = vpop.f32.mrb[78].mxu0  ;;  %v6437_v55 = vld [vmem:[%s7330_s24 + $0xd0] sm:$0xff] }
 0xcc5   : > { %v8343_v23 = vadd.f32 %v8335_v25, %v3588_v61  ;;  %v3590_v43 = vadd.f32 %v6429_v36, %v3553_v8  ;;  %v3555_v7 = vpop.f32.mrb[79].mxu0  ;;  %v6438_v36 = vld [vmem:[%s7330_s24 + $0xd8] sm:$0xff] }
 0xcc6   : > { %v8347_v30 = vadd.f32 %v8338_v49, %v3589_v54  ;;  %v3591_v32 = vadd.f32 %v6430_v5, %v3555_v7  ;;  %v2560_v7 = vmul.f32 0.00390625, %v2537_v53  ;;  %v2546_v5 = vpop.xlane.xlu1 %2545 }
 0xcc7   : > { %v8351_v2 = vadd.f32 %v8335_v25, %v3590_v43 }
 0xcc8   : > { %v8354_v48 = vadd.f32 %v8338_v49, %v3591_v32  ;;  %v3634_v59 = vadd.f32 %v8347_v30, %v8343_v23 }
 0xcca   : > { %3635 = vadd.xlane.f32.xlu0 %v3634_v59  ;;  %v3559_v13 = vpop.f32.mrb[80].mxu0  ;;  %v3637_v57 = vadd.f32 %v8354_v48, %v8351_v2 }
 0xccb   : > { %v3592_v58 = vadd.f32 %v6431_v45, %v3559_v13  ;;  %v3561_v41 = vpop.f32.mrb[81].mxu0 }
 0xccc   : > { %v3593_v51 = vadd.f32 %v6432_v46, %v3561_v41  ;;  %v3563_v31 = vpop.f32.mrb[82].mxu0  ;;  %3638 = vadd.xlane.f32.xlu1 %v3637_v57  ;;  %v2561_v57 = vmul.f32 0.00390625, %v2540_v24  ;;  %v8401_v41 = vsub.f32 %v8196_v0, %v2560_v7  ;;  %v2562_v46 = vmul.f32 0.00390625, %v2543_v56  ;;  %v2552_v24 = vpop.xlane.xlu1 %2551  ;;  %v6441_v0 = vld [vmem:[%s7330_s24 + $0xf0] sm:$0xff] }
 0xccd   : > { %v8363_v50 = vadd.f32 %v8335_v25, %v3592_v58  ;;  %v3594_v52 = vadd.f32 %v6433_v38, %v3563_v31  ;;  %v3565_v21 = vpop.f32.mrb[83].mxu0  ;;  %v6439_v31 = vld [vmem:[%s7330_s24 + $0xe0] sm:$0xff] }
 0xcce   : > { %v8367_v35 = vadd.f32 %v8338_v49, %v3593_v51  ;;  %v3595_v1 = vadd.f32 %v6434_v9, %v3565_v21  ;;  %v2549_v51 = vpop.xlane.xlu0 %2548  ;;  %v8405_v21 = vsub.f32 %v8199_v17, %v2560_v7  ;;  %v6440_v9 = vld [vmem:[%s7330_s24 + $0xe8] sm:$0xff]  ;;  %v8426_v56 = vsub.f32 %v8219_v60, %v2562_v46 }
 0xccf   : > { %v8371_v27 = vadd.f32 %v8335_v25, %v3594_v52 }
 0xcd0   : > { %v8374_v42 = vadd.f32 %v8338_v49, %v3595_v1  ;;  %v3640_v26 = vadd.f32 %v8367_v35, %v8363_v50 }
 0xcd2   : > { %3641 = vadd.xlane.f32.xlu0 %v3640_v26  ;;  %v3569_v33 = vpop.f32.mrb[84].mxu0  ;;  %v3643_v34 = vadd.f32 %v8374_v42, %v8371_v27  ;;  %v2563_v26 = vmul.f32 0.00390625, %v2546_v5 }
 0xcd3   : > { %v3596_v47 = vadd.f32 %v6435_v37, %v3569_v33  ;;  %v3571_v28 = vpop.f32.mrb[85].mxu0 }
 0xcd4   : > { %v3597_v19 = vadd.f32 %v6436_v3, %v3571_v28  ;;  %v3573_v39 = vpop.f32.mrb[86].mxu0  ;;  %3644 = vadd.xlane.f32.xlu1 %v3643_v34  ;;  %v8416_v28 = vsub.f32 %v8213_v4, %v2561_v57  ;;  %v6442_v3 = vld [vmem:[%s7330_s24 + $0xf8] sm:$0xff]  ;;  %v8444_v60 = vsub.f32 %v8233_v40, %v2563_v26  ;;  %v2589_v40 = vmul.f32 %v8426_v56, %v8426_v56 }
 0xcd5   : > { %v8383_v61 = vadd.f32 %v8335_v25, %v3596_v47  ;;  %v3598_v62 = vadd.f32 %v6437_v55, %v3573_v39  ;;  %v3575_v54 = vpop.f32.mrb[87].mxu0  ;;  %v8413_v47 = vsub.f32 %v8210_v11, %v2561_v57  ;;  %v8423_v39 = vsub.f32 %v8216_v15, %v2562_v46 }
 0xcd6   : > { %v8387_v8 = vadd.f32 %v8338_v49, %v3597_v19  ;;  %v3599_v43 = vadd.f32 %v6438_v36, %v3575_v54  ;;  %v2584_v11 = vmul.f32 %v8401_v41, %v8401_v41  ;;  %v2585_v15 = vmul.f32 %v8405_v21, %v8405_v21 }
 0xcd7   : > { %v8391_v32 = vadd.f32 %v8335_v25, %v3598_v62  ;;  %v2564_v62 = vmul.f32 0.00390625, %v2549_v51  ;;  %v8441_v36 = vsub.f32 %v8230_v10, %v2563_v26  ;;  %v2587_v5 = vmul.f32 %v8416_v28, %v8416_v28 }
 0xcd8   : > { %v8394_v59 = vadd.f32 %v8338_v49, %v3599_v43  ;;  %v3646_v13 = vadd.f32 %v8387_v8, %v8383_v61  ;;  %v2565_v43 = vmul.f32 0.00390625, %v2552_v24  ;;  %v2588_v10 = vmul.f32 %v8423_v39, %v8423_v39 }
 0xcd9   : > { %v8457_v57 = vsub.f32 %v8244_v12, %v2564_v62  ;;  %v2600_v46 = vadd.f32 %v2585_v15, %v2584_v11  ;;  %v2590_v51 = vmul.f32 %v8441_v36, %v8441_v36 }
 0xcda   : > { %3647 = vadd.xlane.f32.xlu0 %v3646_v13  ;;  %v3579_v45 = vpop.f32.mrb[88].mxu0  ;;  %v3649_v58 = vadd.f32 %v8394_v59, %v8391_v32  ;;  %v2558_v13 = vpop.xlane.xlu1 %2557 }
 0xcdb   : > { %v3600_v38 = vadd.f32 %v6439_v31, %v3579_v45  ;;  %v3581_v52 = vpop.f32.mrb[89].mxu0  ;;  %v8460_v45 = vsub.f32 %v8247_v44, %v2564_v62  ;;  %v2591_v31 = vmul.f32 %v8444_v60, %v8444_v60  ;;  %v2567_v12 = vmul.f32 0.00390625, %v2558_v13 }
 0xcdc   : > { %v3601_v1 = vadd.f32 %v6440_v9, %v3581_v52  ;;  %v3583_v53 = vpop.f32.mrb[90].mxu0  ;;  %3650 = vadd.xlane.f32.xlu1 %v3649_v58  ;;  %v8470_v52 = vsub.f32 %v8259_v16, %v2565_v43  ;;  %v2606_v44 = vadd.f32 %v2589_v40, %v2588_v10  ;;  %v2592_v26 = vmul.f32 %v8457_v57, %v8457_v57 }
 0xcdd   : > { %v8409_v33 = vadd.f32 %v8335_v25, %v3600_v38  ;;  %v3602_v34 = vadd.f32 %v6441_v0, %v3583_v53  ;;  %v3585_v37 = vpop.f32.mrb[91].mxu0  ;;  %v8467_v38 = vsub.f32 %v8256_v6, %v2565_v43  ;;  %v2593_v6 = vmul.f32 %v8460_v45, %v8460_v45 }
 0xcde   : > { %v8419_v17 = vadd.f32 %v8338_v49, %v3601_v1  ;;  %v3603_v19 = vadd.f32 %v6442_v3, %v3585_v37  ;;  %v2609_v24 = vadd.f32 %v2591_v31, %v2590_v51  ;;  %v8483_v16 = vsub.f32 %v8274_v20, %v2567_v12 }
 0xcdf   : > { %v8429_v55 = vadd.f32 %v8335_v25, %v3602_v34  ;;  %v2555_v25 = vpop.xlane.xlu0 %2554  ;;  %v8486_v0 = vsub.f32 %v8277_v14, %v2567_v12  ;;  %v2612_v34 = vadd.f32 %v2593_v6, %v2592_v26 }
 0xce0   : > { %v8434_v4 = vadd.f32 %v8338_v49, %v3603_v19  ;;  %v3652_v54 = vadd.f32 %v8419_v17, %v8409_v33  ;;  %v2586_v49 = vmul.f32 %v8413_v47, %v8413_v47  ;;  %v2566_v58 = vmul.f32 0.00390625, %v2555_v25 }
 0xce1   : > { %v2598_v14 = vmul.f32 %v8483_v16, %v8483_v16  ;;  %v2599_v19 = vmul.f32 %v8486_v0, %v8486_v0 }
 0xce2   : > { %3653 = vadd.xlane.f32.xlu0 %v3652_v54  ;;  %v3655_v7 = vadd.f32 %v8434_v4, %v8429_v55  ;;  %v2603_v9 = vadd.f32 %v2587_v5, %v2586_v49  ;;  %v8473_v1 = vsub.f32 %v8266_v63, %v2566_v58  ;;  %v8476_v53 = vsub.f32 %v8269_v22, %v2566_v58 }
 0xce3   : > { %v2594_v63 = vmul.f32 %v8467_v38, %v8467_v38  ;;  %v2595_v22 = vmul.f32 %v8470_v52, %v8470_v52  ;;  %v2621_v62 = vadd.f32 %v2599_v19, %v2598_v14 }
 0xce4   : > { %3656 = vadd.xlane.f32.xlu1 %v3655_v7  ;;  %v2596_v37 = vmul.f32 %v8473_v1, %v8473_v1  ;;  %v2597_v3 = vmul.f32 %v8476_v53, %v8476_v53 }
 0xce5   : > { %v2615_v20 = vadd.f32 %v2595_v22, %v2594_v63 }
 0xce6   : > { %2601 = vadd.xlane.f32.xlu0 %v2600_v46  ;;  %v2618_v11 = vadd.f32 %v2597_v3, %v2596_v37 }
 0xce8   : > { %2604 = vadd.xlane.f32.xlu1 %v2603_v9 }
 0xcea   : > { %2607 = vadd.xlane.f32.xlu0 %v2606_v44 }
 0xcec   : > { %2610 = vadd.xlane.f32.xlu1 %v2609_v24 }
 0xcee   : > { %2613 = vadd.xlane.f32.xlu0 %v2612_v34 }
 0xcf0   : > { %2616 = vadd.xlane.f32.xlu1 %v2615_v20 }
 0xcf2   : > { %2619 = vadd.xlane.f32.xlu0 %v2618_v11 }
 0xcf4   : > { %2622 = vadd.xlane.f32.xlu1 %v2621_v62 }
 0xd57   : > { %v3636_v54 = vpop.xlane.xlu0 %3635 }
 0xd58   : > { %v3658_v15 = vmul.f32 0.00390625, %v3636_v54 }
 0xd59   : > { %v3639_v25 = vpop.xlane.xlu1 %3638 }
 0xd5a   : > { %v8501_v43 = vsub.f32 %v8343_v23, %v3658_v15  ;;  %v8504_v7 = vsub.f32 %v8347_v30, %v3658_v15  ;;  %v3659_v49 = vmul.f32 0.00390625, %v3639_v25 }
 0xd5c   : > { %v8507_v5 = vsub.f32 %v8351_v2, %v3659_v49  ;;  %v8510_v13 = vsub.f32 %v8354_v48, %v3659_v49  ;;  %v3682_v10 = vmul.f32 %v8501_v43, %v8501_v43  ;;  %v3683_v40 = vmul.f32 %v8504_v7, %v8504_v7 }
 0xd5e   : > { %v3698_v58 = vadd.f32 %v3683_v40, %v3682_v10  ;;  %v3684_v23 = vmul.f32 %v8507_v5, %v8507_v5  ;;  %v3685_v30 = vmul.f32 %v8510_v13, %v8510_v13 }
 0xd5f   : > { %v3642_v46 = vpop.xlane.xlu0 %3641 }
 0xd60   : > { %v3660_v51 = vmul.f32 0.00390625, %v3642_v46  ;;  %3699 = vadd.xlane.f32.xlu0 %v3698_v58  ;;  %v3701_v2 = vadd.f32 %v3685_v30, %v3684_v23 }
 0xd61   : > { %v3645_v31 = vpop.xlane.xlu1 %3644 }
 0xd62   : > { %v8521_v48 = vsub.f32 %v8363_v50, %v3660_v51  ;;  %v8524_v12 = vsub.f32 %v8367_v35, %v3660_v51  ;;  %v3661_v9 = vmul.f32 0.00390625, %v3645_v31  ;;  %3702 = vadd.xlane.f32.xlu1 %v3701_v2 }
 0xd64   : > { %v8527_v44 = vsub.f32 %v8371_v27, %v3661_v9  ;;  %v8530_v26 = vsub.f32 %v8374_v42, %v3661_v9  ;;  %v3686_v6 = vmul.f32 %v8521_v48, %v8521_v48  ;;  %v3687_v24 = vmul.f32 %v8524_v12, %v8524_v12 }
 0xd66   : > { %v3704_v63 = vadd.f32 %v3687_v24, %v3686_v6  ;;  %v3688_v50 = vmul.f32 %v8527_v44, %v8527_v44  ;;  %v3689_v35 = vmul.f32 %v8530_v26, %v8530_v26 }
 0xd67   : > { %v3648_v22 = vpop.xlane.xlu0 %3647 }
 0xd68   : > { %v3662_v34 = vmul.f32 0.00390625, %v3648_v22  ;;  %3705 = vadd.xlane.f32.xlu0 %v3704_v63  ;;  %v3707_v27 = vadd.f32 %v3689_v35, %v3688_v50 }
 0xd69   : > { %v3651_v37 = vpop.xlane.xlu1 %3650 }
 0xd6a   : > { %v8541_v42 = vsub.f32 %v8383_v61, %v3662_v34  ;;  %v8544_v3 = vsub.f32 %v8387_v8, %v3662_v34  ;;  %v3663_v20 = vmul.f32 0.00390625, %v3651_v37  ;;  %3708 = vadd.xlane.f32.xlu1 %v3707_v27 }
 0xd6c   : > { %v8547_v14 = vsub.f32 %v8391_v32, %v3663_v20  ;;  %v8550_v19 = vsub.f32 %v8394_v59, %v3663_v20  ;;  %v3690_v11 = vmul.f32 %v8541_v42, %v8541_v42  ;;  %v3691_v62 = vmul.f32 %v8544_v3, %v8544_v3 }
 0xd6e   : > { %v3710_v54 = vadd.f32 %v3691_v62, %v3690_v11  ;;  %v3692_v61 = vmul.f32 %v8547_v14, %v8547_v14  ;;  %v3693_v8 = vmul.f32 %v8550_v19, %v8550_v19  ;;  %v2533_v62 = vld [vmem:[%s9541_s16] sm:$0x3] }
 0xd6f   : > { %v3654_v15 = vpop.xlane.xlu0 %3653 }
 0xd70   : > { %v3664_v25 = vmul.f32 0.00390625, %v3654_v15  ;;  %3711 = vadd.xlane.f32.xlu0 %v3710_v54  ;;  %v3713_v32 = vadd.f32 %v3693_v8, %v3692_v61  ;;  %v2534_v15 = vld [vmem:[%s9543_s29] sm:$0x3] }
 0xd71   : > { %v3657_v49 = vpop.xlane.xlu1 %3656 }
 0xd72   : > { %v8561_v59 = vsub.f32 %v8409_v33, %v3664_v25  ;;  %v8564_v10 = vsub.f32 %v8419_v17, %v3664_v25  ;;  %v3665_v40 = vmul.f32 0.00390625, %v3657_v49  ;;  %3714 = vadd.xlane.f32.xlu1 %v3713_v32  ;;  %v8587_v49 = vrot.slane %v2533_v62, %v9534_v18 }
 0xd73   : > { %v2602_v58 = vpop.xlane.xlu0 %2601 }
 0xd74   : > { %v8567_v23 = vsub.f32 %v8429_v55, %v3665_v40  ;;  %v8570_v30 = vsub.f32 %v8434_v4, %v3665_v40  ;;  %v2624_v46 = vmul.f32 0.00390625, %v2602_v58  ;;  %v3694_v51 = vmul.f32 %v8561_v59, %v8561_v59 }
 0xd75   : > { %v2605_v2 = vpop.xlane.xlu1 %2604  ;;  %v3695_v33 = vmul.f32 %v8564_v10, %v8564_v10  ;;  %v8590_v40 = vrot.slane %v2533_v62, %v9535_v29 }
 0xd76   : > { %v2632_v31 = vadd.f32 1e-05, %v2624_v46  ;;  %v2625_v17 = vmul.f32 0.00390625, %v2605_v2  ;;  %v3696_v9 = vmul.f32 %v8567_v23, %v8567_v23  ;;  %v3697_v55 = vmul.f32 %v8570_v30, %v8570_v30 }
 0xd77   : > { %v2608_v6 = vpop.xlane.xlu0 %2607  ;;  %v3716_v24 = vadd.f32 %v3695_v33, %v3694_v51  ;;  %v8593_v33 = vrot.slane %v2534_v15, %v9534_v18 }
 0xd78   : > { %6371 = vrsqrt.f32 %v2632_v31  ;;  %v2633_v4 = vadd.f32 1e-05, %v2625_v17  ;;  %v2626_v63 = vmul.f32 0.00390625, %v2608_v6  ;;  %v3719_v50 = vadd.f32 %v3697_v55, %v3696_v9 }
 0xd79   : > { %3717 = vadd.xlane.f32.xlu0 %v3716_v24  ;;  %v2611_v35 = vpop.xlane.xlu1 %2610  ;;  %v8596_v31 = vrot.slane %v2534_v15, %v9535_v29 }
 0xd7a   : > { %6373 = vrsqrt.f32 %v2633_v4  ;;  %v2634_v22 = vadd.f32 1e-05, %v2626_v63  ;;  %v2627_v34 = vmul.f32 0.00390625, %v2611_v35  ;;  %3720 = vadd.xlane.f32.xlu1 %v3719_v50 }
 0xd7b   : > { %v2614_v27 = vpop.xlane.xlu0 %2613 }
 0xd7c   : > { %6375 = vrsqrt.f32 %v2634_v22  ;;  %v2635_v37 = vadd.f32 1e-05, %v2627_v34  ;;  %v2628_v20 = vmul.f32 0.00390625, %v2614_v27 }
 0xd7d   : > { %v2617_v11 = vpop.xlane.xlu1 %2616 }
 0xd7e   : > { %6377 = vrsqrt.f32 %v2635_v37  ;;  %v2636_v54 = vadd.f32 1e-05, %v2628_v20  ;;  %v2629_v61 = vmul.f32 0.00390625, %v2617_v11 }
 0xd7f   : > { %v2620_v8 = vpop.xlane.xlu0 %2619 }
 0xd80   : > { %6379 = vrsqrt.f32 %v2636_v54  ;;  %v2637_v25 = vadd.f32 1e-05, %v2629_v61  ;;  %v2630_v32 = vmul.f32 0.00390625, %v2620_v8 }
 0xd81   : > { %v2623_v58 = vpop.xlane.xlu1 %2622 }
 0xd82   : > { %v6372_v46 = vpop.eup %6371  ;;  %6381 = vrsqrt.f32 %v2637_v25  ;;  %v2638_v51 = vadd.f32 1e-05, %v2630_v32  ;;  %v2631_v2 = vmul.f32 0.00390625, %v2623_v58 }
 0xd83   : > { %v2648_v17 = vmul.f32 %v6372_v46, %v8401_v41  ;;  %v2649_v9 = vmul.f32 %v6372_v46, %v8405_v21 }
 0xd84   : > { %v6374_v55 = vpop.eup %6373  ;;  %6383 = vrsqrt.f32 %v2638_v51  ;;  %v2639_v6 = vadd.f32 1e-05, %v2631_v2 }
 0xd85   : > { %v2675_v24 = vmul.f32 %v8587_v49, %v2648_v17  ;;  %v2676_v4 = vmul.f32 %v8590_v40, %v2649_v9  ;;  %v2650_v63 = vmul.f32 %v6374_v55, %v8413_v47  ;;  %v2651_v50 = vmul.f32 %v6374_v55, %v8416_v28 }
 0xd86   : > { %v6376_v35 = vpop.eup %6375  ;;  %6385 = vrsqrt.f32 %v2639_v6 }
 0xd87   : > { %v2702_v22 = vadd.f32 %v8593_v33, %v2675_v24  ;;  %v2703_v34 = vadd.f32 %v8596_v31, %v2676_v4  ;;  %v2677_v41 = vmul.f32 %v8587_v49, %v2650_v63  ;;  %v2678_v21 = vmul.f32 %v8590_v40, %v2651_v50 }
 0xd88   : > { %v6378_v27 = vpop.eup %6377  ;;  %v2652_v37 = vmul.f32 %v6376_v35, %v8423_v39  ;;  %v2653_v20 = vmul.f32 %v6376_v35, %v8426_v56 }
 0xd89   : > { %2718 = vst [vmem:[#allocation2] sm:$0xff] %v2702_v22  ;;  %2719 = vst [vmem:[#allocation2 + $0x8] sm:$0xff] %v2703_v34  ;;  %v2704_v47 = vadd.f32 %v8593_v33, %v2677_v41  ;;  %v2705_v28 = vadd.f32 %v8596_v31, %v2678_v21  ;;  %v2654_v11 = vmul.f32 %v6378_v27, %v8441_v36 }
 0xd8a   : > { %v2655_v62 = vmul.f32 %v6378_v27, %v8444_v60  ;;  %v6380_v54 = vpop.eup %6379  ;;  %v2679_v61 = vmul.f32 %v8587_v49, %v2652_v37  ;;  %v2680_v8 = vmul.f32 %v8590_v40, %v2653_v20 }
 0xd8b   : > { %2720 = vst [vmem:[#allocation2 + $0x10] sm:$0xff] %v2704_v47  ;;  %2721 = vst [vmem:[#allocation2 + $0x18] sm:$0xff] %v2705_v28  ;;  %v2734_v39 = vpack.c.bf16 %v2704_v47, %v2702_v22  ;;  %v2735_v15 = vpack.c.bf16 %v2705_v28, %v2703_v34  ;;  %v2681_v56 = vmul.f32 %v8587_v49, %v2654_v11 }
 0xd8c   : > { %v2682_v25 = vmul.f32 %v8590_v40, %v2655_v62  ;;  %v6382_v32 = vpop.eup %6381  ;;  %v2706_v58 = vadd.f32 %v8593_v33, %v2679_v61  ;;  %v2707_v36 = vadd.f32 %v8596_v31, %v2680_v8  ;;  %v2656_v60 = vmul.f32 %v6380_v54, %v8457_v57 }
 0xd8d   : > { %v2657_v46 = vmul.f32 %v6380_v54, %v8460_v45  ;;  %2742 = vst [vmem:[#allocation3] sm:$0xff] %v2734_v39  ;;  %2743 = vst [vmem:[#allocation3 + $0x8] sm:$0xff] %v2735_v15  ;;  %v2708_v51 = vadd.f32 %v8593_v33, %v2681_v56  ;;  %v2658_v17 = vmul.f32 %v6382_v32, %v8467_v38 }
 0xd8e   : > { %v2709_v2 = vadd.f32 %v8596_v31, %v2682_v25  ;;  %v2659_v9 = vmul.f32 %v6382_v32, %v8470_v52  ;;  %v6384_v55 = vpop.eup %6383  ;;  %2722 = vst [vmem:[#allocation2 + $0x20] sm:$0xff] %v2706_v58  ;;  %2723 = vst [vmem:[#allocation2 + $0x28] sm:$0xff] %v2707_v36  ;;  %v2683_v6 = vmul.f32 %v8587_v49, %v2656_v60 }
 0xd8f   : > { %v2684_v24 = vmul.f32 %v8590_v40, %v2657_v46  ;;  %2724 = vst [vmem:[#allocation2 + $0x30] sm:$0xff] %v2708_v51  ;;  %v2736_v57 = vpack.c.bf16 %v2708_v51, %v2706_v58  ;;  %v2685_v4 = vmul.f32 %v8587_v49, %v2658_v17  ;;  %v2660_v35 = vmul.f32 %v6384_v55, %v8473_v1  ;;  %v3632_v58 = vld [vmem:[%s9542_s28] sm:$0x3] }
 0xd90   : > { %2725 = vst [vmem:[#allocation2 + $0x38] sm:$0xff] %v2709_v2  ;;  %v2737_v45 = vpack.c.bf16 %v2709_v2, %v2707_v36  ;;  %v2686_v63 = vmul.f32 %v8590_v40, %v2659_v9  ;;  %v6386_v50 = vpop.eup %6385  ;;  %v2710_v38 = vadd.f32 %v8593_v33, %v2683_v6  ;;  %v2661_v22 = vmul.f32 %v6384_v55, %v8476_v53  ;;  %v3633_v46 = vld [vmem:[%s9544_s26] sm:$0x3] }
 0xd91   : > { %v2711_v52 = vadd.f32 %v8596_v31, %v2684_v24  ;;  %2744 = vst [vmem:[#allocation3 + $0x10] sm:$0xff] %v2736_v57  ;;  %v2712_v34 = vadd.f32 %v8593_v33, %v2685_v4  ;;  %v2662_v21 = vmul.f32 %v6386_v50, %v8483_v16  ;;  %v2663_v27 = vmul.f32 %v6386_v50, %v8486_v0 }
 0xd92   : > { %2745 = vst [vmem:[#allocation3 + $0x18] sm:$0xff] %v2737_v45  ;;  %v2713_v41 = vadd.f32 %v8596_v31, %v2686_v63  ;;  %2726 = vst [vmem:[#allocation2 + $0x40] sm:$0xff] %v2710_v38  ;;  %v2687_v37 = vmul.f32 %v8587_v49, %v2660_v35  ;;  %v2688_v20 = vmul.f32 %v8590_v40, %v2661_v22 }
 0xd93   : > { %2727 = vst [vmem:[#allocation2 + $0x48] sm:$0xff] %v2711_v52  ;;  %2728 = vst [vmem:[#allocation2 + $0x50] sm:$0xff] %v2712_v34  ;;  %v2738_v1 = vpack.c.bf16 %v2712_v34, %v2710_v38  ;;  %v2689_v47 = vmul.f32 %v8587_v49, %v2662_v21  ;;  %v2690_v28 = vmul.f32 %v8590_v40, %v2663_v27  ;;  %v6894_v49 = vmov 0.0  }
 0xd94   : > { %2729 = vst [vmem:[#allocation2 + $0x58] sm:$0xff] %v2713_v41  ;;  %v2739_v53 = vpack.c.bf16 %v2713_v41, %v2711_v52  ;;  %v2714_v11 = vadd.f32 %v8593_v33, %v2687_v37  ;;  %v2715_v16 = vadd.f32 %v8596_v31, %v2688_v20  ;;  %3848 = vst [vmem:[#allocation4] sm:$0xff] %v6894_v49 }
 0xd95   : > { %2746 = vst [vmem:[#allocation3 + $0x20] sm:$0xff] %v2738_v1  ;;  %v2716_v0 = vadd.f32 %v8593_v33, %v2689_v47  ;;  %v2717_v62 = vadd.f32 %v8596_v31, %v2690_v28  ;;  %3849 = vst [vmem:[#allocation4 + $0x8] sm:$0xff] %v6894_v49  ;;  %v8653_v2 = vrot.slane %v3632_v58, %v9534_v18 }
 0xd96   : > { %2747 = vst [vmem:[#allocation3 + $0x28] sm:$0xff] %v2739_v53  ;;  %2730 = vst [vmem:[#allocation2 + $0x60] sm:$0xff] %v2714_v11  ;;  %v8656_v17 = vrot.slane %v3632_v58, %v9535_v29  ;;  %v8659_v55 = vrot.slane %v3633_v46, %v9534_v18  ;;  %v8662_v6 = vrot.slane %v3633_v46, %v9535_v29 }
 0xd97   : > { %2731 = vst [vmem:[#allocation2 + $0x68] sm:$0xff] %v2715_v16  ;;  %2732 = vst [vmem:[#allocation2 + $0x70] sm:$0xff] %v2716_v0  ;;  %v2740_v54 = vpack.c.bf16 %v2716_v0, %v2714_v11  ;;  %v2741_v61 = vpack.c.bf16 %v2717_v62, %v2715_v16 }
 0xd98   : > { %2733 = vst [vmem:[#allocation2 + $0x78] sm:$0xff] %v2717_v62  ;;  %3850 = vst [vmem:[#allocation4 + $0x10] sm:$0xff] %v6894_v49 }
 0xd99   : > { %2748 = vst [vmem:[#allocation3 + $0x30] sm:$0xff] %v2740_v54  ;;  %2749 = vst [vmem:[#allocation3 + $0x38] sm:$0xff] %v2741_v61 }
 0xd9a   : > { %3851 = vst [vmem:[#allocation4 + $0x18] sm:$0xff] %v6894_v49  ;;  %3852 = vst [vmem:[#allocation4 + $0x20] sm:$0xff] %v6894_v49 }
 0xd9b   : > { %3853 = vst [vmem:[#allocation4 + $0x28] sm:$0xff] %v6894_v49  ;;  %3854 = vst [vmem:[#allocation4 + $0x30] sm:$0xff] %v6894_v49 }
 0xd9c   : > { %3855 = vst [vmem:[#allocation4 + $0x38] sm:$0xff] %v6894_v49  ;;  %3856 = vst [vmem:[#allocation4 + $0x40] sm:$0xff] %v6894_v49 }
 0xd9d   : > { %3857 = vst [vmem:[#allocation4 + $0x48] sm:$0xff] %v6894_v49  ;;  %3858 = vst [vmem:[#allocation4 + $0x50] sm:$0xff] %v6894_v49 }
 0xd9e   : > { %3859 = vst [vmem:[#allocation4 + $0x58] sm:$0xff] %v6894_v49  ;;  %3860 = vst [vmem:[#allocation4 + $0x60] sm:$0xff] %v6894_v49 }
 0xd9f   : > { %3861 = vst [vmem:[#allocation4 + $0x68] sm:$0xff] %v6894_v49  ;;  %3862 = vst [vmem:[#allocation4 + $0x70] sm:$0xff] %v6894_v49 }
 0xda0   : > { %3863 = vst [vmem:[#allocation4 + $0x78] sm:$0xff] %v6894_v49  ;;  %3864 = vst [vmem:[#allocation4 + $0x80] sm:$0xff] %v6894_v49 }
 0xda1   : > { %3865 = vst [vmem:[#allocation4 + $0x88] sm:$0xff] %v6894_v49  ;;  %3866 = vst [vmem:[#allocation4 + $0x90] sm:$0xff] %v6894_v49 }
 0xda2   : > { %3867 = vst [vmem:[#allocation4 + $0x98] sm:$0xff] %v6894_v49  ;;  %3868 = vst [vmem:[#allocation4 + $0xa0] sm:$0xff] %v6894_v49 }
 0xda3   : > { %3869 = vst [vmem:[#allocation4 + $0xa8] sm:$0xff] %v6894_v49  ;;  %3870 = vst [vmem:[#allocation4 + $0xb0] sm:$0xff] %v6894_v49 }
 0xda4   : > { %3871 = vst [vmem:[#allocation4 + $0xb8] sm:$0xff] %v6894_v49  ;;  %3872 = vst [vmem:[#allocation4 + $0xc0] sm:$0xff] %v6894_v49 }
 0xda5   : > { %3873 = vst [vmem:[#allocation4 + $0xc8] sm:$0xff] %v6894_v49  ;;  %3874 = vst [vmem:[#allocation4 + $0xd0] sm:$0xff] %v6894_v49 }
 0xda6   : > { %3875 = vst [vmem:[#allocation4 + $0xd8] sm:$0xff] %v6894_v49  ;;  %3876 = vst [vmem:[#allocation4 + $0xe0] sm:$0xff] %v6894_v49 }
 0xda7   : > { %3877 = vst [vmem:[#allocation4 + $0xe8] sm:$0xff] %v6894_v49  ;;  %3878 = vst [vmem:[#allocation4 + $0xf0] sm:$0xff] %v6894_v49 }
 0xda8   : > { %3879 = vst [vmem:[#allocation4 + $0xf8] sm:$0xff] %v6894_v49 }
 0xded   : > { %v3700_v40 = vpop.xlane.xlu0 %3699 }
 0xdee   : > { %v3722_v33 = vmul.f32 0.00390625, %v3700_v40 }
 0xdef   : > { %v3703_v31 = vpop.xlane.xlu1 %3702 }
 0xdf0   : > { %v3730_v8 = vadd.f32 1e-05, %v3722_v33  ;;  %v3723_v39 = vmul.f32 0.00390625, %v3703_v31 }
 0xdf2   : > { %6387 = vrsqrt.f32 %v3730_v8  ;;  %v3731_v15 = vadd.f32 1e-05, %v3723_v39 }
 0xdf4   : > { %6389 = vrsqrt.f32 %v3731_v15 }
 0xdf5   : > { %v3706_v56 = vpop.xlane.xlu0 %3705 }
 0xdf6   : > { %v3724_v25 = vmul.f32 0.00390625, %v3706_v56 }
 0xdf7   : > { %v3709_v32 = vpop.xlane.xlu1 %3708 }
 0xdf8   : > { %v3732_v36 = vadd.f32 1e-05, %v3724_v25  ;;  %v3725_v60 = vmul.f32 0.00390625, %v3709_v32 }
 0xdfa   : > { %6391 = vrsqrt.f32 %v3732_v36  ;;  %v3733_v51 = vadd.f32 1e-05, %v3725_v60 }
 0xdfc   : > { %v6388_v9 = vpop.eup %6387  ;;  %6393 = vrsqrt.f32 %v3733_v51 }
 0xdfd   : > { %v3746_v24 = vmul.f32 %v6388_v9, %v8501_v43  ;;  %v3747_v57 = vmul.f32 %v6388_v9, %v8504_v7  ;;  %v3712_v45 = vpop.xlane.xlu0 %3711 }
 0xdfe   : > { %v6390_v4 = vpop.eup %6389  ;;  %v3726_v63 = vmul.f32 0.00390625, %v3712_v45 }
 0xdff   : > { %v3773_v50 = vmul.f32 %v8653_v2, %v3746_v24  ;;  %v3774_v38 = vmul.f32 %v8656_v17, %v3747_v57  ;;  %v3748_v52 = vmul.f32 %v6390_v4, %v8507_v5  ;;  %v3749_v35 = vmul.f32 %v6390_v4, %v8510_v13  ;;  %v3715_v18 = vpop.xlane.xlu1 %3714 }
 0xe00   : > { %v3734_v22 = vadd.f32 1e-05, %v3726_v63  ;;  %v3727_v34 = vmul.f32 0.00390625, %v3715_v18 }
 0xe01   : > { %v3800_v29 = vadd.f32 %v8659_v55, %v3773_v50  ;;  %v3801_v43 = vadd.f32 %v8662_v6, %v3774_v38  ;;  %v3775_v7 = vmul.f32 %v8653_v2, %v3748_v52  ;;  %v3776_v41 = vmul.f32 %v8656_v17, %v3749_v35 }
 0xe02   : > { %6395 = vrsqrt.f32 %v3734_v22  ;;  %v3735_v21 = vadd.f32 1e-05, %v3727_v34 }
 0xe03   : > { %3816 = vst [vmem:[#allocation2 + $0x80] sm:$0xff] %v3800_v29  ;;  %3817 = vst [vmem:[#allocation2 + $0x88] sm:$0xff] %v3801_v43  ;;  %v3802_v27 = vadd.f32 %v8659_v55, %v3775_v7  ;;  %v3803_v5 = vadd.f32 %v8662_v6, %v3776_v41 }
 0xe04   : > { %v6392_v13 = vpop.eup %6391  ;;  %6397 = vrsqrt.f32 %v3735_v21 }
 0xe05   : > { %3818 = vst [vmem:[#allocation2 + $0x90] sm:$0xff] %v3802_v27  ;;  %3819 = vst [vmem:[#allocation2 + $0x98] sm:$0xff] %v3803_v5  ;;  %v3832_v37 = vpack.c.bf16 %v3802_v27, %v3800_v29  ;;  %v3833_v20 = vpack.c.bf16 %v3803_v5, %v3801_v43  ;;  %v3750_v1 = vmul.f32 %v6392_v13, %v8521_v48 }
 0xe06   : > { %v3751_v53 = vmul.f32 %v6392_v13, %v8524_v12  ;;  %v6394_v47 = vpop.eup %6393  ;;  %v3718_v28 = vpop.xlane.xlu0 %3717 }
 0xe07   : > { %3840 = vst [vmem:[#allocation3 + $0x40] sm:$0xff] %v3832_v37  ;;  %3841 = vst [vmem:[#allocation3 + $0x48] sm:$0xff] %v3833_v20  ;;  %v3777_v11 = vmul.f32 %v8653_v2, %v3750_v1  ;;  %v3752_v0 = vmul.f32 %v6394_v47, %v8527_v44  ;;  %v3753_v62 = vmul.f32 %v6394_v47, %v8530_v26  ;;  %v3721_v54 = vpop.xlane.xlu1 %3720  ;;  %v3728_v61 = vmul.f32 0.00390625, %v3718_v28 }
 0xe08   : > { %v3778_v16 = vmul.f32 %v8656_v17, %v3751_v53  ;;  %v3729_v49 = vmul.f32 0.00390625, %v3721_v54 }
 0xe09   : > { %v3804_v40 = vadd.f32 %v8659_v55, %v3777_v11  ;;  %v3779_v12 = vmul.f32 %v8653_v2, %v3752_v0  ;;  %v3780_v33 = vmul.f32 %v8656_v17, %v3753_v62  ;;  %v3736_v31 = vadd.f32 1e-05, %v3728_v61 }
 0xe0a   : > { %v3805_v48 = vadd.f32 %v8662_v6, %v3778_v16  ;;  %v3737_v8 = vadd.f32 1e-05, %v3729_v49 }
 0xe0b   : > { %3820 = vst [vmem:[#allocation2 + $0xa0] sm:$0xff] %v3804_v40  ;;  %v3806_v39 = vadd.f32 %v8659_v55, %v3779_v12  ;;  %v3807_v44 = vadd.f32 %v8662_v6, %v3780_v33  ;;  %6399 = vrsqrt.f32 %v3736_v31 }
 0xe0c   : > { %3821 = vst [vmem:[#allocation2 + $0xa8] sm:$0xff] %v3805_v48  ;;  %v6396_v26 = vpop.eup %6395  ;;  %6401 = vrsqrt.f32 %v3737_v8 }
 0xe0d   : > { %3822 = vst [vmem:[#allocation2 + $0xb0] sm:$0xff] %v3806_v39  ;;  %3823 = vst [vmem:[#allocation2 + $0xb8] sm:$0xff] %v3807_v44  ;;  %v3834_v15 = vpack.c.bf16 %v3806_v39, %v3804_v40  ;;  %v3835_v56 = vpack.c.bf16 %v3807_v44, %v3805_v48  ;;  %v3754_v25 = vmul.f32 %v6396_v26, %v8541_v42 }
 0xe0e   : > { %v3755_v32 = vmul.f32 %v6396_v26, %v8544_v3  ;;  %v6398_v58 = vpop.eup %6397 }
 0xe0f   : > { %3842 = vst [vmem:[#allocation3 + $0x50] sm:$0xff] %v3834_v15  ;;  %3843 = vst [vmem:[#allocation3 + $0x58] sm:$0xff] %v3835_v56  ;;  %v3781_v36 = vmul.f32 %v8653_v2, %v3754_v25  ;;  %v3756_v46 = vmul.f32 %v6398_v58, %v8547_v14  ;;  %v3757_v51 = vmul.f32 %v6398_v58, %v8550_v19 }
 0xe10   : > { %v3782_v60 = vmul.f32 %v8656_v17, %v3755_v32 }
 0xe11   : > { %v3808_v9 = vadd.f32 %v8659_v55, %v3781_v36  ;;  %v3783_v42 = vmul.f32 %v8653_v2, %v3756_v46  ;;  %v3784_v3 = vmul.f32 %v8656_v17, %v3757_v51 }
 0xe12   : > { %v3809_v24 = vadd.f32 %v8662_v6, %v3782_v60 }
 0xe13   : > { %3824 = vst [vmem:[#allocation2 + $0xc0] sm:$0xff] %v3808_v9  ;;  %v3810_v57 = vadd.f32 %v8659_v55, %v3783_v42  ;;  %v3811_v45 = vadd.f32 %v8662_v6, %v3784_v3 }
 0xe14   : > { %3825 = vst [vmem:[#allocation2 + $0xc8] sm:$0xff] %v3809_v24 }
 0xe15   : > { %3826 = vst [vmem:[#allocation2 + $0xd0] sm:$0xff] %v3810_v57  ;;  %3827 = vst [vmem:[#allocation2 + $0xd8] sm:$0xff] %v3811_v45  ;;  %v3836_v4 = vpack.c.bf16 %v3810_v57, %v3808_v9  ;;  %v3837_v14 = vpack.c.bf16 %v3811_v45, %v3809_v24  ;;  %v6400_v63 = vpop.eup %6399 }
 0xe16   : > { %v3758_v19 = vmul.f32 %v6400_v63, %v8561_v59  ;;  %v3759_v50 = vmul.f32 %v6400_v63, %v8564_v10  ;;  %v6402_v38 = vpop.eup %6401 }
 0xe17   : > { %3844 = vst [vmem:[#allocation3 + $0x60] sm:$0xff] %v3836_v4  ;;  %3845 = vst [vmem:[#allocation3 + $0x68] sm:$0xff] %v3837_v14  ;;  %v3760_v18 = vmul.f32 %v6402_v38, %v8567_v23  ;;  %v3761_v22 = vmul.f32 %v6402_v38, %v8570_v30 }
 0xe18   : > { %v3785_v52 = vmul.f32 %v8653_v2, %v3758_v19  ;;  %v3786_v35 = vmul.f32 %v8656_v17, %v3759_v50 }
 0xe19   : > { %v3787_v43 = vmul.f32 %v8653_v2, %v3760_v18  ;;  %v3788_v7 = vmul.f32 %v8656_v17, %v3761_v22 }
 0xe1a   : > { %v3812_v34 = vadd.f32 %v8659_v55, %v3785_v52  ;;  %v3813_v29 = vadd.f32 %v8662_v6, %v3786_v35 }
 0xe1b   : > { %v3814_v59 = vadd.f32 %v8659_v55, %v3787_v43  ;;  %v3815_v10 = vadd.f32 %v8662_v6, %v3788_v7 }
 0xe1c   : > { %3828 = vst [vmem:[#allocation2 + $0xe0] sm:$0xff] %v3812_v34  ;;  %3829 = vst [vmem:[#allocation2 + $0xe8] sm:$0xff] %v3813_v29 }
 0xe1d   : > { %3830 = vst [vmem:[#allocation2 + $0xf0] sm:$0xff] %v3814_v59  ;;  %3831 = vst [vmem:[#allocation2 + $0xf8] sm:$0xff] %v3815_v10  ;;  %v3838_v41 = vpack.c.bf16 %v3814_v59, %v3812_v34  ;;  %v3839_v23 = vpack.c.bf16 %v3815_v10, %v3813_v29 }
 0xe1f   : > { %3846 = vst [vmem:[#allocation3 + $0x70] sm:$0xff] %v3838_v41  ;;  %3847 = vst [vmem:[#allocation3 + $0x78] sm:$0xff] %v3839_v23 }
 0xe20 PF: > { %v6443_v30 = vld [vmem:[%s7345_s15 + $0x4] ss:$8 sps:$4 sm:$0xff]   ;;  %v6445_v2 = vld [vmem:[%s7345_s15] ss:$8 sps:$4 sm:$0xff]   ;;  %v6446_v17 = vld [vmem:[%s7345_s15 + $0x14] ss:$8 sps:$4 sm:$0xff]  }
 0xe21   : > { %4100 = vmatprep.subr.bf16.mxu0 %v6443_v30  ;;  %v6448_v55 = vld [vmem:[%s7345_s15 + $0x10] ss:$8 sps:$4 sm:$0xff]   ;;  %v6449_v6 = vld [vmem:[%s7345_s15 + $0x24] ss:$8 sps:$4 sm:$0xff]   ;;  %v6451_v21 = vld [vmem:[%s7345_s15 + $0x20] ss:$8 sps:$4 sm:$0xff]  }
 0xe22   : > { %4101 = vmatpush1.bf16.msra.mxu0 %v6445_v2  ;;  %v6452_v27 = vld [vmem:[%s7345_s15 + $0x34] ss:$8 sps:$4 sm:$0xff]   ;;  %v6454_v5 = vld [vmem:[%s7345_s15 + $0x30] ss:$8 sps:$4 sm:$0xff]   ;;  %v6455_v13 = vld [vmem:[%s7345_s15 + $0x44] ss:$8 sps:$4 sm:$0xff]  }
 0xe23   : > { %4102 = vmatprep.subr.bf16.mxu0 %v6446_v17  ;;  %v6457_v37 = vld [vmem:[%s7345_s15 + $0x40] ss:$8 sps:$4 sm:$0xff]   ;;  %v6458_v20 = vld [vmem:[%s7345_s15 + $0x54] ss:$8 sps:$4 sm:$0xff]   ;;  %v6460_v1 = vld [vmem:[%s7345_s15 + $0x50] ss:$8 sps:$4 sm:$0xff]  }
 0xe24   : > { %v6461_v53 = vld [vmem:[%s7345_s15 + $0x64] ss:$8 sps:$4 sm:$0xff]   ;;  %v6463_v28 = vld [vmem:[%s7345_s15 + $0x60] ss:$8 sps:$4 sm:$0xff]   ;;  %v6464_v11 = vld [vmem:[%s7345_s15 + $0x74] ss:$8 sps:$4 sm:$0xff]  }
 0xe25   : > { %v3881_v47 = vld [vmem:[#allocation3 + $0x8] sm:$0xff]  ;;  %v6466_v16 = vld [vmem:[%s7345_s15 + $0x70] ss:$8 sps:$4 sm:$0xff]   ;;  %v6494_v61 = vld [vmem:[%s7358_s11 + $0x14] ss:$8 sps:$4 sm:$0xff]   ;;  %p5628_p12 = scmp.ne.s32.totalorder %s6863_s19, 1 }
 0xe26   : > { %4103 = vmatpush1.bf16.msra.mxu0 %v6448_v55  ;;  %4132 = vmatprep.mubr.bf16.mxu0 %v3881_v47  ;;  %v6467_v0 = vld [vmem:[%s7345_s15 + $0x84] ss:$8 sps:$4 sm:$0xff]   ;;  %v6493_v54 = vld [vmem:[%s7358_s11] ss:$8 sps:$4 sm:$0xff]   ;;  %v6496_v49 = vld [vmem:[%s7358_s11 + $0x10] ss:$8 sps:$4 sm:$0xff]  }
 0xe27   : > { %4104 = vmatprep.subr.bf16.mxu0 %v6449_v6  ;;  %v6491_v62 = vld [vmem:[%s7358_s11 + $0x4] ss:$8 sps:$4 sm:$0xff]   ;;  %v6469_v40 = vld [vmem:[%s7345_s15 + $0x80] ss:$8 sps:$4 sm:$0xff]   ;;  %v6470_v12 = vld [vmem:[%s7345_s15 + $0x94] ss:$8 sps:$4 sm:$0xff]  }
 0xe28   : > { %4485 = vmatprep.subr.bf16.mxu1 %v6491_v62  ;;  %v6497_v48 = vld [vmem:[%s7358_s11 + $0x24] ss:$8 sps:$4 sm:$0xff]   ;;  %v6499_v33 = vld [vmem:[%s7358_s11 + $0x20] ss:$8 sps:$4 sm:$0xff]   ;;  %v6472_v31 = vld [vmem:[%s7345_s15 + $0x90] ss:$8 sps:$4 sm:$0xff]  }
 0xe29   : > { %4486 = vmatpush1.bf16.msra.mxu1 %v6493_v54  ;;  %v6500_v8 = vld [vmem:[%s7358_s11 + $0x34] ss:$8 sps:$4 sm:$0xff]   ;;  %v6473_v39 = vld [vmem:[%s7345_s15 + $0xa4] ss:$8 sps:$4 sm:$0xff]   ;;  %v6502_v44 = vld [vmem:[%s7358_s11 + $0x30] ss:$8 sps:$4 sm:$0xff]  }
 0xe2a   : > { %4105 = vmatpush1.bf16.msra.mxu0 %v6451_v21  ;;  %4487 = vmatprep.subr.bf16.mxu1 %v6494_v61  ;;  %v6475_v26 = vld [vmem:[%s7345_s15 + $0xa0] ss:$8 sps:$4 sm:$0xff]   ;;  %v6503_v15 = vld [vmem:[%s7358_s11 + $0x44] ss:$8 sps:$4 sm:$0xff]   ;;  %v6476_v56 = vld [vmem:[%s7345_s15 + $0xb4] ss:$8 sps:$4 sm:$0xff]  }
 0xe2b   : > { %4106 = vmatprep.subr.bf16.mxu0 %v6452_v27  ;;  %v6505_v25 = vld [vmem:[%s7358_s11 + $0x40] ss:$8 sps:$4 sm:$0xff]   ;;  %v6478_v32 = vld [vmem:[%s7345_s15 + $0xb0] ss:$8 sps:$4 sm:$0xff]   ;;  %v6506_v58 = vld [vmem:[%s7358_s11 + $0x54] ss:$8 sps:$4 sm:$0xff]  }
 0xe2c   : > { %v6479_v36 = vld [vmem:[%s7345_s15 + $0xc4] ss:$8 sps:$4 sm:$0xff]   ;;  %v6508_v60 = vld [vmem:[%s7358_s11 + $0x50] ss:$8 sps:$4 sm:$0xff]   ;;  %v6481_v46 = vld [vmem:[%s7345_s15 + $0xc0] ss:$8 sps:$4 sm:$0xff]  }
 0xe2d   : > { %4488 = vmatpush1.bf16.msra.mxu1 %v6496_v49  ;;  %v6509_v51 = vld [vmem:[%s7358_s11 + $0x64] ss:$8 sps:$4 sm:$0xff]   ;;  %v6482_v9 = vld [vmem:[%s7345_s15 + $0xd4] ss:$8 sps:$4 sm:$0xff]   ;;  %v6511_v24 = vld [vmem:[%s7358_s11 + $0x60] ss:$8 sps:$4 sm:$0xff]  }
 0xe2e   : > { %4107 = vmatpush1.bf16.msra.mxu0 %v6454_v5  ;;  %4489 = vmatprep.subr.bf16.mxu1 %v6497_v48  ;;  %v6484_v42 = vld [vmem:[%s7345_s15 + $0xd0] ss:$8 sps:$4 sm:$0xff]   ;;  %v6512_v3 = vld [vmem:[%s7358_s11 + $0x74] ss:$8 sps:$4 sm:$0xff]   ;;  %v6485_v57 = vld [vmem:[%s7345_s15 + $0xe4] ss:$8 sps:$4 sm:$0xff]  }
 0xe2f   : > { %4108 = vmatprep.subr.bf16.mxu0 %v6455_v13  ;;  %v6514_v45 = vld [vmem:[%s7358_s11 + $0x70] ss:$8 sps:$4 sm:$0xff]   ;;  %v6487_v4 = vld [vmem:[%s7345_s15 + $0xe0] ss:$8 sps:$4 sm:$0xff]   ;;  %v6515_v14 = vld [vmem:[%s7358_s11 + $0x84] ss:$8 sps:$4 sm:$0xff]  }
 0xe30   : > { %v6488_v63 = vld [vmem:[%s7345_s15 + $0xf4] ss:$8 sps:$4 sm:$0xff]   ;;  %v6517_v19 = vld [vmem:[%s7358_s11 + $0x80] ss:$8 sps:$4 sm:$0xff]   ;;  %v6490_v50 = vld [vmem:[%s7345_s15 + $0xf0] ss:$8 sps:$4 sm:$0xff]  }
 0xe31   : > { %4490 = vmatpush1.bf16.msra.mxu1 %v6499_v33  ;;  %v6518_v38 = vld [vmem:[%s7358_s11 + $0x94] ss:$8 sps:$4 sm:$0xff]   ;;  %v6520_v52 = vld [vmem:[%s7358_s11 + $0x90] ss:$8 sps:$4 sm:$0xff]   ;;  %v3880_v35 = vld [vmem:[#allocation3] sm:$0xff]  ;;  %s9547_s25 = sld [smem:[#allocation66_spill]] (!%p5628_p12) }
 0xe32   : > { %4109 = vmatpush1.bf16.msra.mxu0 %v6457_v37  ;;  %4491 = vmatprep.subr.bf16.mxu1 %v6500_v8  ;;  %v6521_v18 = vld [vmem:[%s7358_s11 + $0xa4] ss:$8 sps:$4 sm:$0xff]   ;;  %v3883_v22 = vld [vmem:[#allocation3 + $0x18] sm:$0xff]  ;;  %v6523_v34 = vld [vmem:[%s7358_s11 + $0xa0] ss:$8 sps:$4 sm:$0xff]   ;;  %s9548_s18 = sld [smem:[#allocation67_spill]] (!%p5628_p12) }
 0xe33   : > { %4110 = vmatprep.subr.bf16.mxu0 %v6458_v20  ;;  %v6524_v29 = vld [vmem:[%s7358_s11 + $0xb4] ss:$8 sps:$4 sm:$0xff]   ;;  %v6526_v43 = vld [vmem:[%s7358_s11 + $0xb0] ss:$8 sps:$4 sm:$0xff]   ;;  %v6527_v59 = vld [vmem:[%s7358_s11 + $0xc4] ss:$8 sps:$4 sm:$0xff]  }
 0xe34   : > { %v3882_v7 = vld [vmem:[#allocation3 + $0x10] sm:$0xff]  ;;  %v3885_v10 = vld [vmem:[#allocation3 + $0x28] sm:$0xff]  ;;  %v3884_v30 = vld [vmem:[#allocation3 + $0x20] sm:$0xff] }
 0xe35   : > { %4492 = vmatpush1.bf16.msra.mxu1 %v6502_v44  ;;  %v6529_v41 = vld [vmem:[%s7358_s11 + $0xc0] ss:$8 sps:$4 sm:$0xff]   ;;  %v6530_v23 = vld [vmem:[%s7358_s11 + $0xd4] ss:$8 sps:$4 sm:$0xff]  }
 0xe36   : > { %4111 = vmatpush1.bf16.msra.mxu0 %v6460_v1  ;;  %4493 = vmatprep.subr.bf16.mxu1 %v6503_v15  ;;  %v3887_v2 = vld [vmem:[#allocation3 + $0x38] sm:$0xff]  ;;  %v3886_v17 = vld [vmem:[#allocation3 + $0x30] sm:$0xff]  ;;  %v3889_v55 = vld [vmem:[#allocation3 + $0x48] sm:$0xff] }
 0xe37   : > { %4112 = vmatprep.subr.bf16.mxu0 %v6461_v53  ;;  %v3888_v6 = vld [vmem:[#allocation3 + $0x40] sm:$0xff]  ;;  %v3891_v21 = vld [vmem:[#allocation3 + $0x58] sm:$0xff]  ;;  %v3890_v27 = vld [vmem:[#allocation3 + $0x50] sm:$0xff] }
 0xe38   : > { %v3893_v5 = vld [vmem:[#allocation3 + $0x68] sm:$0xff]  ;;  %v3892_v13 = vld [vmem:[#allocation3 + $0x60] sm:$0xff]  ;;  %v3895_v37 = vld [vmem:[#allocation3 + $0x78] sm:$0xff] }
 0xe39   : > { %4494 = vmatpush1.bf16.msra.mxu1 %v6505_v25  ;;  %v3894_v20 = vld [vmem:[#allocation3 + $0x70] sm:$0xff]  ;;  %v6533_v53 = vld [vmem:[%s7358_s11 + $0xe4] ss:$8 sps:$4 sm:$0xff]   ;;  %v6535_v47 = vld [vmem:[%s7358_s11 + $0xe0] ss:$8 sps:$4 sm:$0xff]  }
 0xe3a   : > { %4113 = vmatpush1.bf16.msra.mxu0 %v6463_v28  ;;  %4495 = vmatprep.subr.bf16.mxu1 %v6506_v58  ;;  %v6532_v1 = vld [vmem:[%s7358_s11 + $0xd0] ss:$8 sps:$4 sm:$0xff]   ;;  %v6536_v28 = vld [vmem:[%s7358_s11 + $0xf4] ss:$8 sps:$4 sm:$0xff]   ;;  %v3928_v54 = vld [vmem:[%s637_s5] sm:$0x3] }
 0xe3b   : > { %4114 = vmatprep.subr.bf16.mxu0 %v6464_v11  ;;  %v6538_v11 = vld [vmem:[%s7358_s11 + $0xf0] ss:$8 sps:$4 sm:$0xff]   ;;  %s9546_s11 = sld [smem:[#allocation65_spill]] (!%p5628_p12) }
 0xe3d   : > { %4496 = vmatpush1.bf16.msra.mxu1 %v6508_v60 }
 0xe3e   : > { %4115 = vmatpush1.bf16.msra.mxu0 %v6466_v16  ;;  %4497 = vmatprep.subr.bf16.mxu1 %v6509_v51  ;;  %v3930_v16 = vlaneseq }
 0xe3f   : > { %4116 = vmatprep.subr.bf16.mxu0 %v6467_v0 }
 0xe40   : > { %v3931_v0 = vshrl.u32 %v3930_v16, 7 }
 0xe41   : > { %4498 = vmatpush1.bf16.msra.mxu1 %v6511_v24 }
 0xe42   : > { %4117 = vmatpush1.bf16.msra.mxu0 %v6469_v40  ;;  %4499 = vmatprep.subr.bf16.mxu1 %v6512_v3  ;;  %v8776_v62 = vsub.s32 0, %v3931_v0  ;;  %v8783_v61 = vsub.s32 1, %v3931_v0 }
 0xe43   : > { %4118 = vmatprep.subr.bf16.mxu0 %v6470_v12 }
 0xe44   : > { %v8786_v49 = vrot.slane %v3928_v54, %v8776_v62  ;;  %v8789_v40 = vrot.slane %v3928_v54, %v8783_v61 }
 0xe45   : > { %4500 = vmatpush1.bf16.msra.mxu1 %v6514_v45 }
 0xe46   : > { %4119 = vmatpush1.bf16.msra.mxu0 %v6472_v31  ;;  %4501 = vmatprep.subr.bf16.mxu1 %v6515_v14 }
 0xe47   : > { %4120 = vmatprep.subr.bf16.mxu0 %v6473_v39 }
 0xe49   : > { %4502 = vmatpush1.bf16.msra.mxu1 %v6517_v19 }
 0xe4a   : > { %4121 = vmatpush1.bf16.msra.mxu0 %v6475_v26  ;;  %4503 = vmatprep.subr.bf16.mxu1 %v6518_v38 }
 0xe4b   : > { %4122 = vmatprep.subr.bf16.mxu0 %v6476_v56 }
 0xe4d   : > { %4504 = vmatpush1.bf16.msra.mxu1 %v6520_v52 }
 0xe4e   : > { %4123 = vmatpush1.bf16.msra.mxu0 %v6478_v32  ;;  %4505 = vmatprep.subr.bf16.mxu1 %v6521_v18 }
 0xe4f   : > { %4124 = vmatprep.subr.bf16.mxu0 %v6479_v36 }
 0xe51   : > { %4506 = vmatpush1.bf16.msra.mxu1 %v6523_v34 }
 0xe52   : > { %4125 = vmatpush1.bf16.msra.mxu0 %v6481_v46  ;;  %4507 = vmatprep.subr.bf16.mxu1 %v6524_v29 }
 0xe53   : > { %4126 = vmatprep.subr.bf16.mxu0 %v6482_v9 }
 0xe55   : > { %4508 = vmatpush1.bf16.msra.mxu1 %v6526_v43 }
 0xe56   : > { %4127 = vmatpush1.bf16.msra.mxu0 %v6484_v42  ;;  %4509 = vmatprep.subr.bf16.mxu1 %v6527_v59 }
 0xe57   : > { %4128 = vmatprep.subr.bf16.mxu0 %v6485_v57 }
 0xe59   : > { %4510 = vmatpush1.bf16.msra.mxu1 %v6529_v41 }
 0xe5a   : > { %4129 = vmatpush1.bf16.msra.mxu0 %v6487_v4  ;;  %4511 = vmatprep.subr.bf16.mxu1 %v6530_v23 }
 0xe5b   : > { %4130 = vmatprep.subr.bf16.mxu0 %v6488_v63 }
 0xe5d   : > { %4512 = vmatpush1.bf16.msra.mxu1 %v6532_v1 }
 0xe5e   : > { %4131 = vmatpush1.bf16.msra.mxu0 %v6490_v50  ;;  %4513 = vmatprep.subr.bf16.mxu1 %v6533_v53 }
 0xe61   : > { %4133 = vmatmul.mubr.bf16.vlgmr.msra.gmra.mrb[0].mxu0 %v3880_v35  ;;  %4514 = vmatpush1.bf16.msra.mxu1 %v6535_v47 }
 0xe62   : > { %4142 = vmatprep.mubr.bf16.mxu0 %v3883_v22  ;;  %4515 = vmatprep.subr.bf16.mxu1 %v6536_v28 }
 0xe65   : > { %4516 = vmatpush1.bf16.msra.mxu1 %v6538_v11 }
 0xe69   : > { %4143 = vmatmul.mubr.bf16.gmra.mrb[4].mxu0 %v3882_v7 }
 0xe6a   : > { %4152 = vmatprep.mubr.bf16.mxu0 %v3885_v10 }
 0xe71   : > { %4153 = vmatmul.mubr.bf16.gmra.mrb[8].mxu0 %v3884_v30 }
 0xe72   : > { %4162 = vmatprep.mubr.bf16.mxu0 %v3887_v2 }
 0xe79   : > { %4163 = vmatmul.mubr.bf16.gmra.mrb[12].mxu0 %v3886_v17 }
 0xe7a   : > { %4172 = vmatprep.mubr.bf16.mxu0 %v3889_v55 }
 0xe81   : > { %4173 = vmatmul.mubr.bf16.gmra.mrb[16].mxu0 %v3888_v6 }
 0xe82   : > { %4182 = vmatprep.mubr.bf16.mxu0 %v3891_v21 }
 0xe89   : > { %4183 = vmatmul.mubr.bf16.gmra.mrb[20].mxu0 %v3890_v27 }
 0xe8a   : > { %4192 = vmatprep.mubr.bf16.mxu0 %v3893_v5 }
 0xe91   : > { %4193 = vmatmul.mubr.bf16.gmra.mrb[24].mxu0 %v3892_v13 }
 0xe92   : > { %4202 = vmatprep.mubr.bf16.mxu0 %v3895_v37 }
 0xe99   : > { %4203 = vmatmul.mubr.bf16.gmra.mrb[28].mxu0 %v3894_v20 }
 0xf34   : > { %v4134_v48 = vpop.f32.mrb[0].mxu0 }
 0xf35   : > { %v4135_v12 = vadd.f32 %v4134_v48, %v8786_v49  ;;  %v4136_v33 = vpop.f32.mrb[1].mxu0 }
 0xf36   : > { %v4137_v31 = vadd.f32 %v4136_v33, %v8789_v40  ;;  %v4138_v8 = vpop.f32.mrb[2].mxu0 }
 0xf37   : > { %v4139_v39 = vadd.f32 %v4138_v8, %v8786_v49  ;;  %v4140_v44 = vpop.f32.mrb[3].mxu0  ;;  %v4213_v15 = vmax.f32 %v4135_v12, 0.0 }
 0xf38   : > { %v4141_v26 = vadd.f32 %v4140_v44, %v8789_v40  ;;  %v4214_v25 = vmax.f32 %v4137_v31, 0.0 }
 0xf39   : > { %v4215_v56 = vmax.f32 %v4139_v39, 0.0 }
 0xf3a   : > { %v4216_v32 = vmax.f32 %v4141_v26, 0.0 }
 0xf3b   : > { %v4277_v58 = vpack.c.bf16 %v4215_v56, %v4213_v15 }
 0xf3c   : > { %v4144_v36 = vpop.f32.mrb[4].mxu0  ;;  %v4278_v60 = vpack.c.bf16 %v4216_v32, %v4214_v25 }
 0xf3d   : > { %v4145_v46 = vadd.f32 %v4144_v36, %v8786_v49  ;;  %v4146_v51 = vpop.f32.mrb[5].mxu0 }
 0xf3e   : > { %v4147_v9 = vadd.f32 %v4146_v51, %v8789_v40  ;;  %v4148_v24 = vpop.f32.mrb[6].mxu0  ;;  %4517 = vmatprep.mubr.bf16.mxu1 %v4278_v60 }
 0xf3f   : > { %v4149_v42 = vadd.f32 %v4148_v24, %v8786_v49  ;;  %v4150_v3 = vpop.f32.mrb[7].mxu0  ;;  %4518 = vmatmul.mubr.bf16.vlgmr.msra.gmra.mrb[0].mxu1 %v4277_v58  ;;  %v4217_v45 = vmax.f32 %v4145_v46, 0.0 }
 0xf40   : > { %v4151_v57 = vadd.f32 %v4150_v3, %v8789_v40  ;;  %v4218_v14 = vmax.f32 %v4147_v9, 0.0 }
 0xf41   : > { %v4219_v4 = vmax.f32 %v4149_v42, 0.0 }
 0xf42   : > { %v4220_v63 = vmax.f32 %v4151_v57, 0.0 }
 0xf43   : > { %v4279_v19 = vpack.c.bf16 %v4219_v4, %v4217_v45 }
 0xf44   : > { %v4280_v50 = vpack.c.bf16 %v4220_v63, %v4218_v14  ;;  %v4154_v38 = vpop.f32.mrb[8].mxu0 }
 0xf45   : > { %v4155_v52 = vadd.f32 %v4154_v38, %v8786_v49  ;;  %v4156_v35 = vpop.f32.mrb[9].mxu0 }
 0xf46   : > { %v4157_v18 = vadd.f32 %v4156_v35, %v8789_v40  ;;  %v4158_v22 = vpop.f32.mrb[10].mxu0  ;;  %4527 = vmatprep.mubr.bf16.mxu1 %v4280_v50 }
 0xf47   : > { %v4159_v34 = vadd.f32 %v4158_v22, %v8786_v49  ;;  %v4160_v29 = vpop.f32.mrb[11].mxu0  ;;  %4528 = vmatmul.mubr.bf16.gmra.mrb[4].mxu1 %v4279_v19  ;;  %v4221_v7 = vmax.f32 %v4155_v52, 0.0 }
 0xf48   : > { %v4161_v43 = vadd.f32 %v4160_v29, %v8789_v40  ;;  %v4222_v10 = vmax.f32 %v4157_v18, 0.0 }
 0xf49   : > { %v4223_v59 = vmax.f32 %v4159_v34, 0.0 }
 0xf4a   : > { %v4224_v41 = vmax.f32 %v4161_v43, 0.0 }
 0xf4b   : > { %v4281_v23 = vpack.c.bf16 %v4223_v59, %v4221_v7 }
 0xf4c   : > { %v4282_v30 = vpack.c.bf16 %v4224_v41, %v4222_v10  ;;  %v4164_v2 = vpop.f32.mrb[12].mxu0 }
 0xf4d   : > { %v4165_v17 = vadd.f32 %v4164_v2, %v8786_v49  ;;  %v4166_v55 = vpop.f32.mrb[13].mxu0 }
 0xf4e   : > { %v4167_v6 = vadd.f32 %v4166_v55, %v8789_v40  ;;  %v4168_v21 = vpop.f32.mrb[14].mxu0  ;;  %4537 = vmatprep.mubr.bf16.mxu1 %v4282_v30 }
 0xf4f   : > { %v4169_v27 = vadd.f32 %v4168_v21, %v8786_v49  ;;  %v4170_v5 = vpop.f32.mrb[15].mxu0  ;;  %4538 = vmatmul.mubr.bf16.gmra.mrb[8].mxu1 %v4281_v23  ;;  %v4225_v37 = vmax.f32 %v4165_v17, 0.0 }
 0xf50   : > { %v4171_v13 = vadd.f32 %v4170_v5, %v8789_v40  ;;  %v4226_v1 = vmax.f32 %v4167_v6, 0.0 }
 0xf51   : > { %v4227_v20 = vmax.f32 %v4169_v27, 0.0 }
 0xf52   : > { %v4228_v53 = vmax.f32 %v4171_v13, 0.0 }
 0xf53   : > { %v4283_v47 = vpack.c.bf16 %v4227_v20, %v4225_v37 }
 0xf54   : > { %v4284_v28 = vpack.c.bf16 %v4228_v53, %v4226_v1  ;;  %v4174_v11 = vpop.f32.mrb[16].mxu0  ;;  %v4245_v1 = vld [vmem:[#allocation4] sm:$0xff]  ;;  %v4246_v53 = vld [vmem:[#allocation4 + $0x8] sm:$0xff] }
 0xf55   : > { %v4175_v16 = vadd.f32 %v4174_v11, %v8786_v49  ;;  %v4176_v0 = vpop.f32.mrb[17].mxu0 }
 0xf56   : > { %v4177_v54 = vadd.f32 %v4176_v0, %v8789_v40  ;;  %v4178_v48 = vpop.f32.mrb[18].mxu0  ;;  %4547 = vmatprep.mubr.bf16.mxu1 %v4284_v28  ;;  %v4247_v28 = vld [vmem:[#allocation4 + $0x10] sm:$0xff]  ;;  %v4248_v0 = vld [vmem:[#allocation4 + $0x18] sm:$0xff] }
 0xf57   : > { %v4179_v12 = vadd.f32 %v4178_v48, %v8786_v49  ;;  %v4180_v33 = vpop.f32.mrb[19].mxu0  ;;  %4548 = vmatmul.mubr.bf16.gmra.mrb[12].mxu1 %v4283_v47  ;;  %v4229_v8 = vmax.f32 %v4175_v16, 0.0 }
 0xf58   : > { %v4181_v31 = vadd.f32 %v4180_v33, %v8789_v40  ;;  %v4230_v44 = vmax.f32 %v4177_v54, 0.0  ;;  %v4249_v33 = vld [vmem:[#allocation4 + $0x20] sm:$0xff] }
 0xf59   : > { %v4231_v39 = vmax.f32 %v4179_v12, 0.0 }
 0xf5a   : > { %v4232_v26 = vmax.f32 %v4181_v31, 0.0  ;;  %v4250_v31 = vld [vmem:[#allocation4 + $0x28] sm:$0xff] }
 0xf5b   : > { %v4285_v15 = vpack.c.bf16 %v4231_v39, %v4229_v8  ;;  %v4251_v39 = vld [vmem:[#allocation4 + $0x30] sm:$0xff] }
 0xf5c   : > { %v4286_v56 = vpack.c.bf16 %v4232_v26, %v4230_v44  ;;  %v4184_v25 = vpop.f32.mrb[20].mxu0 }
 0xf5d   : > { %v4185_v32 = vadd.f32 %v4184_v25, %v8786_v49  ;;  %v4186_v58 = vpop.f32.mrb[21].mxu0 }
 0xf5e   : > { %v4187_v36 = vadd.f32 %v4186_v58, %v8789_v40  ;;  %v4188_v60 = vpop.f32.mrb[22].mxu0  ;;  %4557 = vmatprep.mubr.bf16.mxu1 %v4286_v56 }
 0xf5f   : > { %v4189_v46 = vadd.f32 %v4188_v60, %v8786_v49  ;;  %v4190_v51 = vpop.f32.mrb[23].mxu0  ;;  %4558 = vmatmul.mubr.bf16.gmra.mrb[16].mxu1 %v4285_v15  ;;  %v4233_v24 = vmax.f32 %v4185_v32, 0.0  ;;  %v4252_v15 = vld [vmem:[#allocation4 + $0x38] sm:$0xff]  ;;  %v4253_v60 = vld [vmem:[#allocation4 + $0x40] sm:$0xff] }
 0xf60   : > { %v4191_v9 = vadd.f32 %v4190_v51, %v8789_v40  ;;  %v4234_v3 = vmax.f32 %v4187_v36, 0.0 }
 0xf61   : > { %v4235_v42 = vmax.f32 %v4189_v46, 0.0  ;;  %v4254_v46 = vld [vmem:[#allocation4 + $0x48] sm:$0xff] }
 0xf62   : > { %v4236_v57 = vmax.f32 %v4191_v9, 0.0  ;;  %v4255_v9 = vld [vmem:[#allocation4 + $0x50] sm:$0xff] }
 0xf63   : > { %v4287_v45 = vpack.c.bf16 %v4235_v42, %v4233_v24 }
 0xf64   : > { %v4288_v4 = vpack.c.bf16 %v4236_v57, %v4234_v3  ;;  %v4194_v14 = vpop.f32.mrb[24].mxu0  ;;  %v4256_v3 = vld [vmem:[#allocation4 + $0x58] sm:$0xff] }
 0xf65   : > { %v4195_v63 = vadd.f32 %v4194_v14, %v8786_v49  ;;  %v4196_v19 = vpop.f32.mrb[25].mxu0 }
 0xf66   : > { %v4197_v50 = vadd.f32 %v4196_v19, %v8789_v40  ;;  %v4198_v38 = vpop.f32.mrb[26].mxu0  ;;  %4567 = vmatprep.mubr.bf16.mxu1 %v4288_v4  ;;  %v4257_v19 = vld [vmem:[#allocation4 + $0x60] sm:$0xff] }
 0xf67   : > { %v4199_v52 = vadd.f32 %v4198_v38, %v8786_v49  ;;  %v4200_v35 = vpop.f32.mrb[27].mxu0  ;;  %4568 = vmatmul.mubr.bf16.gmra.mrb[20].mxu1 %v4287_v45  ;;  %v4237_v22 = vmax.f32 %v4195_v63, 0.0 }
 0xf68   : > { %v4201_v18 = vadd.f32 %v4200_v35, %v8789_v40  ;;  %v4238_v29 = vmax.f32 %v4197_v50, 0.0  ;;  %v4258_v50 = vld [vmem:[#allocation4 + $0x68] sm:$0xff] }
 0xf69   : > { %v4239_v34 = vmax.f32 %v4199_v52, 0.0  ;;  %v4259_v52 = vld [vmem:[#allocation4 + $0x70] sm:$0xff] }
 0xf6a   : > { %v4240_v43 = vmax.f32 %v4201_v18, 0.0 }
 0xf6b   : > { %v4289_v7 = vpack.c.bf16 %v4239_v34, %v4237_v22  ;;  %v4260_v22 = vld [vmem:[#allocation4 + $0x78] sm:$0xff] }
 0xf6c   : > { %v4290_v59 = vpack.c.bf16 %v4240_v43, %v4238_v29  ;;  %v4204_v10 = vpop.f32.mrb[28].mxu0 }
 0xf6d   : > { %v4205_v41 = vadd.f32 %v4204_v10, %v8786_v49  ;;  %v4206_v23 = vpop.f32.mrb[29].mxu0  ;;  %v4261_v10 = vld [vmem:[#allocation4 + $0x80] sm:$0xff] }
 0xf6e   : > { %v4207_v30 = vadd.f32 %v4206_v23, %v8789_v40  ;;  %v4208_v2 = vpop.f32.mrb[30].mxu0  ;;  %4577 = vmatprep.mubr.bf16.mxu1 %v4290_v59 }
 0xf6f   : > { %v4209_v17 = vadd.f32 %v4208_v2, %v8786_v49  ;;  %v4210_v55 = vpop.f32.mrb[31].mxu0  ;;  %4578 = vmatmul.mubr.bf16.gmra.mrb[24].mxu1 %v4289_v7  ;;  %v4241_v21 = vmax.f32 %v4205_v41, 0.0  ;;  %v4262_v41 = vld [vmem:[#allocation4 + $0x88] sm:$0xff] }
 0xf70   : > { %v4211_v6 = vadd.f32 %v4210_v55, %v8789_v40  ;;  %v4242_v5 = vmax.f32 %v4207_v30, 0.0  ;;  %v4263_v30 = vld [vmem:[#allocation4 + $0x90] sm:$0xff]  ;;  %v4264_v55 = vld [vmem:[#allocation4 + $0x98] sm:$0xff] }
 0xf71   : > { %v4243_v27 = vmax.f32 %v4209_v17, 0.0 }
 0xf72   : > { %v4244_v13 = vmax.f32 %v4211_v6, 0.0 }
 0xf73   : > { %v4291_v37 = vpack.c.bf16 %v4243_v27, %v4241_v21 }
 0xf74   : > { %v4292_v20 = vpack.c.bf16 %v4244_v13, %v4242_v5 }
 0xf76   : > { %4587 = vmatprep.mubr.bf16.mxu1 %v4292_v20  ;;  %v4266_v20 = vld [vmem:[#allocation4 + $0xa8] sm:$0xff] }
 0xf77   : > { %4588 = vmatmul.mubr.bf16.gmra.mrb[28].mxu1 %v4291_v37  ;;  %v4265_v37 = vld [vmem:[#allocation4 + $0xa0] sm:$0xff] }
0x1012   : > { %v4519_v47 = vpop.f32.mrb[0].mxu1 }
0x1013   : > { %v4598_v11 = vadd.f32 %v4519_v47, %v4245_v1  ;;  %v4521_v16 = vpop.f32.mrb[1].mxu1 }
0x1014   : > { %v4599_v49 = vadd.f32 %v4521_v16, %v4246_v53  ;;  %v4523_v54 = vpop.f32.mrb[2].mxu1  ;;  %v4267_v53 = vld [vmem:[#allocation4 + $0xb0] sm:$0xff] }
0x1015   : > { %4630 = vst [vmem:[#allocation4] sm:$0xff] %v4598_v11  ;;  %v4600_v48 = vadd.f32 %v4523_v54, %v4247_v28  ;;  %v4525_v40 = vpop.f32.mrb[3].mxu1  ;;  %v4268_v11 = vld [vmem:[#allocation4 + $0xb8] sm:$0xff] }
0x1016   : > { %4631 = vst [vmem:[#allocation4 + $0x8] sm:$0xff] %v4599_v49  ;;  %v4601_v12 = vadd.f32 %v4525_v40, %v4248_v0  ;;  %v4269_v40 = vld [vmem:[#allocation4 + $0xc0] sm:$0xff] }
0x1017   : > { %4632 = vst [vmem:[#allocation4 + $0x10] sm:$0xff] %v4600_v48 }
0x1018   : > { %4633 = vst [vmem:[#allocation4 + $0x18] sm:$0xff] %v4601_v12  ;;  %v4270_v12 = vld [vmem:[#allocation4 + $0xc8] sm:$0xff] }
0x101a   : > { %v4529_v8 = vpop.f32.mrb[4].mxu1 }
0x101b   : > { %v4602_v44 = vadd.f32 %v4529_v8, %v4249_v33  ;;  %v4531_v26 = vpop.f32.mrb[5].mxu1 }
0x101c   : > { %v4603_v56 = vadd.f32 %v4531_v26, %v4250_v31  ;;  %v4533_v25 = vpop.f32.mrb[6].mxu1  ;;  %v4271_v31 = vld [vmem:[#allocation4 + $0xd0] sm:$0xff] }
0x101d   : > { %4634 = vst [vmem:[#allocation4 + $0x20] sm:$0xff] %v4602_v44  ;;  %v4604_v32 = vadd.f32 %v4533_v25, %v4251_v39  ;;  %v4535_v58 = vpop.f32.mrb[7].mxu1  ;;  %v4272_v44 = vld [vmem:[#allocation4 + $0xd8] sm:$0xff] }
0x101e   : > { %4635 = vst [vmem:[#allocation4 + $0x28] sm:$0xff] %v4603_v56  ;;  %v4605_v36 = vadd.f32 %v4535_v58, %v4252_v15  ;;  %v4273_v58 = vld [vmem:[#allocation4 + $0xe0] sm:$0xff] }
0x101f   : > { %4636 = vst [vmem:[#allocation4 + $0x30] sm:$0xff] %v4604_v32 }
0x1020   : > { %4637 = vst [vmem:[#allocation4 + $0x38] sm:$0xff] %v4605_v36  ;;  %v4274_v36 = vld [vmem:[#allocation4 + $0xe8] sm:$0xff] }
0x1022   : > { %v4539_v51 = vpop.f32.mrb[8].mxu1 }
0x1023   : > { %v4606_v24 = vadd.f32 %v4539_v51, %v4253_v60  ;;  %v4541_v42 = vpop.f32.mrb[9].mxu1 }
0x1024   : > { %v4607_v57 = vadd.f32 %v4541_v42, %v4254_v46  ;;  %v4543_v45 = vpop.f32.mrb[10].mxu1  ;;  %v4275_v46 = vld [vmem:[#allocation4 + $0xf0] sm:$0xff] }
0x1025   : > { %4638 = vst [vmem:[#allocation4 + $0x40] sm:$0xff] %v4606_v24  ;;  %v4608_v4 = vadd.f32 %v4543_v45, %v4255_v9  ;;  %v4545_v14 = vpop.f32.mrb[11].mxu1  ;;  %v4276_v24 = vld [vmem:[#allocation4 + $0xf8] sm:$0xff] }
0x1026   : > { %4639 = vst [vmem:[#allocation4 + $0x48] sm:$0xff] %v4607_v57  ;;  %v4609_v63 = vadd.f32 %v4545_v14, %v4256_v3  ;;  %v4666_v14 = vld [vmem:[#allocation4] sm:$0xff] (!%p5628_p12) }
0x1027   : > { %4640 = vst [vmem:[#allocation4 + $0x50] sm:$0xff] %v4608_v4 }
0x1028   : > { %4641 = vst [vmem:[#allocation4 + $0x58] sm:$0xff] %v4609_v63  ;;  %v4667_v63 = vld [vmem:[#allocation4 + $0x8] sm:$0xff] (!%p5628_p12) }
0x102a   : > { %v4549_v38 = vpop.f32.mrb[12].mxu1 }
0x102b   : > { %v4610_v35 = vadd.f32 %v4549_v38, %v4257_v19  ;;  %v4551_v18 = vpop.f32.mrb[13].mxu1  ;;  %v4698_v19 = vld [vmem:[%s9546_s11] sm:$0x3] (!%p5628_p12) }
0x102c   : > { %v4611_v34 = vadd.f32 %v4551_v18, %v4258_v50  ;;  %v4553_v29 = vpop.f32.mrb[14].mxu1  ;;  %v8828_v50 = vrot.slane (!%p5628_p12), %v4698_v19, %v8776_v62  ;;  %v8831_v38 = vrot.slane (!%p5628_p12), %v4698_v19, %v8783_v61  ;;  %v4670_v18 = vld [vmem:[#allocation4 + $0x20] sm:$0xff] (!%p5628_p12) }
0x102d   : > { %4642 = vst [vmem:[#allocation4 + $0x60] sm:$0xff] %v4610_v35  ;;  %v4612_v43 = vadd.f32 %v4553_v29, %v4259_v52  ;;  %v4555_v7 = vpop.f32.mrb[15].mxu1  ;;  %v4742_v52 = vld [vmem:[#allocation2] sm:$0xff] (!%p5628_p12)  ;;  %v4743_v35 = vld [vmem:[#allocation2 + $0x8] sm:$0xff] (!%p5628_p12) }
0x102e   : > { %4643 = vst [vmem:[#allocation4 + $0x68] sm:$0xff] %v4611_v34  ;;  %v4613_v59 = vadd.f32 %v4555_v7, %v4260_v22  ;;  %v4671_v22 = vld [vmem:[#allocation4 + $0x28] sm:$0xff] (!%p5628_p12)  ;;  %v4746_v34 = vld [vmem:[#allocation2 + $0x20] sm:$0xff] (!%p5628_p12)  ;;  %v4711_v7 = vadd.f32 (!%p5628_p12), %v8831_v38, %v4667_v63  ;;  %v4757_v63 = vld [vmem:[#allocation2 + $0x78] sm:$0xff] (!%p5628_p12) }
0x102f   : > { %4644 = vst [vmem:[#allocation4 + $0x70] sm:$0xff] %v4612_v43  ;;  %v4747_v29 = vld [vmem:[#allocation2 + $0x28] sm:$0xff] (!%p5628_p12)  ;;  %v4710_v43 = vadd.f32 (!%p5628_p12), %v8828_v50, %v4666_v14  ;;  %v4756_v14 = vld [vmem:[#allocation2 + $0x70] sm:$0xff] (!%p5628_p12) }
0x1030   : > { %4645 = vst [vmem:[#allocation4 + $0x78] sm:$0xff] %v4613_v59  ;;  %v4714_v59 = vadd.f32 (!%p5628_p12), %v8828_v50, %v4670_v18 }
0x1032   : > { %v4559_v23 = vpop.f32.mrb[16].mxu1 }
0x1033   : > { %v4614_v2 = vadd.f32 %v4559_v23, %v4261_v10  ;;  %v4561_v17 = vpop.f32.mrb[17].mxu1  ;;  %v4715_v10 = vadd.f32 (!%p5628_p12), %v8831_v38, %v4671_v22  ;;  %v4669_v23 = vld [vmem:[#allocation4 + $0x18] sm:$0xff] (!%p5628_p12) }
0x1034   : > { %v4615_v6 = vadd.f32 %v4561_v17, %v4262_v41  ;;  %v4563_v21 = vpop.f32.mrb[18].mxu1  ;;  %v4668_v41 = vld [vmem:[#allocation4 + $0x10] sm:$0xff] (!%p5628_p12)  ;;  %v4713_v17 = vadd.f32 (!%p5628_p12), %v8831_v38, %v4669_v23 }
0x1035   : > { %4646 = vst [vmem:[#allocation4 + $0x80] sm:$0xff] %v4614_v2  ;;  %v4616_v27 = vadd.f32 %v4563_v21, %v4263_v30  ;;  %v4565_v5 = vpop.f32.mrb[19].mxu1  ;;  %v4744_v30 = vld [vmem:[#allocation2 + $0x10] sm:$0xff] (!%p5628_p12)  ;;  %v4712_v2 = vadd.f32 (!%p5628_p12), %v8828_v50, %v4668_v41  ;;  %v4673_v21 = vld [vmem:[#allocation4 + $0x38] sm:$0xff] (!%p5628_p12) }
0x1036   : > { %4647 = vst [vmem:[#allocation4 + $0x88] sm:$0xff] %v4615_v6  ;;  %v4617_v13 = vadd.f32 %v4565_v5, %v4264_v55  ;;  %v4745_v55 = vld [vmem:[#allocation2 + $0x18] sm:$0xff] (!%p5628_p12)  ;;  %v4672_v6 = vld [vmem:[#allocation4 + $0x30] sm:$0xff] (!%p5628_p12)  ;;  %v8841_v5 = vadd.f32 (!%p5628_p12), %v4743_v35, %v4711_v7 }
0x1037   : > { %4648 = vst [vmem:[#allocation4 + $0x90] sm:$0xff] %v4616_v27  ;;  %v8839_v27 = vadd.f32 (!%p5628_p12), %v4742_v52, %v4710_v43 }
0x1038   : > { %4649 = vst [vmem:[#allocation4 + $0x98] sm:$0xff] %v4617_v13  ;;  %v8843_v13 = vadd.f32 (!%p5628_p12), %v4746_v34, %v4714_v59 }
0x103a   : > { %v4569_v1 = vpop.f32.mrb[20].mxu1 }
0x103b   : > { %v4618_v47 = vadd.f32 %v4569_v1, %v4265_v37  ;;  %v4571_v28 = vpop.f32.mrb[21].mxu1  ;;  %v8845_v37 = vadd.f32 (!%p5628_p12), %v4747_v29, %v4715_v10  ;;  %v4749_v1 = vld [vmem:[#allocation2 + $0x38] sm:$0xff] (!%p5628_p12)  ;;  %v4758_v10 = vld [vmem:[#allocation2 + $0x80] sm:$0xff] (!%p5628_p12) }
0x103c   : > { %v4619_v16 = vadd.f32 %v4571_v28, %v4266_v20  ;;  %v4573_v0 = vpop.f32.mrb[22].mxu1  ;;  %v4748_v20 = vld [vmem:[#allocation2 + $0x30] sm:$0xff] (!%p5628_p12)  ;;  %v8849_v28 = vadd.f32 (!%p5628_p12), %v4745_v55, %v4713_v17  ;;  %v4682_v22 = vld [vmem:[#allocation4 + $0x80] sm:$0xff] (!%p5628_p12)  ;;  %v4759_v55 = vld [vmem:[#allocation2 + $0x88] sm:$0xff] (!%p5628_p12) }
0x103d   : > { %4650 = vst [vmem:[#allocation4 + $0xa0] sm:$0xff] %v4618_v47  ;;  %v4620_v49 = vadd.f32 %v4573_v0, %v4267_v53  ;;  %v4575_v54 = vpop.f32.mrb[23].mxu1  ;;  %v4674_v53 = vld [vmem:[#allocation4 + $0x40] sm:$0xff] (!%p5628_p12)  ;;  %v8847_v47 = vadd.f32 (!%p5628_p12), %v4744_v30, %v4712_v2  ;;  %v4675_v0 = vld [vmem:[#allocation4 + $0x48] sm:$0xff] (!%p5628_p12)  ;;  %v4726_v7 = vadd.f32 (!%p5628_p12), %v8828_v50, %v4682_v22 }
0x103e   : > { %4651 = vst [vmem:[#allocation4 + $0xa8] sm:$0xff] %v4619_v16  ;;  %v4621_v48 = vadd.f32 %v4575_v54, %v4268_v11  ;;  %v4716_v11 = vadd.f32 (!%p5628_p12), %v8828_v50, %v4672_v6  ;;  %v4717_v16 = vadd.f32 (!%p5628_p12), %v8831_v38, %v4673_v21  ;;  %v4751_v54 = vld [vmem:[#allocation2 + $0x48] sm:$0xff] (!%p5628_p12)  ;;  %v4684_v41 = vld [vmem:[#allocation4 + $0x90] sm:$0xff] (!%p5628_p12) }
0x103f   : > { %4652 = vst [vmem:[#allocation4 + $0xb0] sm:$0xff] %v4620_v49  ;;  %v4750_v49 = vld [vmem:[#allocation2 + $0x40] sm:$0xff] (!%p5628_p12)  ;;  %v4683_v34 = vld [vmem:[#allocation4 + $0x88] sm:$0xff] (!%p5628_p12)  ;;  %v4685_v23 = vld [vmem:[#allocation4 + $0x98] sm:$0xff] (!%p5628_p12) }
0x1040   : > { %4653 = vst [vmem:[#allocation4 + $0xb8] sm:$0xff] %v4621_v48  ;;  %v4808_v48 = vadd.f32 (!%p5628_p12), %v8841_v5, %v8839_v27  ;;  %v4727_v59 = vadd.f32 (!%p5628_p12), %v8831_v38, %v4683_v34  ;;  %v4760_v6 = vld [vmem:[#allocation2 + $0x90] sm:$0xff] (!%p5628_p12) }
0x1042   : > { %v4579_v33 = vpop.f32.mrb[24].mxu1  ;;  %4809 = vadd.xlane.f32.xlu0 (!%p5628_p12), %v4808_v48  ;;  %v4763_v48 = vld [vmem:[#allocation2 + $0xa8] sm:$0xff] (!%p5628_p12) }
0x1043   : > { %v4622_v8 = vadd.f32 %v4579_v33, %v4269_v40  ;;  %v4581_v39 = vpop.f32.mrb[25].mxu1  ;;  %v4814_v40 = vadd.f32 (!%p5628_p12), %v8845_v37, %v8843_v13  ;;  %v4719_v33 = vadd.f32 (!%p5628_p12), %v8831_v38, %v4675_v0  ;;  %v4729_v0 = vadd.f32 (!%p5628_p12), %v8831_v38, %v4685_v23 }
0x1044   : > { %v4623_v26 = vadd.f32 %v4581_v39, %v4270_v12  ;;  %v4583_v15 = vpop.f32.mrb[26].mxu1  ;;  %v4718_v12 = vadd.f32 (!%p5628_p12), %v8828_v50, %v4674_v53  ;;  %v4752_v39 = vld [vmem:[#allocation2 + $0x50] sm:$0xff] (!%p5628_p12)  ;;  %v4686_v21 = vld [vmem:[#allocation4 + $0xa0] sm:$0xff] (!%p5628_p12) }
0x1045   : > { %4654 = vst [vmem:[#allocation4 + $0xc0] sm:$0xff] %v4622_v8  ;;  %v4624_v56 = vadd.f32 %v4583_v15, %v4271_v31  ;;  %v4585_v25 = vpop.f32.mrb[27].mxu1  ;;  %v4676_v31 = vld [vmem:[#allocation4 + $0x50] sm:$0xff] (!%p5628_p12)  ;;  %v4677_v8 = vld [vmem:[#allocation4 + $0x58] sm:$0xff] (!%p5628_p12)  ;;  %v8863_v15 = vadd.f32 (!%p5628_p12), %v4749_v1, %v4717_v16  ;;  %4815 = vadd.xlane.f32.xlu1 (!%p5628_p12), %v4814_v40  ;;  %v4687_v53 = vld [vmem:[#allocation4 + $0xa8] sm:$0xff] (!%p5628_p12) }
0x1046   : > { %4655 = vst [vmem:[#allocation4 + $0xc8] sm:$0xff] %v4623_v26  ;;  %v4625_v32 = vadd.f32 %v4585_v25, %v4272_v44  ;;  %v4811_v44 = vadd.f32 (!%p5628_p12), %v8849_v28, %v8847_v47  ;;  %v8861_v26 = vadd.f32 (!%p5628_p12), %v4748_v20, %v4716_v11  ;;  %v4753_v25 = vld [vmem:[#allocation2 + $0x58] sm:$0xff] (!%p5628_p12)  ;;  %v4728_v20 = vadd.f32 (!%p5628_p12), %v8828_v50, %v4684_v41  ;;  %v4762_v11 = vld [vmem:[#allocation2 + $0xa0] sm:$0xff] (!%p5628_p12)  ;;  %v4688_v40 = vld [vmem:[#allocation4 + $0xb0] sm:$0xff] (!%p5628_p12) }
0x1047   : > { %4656 = vst [vmem:[#allocation4 + $0xd0] sm:$0xff] %v4624_v56  ;;  %v4720_v56 = vadd.f32 (!%p5628_p12), %v8828_v50, %v4676_v31  ;;  %v4761_v1 = vld [vmem:[#allocation2 + $0x98] sm:$0xff] (!%p5628_p12)  ;;  %v8903_v31 = vadd.f32 (!%p5628_p12), %v4759_v55, %v4727_v59  ;;  %v4768_v59 = vld [vmem:[#allocation2 + $0xd0] sm:$0xff] (!%p5628_p12) }
0x1048   : > { %4657 = vst [vmem:[#allocation4 + $0xd8] sm:$0xff] %v4625_v32  ;;  %v4678_v32 = vld [vmem:[#allocation4 + $0x60] sm:$0xff] (!%p5628_p12)  ;;  %4812 = vadd.xlane.f32.xlu0 (!%p5628_p12), %v4811_v44  ;;  %v4764_v44 = vld [vmem:[#allocation2 + $0xb0] sm:$0xff] (!%p5628_p12) }
0x104a   : > { %v4589_v60 = vpop.f32.mrb[28].mxu1  ;;  %4665 = sbr.rel (%p5628_p12) target bundleno = 4518 (0x11a6), region = 108 }
0x104b   : > { %v4626_v51 = vadd.f32 %v4589_v60, %v4273_v58  ;;  %v4591_v9 = vpop.f32.mrb[29].mxu1  ;;  %v4679_v58 = vld [vmem:[#allocation4 + $0x68] sm:$0xff] (!%p5628_p12)  ;;  %v8868_v60 = vadd.f32 (!%p5628_p12), %v4751_v54, %v4719_v33  ;;  %v4731_v54 = vadd.f32 (!%p5628_p12), %v8831_v38, %v4687_v53  ;;  %v8901_v33 = vadd.f32 (!%p5628_p12), %v4758_v10, %v4726_v7  ;;  %v4769_v10 = vld [vmem:[#allocation2 + $0xd8] sm:$0xff] (!%p5628_p12) }
0x104c   : > { %v4627_v42 = vadd.f32 %v4591_v9, %v4274_v36  ;;  %v4593_v3 = vpop.f32.mrb[30].mxu1  ;;  %v8866_v36 = vadd.f32 (!%p5628_p12), %v4750_v49, %v4718_v12  ;;  %v4755_v9 = vld [vmem:[#allocation2 + $0x68] sm:$0xff] (!%p5628_p12)  ;;  %v4730_v49 = vadd.f32 (!%p5628_p12), %v8828_v50, %v4686_v21  ;;  %v4689_v12 = vld [vmem:[#allocation4 + $0xb8] sm:$0xff] (!%p5628_p12) }
0x104d   : > { %4658 = vst [vmem:[#allocation4 + $0xe0] sm:$0xff] %v4626_v51  ;;  %v4628_v57 = vadd.f32 %v4593_v3, %v4275_v46  ;;  %v4595_v45 = vpop.f32.mrb[31].mxu1  ;;  %v4721_v46 = vadd.f32 (!%p5628_p12), %v8831_v38, %v4677_v8  ;;  %v4754_v51 = vld [vmem:[#allocation2 + $0x60] sm:$0xff] (!%p5628_p12)  ;;  %v8873_v3 = vadd.f32 (!%p5628_p12), %v4752_v39, %v4720_v56  ;;  %v4732_v8 = vadd.f32 (!%p5628_p12), %v8828_v50, %v4688_v40  ;;  %v4765_v56 = vld [vmem:[#allocation2 + $0xb8] sm:$0xff] (!%p5628_p12)  ;;  %v4771_v40 = vld [vmem:[#allocation2 + $0xe8] sm:$0xff] (!%p5628_p12) }
0x104e   : > { %4659 = vst [vmem:[#allocation4 + $0xe8] sm:$0xff] %v4627_v42  ;;  %v4629_v4 = vadd.f32 %v4595_v45, %v4276_v24  ;;  %v4680_v24 = vld [vmem:[#allocation4 + $0x70] sm:$0xff] (!%p5628_p12)  ;;  %v4817_v42 = vadd.f32 (!%p5628_p12), %v8863_v15, %v8861_v26  ;;  %v4723_v45 = vadd.f32 (!%p5628_p12), %v8831_v38, %v4679_v58  ;;  %v4820_v19 = vadd.f32 (!%p5628_p12), %v8868_v60, %v8866_v36 }
0x104f   : > { %4660 = vst [vmem:[#allocation4 + $0xf0] sm:$0xff] %v4628_v57  ;;  %v4722_v57 = vadd.f32 (!%p5628_p12), %v8828_v50, %v4678_v32  ;;  %v8879_v52 = vadd.f32 (!%p5628_p12), %v4753_v25, %v4721_v46  ;;  %v4724_v35 = vadd.f32 (!%p5628_p12), %v8828_v50, %v4680_v24  ;;  %v4733_v39 = vadd.f32 (!%p5628_p12), %v8831_v38, %v4689_v12  ;;  %v4690_v25 = vld [vmem:[#allocation4 + $0xc0] sm:$0xff] (!%p5628_p12)  ;;  %v4772_v12 = vld [vmem:[#allocation2 + $0xf0] sm:$0xff] (!%p5628_p12) }
0x1050   : > { %4661 = vst [vmem:[#allocation4 + $0xf8] sm:$0xff] %v4629_v4  ;;  %v4681_v4 = vld [vmem:[#allocation4 + $0x78] sm:$0xff] (!%p5628_p12)  ;;  %v8885_v43 = vadd.f32 (!%p5628_p12), %v4755_v9, %v4723_v45  ;;  %4818 = vadd.xlane.f32.xlu1 (!%p5628_p12), %v4817_v42  ;;  %4821 = vadd.xlane.f32.xlu0 (!%p5628_p12), %v4820_v19  ;;  %v8909_v58 = vadd.f32 (!%p5628_p12), %v4760_v6, %v4728_v20  ;;  %v4692_v9 = vld [vmem:[#allocation4 + $0xd0] sm:$0xff] (!%p5628_p12)  ;;  %v4766_v19 = vld [vmem:[#allocation2 + $0xc0] sm:$0xff] (!%p5628_p12) }
0x1051   : > { %v4725_v18 = vadd.f32 %v8831_v38, %v4681_v4  ;;  %v8883_v29 = vadd.f32 %v4754_v51, %v4722_v57  ;;  %v4823_v30 = vadd.f32 %v8879_v52, %v8873_v3  ;;  %v8891_v2 = vadd.f32 %v4756_v14, %v4724_v35  ;;  %v4691_v51 = vld [vmem:[#allocation4 + $0xc8] sm:$0xff]  ;;  %v4693_v42 = vld [vmem:[#allocation4 + $0xd8] sm:$0xff] }
0x1052   : > { %v8911_v46 = vadd.f32 %v4761_v1, %v4729_v0  ;;  %v8913_v24 = vadd.f32 %v4762_v11, %v4730_v49  ;;  %v8915_v57 = vadd.f32 %v4763_v48, %v4731_v54  ;;  %v8917_v45 = vadd.f32 %v4764_v44, %v4732_v8  ;;  %v4767_v35 = vld [vmem:[#allocation2 + $0xc8] sm:$0xff]  ;;  %v4770_v49 = vld [vmem:[#allocation2 + $0xe0] sm:$0xff]  ;;  %v4773_v8 = vld [vmem:[#allocation2 + $0xf8] sm:$0xff] }
0x1053   : > { %v8893_v17 = vadd.f32 %v4757_v63, %v4725_v18  ;;  %v4826_v16 = vadd.f32 %v8885_v43, %v8883_v29  ;;  %v8919_v4 = vadd.f32 %v4765_v56, %v4733_v39  ;;  %v4734_v14 = vadd.f32 %v8828_v50, %v4690_v25 }
0x1054   : > { %4824 = vadd.xlane.f32.xlu1 %v4823_v30  ;;  %v4735_v63 = vadd.f32 %v8831_v38, %v4691_v51  ;;  %v4736_v18 = vadd.f32 %v8828_v50, %v4692_v9  ;;  %v4737_v22 = vadd.f32 %v8831_v38, %v4693_v42  ;;  %v4832_v34 = vadd.f32 %v8903_v31, %v8901_v33  ;;  %v4694_v41 = vld [vmem:[#allocation4 + $0xe0] sm:$0xff] }
0x1055   : > { %v4829_v32 = vadd.f32 %v8893_v17, %v8891_v2  ;;  %4827 = vadd.xlane.f32.xlu0 %v4826_v16  ;;  %v4835_v7 = vadd.f32 %v8911_v46, %v8909_v58  ;;  %v4695_v23 = vld [vmem:[#allocation4 + $0xe8] sm:$0xff]  ;;  %v4838_v6 = vadd.f32 %v8915_v57, %v8913_v24  ;;  %v4841_v21 = vadd.f32 %v8919_v4, %v8917_v45 }
0x1056   : > { %v4696_v30 = vld [vmem:[#allocation4 + $0xf0] sm:$0xff]  ;;  %v8933_v20 = vadd.f32 %v4766_v19, %v4734_v14  ;;  %v8935_v1 = vadd.f32 %v4767_v35, %v4735_v63  ;;  %v8937_v53 = vadd.f32 %v4768_v59, %v4736_v18  ;;  %v8939_v11 = vadd.f32 %v4769_v10, %v4737_v22 }
0x1057   : > { %v4697_v55 = vld [vmem:[#allocation4 + $0xf8] sm:$0xff]  ;;  %v4738_v16 = vadd.f32 %v8828_v50, %v4694_v41  ;;  %v4739_v0 = vadd.f32 %v8831_v38, %v4695_v23  ;;  %v4740_v54 = vadd.f32 %v8828_v50, %v4696_v30 }
0x1058   : > { %4830 = vadd.xlane.f32.xlu1 %v4829_v32  ;;  %v4741_v48 = vadd.f32 %v8831_v38, %v4697_v55  ;;  %v4844_v39 = vadd.f32 %v8935_v1, %v8933_v20  ;;  %v4847_v44 = vadd.f32 %v8939_v11, %v8937_v53 }
0x1059   : > { %4833 = vadd.xlane.f32.xlu0 %v4832_v34  ;;  %v8949_v56 = vadd.f32 %v4770_v49, %v4738_v16  ;;  %v8951_v25 = vadd.f32 %v4771_v40, %v4739_v0  ;;  %v8953_v32 = vadd.f32 %v4772_v12, %v4740_v54 }
0x105a   : > { %v8955_v50 = vadd.f32 %v4773_v8, %v4741_v48 }
0x105b   : > { %v4850_v38 = vadd.f32 %v8951_v25, %v8949_v56 }
0x105c   : > { %4836 = vadd.xlane.f32.xlu1 %v4835_v7  ;;  %v4853_v51 = vadd.f32 %v8955_v50, %v8953_v32 }
0x105d   : > { %4839 = vadd.xlane.f32.xlu0 %v4838_v6 }
0x1060   : > { %4842 = vadd.xlane.f32.xlu1 %v4841_v21 }
0x1061   : > { %4845 = vadd.xlane.f32.xlu0 %v4844_v39 }
0x1064   : > { %4848 = vadd.xlane.f32.xlu1 %v4847_v44 }
0x1065   : > { %4851 = vadd.xlane.f32.xlu0 %v4850_v38 }
0x1068   : > { %4854 = vadd.xlane.f32.xlu1 %v4853_v51 }
0x10cf   : > { %v4810_v9 = vpop.xlane.xlu0 %4809 }
0x10d0   : > { %v4857_v14 = vmul.f32 0.00390625, %v4810_v9 }
0x10d2   : > { %v4816_v42 = vpop.xlane.xlu1 %4815  ;;  %v8962_v19 = vsub.f32 %v8839_v27, %v4857_v14  ;;  %v8965_v35 = vsub.f32 %v8841_v5, %v4857_v14 }
0x10d3   : > { %v4859_v63 = vmul.f32 0.00390625, %v4816_v42 }
0x10d4   : > { %v4905_v41 = vmul.f32 %v8962_v19, %v8962_v19  ;;  %v4906_v27 = vmul.f32 %v8965_v35, %v8965_v35 }
0x10d5   : > { %v8968_v18 = vsub.f32 %v8843_v13, %v4859_v63  ;;  %v8971_v22 = vsub.f32 %v8845_v37, %v4859_v63  ;;  %v4813_v34 = vpop.xlane.xlu0 %4812 }
0x10d6   : > { %v4858_v59 = vmul.f32 0.00390625, %v4813_v34  ;;  %v4937_v21 = vadd.f32 %v4906_v27, %v4905_v41 }
0x10d7   : > { %v4909_v5 = vmul.f32 %v8968_v18, %v8968_v18  ;;  %v4910_v13 = vmul.f32 %v8971_v22, %v8971_v22 }
0x10d8   : > { %v8982_v23 = vsub.f32 %v8847_v47, %v4858_v59  ;;  %v8985_v37 = vsub.f32 %v8849_v28, %v4858_v59  ;;  %4938 = vadd.xlane.f32.xlu0 %v4937_v21 }
0x10d9   : > { %v4943_v28 = vadd.f32 %v4910_v13, %v4909_v5 }
0x10da   : > { %v4907_v54 = vmul.f32 %v8982_v23, %v8982_v23  ;;  %v4908_v47 = vmul.f32 %v8985_v37, %v8985_v37 }
0x10dc   : > { %v4940_v44 = vadd.f32 %v4908_v47, %v4907_v54  ;;  %4944 = vadd.xlane.f32.xlu0 %v4943_v28 }
0x10dd   : > { %v4819_v7 = vpop.xlane.xlu1 %4818  ;;  %v4822_v6 = vpop.xlane.xlu0 %4821 }
0x10de   : > { %v4860_v10 = vmul.f32 0.00390625, %v4819_v7  ;;  %v4861_v0 = vmul.f32 0.00390625, %v4822_v6  ;;  %4941 = vadd.xlane.f32.xlu1 %v4940_v44 }
0x10e0   : > { %v8988_v30 = vsub.f32 %v8861_v26, %v4860_v10  ;;  %v8991_v55 = vsub.f32 %v8863_v15, %v4860_v10  ;;  %v9002_v48 = vsub.f32 %v8866_v36, %v4861_v0  ;;  %v9005_v40 = vsub.f32 %v8868_v60, %v4861_v0 }
0x10e1   : > { %v4825_v16 = vpop.xlane.xlu1 %4824 }
0x10e2   : > { %v4862_v49 = vmul.f32 0.00390625, %v4825_v16  ;;  %v4911_v26 = vmul.f32 %v8988_v30, %v8988_v30  ;;  %v4912_v15 = vmul.f32 %v8991_v55, %v8991_v55  ;;  %v4828_v39 = vpop.xlane.xlu0 %4827  ;;  %v4913_v42 = vmul.f32 %v9002_v48, %v9002_v48 }
0x10e3   : > { %v4863_v51 = vmul.f32 0.00390625, %v4828_v39  ;;  %v4914_v36 = vmul.f32 %v9005_v40, %v9005_v40 }
0x10e4   : > { %v9008_v12 = vsub.f32 %v8873_v3, %v4862_v49  ;;  %v9011_v8 = vsub.f32 %v8879_v52, %v4862_v49  ;;  %v4946_v60 = vadd.f32 %v4912_v15, %v4911_v26 }
0x10e5   : > { %v4831_v38 = vpop.xlane.xlu1 %4830  ;;  %v9022_v14 = vsub.f32 %v8883_v29, %v4863_v51  ;;  %v9025_v63 = vsub.f32 %v8885_v43, %v4863_v51  ;;  %v4949_v10 = vadd.f32 %v4914_v36, %v4913_v42 }
0x10e6   : > { %v4864_v9 = vmul.f32 0.00390625, %v4831_v38  ;;  %v4915_v3 = vmul.f32 %v9008_v12, %v9008_v12  ;;  %v4916_v52 = vmul.f32 %v9011_v8, %v9011_v8  ;;  %v4834_v59 = vpop.xlane.xlu0 %4833  ;;  %4947 = vadd.xlane.f32.xlu1 %v4946_v60 }
0x10e7   : > { %v4865_v27 = vmul.f32 0.00390625, %v4834_v59  ;;  %v4917_v13 = vmul.f32 %v9022_v14, %v9022_v14  ;;  %v4918_v29 = vmul.f32 %v9025_v63, %v9025_v63  ;;  %4950 = vadd.xlane.f32.xlu0 %v4949_v10 }
0x10e8   : > { %v9028_v34 = vsub.f32 %v8891_v2, %v4864_v9  ;;  %v9031_v7 = vsub.f32 %v8893_v17, %v4864_v9  ;;  %v4952_v43 = vadd.f32 %v4916_v52, %v4915_v3 }
0x10e9   : > { %v4837_v41 = vpop.xlane.xlu1 %4836  ;;  %v9042_v6 = vsub.f32 %v8901_v33, %v4865_v27  ;;  %v9045_v21 = vsub.f32 %v8903_v31, %v4865_v27  ;;  %v4955_v54 = vadd.f32 %v4918_v29, %v4917_v13 }
0x10ea   : > { %v4866_v5 = vmul.f32 0.00390625, %v4837_v41  ;;  %v4919_v2 = vmul.f32 %v9028_v34, %v9028_v34  ;;  %v4920_v17 = vmul.f32 %v9031_v7, %v9031_v7  ;;  %v4840_v49 = vpop.xlane.xlu0 %4839  ;;  %4953 = vadd.xlane.f32.xlu1 %v4952_v43 }
0x10eb   : > { %v4867_v28 = vmul.f32 0.00390625, %v4840_v49  ;;  %v4921_v15 = vmul.f32 %v9042_v6, %v9042_v6  ;;  %v4922_v33 = vmul.f32 %v9045_v21, %v9045_v21  ;;  %4956 = vadd.xlane.f32.xlu0 %v4955_v54 }
0x10ec   : > { %v9048_v16 = vsub.f32 %v8909_v58, %v4866_v5  ;;  %v9051_v0 = vsub.f32 %v8911_v46, %v4866_v5  ;;  %v4958_v31 = vadd.f32 %v4920_v17, %v4919_v2 }
0x10ed   : > { %v4843_v47 = vpop.xlane.xlu1 %4842  ;;  %v9062_v39 = vsub.f32 %v8913_v24, %v4867_v28  ;;  %v9065_v44 = vsub.f32 %v8915_v57, %v4867_v28  ;;  %v4961_v42 = vadd.f32 %v4922_v33, %v4921_v15 }
0x10ee   : > { %v4868_v26 = vmul.f32 0.00390625, %v4843_v47  ;;  %v4923_v58 = vmul.f32 %v9048_v16, %v9048_v16  ;;  %v4924_v46 = vmul.f32 %v9051_v0, %v9051_v0  ;;  %v4846_v9 = vpop.xlane.xlu0 %4845  ;;  %4959 = vadd.xlane.f32.xlu1 %v4958_v31 }
0x10ef   : > { %v4869_v60 = vmul.f32 0.00390625, %v4846_v9  ;;  %v4925_v52 = vmul.f32 %v9062_v39, %v9062_v39  ;;  %v4926_v24 = vmul.f32 %v9065_v44, %v9065_v44  ;;  %4962 = vadd.xlane.f32.xlu0 %v4961_v42 }
0x10f0   : > { %v9068_v38 = vsub.f32 %v8917_v45, %v4868_v26  ;;  %v9071_v51 = vsub.f32 %v8919_v4, %v4868_v26  ;;  %v4964_v57 = vadd.f32 %v4924_v46, %v4923_v58 }
0x10f1   : > { %v4849_v36 = vpop.xlane.xlu1 %4848  ;;  %v9082_v59 = vsub.f32 %v8933_v20, %v4869_v60  ;;  %v9085_v10 = vsub.f32 %v8935_v1, %v4869_v60  ;;  %v4967_v13 = vadd.f32 %v4926_v24, %v4925_v52 }
0x10f2   : > { %v4870_v3 = vmul.f32 0.00390625, %v4849_v36  ;;  %v4927_v45 = vmul.f32 %v9068_v38, %v9068_v38  ;;  %v4928_v4 = vmul.f32 %v9071_v51, %v9071_v51  ;;  %v4852_v5 = vpop.xlane.xlu0 %4851  ;;  %4965 = vadd.xlane.f32.xlu1 %v4964_v57 }
0x10f3   : > { %v4871_v43 = vmul.f32 0.00390625, %v4852_v5  ;;  %v4929_v17 = vmul.f32 %v9082_v59, %v9082_v59  ;;  %v4930_v20 = vmul.f32 %v9085_v10, %v9085_v10  ;;  %4968 = vadd.xlane.f32.xlu0 %v4967_v13  ;;  %v4806_v13 = vld [vmem:[%s9547_s25] sm:$0x3] }
0x10f4   : > { %v9088_v41 = vsub.f32 %v8937_v53, %v4870_v3  ;;  %v9091_v27 = vsub.f32 %v8939_v11, %v4870_v3  ;;  %v4970_v1 = vadd.f32 %v4928_v4, %v4927_v45 }
0x10f5   : > { %v4855_v29 = vpop.xlane.xlu1 %4854  ;;  %v9102_v49 = vsub.f32 %v8949_v56, %v4871_v43  ;;  %v9105_v54 = vsub.f32 %v8951_v25, %v4871_v43  ;;  %v4973_v26 = vadd.f32 %v4930_v20, %v4929_v17  ;;  %v4807_v20 = vld [vmem:[%s9548_s18] sm:$0x3] }
0x10f6   : > { %v4872_v2 = vmul.f32 0.00390625, %v4855_v29  ;;  %v4931_v53 = vmul.f32 %v9088_v41, %v9088_v41  ;;  %v4932_v11 = vmul.f32 %v9091_v27, %v9091_v27  ;;  %4971 = vadd.xlane.f32.xlu1 %v4970_v1 }
0x10f7   : > { %v4933_v15 = vmul.f32 %v9102_v49, %v9102_v49  ;;  %v4934_v33 = vmul.f32 %v9105_v54, %v9105_v54  ;;  %4974 = vadd.xlane.f32.xlu0 %v4973_v26  ;;  %v9131_v26 = vrot.slane %v4806_v13, %v8783_v61 }
0x10f8   : > { %v9108_v47 = vsub.f32 %v8953_v32, %v4872_v2  ;;  %v9111_v28 = vsub.f32 %v8955_v50, %v4872_v2  ;;  %v4976_v56 = vadd.f32 %v4932_v11, %v4931_v53  ;;  %v9128_v11 = vrot.slane %v4806_v13, %v8776_v62 }
0x10f9   : > { %v4979_v31 = vadd.f32 %v4934_v33, %v4933_v15 }
0x10fa   : > { %v4935_v25 = vmul.f32 %v9108_v47, %v9108_v47  ;;  %v4936_v32 = vmul.f32 %v9111_v28, %v9111_v28  ;;  %4977 = vadd.xlane.f32.xlu1 %v4976_v56 }
0x10fb   : > { %4980 = vadd.xlane.f32.xlu0 %v4979_v31 }
0x10fc   : > { %v4982_v50 = vadd.f32 %v4936_v32, %v4935_v25  ;;  %v9134_v25 = vrot.slane %v4807_v20, %v8776_v62  ;;  %v9137_v32 = vrot.slane %v4807_v20, %v8783_v61 }
0x10fe   : > { %4983 = vadd.xlane.f32.xlu1 %v4982_v50 }
0x1165   : > { %v4939_v58 = vpop.xlane.xlu0 %4938 }
0x1166   : > { %v4985_v46 = vmul.f32 0.00390625, %v4939_v58 }
0x1168   : > { %v5001_v9 = vadd.f32 1e-05, %v4985_v46 }
0x1169   : > { %v4945_v36 = vpop.xlane.xlu0 %4944 }
0x116a   : > { %6539 = vrsqrt.f32 %v5001_v9  ;;  %v4987_v3 = vmul.f32 0.00390625, %v4945_v36 }
0x116b   : > { %v4942_v42 = vpop.xlane.xlu1 %4941 }
0x116c   : > { %v4986_v60 = vmul.f32 0.00390625, %v4942_v42  ;;  %v5003_v24 = vadd.f32 1e-05, %v4987_v3 }
0x116e   : > { %v5002_v52 = vadd.f32 1e-05, %v4986_v60 }
0x1170   : > { %6541 = vrsqrt.f32 %v5002_v52 }
0x1171   : > { %6543 = vrsqrt.f32 %v5003_v24 }
0x1173   : > { %v4948_v57 = vpop.xlane.xlu1 %4947 }
0x1174   : > { %v4951_v45 = vpop.xlane.xlu0 %4950  ;;  %v4988_v4 = vmul.f32 0.00390625, %v4948_v57  ;;  %v6540_v15 = vpop.eup %6539 }
0x1175   : > { %v4989_v5 = vmul.f32 0.00390625, %v4951_v45  ;;  %v5033_v31 = vmul.f32 %v6540_v15, %v8962_v19  ;;  %v5034_v50 = vmul.f32 %v6540_v15, %v8965_v35 }
0x1176   : > { %v5004_v29 = vadd.f32 1e-05, %v4988_v4 }
0x1177   : > { %v5005_v43 = vadd.f32 1e-05, %v4989_v5  ;;  %v4954_v2 = vpop.xlane.xlu1 %4953  ;;  %v5076_v36 = vmul.f32 %v9128_v11, %v5033_v31  ;;  %v5077_v60 = vmul.f32 %v9131_v26, %v5034_v50 }
0x1178   : > { %v4957_v17 = vpop.xlane.xlu0 %4956  ;;  %6545 = vrsqrt.f32 %v5004_v29  ;;  %v4990_v1 = vmul.f32 0.00390625, %v4954_v2 }
0x1179   : > { %v4991_v53 = vmul.f32 0.00390625, %v4957_v17  ;;  %6547 = vrsqrt.f32 %v5005_v43  ;;  %v5119_v19 = vadd.f32 %v9134_v25, %v5076_v36  ;;  %v5120_v35 = vadd.f32 %v9137_v32, %v5077_v60 }
0x117a   : > { %v5006_v33 = vadd.f32 1e-05, %v4990_v1  ;;  %v6542_v62 = vpop.eup %6541 }
0x117b   : > { %v5007_v56 = vadd.f32 1e-05, %v4991_v53  ;;  %v4960_v58 = vpop.xlane.xlu1 %4959  ;;  %v6544_v52 = vpop.eup %6543  ;;  %v5035_v24 = vmul.f32 %v6542_v62, %v8982_v23  ;;  %v5036_v57 = vmul.f32 %v6542_v62, %v8985_v37  ;;  %5151 = vst [vmem:[%s7360_s14] sm:$0xff] %v5119_v19  ;;  %5152 = vst [vmem:[%s7360_s14 + $0x8] sm:$0xff] %v5120_v35 }
0x117c   : > { %v4963_v46 = vpop.xlane.xlu0 %4962  ;;  %6549 = vrsqrt.f32 %v5006_v33  ;;  %v4992_v9 = vmul.f32 0.00390625, %v4960_v58  ;;  %v5037_v5 = vmul.f32 %v6544_v52, %v8968_v18  ;;  %v5038_v13 = vmul.f32 %v6544_v52, %v8971_v22 }
0x117d   : > { %v4993_v42 = vmul.f32 0.00390625, %v4963_v46  ;;  %6551 = vrsqrt.f32 %v5007_v56  ;;  %v5078_v43 = vmul.f32 %v9128_v11, %v5035_v24  ;;  %v5079_v2 = vmul.f32 %v9131_v26, %v5036_v57 }
0x117e   : > { %v5008_v3 = vadd.f32 1e-05, %v4992_v9  ;;  %v5080_v37 = vmul.f32 %v9128_v11, %v5037_v5  ;;  %v5081_v20 = vmul.f32 %v9131_v26, %v5038_v13 }
0x117f   : > { %v5009_v61 = vadd.f32 1e-05, %v4993_v42  ;;  %v4966_v45 = vpop.xlane.xlu1 %4965  ;;  %v5121_v22 = vadd.f32 %v9134_v25, %v5078_v43  ;;  %v5122_v53 = vadd.f32 %v9137_v32, %v5079_v2 }
0x1180   : > { %v4969_v4 = vpop.xlane.xlu0 %4968  ;;  %6553 = vrsqrt.f32 %v5008_v3  ;;  %v4994_v29 = vmul.f32 0.00390625, %v4966_v45  ;;  %v5123_v50 = vadd.f32 %v9134_v25, %v5080_v37  ;;  %v5124_v58 = vadd.f32 %v9137_v32, %v5081_v20 }
0x1181   : > { %6555 = vrsqrt.f32 %v5009_v61  ;;  %v4995_v17 = vmul.f32 0.00390625, %v4969_v4  ;;  %5153 = vst [vmem:[%s7360_s14 + $0x10] sm:$0xff] %v5121_v22  ;;  %5154 = vst [vmem:[%s7360_s14 + $0x18] sm:$0xff] %v5122_v53 }
0x1182   : > { %v6546_v23 = vpop.eup %6545  ;;  %v5010_v18 = vadd.f32 1e-05, %v4994_v29  ;;  %5155 = vst [vmem:[%s7360_s14 + $0x20] sm:$0xff] %v5123_v50  ;;  %5156 = vst [vmem:[%s7360_s14 + $0x28] sm:$0xff] %v5124_v58 }
0x1183   : > { %v6548_v1 = vpop.eup %6547  ;;  %v5039_v15 = vmul.f32 %v6546_v23, %v8988_v30  ;;  %v5040_v33 = vmul.f32 %v6546_v23, %v8991_v55  ;;  %v4972_v56 = vpop.xlane.xlu1 %4971  ;;  %v5011_v30 = vadd.f32 1e-05, %v4995_v17 }
0x1184   : > { %v4975_v31 = vpop.xlane.xlu0 %4974  ;;  %v5041_v46 = vmul.f32 %v6548_v1, %v9002_v48  ;;  %v5042_v9 = vmul.f32 %v6548_v1, %v9005_v40  ;;  %6557 = vrsqrt.f32 %v5010_v18  ;;  %v4996_v48 = vmul.f32 0.00390625, %v4972_v56 }
0x1185   : > { %v5082_v42 = vmul.f32 %v9128_v11, %v5039_v15  ;;  %v5083_v36 = vmul.f32 %v9131_v26, %v5040_v33  ;;  %v4997_v3 = vmul.f32 0.00390625, %v4975_v31  ;;  %6559 = vrsqrt.f32 %v5011_v30 }
0x1186   : > { %v6550_v60 = vpop.eup %6549  ;;  %v5084_v55 = vmul.f32 %v9128_v11, %v5041_v46  ;;  %v5085_v62 = vmul.f32 %v9131_v26, %v5042_v9  ;;  %v5012_v43 = vadd.f32 1e-05, %v4996_v48 }
0x1187   : > { %v6552_v40 = vpop.eup %6551  ;;  %v5125_v61 = vadd.f32 %v9134_v25, %v5082_v42  ;;  %v5126_v52 = vadd.f32 %v9137_v32, %v5083_v36  ;;  %v5043_v19 = vmul.f32 %v6550_v60, %v9008_v12  ;;  %v5044_v35 = vmul.f32 %v6550_v60, %v9011_v8  ;;  %v4978_v24 = vpop.xlane.xlu1 %4977 }
0x1188   : > { %v5127_v57 = vadd.f32 %v9134_v25, %v5084_v55  ;;  %v5128_v45 = vadd.f32 %v9137_v32, %v5085_v62  ;;  %v5045_v4 = vmul.f32 %v6552_v40, %v9022_v14  ;;  %v5046_v5 = vmul.f32 %v6552_v40, %v9025_v63  ;;  %v4981_v1 = vpop.xlane.xlu0 %4980 }
0x1189   : > { %5157 = vst [vmem:[%s7360_s14 + $0x30] sm:$0xff] %v5125_v61  ;;  %5158 = vst [vmem:[%s7360_s14 + $0x38] sm:$0xff] %v5126_v52  ;;  %v5086_v13 = vmul.f32 %v9128_v11, %v5043_v19  ;;  %v5087_v29 = vmul.f32 %v9131_v26, %v5044_v35  ;;  %v5013_v14 = vadd.f32 1e-05, %v4997_v3  ;;  %v4998_v17 = vmul.f32 0.00390625, %v4978_v24 }
0x118a   : > { %v6554_v12 = vpop.eup %6553  ;;  %5159 = vst [vmem:[%s7360_s14 + $0x40] sm:$0xff] %v5127_v57  ;;  %5160 = vst [vmem:[%s7360_s14 + $0x48] sm:$0xff] %v5128_v45  ;;  %v5088_v8 = vmul.f32 %v9128_v11, %v5045_v4  ;;  %v5089_v2 = vmul.f32 %v9131_v26, %v5046_v5  ;;  %6561 = vrsqrt.f32 %v5012_v43 }
0x118b   : > { %v6556_v63 = vpop.eup %6555  ;;  %v5129_v23 = vadd.f32 %v9134_v25, %v5086_v13  ;;  %v5130_v37 = vadd.f32 %v9137_v32, %v5087_v29  ;;  %v5047_v20 = vmul.f32 %v6554_v12, %v9028_v34  ;;  %v5048_v18 = vmul.f32 %v6554_v12, %v9031_v7  ;;  %v4984_v56 = vpop.xlane.xlu1 %4983 }
0x118c   : > { %v5131_v22 = vadd.f32 %v9134_v25, %v5088_v8  ;;  %v5132_v53 = vadd.f32 %v9137_v32, %v5089_v2  ;;  %v5049_v15 = vmul.f32 %v6556_v63, %v9042_v6  ;;  %v5050_v33 = vmul.f32 %v6556_v63, %v9045_v21 }
0x118d   : > { %5161 = vst [vmem:[%s7360_s14 + $0x50] sm:$0xff] %v5129_v23  ;;  %5162 = vst [vmem:[%s7360_s14 + $0x58] sm:$0xff] %v5130_v37  ;;  %v5090_v31 = vmul.f32 %v9128_v11, %v5047_v20  ;;  %v5091_v50 = vmul.f32 %v9131_v26, %v5048_v18  ;;  %v5014_v34 = vadd.f32 1e-05, %v4998_v17  ;;  %6563 = vrsqrt.f32 %v5013_v14 }
0x118e   : > { %5163 = vst [vmem:[%s7360_s14 + $0x60] sm:$0xff] %v5131_v22  ;;  %5164 = vst [vmem:[%s7360_s14 + $0x68] sm:$0xff] %v5132_v53  ;;  %v5092_v7 = vmul.f32 %v9128_v11, %v5049_v15  ;;  %v5093_v58 = vmul.f32 %v9131_v26, %v5050_v33  ;;  %v4999_v6 = vmul.f32 0.00390625, %v4981_v1  ;;  %v6558_v21 = vpop.eup %6557  ;;  %v5000_v42 = vmul.f32 0.00390625, %v4984_v56 }
0x118f   : > { %v5133_v46 = vadd.f32 %v9134_v25, %v5090_v31  ;;  %v5134_v9 = vadd.f32 %v9137_v32, %v5091_v50  ;;  %6565 = vrsqrt.f32 %v5014_v34  ;;  %v5051_v60 = vmul.f32 %v6558_v21, %v9048_v16  ;;  %v6560_v61 = vpop.eup %6559 }
0x1190   : > { %v5135_v36 = vadd.f32 %v9134_v25, %v5092_v7  ;;  %v5136_v30 = vadd.f32 %v9137_v32, %v5093_v58  ;;  %v5052_v55 = vmul.f32 %v6558_v21, %v9051_v0  ;;  %v5015_v62 = vadd.f32 1e-05, %v4999_v6 }
0x1191   : > { %5165 = vst [vmem:[%s7360_s14 + $0x70] sm:$0xff] %v5133_v46  ;;  %5166 = vst [vmem:[%s7360_s14 + $0x78] sm:$0xff] %v5134_v9  ;;  %v5016_v48 = vadd.f32 1e-05, %v5000_v42  ;;  %v5094_v3 = vmul.f32 %v9128_v11, %v5051_v60  ;;  %v5053_v0 = vmul.f32 %v6560_v61, %v9062_v39  ;;  %v5054_v19 = vmul.f32 %v6560_v61, %v9065_v44 }
0x1192   : > { %5167 = vst [vmem:[%s7360_s14 + $0x80] sm:$0xff] %v5135_v36  ;;  %5168 = vst [vmem:[%s7360_s14 + $0x88] sm:$0xff] %v5136_v30  ;;  %v5095_v40 = vmul.f32 %v9131_v26, %v5052_v55  ;;  %6567 = vrsqrt.f32 %v5015_v62 }
0x1193   : > { %v5137_v52 = vadd.f32 %v9134_v25, %v5094_v3  ;;  %6569 = vrsqrt.f32 %v5016_v48  ;;  %v5096_v35 = vmul.f32 %v9128_v11, %v5053_v0  ;;  %v5097_v24 = vmul.f32 %v9131_v26, %v5054_v19 }
0x1194   : > { %v5138_v16 = vadd.f32 %v9137_v32, %v5095_v40  ;;  %v6562_v57 = vpop.eup %6561 }
0x1195   : > { %5169 = vst [vmem:[%s7360_s14 + $0x90] sm:$0xff] %v5137_v52  ;;  %v5139_v4 = vadd.f32 %v9134_v25, %v5096_v35  ;;  %v5140_v5 = vadd.f32 %v9137_v32, %v5097_v24  ;;  %v5055_v13 = vmul.f32 %v6562_v57, %v9068_v38  ;;  %v5056_v39 = vmul.f32 %v6562_v57, %v9071_v51 }
0x1196   : > { %5170 = vst [vmem:[%s7360_s14 + $0x98] sm:$0xff] %v5138_v16 }
0x1197   : > { %v6564_v45 = vpop.eup %6563  ;;  %5171 = vst [vmem:[%s7360_s14 + $0xa0] sm:$0xff] %v5139_v4  ;;  %5172 = vst [vmem:[%s7360_s14 + $0xa8] sm:$0xff] %v5140_v5  ;;  %v5098_v12 = vmul.f32 %v9128_v11, %v5055_v13  ;;  %v5099_v8 = vmul.f32 %v9131_v26, %v5056_v39 }
0x1198   : > { %v5057_v44 = vmul.f32 %v6564_v45, %v9082_v59  ;;  %v5058_v43 = vmul.f32 %v6564_v45, %v9085_v10 }
0x1199   : > { %v6566_v29 = vpop.eup %6565  ;;  %v5141_v59 = vadd.f32 %v9134_v25, %v5098_v12  ;;  %v5142_v10 = vadd.f32 %v9137_v32, %v5099_v8 }
0x119a   : > { %v5059_v2 = vmul.f32 %v6566_v29, %v9088_v41  ;;  %v5060_v14 = vmul.f32 %v6566_v29, %v9091_v27  ;;  %v5100_v38 = vmul.f32 %v9128_v11, %v5057_v44  ;;  %v5101_v51 = vmul.f32 %v9131_v26, %v5058_v43 }
0x119b   : > { %5173 = vst [vmem:[%s7360_s14 + $0xb0] sm:$0xff] %v5141_v59  ;;  %5174 = vst [vmem:[%s7360_s14 + $0xb8] sm:$0xff] %v5142_v10 }
0x119c   : > { %v5102_v17 = vmul.f32 %v9128_v11, %v5059_v2  ;;  %v5103_v63 = vmul.f32 %v9131_v26, %v5060_v14  ;;  %v6568_v23 = vpop.eup %6567  ;;  %v5143_v41 = vadd.f32 %v9134_v25, %v5100_v38  ;;  %v5144_v27 = vadd.f32 %v9137_v32, %v5101_v51 }
0x119d   : > { %v5061_v18 = vmul.f32 %v6568_v23, %v9102_v49  ;;  %v5062_v1 = vmul.f32 %v6568_v23, %v9105_v54  ;;  %v6570_v22 = vpop.eup %6569 }
0x119e   : > { %v5145_v37 = vadd.f32 %v9134_v25, %v5102_v17  ;;  %v5146_v20 = vadd.f32 %v9137_v32, %v5103_v63  ;;  %5175 = vst [vmem:[%s7360_s14 + $0xc0] sm:$0xff] %v5143_v41  ;;  %5176 = vst [vmem:[%s7360_s14 + $0xc8] sm:$0xff] %v5144_v27  ;;  %v5063_v33 = vmul.f32 %v6570_v22, %v9108_v47 }
0x119f   : > { %v5104_v53 = vmul.f32 %v9128_v11, %v5061_v18  ;;  %v5105_v15 = vmul.f32 %v9131_v26, %v5062_v1  ;;  %v5064_v56 = vmul.f32 %v6570_v22, %v9111_v28 }
0x11a0   : > { %5177 = vst [vmem:[%s7360_s14 + $0xd0] sm:$0xff] %v5145_v37  ;;  %5178 = vst [vmem:[%s7360_s14 + $0xd8] sm:$0xff] %v5146_v20  ;;  %v5106_v54 = vmul.f32 %v9128_v11, %v5063_v33 }
0x11a1   : > { %v5147_v49 = vadd.f32 %v9134_v25, %v5104_v53  ;;  %v5148_v31 = vadd.f32 %v9137_v32, %v5105_v15  ;;  %v5107_v50 = vmul.f32 %v9131_v26, %v5064_v56 }
0x11a2   : > { %v5149_v34 = vadd.f32 %v9134_v25, %v5106_v54 }
0x11a3   : > { %5179 = vst [vmem:[%s7360_s14 + $0xe0] sm:$0xff] %v5147_v49  ;;  %5180 = vst [vmem:[%s7360_s14 + $0xe8] sm:$0xff] %v5148_v31  ;;  %v5150_v7 = vadd.f32 %v9137_v32, %v5107_v50 }
0x11a4   : > { %5181 = vst [vmem:[%s7360_s14 + $0xf0] sm:$0xff] %v5149_v34 }
0x11a5   : > { %5182 = vst [vmem:[%s7360_s14 + $0xf8] sm:$0xff] %v5150_v7 }
0x11a6 PF: > { %s9549_s16 = sld [smem:[#allocation24_spill]]  ;;  %s9550_s24 = sld [smem:[#allocation31_spill]] }
0x11a7   : > { %s9551_s6 = sld [smem:[#allocation68_spill]]  ;;  %s5198_s23 = sshll.u32 %s7360_s14, 4  ;;  %s9274_s23 = int_to_ptr.vmem [resolvable:$true] %s5198_s23 }
0x11a8   : > { %s9278_s15 = scalar_lea.sflag [#allocation7], %s541_s7  ;;  %s6745_s9 = scalar_lea.vmem %s9274_s23, 4096 }
0x11a9   : > { %p6746_p11 = scmp.ne.s32.totalorder %s9274_s23, %s6745_s9  ;;  %s6895_s20 = smov [#allocation15]  }
0x11aa   : > { %s6749_s12 = sshll.u32 %s6895_s20, 4  ;;  %s6750_s12 = int_to_ptr.vmem [resolvable:$false] %s6749_s12 }
0x11ab   : > { %s6751_s5 = scalar_lea.vmem %s6750_s12, 8192  ;;  %p6752_p0 = scmp.lt.s32.totalorder %s9274_s23, %s6750_s12 }
0x11ac   : > { %s5641_s13 = sshll.u32 %s9549_s16, 12  ;;  %p9552_p1 = scmp.ne.s32.totalorder %s9550_s24, 0 }
0x11ad   : > { %s9271_s3 = scalar_lea.hbm %s9551_s6, %s5641_s13  ;;  %p6753_p6 = scmp.lt.s32.totalorder %s6751_s5, %s6745_s9 }
0x11ae   : > { %p6747_p4 = pnand %p6746_p11, %p9552_p1 }
0x11af   : > { %p6754_p7 = por %p6753_p6, %p6752_p0 }
0x11b0   : > { %p6748_p10 = pneg %p6747_p4 }
0x11b2   : > { %p6755_p9 = pnand %p6754_p7, %p6748_p10 }
0x11b4   : > { %6758 = shalt.err (!%p6755_p9)
}
0x11b5   : > { %s6759_s7 = scalar_lea.hbm %s9271_s3, 4096  ;;  %s6763_s19 = scalar_lea.hbm %s9551_s6, 8192 }
0x11b6   : > { %p6760_p2 = scmp.ne.s32.totalorder %s9271_s3, %s6759_s7  ;;  %p6764_p3 = scmp.lt.u32.totalorder %s9271_s3, %s9551_s6 }
0x11b7   : > { %p6765_p8 = scmp.lt.u32.totalorder %s6763_s19, %s6759_s7  ;;  %p6767_p11 = scmp.lt.u32.totalorder %s6759_s7, %s9271_s3 }
0x11b8   : > { %p6761_p13 = pnand %p6760_p2, %p9552_p1 }
0x11b9   : > { %p6766_p12 = por %p6765_p8, %p6764_p3 }
0x11ba   : > { %p6762_p5 = pneg %p6761_p13 }
0x11bb   : > { %p6768_p4 = por %p6767_p11, %p6766_p12 }
0x11bd   : > { %p6769_p10 = pnand %p6768_p4, %p6762_p5 }
0x11bf   : > { %6772 = shalt.err (!%p6769_p10)
}
0x11c0   : > { %s6896_s27 = smov 256   ;;  %s6897_s8 = smov 16  }
0x11c1   : > { %5916 = dma.vmem_to_hbm [thread:$0]  (%p9552_p1), %s9274_s23, 4096, %s9271_s3, %s9278_s15, %s6896_s27, %s6896_s27, %s6897_s8  }
0x11c2 PF: > { %s9553_s18 = sld [smem:[#allocation26_spill]]  ;;  %s9554_s16 = sld [smem:[#allocation22_spill]] }
0x11c3   : > { %s9555_s13 = sld [smem:[#allocation32_spill]] }
0x11c8   : > { %p5949_p0 = scmp.ge.s32.totalorder %s9553_s18, 2  ;;  %s5213_s29 = sand.u32 1, %s9554_s16  }
0x11c9   : > { %p9556_p6 = scmp.ne.s32.totalorder %s9555_s13, 0  ;;  %s5214_s22 = scalar_lea.sflag [#allocation7], %s5213_s29 }
0x11cb   : > { %p5939_p7 = pnand %p5949_p0, %p9556_p6 }
0x11cd   : > { %6834 = dma.done.wait (!%p5939_p7), %s5214_s22, 4096  }
0x11ce   : > { %6836 = vsyncadd (!%p5939_p7), %s5214_s22, 4294963200  ;;  %s32_s23 = sadd.s32 1, %s9553_s18   ;;  %s9557_s9 = sld [smem:[#allocation21_spill]] }
0x11cf   : > { %p29_p9 = scmp.ge.s32.totalorder %s32_s23, 6   ;;  %s9558_s15 = sld [smem:[#allocation30_spill]] }
0x11d0   : > { %s9559_s24 = sld [smem:[#allocation23_spill]]  ;;  %s9560_s18 = sld [smem:[#allocation29_spill]] }
0x11d1   : > { %s9561_s20 = sld [smem:[#allocation25_spill]]  ;;  %s9562_s3 = sld [smem:[#allocation27_spill]] }
0x11d2   : > { %s9563_s22 = sld [smem:[#allocation28_spill]]  ;;  %s9564_s29 = smov %s6843_s30 }
0x11d3   : > { %s9566_s16 = smov %s6855_s17  ;;  %s9568_s19 = smov %s6871_s21 }
0x11d4   : > { %s9565_s30 = smov %s9557_s9  ;;  %31 = sbr.rel (!%p29_p9) target bundleno = 24 (0x18), region = 167 }
0x11d6   : > { %s9567_s17 = smov %s9559_s24 }
0x11d7   : > { %s9569_s21 = smov %s9562_s3 }
0x11db   :  { %5219 = vsyncpa [#allocation6], 1 }
0x11dc   :  { %5221 = vsyncpa [#allocation6 + $0x1], 1 }
0x11dd   :  { %5222 = vsyncpa [#allocation9], 1 }
0x11de   :  { %5223 = vsyncpa [#allocation12], 1 }
0x11df   :  { %5224 = vsyncpa [#allocation7], 1 }
0x11e0   :  { %5226 = vsyncpa [#allocation7 + $0x1], 1 }

// kernel: tpu_custom_call.1
= control target key start
LH: loop header
LB: loop body
LE: loop exit
PB: predicated region body
PF: predicated region fallthrough
CT: control target
= control target key end

     0   :  { %s9339_s0 = inlined_call_operand.hbm [shape: f32[4,64,256], index: 0, kind: input, shape index: {}]   ;;  %s9340_s1 = inlined_call_operand.hbm [shape: f32[64,64], index: 1, kind: input, shape index: {}]   ;;  %s9341_s2 = inlined_call_operand.hbm [shape: bf16[256,768], index: 2, kind: input, shape index: {}]   ;;  %s9342_s3 = inlined_call_operand.vmem [shape: f32[1,768], index: 3, kind: input, shape index: {}]   ;;  %s9343_s4 = inlined_call_operand.hbm [shape: bf16[2,128,256], index: 4, kind: input, shape index: {}]   ;;  %s9344_s5 = inlined_call_operand.vmem [shape: f32[1,256], index: 5, kind: input, shape index: {}]   ;;  %s9345_s6 = inlined_call_operand.vmem [shape: f32[1,256], index: 6, kind: input, shape index: {}]   ;;  %s9346_s7 = inlined_call_operand.vmem [shape: f32[1,256], index: 7, kind: input, shape index: {}]   ;;  %s9347_s8 = inlined_call_operand.hbm [shape: bf16[256,512], index: 8, kind: input, shape index: {}]   ;;  %s9348_s9 = inlined_call_operand.vmem [shape: f32[1,512], index: 9, kind: input, shape index: {}]   ;;  %s9349_s10 = inlined_call_operand.hbm [shape: bf16[512,256], index: 10, kind: input, shape index: {}]   ;;  %s9350_s11 = inlined_call_operand.vmem [shape: f32[1,256], index: 11, kind: input, shape index: {}]   ;;  %s9351_s12 = inlined_call_operand.vmem [shape: f32[1,256], index: 12, kind: input, shape index: {}]   ;;  %s9352_s13 = inlined_call_operand.vmem [shape: f32[1,256], index: 13, kind: input, shape index: {}]   ;;  %s9353_s14 = inlined_call_operand.hbm [shape: f32[4,64,256], index: 14, kind: output, shape index: {}]  }
   0x1   :  { %9415 = sst [smem:[#allocation57_spill]] %s9339_s0 }
   0x2   :  { %9416 = sst [smem:[#allocation58_spill]] %s9340_s1 }
   0x3   :  { %9417 = sst [smem:[#allocation59_spill]] %s9342_s3 }
   0x4   :  { %9418 = sst [smem:[#allocation60_spill]] %s9344_s5 }
   0x5   :  { %9419 = sst [smem:[#allocation61_spill]] %s9345_s6 }
   0x6   :  { %9420 = sst [smem:[#allocation62_spill]] %s9346_s7 }
   0x7   :  { %9421 = sst [smem:[#allocation63_spill]] %s9347_s8 }
   0x8   :  { %9422 = sst [smem:[#allocation64_spill]] %s9348_s9 }
   0x9   :  { %9423 = sst [smem:[#allocation65_spill]] %s9350_s11 }
   0xa   :  { %9424 = sst [smem:[#allocation66_spill]] %s9351_s12 }
   0xb   :  { %9425 = sst [smem:[#allocation67_spill]] %s9352_s13 }
   0xc   :  { %9426 = sst [smem:[#allocation68_spill]] %s9353_s14 }
   0xd   :  { %19 = vsyncpa [#allocation6], 0 }
   0xe   :  { %21 = vsyncpa [#allocation6 + $0x1], 0 }
   0xf   :  { %22 = vsyncpa [#allocation9], 0 }
  0x10   :  { %23 = vsyncpa [#allocation12], 0 }
  0x11   :  { %24 = vsyncpa [#allocation7], 0 }
  0x12   :  { %26 = vsyncpa [#allocation7 + $0x1], 0  ;;  %s6973_s29 = smov 0   ;;  %s6975_s30 = smov 0  }
  0x13   :  { %s6977_s15 = smov 0   ;;  %s6979_s16 = smov 0  }
  0x14   :  { %s6981_s17 = smov 0   ;;  %s6983_s18 = smov 0  }
  0x15   :  { %s6985_s19 = smov 0   ;;  %s6987_s20 = smov 0  }
  0x16   :  { %s6989_s21 = smov 0   ;;  %s6991_s22 = smov 0  }
  0x17   :  { %s6993_s23 = smov 0  }
  0x18 LB: > { %9427 = sst [smem:[#allocation21_spill]] %s6847_s15  ;;  %s41_s24 = sadd.s32 1, %s6871_s21  ;;  %s6879_s23 = sphi %s6993_s23, %s32_s23   ;;  %s6875_s22 = sphi %s6991_s22, %s9563_s22   ;;  %s6871_s21 = sphi %s6989_s21, %s9569_s21   ;;  %s6867_s20 = sphi %s6987_s20, %s9561_s20   ;;  %s6863_s19 = sphi %s6985_s19, %s9568_s19   ;;  %s6859_s18 = sphi %s6983_s18, %s9560_s18   ;;  %s6855_s17 = sphi %s6981_s17, %s9567_s17   ;;  %s6851_s16 = sphi %s6979_s16, %s9566_s16   ;;  %s6847_s15 = sphi %s6977_s15, %s9558_s15   ;;  %s6843_s30 = sphi %s6975_s30, %s9565_s30   ;;  %s6839_s29 = sphi %s6973_s29, %s9564_s29  }
  0x19   : > { %9428 = sst [smem:[#allocation22_spill]] %s6851_s16  ;;  %s44_s25 = sadd.s32 1, %s6875_s22 }
  0x1a   : > { %9429 = sst [smem:[#allocation23_spill]] %s6859_s18  ;;  %p42_p0 = scmp.ge.s32.totalorder %s41_s24, 2 }
  0x1b   : > { %9430 = sst [smem:[#allocation24_spill]] %s6867_s20  ;;  %s51_s26 = sadd.s32 1, %s6859_s18 }
  0x1c   : > { %9431 = sst [smem:[#allocation25_spill]] %s6875_s22  ;;  %p9360_p1 = scmp.ne.s32.totalorder %s6859_s18, %s6855_s17 }
  0x1d   : > { %9432 = sst [smem:[#allocation26_spill]] %s6879_s23  ;;  %p9361_p2 = scmp.eq.s32.totalorder %s6879_s23, 0 }
  0x1e   : > { %s9571_s24 = smov (%p42_p0, %s41_s24), 0  ;;  %s9573_s25 = smov (!%p42_p0, %s44_s25), %s6875_s22 }
  0x1f   : > { %9433 = sst [smem:[#allocation27_spill]] %s9571_s24  ;;  %p7042_p3 = por %p9361_p2, %p9360_p1 }
  0x20   : > { %s221_s28 = ssub.s32 %s6871_s21, %s9571_s24  ;;  %p46_p4 = scmp.ge.s32.totalorder %s9573_s25, 2 }
  0x21   : > { %p7048_p5 = scmp.eq.s32.totalorder %s221_s28, 0  ;;  %p9359_p6 = scmp.lt.s32.totalorder %s6879_s23, 4 }
  0x22   : > { %s9575_s25 = smov (%p46_p4, %s9573_s25), 0  ;;  %s462_s20 = sand.u32 1, %s6879_s23  }
  0x23   : > { %9436 = sst [smem:[#allocation28_spill]] %s9575_s25  ;;  %s464_s13 = sand.u32 1, %s6859_s18  }
  0x24   : > { %s48_s12 = ssub.s32 %s6875_s22, %s9575_s25  ;;  %s5367_s11 = sshll.u32 %s464_s13, 8 }
  0x25   : > { %p49_p7 = scmp.eq.s32.totalorder %s48_s12, 0  ;;  %s5636_s7 = sshll.u32 %s6875_s22, 12 }
  0x26   : > { %s9438_s0 = sld [smem:[#allocation57_spill]]  ;;  %s466_s28 = scalar_lea.vmem [#allocation5], %s5367_s11 }
  0x27   : > { %s7061_s6 = scalar_select %p49_p7, %s6859_s18, %s51_s26  }
  0x28   : > { %s474_s9 = sshll.u32 %s466_s28, 4  ;;  %p7074_p8 = pnand %p9359_p6, %p7042_p3  ;;  %s7068_s9 = int_to_ptr.vmem [resolvable:$true] %s474_s9 }
  0x29   : > { %9437 = sst [smem:[#allocation29_spill]] %s7061_s6  ;;  %s7078_s13 = scalar_lea.sflag [#allocation6], %s462_s20 }
  0x2a   : > { %p6573_p10 = pneg %p7074_p8 }
  0x2c   : > { %s7066_s3 = scalar_lea.hbm %s9438_s0, %s5636_s7  ;;  %s6576_s24 = scalar_lea.hbm %s9438_s0, 8192 }
  0x2d   : > { %s6571_s5 = scalar_lea.hbm %s7066_s3, 4096  ;;  %p6577_p13 = scmp.lt.u32.totalorder %s7066_s3, %s9438_s0 }
  0x2e   : > { %p6572_p9 = scmp.ne.s32.totalorder %s7066_s3, %s6571_s5  ;;  %p6578_p0 = scmp.lt.u32.totalorder %s6576_s24, %s6571_s5 }
  0x2f   : > { %p6580_p4 = scmp.lt.u32.totalorder %s6571_s5, %s7066_s3 }
  0x30   : > { %p6574_p11 = pnand %p6573_p10, %p6572_p9  ;;  %p6579_p3 = por %p6578_p0, %p6577_p13 }
  0x32   : > { %p6575_p12 = pneg %p6574_p11  ;;  %p6581_p7 = por %p6580_p4, %p6579_p3 }
  0x34   : > { %p6582_p6 = pnand %p6581_p7, %p6575_p12 }
  0x36   : > { %6585 = shalt.err (!%p6582_p6)
}
  0x37   : > { %s6586_s20 = scalar_lea.vmem %s7068_s9, 4096  ;;  %s6881_s28 = smov [#allocation5]  }
  0x38   : > { %p6587_p9 = scmp.ne.s32.totalorder %s7068_s9, %s6586_s20  ;;  %s6591_s7 = sshll.u32 %s6881_s28, 4  ;;  %s6592_s7 = int_to_ptr.vmem [resolvable:$false] %s6591_s7 }
  0x39   : > { %s6593_s11 = scalar_lea.vmem %s6592_s7, 8192  ;;  %p6594_p2 = scmp.lt.s32.totalorder %s7068_s9, %s6592_s7 }
  0x3a   : > { %p6589_p11 = pnand %p6587_p9, %p6573_p10  ;;  %p6595_p13 = scmp.lt.s32.totalorder %s6593_s11, %s6586_s20 }
  0x3c   : > { %p6590_p1 = pneg %p6589_p11  ;;  %p6596_p0 = por %p6595_p13, %p6594_p2 }
  0x3e   : > { %p6597_p3 = pnand %p6596_p0, %p6590_p1 }
  0x40   : > { %6600 = shalt.err (!%p6597_p3)
}
  0x41   : > { %s9363_s5 = smov 256   ;;  %s6883_s24 = smov 16  }
  0x42   : > { %5931 = dma.hbm_to_vmem [thread:$0]  (!%p7074_p8), %s7066_s3, 4096, %s7068_s9, %s7078_s13, %s9363_s5, %s9363_s5, %s6883_s24  }
  0x43   : > { %s7109_s26 = sadd.s32 4294967295, %s6879_s23   ;;  %s5361_s27 = sadd.s32 4294967294, %s6879_s23  }
  0x44   : > { %p64_p1 = scmp.ne.s32.totalorder %s6855_s17, %s6851_s16  ;;  %p9370_p2 = scmp.eq.s32.totalorder %s7109_s26, 0 }
  0x45   : > { %s224_s20 = sadd.s32 1, %s6847_s15  ;;  %p231_p8 = scmp.ne.s32.totalorder %s6847_s15, %s6843_s30 }
  0x46   : > { %s7119_s28 = scalar_select %p7048_p5, %s6847_s15, %s224_s20  }
  0x47   : > { %p7123_p6 = por %p9370_p2, %p64_p1  ;;  %p237_p10 = scmp.ne.s32.totalorder %s6843_s30, %s6839_s29 }
  0x48   : > { %9440 = sst [smem:[#allocation30_spill]] %s7119_s28  ;;  %p376_p12 = scmp.eq.s32.totalorder %s7109_s26, 3 }
  0x49   : > { %s9441_s12 = scalar_select %p7123_p6, 1, 0 }
  0x4a   : > { %p9442_p4 = scmp.eq.s32.totalorder %s6879_s23, 0  ;;  %p382_p9 = scmp.eq.s32.totalorder %s5361_s27, 3 }
  0x4b   : > { %p7136_p11 = por %p237_p10, %p9370_p2  ;;  %p9444_p5 = scmp.ne.s32.totalorder %s6859_s18, %s6855_s17 }
  0x4c   : > { %p233_p7 = por %p231_p8, %p9442_p4  ;;  %p7147_p0 = por %p382_p9, %p64_p1 }
  0x4d   : > { %s9443_s3 = scalar_select %p7136_p11, 1, 0 }
  0x4e   : > { %p7143_p13 = por %p376_p12, %p9444_p5  ;;  %p5362_p3 = scmp.ge.s32.totalorder %s6879_s23, 1 }
  0x4f   : > { %s9447_s14 = scalar_select %p7147_p0, 1, 0 }
  0x50   : > { %s9445_s9 = scalar_select %p7143_p13, 1, 0 }
  0x51   : > { %9448 = sst [smem:[#allocation32_spill]] %s9447_s14  ;;  %p389_p6 = scmp.lt.s32.totalorder %s6879_s23, 5 }
  0x52   : > { %9446 = sst [smem:[#allocation31_spill]] %s9445_s9  ;;  %s6884_s7 = smov [#allocation8]  }
  0x53   : > { %p7153_p4 = pnand %p5362_p3, %p389_p6  ;;  %s401_s11 = sshll.u32 %s6884_s7, 4  ;;  %s7157_s11 = int_to_ptr.vmem [resolvable:$true] %s401_s11 }
  0x54   : > { %p9450_p10 = scmp.lt.s32.totalorder %s6879_s23, 4  ;;  %s486_s27 = sand.u32 1, %s6847_s15  }
  0x55   : > { %s9449_s29 = scalar_select %p7153_p4, 1, 0 }
  0x56   : > { %p5918_p8 = pneg %p7153_p4  ;;  %p7163_p12 = pnand %p9450_p10, %p233_p7 }
  0x57   : > { %s5637_s20 = sshll.u32 %s6871_s21, 7  ;;  %s7175_s0 = sshll.u32 %s486_s27, 8 }
  0x58   : > { %s9451_s24 = scalar_select %p7163_p12, 1, 0 }
  0x59   : > { %p7171_p1 = pnand %p5918_p8, %p9370_p2  ;;  %s9453_s8 = sld [smem:[#allocation63_spill]] }
  0x5a   : > { %s9454_s1 = sld [smem:[#allocation58_spill]] }
  0x5b   : > { %s9452_s5 = scalar_select %p7171_p1, 1, 0 }
  0x5c   : > { %p7190_p7 = pneg %p7171_p1 }
  0x5f   : > { %s7180_s22 = scalar_lea.hbm %s9453_s8, %s5637_s20 }
  0x60   : > { %s6601_s28 = scalar_lea.hbm %s9454_s1, 1024 }
  0x61   : > { %p6602_p6 = scmp.ne.s32.totalorder %s9454_s1, %s6601_s28  ;;  %p6608_p3 = scmp.lt.u32.totalorder %s6601_s28, %s9454_s1 }
  0x63   : > { %p6604_p9 = pnand %p7190_p7, %p6602_p6 }
  0x65   : > { %p6605_p5 = pneg %p6604_p9 }
  0x67   : > { %p6610_p8 = pnand %p6608_p3, %p6605_p5 }
  0x69   : > { %6613 = shalt.err (!%p6610_p8)
}
  0x6a   : > { %s6614_s6 = scalar_lea.vmem %s7157_s11, 1024  ;;  %p6622_p13 = scmp.lt.s32.totalorder %s7157_s11, %s7157_s11 }
  0x6b   : > { %p6615_p10 = scmp.ne.s32.totalorder %s7157_s11, %s6614_s6  ;;  %p6623_p11 = scmp.lt.s32.totalorder %s6614_s6, %s6614_s6 }
  0x6d   : > { %p6617_p2 = pnand %p6615_p10, %p7190_p7  ;;  %p6624_p6 = por %p6623_p11, %p6622_p13 }
  0x6f   : > { %p6618_p0 = pneg %p6617_p2 }
  0x71   : > { %p6625_p9 = pnand %p6624_p6, %p6618_p0 }
  0x73   : > { %6628 = shalt.err (!%p6625_p9)
}
  0x74   : > { %s9381_s15 = smov 128   ;;  %s9383_s18 = smov 8  }
  0x75   : > { %5921 = dma.hbm_to_vmem [thread:$0]  (!%p7171_p1), %s9454_s1, 1024, %s7157_s11, [#allocation9], %s9381_s15, %s9381_s15, %s9383_s18  }
  0x76   : > { %s488_s20 = scalar_lea.vmem [#allocation13], %s7175_s0  ;;  %s6887_s25 = smov [#allocation10]  }
  0x77   : > { %s495_s7 = sshll.u32 %s488_s20, 4  ;;  %s7217_s27 = sshll.u32 %s6887_s25, 4  ;;  %s7215_s7 = int_to_ptr.vmem [resolvable:$true] %s495_s7  ;;  %s415_s27 = int_to_ptr.vmem [resolvable:$true] %s7217_s27 }
  0x78   : > { %s6629_s6 = scalar_lea.hbm %s7180_s22, 4096  ;;  %p9380_p11 = pneg %p7163_p12 }
  0x79   : > { %p6630_p2 = scmp.ne.s32.totalorder %s7180_s22, %s6629_s6  ;;  %s6634_s28 = scalar_lea.hbm %s9453_s8, 8192 }
  0x7a   : > { %p6635_p5 = scmp.lt.u32.totalorder %s7180_s22, %s9453_s8  ;;  %p6636_p3 = scmp.lt.u32.totalorder %s6634_s28, %s6629_s6 }
  0x7b   : > { %p6632_p13 = pnand %p9380_p11, %p6630_p2  ;;  %p6638_p10 = scmp.lt.u32.totalorder %s6629_s6, %s7180_s22 }
  0x7c   : > { %p6637_p8 = por %p6636_p3, %p6635_p5 }
  0x7d   : > { %p6633_p0 = pneg %p6632_p13 }
  0x7e   : > { %p6639_p6 = por %p6638_p10, %p6637_p8 }
  0x80   : > { %p6640_p9 = pnand %p6639_p6, %p6633_p0 }
  0x82   : > { %6643 = shalt.err (!%p6640_p9)
}
  0x83   : > { %s6644_s20 = scalar_lea.vmem %s7215_s7, 4096  ;;  %s6888_s23 = smov [#allocation13]  }
  0x84   : > { %p6645_p2 = scmp.ne.s32.totalorder %s7215_s7, %s6644_s20  ;;  %s6649_s9 = sshll.u32 %s6888_s23, 4  ;;  %s6650_s9 = int_to_ptr.vmem [resolvable:$false] %s6649_s9 }
  0x85   : > { %s6651_s25 = scalar_lea.vmem %s6650_s9, 8192  ;;  %p6652_p1 = scmp.lt.s32.totalorder %s7215_s7, %s6650_s9 }
  0x86   : > { %p6647_p13 = pnand %p6645_p2, %p9380_p11  ;;  %p6653_p5 = scmp.lt.s32.totalorder %s6651_s25, %s6644_s20 }
  0x88   : > { %p6648_p4 = pneg %p6647_p13  ;;  %p6654_p3 = por %p6653_p5, %p6652_p1 }
  0x8a   : > { %p6655_p8 = pnand %p6654_p3, %p6648_p4 }
  0x8c   : > { %6658 = shalt.err (!%p6655_p8)
}
  0x8d   : > { %s9456_s6 = smov 256   ;;  %s6659_s14 = scalar_lea.hbm %s9341_s2, 12288 }
  0x8e   : > { %5934 = dma.hbm_to_vmem [thread:$0]  (!%p7163_p12), %s7180_s22, 4096, %s7215_s7, %s7078_s13, %s9456_s6, %s9381_s15, %s9383_s18  }
  0x8f   : > { %p6660_p4 = scmp.ne.s32.totalorder %s9341_s2, %s6659_s14  ;;  %p6666_p10 = scmp.lt.u32.totalorder %s6659_s14, %s9341_s2 }
  0x91   : > { %p6662_p1 = pnand %p6660_p4, %p7190_p7 }
  0x93   : > { %p6663_p0 = pneg %p6662_p1 }
  0x95   : > { %p6668_p6 = pnand %p6666_p10, %p6663_p0 }
  0x97   : > { %6671 = shalt.err (!%p6668_p6)
}
  0x98   : > { %s6672_s1 = scalar_lea.vmem %s415_s27, 12288  ;;  %p6680_p5 = scmp.lt.s32.totalorder %s415_s27, %s415_s27 }
  0x99   : > { %p6673_p9 = scmp.ne.s32.totalorder %s415_s27, %s6672_s1  ;;  %p6681_p3 = scmp.lt.s32.totalorder %s6672_s1, %s6672_s1 }
  0x9b   : > { %p6675_p2 = pnand %p6673_p9, %p7190_p7  ;;  %p6682_p8 = por %p6681_p3, %p6680_p5 }
  0x9d   : > { %p6676_p13 = pneg %p6675_p2 }
  0x9f   : > { %p6683_p11 = pnand %p6682_p8, %p6676_p13 }
  0xa1   : > { %6686 = shalt.err (!%p6683_p11)
}
  0xa2   : > { %s6889_s22 = smov 384   ;;  %s6890_s7 = smov 24  }
  0xa3   : > { %p9457_p4 = scmp.ne.s32.totalorder %s9452_s5, 0  ;;  %s6891_s11 = smov [#allocation11]  }
  0xa4   : > { %s430_s14 = sshll.u32 %s6891_s11, 4  ;;  %s5639_s20 = sshll.u32 %s6871_s21, 12  ;;  %s431_s14 = int_to_ptr.vmem [resolvable:$true] %s430_s14 }
  0xa5   : > { %5924 = dma.hbm_to_vmem [thread:$0]  (!%p9457_p4), %s9341_s2, 12288, %s415_s27, [#allocation9], %s6889_s22, %s6889_s22, %s6890_s7  }
  0xa6   : > { %s6687_s1 = scalar_lea.hbm %s9343_s4, 4096 }
  0xa7   : > { %p6688_p11 = scmp.ne.s32.totalorder %s9343_s4, %s6687_s1  ;;  %p6694_p10 = scmp.lt.u32.totalorder %s6687_s1, %s9343_s4 }
  0xa9   : > { %p6690_p1 = pnand %p6688_p11, %p7190_p7 }
  0xab   : > { %p6691_p0 = pneg %p6690_p1 }
  0xad   : > { %p6696_p6 = pnand %p6694_p10, %p6691_p0 }
  0xaf   : > { %6699 = shalt.err (!%p6696_p6)
}
  0xb0   : > { %s6700_s27 = scalar_lea.vmem %s431_s14, 4096  ;;  %p6708_p5 = scmp.lt.s32.totalorder %s431_s14, %s431_s14 }
  0xb1   : > { %p6701_p9 = scmp.ne.s32.totalorder %s431_s14, %s6700_s27  ;;  %p6709_p3 = scmp.lt.s32.totalorder %s6700_s27, %s6700_s27 }
  0xb3   : > { %p6703_p2 = pnand %p6701_p9, %p7190_p7  ;;  %p6710_p8 = por %p6709_p3, %p6708_p5 }
  0xb5   : > { %p6704_p13 = pneg %p6703_p2 }
  0xb7   : > { %p6711_p12 = pnand %p6710_p8, %p6704_p13 }
  0xb9   : > { %6714 = shalt.err (!%p6711_p12)
}
  0xba   : > { %s9458_s15 = smov 8   ;;  %s9459_s22 = smov 128  }
  0xbb   : > { %5927 = dma.hbm_to_vmem [thread:$0]  (!%p9457_p4), %s9343_s4, 4096, %s431_s14, [#allocation12], %s9459_s22, %s9459_s22, %s9458_s15  }
  0xbc   : > { %s7292_s6 = scalar_lea.hbm %s9349_s10, %s5639_s20  ;;  %s517_s28 = scalar_lea.vmem [#allocation14], %s7175_s0 }
  0xbd   : > { %s525_s5 = sshll.u32 %s517_s28, 4  ;;  %s6715_s11 = scalar_lea.hbm %s7292_s6, 4096  ;;  %s7295_s5 = int_to_ptr.vmem [resolvable:$true] %s525_s5 }
  0xbe   : > { %p6716_p12 = scmp.ne.s32.totalorder %s7292_s6, %s6715_s11  ;;  %p9460_p7 = scmp.ne.s32.totalorder %s9451_s24, 0 }
  0xbf   : > { %s6720_s9 = scalar_lea.hbm %s9349_s10, 8192  ;;  %p6721_p4 = scmp.lt.u32.totalorder %s7292_s6, %s9349_s10 }
  0xc0   : > { %p9461_p11 = pneg %p9460_p7  ;;  %p6722_p10 = scmp.lt.u32.totalorder %s6720_s9, %s6715_s11 }
  0xc1   : > { %p6724_p9 = scmp.lt.u32.totalorder %s6715_s11, %s7292_s6 }
  0xc2   : > { %p6718_p1 = pnand %p6716_p12, %p9461_p11  ;;  %p6723_p6 = por %p6722_p10, %p6721_p4 }
  0xc4   : > { %p6719_p0 = pneg %p6718_p1  ;;  %p6725_p2 = por %p6724_p9, %p6723_p6 }
  0xc6   : > { %p6726_p13 = pnand %p6725_p2, %p6719_p0 }
  0xc8   : > { %6729 = shalt.err (!%p6726_p13)
}
  0xc9   : > { %s6730_s0 = scalar_lea.vmem %s7295_s5, 4096  ;;  %p9462_p3 = pmov %p9461_p11 }
  0xca   : > { %p6731_p5 = scmp.ne.s32.totalorder %s7295_s5, %s6730_s0  ;;  %s6892_s25 = smov [#allocation14]  }
  0xcb   : > { %s6735_s27 = sshll.u32 %s6892_s25, 4  ;;  %s6736_s27 = int_to_ptr.vmem [resolvable:$false] %s6735_s27 }
  0xcc   : > { %p6733_p8 = pnand %p6731_p5, %p9462_p3  ;;  %s6737_s8 = scalar_lea.vmem %s6736_s27, 8192 }
  0xcd   : > { %p6738_p11 = scmp.lt.s32.totalorder %s7295_s5, %s6736_s27  ;;  %p6739_p1 = scmp.lt.s32.totalorder %s6737_s8, %s6730_s0 }
  0xce   : > { %p6734_p12 = pneg %p6733_p8 }
  0xcf   : > { %p6740_p4 = por %p6739_p1, %p6738_p11 }
  0xd1   : > { %p6741_p10 = pnand %p6740_p4, %p6734_p12 }
  0xd3   : > { %6744 = shalt.err (!%p6741_p10)
}
  0xd4   : > { %5937 = dma.hbm_to_vmem [thread:$0]  (!%p9460_p7), %s7292_s6, 4096, %s7295_s5, %s7078_s13, %s9459_s22, %s9459_s22, %s9458_s15  }
  0xd5   : > { %p9463_p0 = scmp.ne.s32.totalorder %s9449_s29, 0 }
  0xd6   : > { %s539_s18 = sand.u32 (!%p9463_p0), 1, %s7109_s26   ;;  %s541_s7 = sand.u32 (!%p9463_p0), 1, %s6855_s17  }
  0xd7   : > { %537 = sbr.rel (%p9463_p0) target bundleno = 4546 (0x11c2), region = 76  ;;  %s5379_s16 = sshll.u32 (!%p9463_p0), %s541_s7, 8 }
  0xd8   : > { %s540_s28 = scalar_lea.sflag (!%p9463_p0), [#allocation6], %s539_s18  ;;  %s7330_s24 = scalar_lea.vmem (!%p9463_p0), [#allocation5], %s5379_s16 }
  0xd9   : > { %p9464_p6 = scmp.ne.s32.totalorder (!%p9463_p0), %s9441_s12, 0 }
  0xde   : > { %6818 = dma.done.wait (%p9464_p6), %s540_s28, 4096  }
  0xdf   : > { %6820 = vsyncadd (%p9464_p6), %s540_s28, 4294963200  ;;  %p9465_p7 = scmp.eq.s32.totalorder %s7109_s26, 0 }
  0xe1   : > { %6822 = dma.done.wait (%p9465_p7), [#allocation9], 13312   ;;  %p9466_p9 = pmov %p9465_p7 }
  0xe2   : > { %p9467_p2 = pmov %p9465_p7 }
  0xe3   : > { %6824 = vsyncadd (%p9466_p9), [#allocation9], 4294953984 }
  0xe4   : > { %6826 = dma.done.wait (%p9467_p2), [#allocation12], 4096   ;;  %p9468_p13 = pmov %p9467_p2 }
  0xe5   : > { %s562_s13 = sand.u32 1, %s6843_s30   ;;  %p9469_p5 = scmp.ne.s32.totalorder %s9443_s3, 0 }
  0xe6   : > { %6828 = vsyncadd (%p9468_p13), [#allocation12], 4294963200  ;;  %s5383_s29 = sshll.u32 %s562_s13, 8 }
  0xe7   : > { %s7345_s15 = scalar_lea.vmem [#allocation13], %s5383_s29 }
  0xe8   : > { %6830 = dma.done.wait (%p9469_p5), %s540_s28, 8192  }
  0xe9   : > { %6832 = vsyncadd (%p9469_p5), %s540_s28, 4294959104  ;;  %s5386_s12 = sshll.u32 %s6863_s19, 1  ;;  %s9470_s6 = sld [smem:[#allocation64_spill]] }
  0xea   : > { %p635_p3 = scmp.lt.s32.totalorder %s5386_s12, 3  ;;  %s7358_s11 = scalar_lea.vmem [#allocation14], %s5383_s29 }
  0xeb   : > { %s7360_s14 = scalar_lea.vmem [#allocation15], %s5379_s16  ;;  %p5387_p8 = scmp.ne.s32.totalorder %s6863_s19, 0 }
  0xec   : > { %s9577_s12 = smov (!%p635_p3, %s5386_s12), 3 }
  0xed   : > { %645 = sbr.rel (%p5387_p8) target bundleno = 3616 (0xe20), region = 104 }
  0xef   : > { %s637_s5 = scalar_lea.vmem %s9470_s6, %s9577_s12 }
  0xf4   : > { %v6051_v0 = vld [vmem:[#allocation10 + $0x4] ss:$24 sps:$4 sm:$0xff]   ;;  %v6055_v2 = vld [vmem:[#allocation10] ss:$24 sps:$4 sm:$0xff]   ;;  %v6057_v4 = vld [vmem:[#allocation10 + $0x34] ss:$24 sps:$4 sm:$0xff]  }
  0xf5   : > { %v6053_v1 = vld [vmem:[#allocation10 + $0xc] ss:$24 sps:$4 sm:$0xff]   ;;  %1302 = vmatprep.subr.bf16.mxu0 %v6051_v0  ;;  %v6056_v3 = vld [vmem:[#allocation10 + $0x8] ss:$24 sps:$4 sm:$0xff]   ;;  %v6059_v5 = vld [vmem:[#allocation10 + $0x3c] ss:$24 sps:$4 sm:$0xff]  }
  0xf6   : > { %1415 = vmatprep.subr.bf16.mxu1 %v6053_v1  ;;  %1303 = vmatpush1.bf16.msra.mxu0 %v6055_v2  ;;  %v6061_v6 = vld [vmem:[#allocation10 + $0x30] ss:$24 sps:$4 sm:$0xff]   ;;  %v6063_v8 = vld [vmem:[#allocation10 + $0x64] ss:$24 sps:$4 sm:$0xff]   ;;  %v6067_v10 = vld [vmem:[#allocation10 + $0x60] ss:$24 sps:$4 sm:$0xff]  }
  0xf7   : > { %1416 = vmatpush1.bf16.msra.mxu1 %v6056_v3  ;;  %1304 = vmatprep.subr.bf16.mxu0 %v6057_v4  ;;  %v6062_v7 = vld [vmem:[#allocation10 + $0x38] ss:$24 sps:$4 sm:$0xff]   ;;  %v6065_v9 = vld [vmem:[#allocation10 + $0x6c] ss:$24 sps:$4 sm:$0xff]   ;;  %v6068_v11 = vld [vmem:[#allocation10 + $0x68] ss:$24 sps:$4 sm:$0xff]  }
  0xf8   : > { %1417 = vmatprep.subr.bf16.mxu1 %v6059_v5  ;;  %v6069_v12 = vld [vmem:[#allocation10 + $0x94] ss:$24 sps:$4 sm:$0xff]   ;;  %v6073_v14 = vld [vmem:[#allocation10 + $0x90] ss:$24 sps:$4 sm:$0xff]   ;;  %v6075_v16 = vld [vmem:[#allocation10 + $0xc4] ss:$24 sps:$4 sm:$0xff]  }
  0xf9   : > { %v6071_v13 = vld [vmem:[#allocation10 + $0x9c] ss:$24 sps:$4 sm:$0xff]   ;;  %v6074_v15 = vld [vmem:[#allocation10 + $0x98] ss:$24 sps:$4 sm:$0xff]   ;;  %v6077_v17 = vld [vmem:[#allocation10 + $0xcc] ss:$24 sps:$4 sm:$0xff]  }
  0xfa   : > { %1305 = vmatpush1.bf16.msra.mxu0 %v6061_v6  ;;  %v6079_v18 = vld [vmem:[#allocation10 + $0xc0] ss:$24 sps:$4 sm:$0xff]   ;;  %v6081_v20 = vld [vmem:[#allocation10 + $0xf4] ss:$24 sps:$4 sm:$0xff]   ;;  %v6085_v22 = vld [vmem:[#allocation10 + $0xf0] ss:$24 sps:$4 sm:$0xff]  }
  0xfb   : > { %1418 = vmatpush1.bf16.msra.mxu1 %v6062_v7  ;;  %1306 = vmatprep.subr.bf16.mxu0 %v6063_v8  ;;  %v6080_v19 = vld [vmem:[#allocation10 + $0xc8] ss:$24 sps:$4 sm:$0xff]   ;;  %v6083_v21 = vld [vmem:[#allocation10 + $0xfc] ss:$24 sps:$4 sm:$0xff]   ;;  %v6086_v23 = vld [vmem:[#allocation10 + $0xf8] ss:$24 sps:$4 sm:$0xff]  }
  0xfc   : > { %1419 = vmatprep.subr.bf16.mxu1 %v6065_v9  ;;  %v6087_v24 = vld [vmem:[#allocation10 + $0x124] ss:$24 sps:$4 sm:$0xff]   ;;  %v6091_v26 = vld [vmem:[#allocation10 + $0x120] ss:$24 sps:$4 sm:$0xff]   ;;  %v6093_v28 = vld [vmem:[#allocation10 + $0x154] ss:$24 sps:$4 sm:$0xff]  }
  0xfd   : > { %v6089_v25 = vld [vmem:[#allocation10 + $0x12c] ss:$24 sps:$4 sm:$0xff]   ;;  %v6092_v27 = vld [vmem:[#allocation10 + $0x128] ss:$24 sps:$4 sm:$0xff]   ;;  %v6095_v29 = vld [vmem:[#allocation10 + $0x15c] ss:$24 sps:$4 sm:$0xff]  }
  0xfe   : > { %1307 = vmatpush1.bf16.msra.mxu0 %v6067_v10  ;;  %v6097_v30 = vld [vmem:[#allocation10 + $0x150] ss:$24 sps:$4 sm:$0xff]   ;;  %v6099_v32 = vld [vmem:[#allocation10 + $0x184] ss:$24 sps:$4 sm:$0xff]   ;;  %v6103_v34 = vld [vmem:[#allocation10 + $0x180] ss:$24 sps:$4 sm:$0xff]  }
  0xff   : > { %1420 = vmatpush1.bf16.msra.mxu1 %v6068_v11  ;;  %1308 = vmatprep.subr.bf16.mxu0 %v6069_v12  ;;  %v6098_v31 = vld [vmem:[#allocation10 + $0x158] ss:$24 sps:$4 sm:$0xff]   ;;  %v6101_v33 = vld [vmem:[#allocation10 + $0x18c] ss:$24 sps:$4 sm:$0xff]   ;;  %v6104_v35 = vld [vmem:[#allocation10 + $0x188] ss:$24 sps:$4 sm:$0xff]  }
 0x100   : > { %1421 = vmatprep.subr.bf16.mxu1 %v6071_v13  ;;  %v6105_v36 = vld [vmem:[#allocation10 + $0x1b4] ss:$24 sps:$4 sm:$0xff]   ;;  %v6109_v38 = vld [vmem:[#allocation10 + $0x1b0] ss:$24 sps:$4 sm:$0xff]   ;;  %v6111_v40 = vld [vmem:[#allocation10 + $0x1e4] ss:$24 sps:$4 sm:$0xff]  }
 0x101   : > { %v6107_v37 = vld [vmem:[#allocation10 + $0x1bc] ss:$24 sps:$4 sm:$0xff]   ;;  %v6110_v39 = vld [vmem:[#allocation10 + $0x1b8] ss:$24 sps:$4 sm:$0xff]   ;;  %v6113_v41 = vld [vmem:[#allocation10 + $0x1ec] ss:$24 sps:$4 sm:$0xff]  }
 0x102   : > { %1309 = vmatpush1.bf16.msra.mxu0 %v6073_v14  ;;  %v6115_v42 = vld [vmem:[#allocation10 + $0x1e0] ss:$24 sps:$4 sm:$0xff]   ;;  %v6117_v44 = vld [vmem:[#allocation10 + $0x214] ss:$24 sps:$4 sm:$0xff]   ;;  %v6121_v47 = vld [vmem:[#allocation10 + $0x210] ss:$24 sps:$4 sm:$0xff]  }
 0x103   : > { %1422 = vmatpush1.bf16.msra.mxu1 %v6074_v15  ;;  %1310 = vmatprep.subr.bf16.mxu0 %v6075_v16  ;;  %v6116_v43 = vld [vmem:[#allocation10 + $0x1e8] ss:$24 sps:$4 sm:$0xff]   ;;  %v6119_v45 = vld [vmem:[#allocation10 + $0x21c] ss:$24 sps:$4 sm:$0xff]   ;;  %v6122_v48 = vld [vmem:[#allocation10 + $0x218] ss:$24 sps:$4 sm:$0xff]  }
 0x104   : > { %1423 = vmatprep.subr.bf16.mxu1 %v6077_v17  ;;  %v647_v46 = vld [vmem:[%s7330_s24 + $0x8] sm:$0xff]  ;;  %v649_v49 = vld [vmem:[%s7330_s24 + $0x18] sm:$0xff]  ;;  %v646_v3 = vld [vmem:[%s7330_s24] sm:$0xff]  ;;  %s9473_s9 = sld [smem:[#allocation59_spill]]  ;;  %vm1726_vm0 = vcmask 523264   ;;  %s9533_s0 = sld [smem:[#allocation60_spill]] }
 0x105   : > { %v6123_v50 = vld [vmem:[#allocation10 + $0x244] ss:$24 sps:$4 sm:$0xff]   ;;  %v7365_v51 = vpack.c.bf16 %v649_v49, %v647_v46  ;;  %v6127_v53 = vld [vmem:[#allocation10 + $0x240] ss:$24 sps:$4 sm:$0xff]   ;;  %v6129_v55 = vld [vmem:[#allocation10 + $0x274] ss:$24 sps:$4 sm:$0xff]  }
 0x106   : > { %1311 = vmatpush1.bf16.msra.mxu0 %v6079_v18  ;;  %v6125_v52 = vld [vmem:[#allocation10 + $0x24c] ss:$24 sps:$4 sm:$0xff]   ;;  %v6128_v54 = vld [vmem:[#allocation10 + $0x248] ss:$24 sps:$4 sm:$0xff]   ;;  %v6131_v56 = vld [vmem:[#allocation10 + $0x27c] ss:$24 sps:$4 sm:$0xff]  }
 0x107   : > { %1424 = vmatpush1.bf16.msra.mxu1 %v6080_v19  ;;  %1312 = vmatprep.subr.bf16.mxu0 %v6081_v20  ;;  %v6133_v57 = vld [vmem:[#allocation10 + $0x270] ss:$24 sps:$4 sm:$0xff]   ;;  %v6135_v59 = vld [vmem:[#allocation10 + $0x2a4] ss:$24 sps:$4 sm:$0xff]   ;;  %v6139_v61 = vld [vmem:[#allocation10 + $0x2a0] ss:$24 sps:$4 sm:$0xff]  }
 0x108   : > { %1425 = vmatprep.subr.bf16.mxu1 %v6083_v21  ;;  %1334 = vmatprep.mubr.bf16.mxu0 %v7365_v51  ;;  %v6134_v58 = vld [vmem:[#allocation10 + $0x278] ss:$24 sps:$4 sm:$0xff]   ;;  %v6137_v60 = vld [vmem:[#allocation10 + $0x2ac] ss:$24 sps:$4 sm:$0xff]   ;;  %v6140_v62 = vld [vmem:[#allocation10 + $0x2a8] ss:$24 sps:$4 sm:$0xff]  }
 0x109   : > { %1447 = vmatprep.mubr.bf16.mxu1 %v7365_v51  ;;  %v6141_v63 = vld [vmem:[#allocation10 + $0x2d4] ss:$24 sps:$4 sm:$0xff]   ;;  %v6145_v1 = vld [vmem:[#allocation10 + $0x2d0] ss:$24 sps:$4 sm:$0xff]   ;;  %v653_v7 = vld [vmem:[%s7330_s24 + $0x38] sm:$0xff]  ;;  %s9541_s16 = sld [smem:[#allocation61_spill]] }
 0x10a   : > { %1313 = vmatpush1.bf16.msra.mxu0 %v6085_v22  ;;  %v6143_v0 = vld [vmem:[#allocation10 + $0x2dc] ss:$24 sps:$4 sm:$0xff]   ;;  %v6146_v2 = vld [vmem:[#allocation10 + $0x2d8] ss:$24 sps:$4 sm:$0xff]   ;;  %v651_v6 = vld [vmem:[%s7330_s24 + $0x28] sm:$0xff]  ;;  %s9543_s29 = sld [smem:[#allocation62_spill]] }
 0x10b   : > { %1426 = vmatpush1.bf16.msra.mxu1 %v6086_v23  ;;  %1314 = vmatprep.subr.bf16.mxu0 %v6087_v24  ;;  %v648_v4 = vld [vmem:[%s7330_s24 + $0x10] sm:$0xff]  ;;  %v7375_v10 = vpack.c.bf16 %v653_v7, %v651_v6  ;;  %v6152_v11 = vld [vmem:[#allocation10 + $0x44] ss:$24 sps:$4 sm:$0xff]   ;;  %v6150_v12 = vld [vmem:[#allocation10 + $0x40] ss:$24 sps:$4 sm:$0xff]  }
 0x10c   : > { %1427 = vmatprep.subr.bf16.mxu1 %v6089_v25  ;;  %v6149_v5 = vld [vmem:[#allocation10 + $0x14] ss:$24 sps:$4 sm:$0xff]   ;;  %v7373_v8 = vpack.c.bf16 %v648_v4, %v646_v3  ;;  %v6147_v9 = vld [vmem:[#allocation10 + $0x10] ss:$24 sps:$4 sm:$0xff]   ;;  %v650_v13 = vld [vmem:[%s7330_s24 + $0x20] sm:$0xff] }
 0x10d   : > { %v652_v14 = vld [vmem:[%s7330_s24 + $0x30] sm:$0xff]  ;;  %v655_v16 = vld [vmem:[%s7330_s24 + $0x48] sm:$0xff]  ;;  %v657_v17 = vld [vmem:[%s7330_s24 + $0x58] sm:$0xff] }
 0x10e   : > { %1315 = vmatpush1.bf16.msra.mxu0 %v6091_v26  ;;  %v6155_v15 = vld [vmem:[#allocation10 + $0x74] ss:$24 sps:$4 sm:$0xff]   ;;  %v7385_v18 = vpack.c.bf16 %v652_v14, %v650_v13  ;;  %v6153_v19 = vld [vmem:[#allocation10 + $0x70] ss:$24 sps:$4 sm:$0xff]   ;;  %v7387_v20 = vpack.c.bf16 %v657_v17, %v655_v16  ;;  %v6158_v21 = vld [vmem:[#allocation10 + $0xa4] ss:$24 sps:$4 sm:$0xff]  }
 0x10f   : > { %1428 = vmatpush1.bf16.msra.mxu1 %v6092_v27  ;;  %1316 = vmatprep.subr.bf16.mxu0 %v6093_v28  ;;  %v6156_v22 = vld [vmem:[#allocation10 + $0xa0] ss:$24 sps:$4 sm:$0xff]   ;;  %v656_v24 = vld [vmem:[%s7330_s24 + $0x50] sm:$0xff]  ;;  %v659_v26 = vld [vmem:[%s7330_s24 + $0x68] sm:$0xff]  ;;  %s9542_s28 = smov %s9541_s16 }
 0x110   : > { %1429 = vmatprep.subr.bf16.mxu1 %v6095_v29  ;;  %v654_v23 = vld [vmem:[%s7330_s24 + $0x40] sm:$0xff]  ;;  %v6161_v25 = vld [vmem:[#allocation10 + $0xd4] ss:$24 sps:$4 sm:$0xff]   ;;  %v661_v27 = vld [vmem:[%s7330_s24 + $0x78] sm:$0xff]  ;;  %s9544_s26 = smov %s9543_s29 }
 0x111   : > { %v6159_v28 = vld [vmem:[#allocation10 + $0xd0] ss:$24 sps:$4 sm:$0xff]   ;;  %v7397_v29 = vpack.c.bf16 %v656_v24, %v654_v23  ;;  %v677_v4 = vld [vmem:[%s7330_s24 + $0xf8] sm:$0xff]  ;;  %v6191_v14 = vld [vmem:[#allocation10 + $0x2b4] ss:$24 sps:$4 sm:$0xff]  }
 0x112   : > { %1317 = vmatpush1.bf16.msra.mxu0 %v6097_v30  ;;  %v6164_v30 = vld [vmem:[#allocation10 + $0x104] ss:$24 sps:$4 sm:$0xff]   ;;  %v667_v46 = vld [vmem:[%s7330_s24 + $0xa8] sm:$0xff]  ;;  %v676_v13 = vld [vmem:[%s7330_s24 + $0xf0] sm:$0xff] }
 0x113   : > { %1430 = vmatpush1.bf16.msra.mxu1 %v6098_v31  ;;  %1318 = vmatprep.subr.bf16.mxu0 %v6099_v32  ;;  %v7399_v31 = vpack.c.bf16 %v661_v27, %v659_v26  ;;  %v6162_v32 = vld [vmem:[#allocation10 + $0x100] ss:$24 sps:$4 sm:$0xff]   ;;  %v6171_v49 = vld [vmem:[#allocation10 + $0x190] ss:$24 sps:$4 sm:$0xff]   ;;  %v6194_v17 = vld [vmem:[#allocation10 + $0x2e4] ss:$24 sps:$4 sm:$0xff]  }
 0x114   : > { %1431 = vmatprep.subr.bf16.mxu1 %v6101_v33  ;;  %v658_v33 = vld [vmem:[%s7330_s24 + $0x60] sm:$0xff]  ;;  %v675_v3 = vld [vmem:[%s7330_s24 + $0xe8] sm:$0xff] }
 0x115   : > { %v6183_v6 = vld [vmem:[#allocation10 + $0x250] ss:$24 sps:$4 sm:$0xff]   ;;  %v693_v7 = vpack.c.bf16 %v677_v4, %v675_v3 }
 0x116   : > { %1319 = vmatpush1.bf16.msra.mxu0 %v6103_v34  ;;  %v660_v34 = vld [vmem:[%s7330_s24 + $0x70] sm:$0xff] }
 0x117   : > { %1432 = vmatpush1.bf16.msra.mxu1 %v6104_v35  ;;  %1320 = vmatprep.subr.bf16.mxu0 %v6105_v36  ;;  %v6167_v35 = vld [vmem:[#allocation10 + $0x134] ss:$24 sps:$4 sm:$0xff]   ;;  %v6189_v16 = vld [vmem:[#allocation10 + $0x2b0] ss:$24 sps:$4 sm:$0xff]  }
 0x118   : > { %1433 = vmatprep.subr.bf16.mxu1 %v6107_v37  ;;  %v663_v36 = vld [vmem:[%s7330_s24 + $0x88] sm:$0xff]  ;;  %v665_v37 = vld [vmem:[%s7330_s24 + $0x98] sm:$0xff] }
 0x11a   : > { %1321 = vmatpush1.bf16.msra.mxu0 %v6109_v38  ;;  %v7409_v38 = vpack.c.bf16 %v660_v34, %v658_v33 }
 0x11b   : > { %1434 = vmatpush1.bf16.msra.mxu1 %v6110_v39  ;;  %1322 = vmatprep.subr.bf16.mxu0 %v6111_v40  ;;  %v6165_v39 = vld [vmem:[#allocation10 + $0x130] ss:$24 sps:$4 sm:$0xff]   ;;  %v7411_v40 = vpack.c.bf16 %v665_v37, %v663_v36 }
 0x11c   : > { %1435 = vmatprep.subr.bf16.mxu1 %v6113_v41  ;;  %v6170_v41 = vld [vmem:[#allocation10 + $0x164] ss:$24 sps:$4 sm:$0xff]  }
 0x11e   : > { %1323 = vmatpush1.bf16.msra.mxu0 %v6115_v42  ;;  %v6168_v42 = vld [vmem:[#allocation10 + $0x160] ss:$24 sps:$4 sm:$0xff]  }
 0x11f   : > { %1436 = vmatpush1.bf16.msra.mxu1 %v6116_v43  ;;  %1324 = vmatprep.subr.bf16.mxu0 %v6117_v44  ;;  %v662_v43 = vld [vmem:[%s7330_s24 + $0x80] sm:$0xff]  ;;  %v664_v44 = vld [vmem:[%s7330_s24 + $0x90] sm:$0xff] }
 0x120   : > { %1437 = vmatprep.subr.bf16.mxu1 %v6119_v45  ;;  %v6173_v45 = vld [vmem:[#allocation10 + $0x194] ss:$24 sps:$4 sm:$0xff]  }
 0x122   : > { %1325 = vmatpush1.bf16.msra.mxu0 %v6121_v47  ;;  %v669_v47 = vld [vmem:[%s7330_s24 + $0xb8] sm:$0xff] }
 0x123   : > { %1438 = vmatpush1.bf16.msra.mxu1 %v6122_v48  ;;  %1326 = vmatprep.subr.bf16.mxu0 %v6123_v50  ;;  %v7421_v48 = vpack.c.bf16 %v664_v44, %v662_v43  ;;  %v7423_v50 = vpack.c.bf16 %v669_v47, %v667_v46 }
 0x124   : > { %1439 = vmatprep.subr.bf16.mxu1 %v6125_v52  ;;  %v6176_v52 = vld [vmem:[#allocation10 + $0x1c4] ss:$24 sps:$4 sm:$0xff]  }
 0x126   : > { %1327 = vmatpush1.bf16.msra.mxu0 %v6127_v53  ;;  %v6174_v53 = vld [vmem:[#allocation10 + $0x1c0] ss:$24 sps:$4 sm:$0xff]  }
 0x127   : > { %1440 = vmatpush1.bf16.msra.mxu1 %v6128_v54  ;;  %1328 = vmatprep.subr.bf16.mxu0 %v6129_v55  ;;  %v666_v54 = vld [vmem:[%s7330_s24 + $0xa0] sm:$0xff]  ;;  %v668_v55 = vld [vmem:[%s7330_s24 + $0xb0] sm:$0xff] }
 0x128   : > { %1441 = vmatprep.subr.bf16.mxu1 %v6131_v56  ;;  %v6179_v56 = vld [vmem:[#allocation10 + $0x1f4] ss:$24 sps:$4 sm:$0xff]  }
 0x12a   : > { %1329 = vmatpush1.bf16.msra.mxu0 %v6133_v57  ;;  %v671_v57 = vld [vmem:[%s7330_s24 + $0xc8] sm:$0xff] }
 0x12b   : > { %1442 = vmatpush1.bf16.msra.mxu1 %v6134_v58  ;;  %1330 = vmatprep.subr.bf16.mxu0 %v6135_v59  ;;  %v673_v58 = vld [vmem:[%s7330_s24 + $0xd8] sm:$0xff]  ;;  %v7433_v59 = vpack.c.bf16 %v668_v55, %v666_v54 }
 0x12c   : > { %1443 = vmatprep.subr.bf16.mxu1 %v6137_v60  ;;  %v6177_v60 = vld [vmem:[#allocation10 + $0x1f0] ss:$24 sps:$4 sm:$0xff]  }
 0x12e   : > { %1331 = vmatpush1.bf16.msra.mxu0 %v6139_v61  ;;  %v7435_v61 = vpack.c.bf16 %v673_v58, %v671_v57 }
 0x12f   : > { %1444 = vmatpush1.bf16.msra.mxu1 %v6140_v62  ;;  %1332 = vmatprep.subr.bf16.mxu0 %v6141_v63  ;;  %v6182_v62 = vld [vmem:[#allocation10 + $0x224] ss:$24 sps:$4 sm:$0xff]   ;;  %v6180_v63 = vld [vmem:[#allocation10 + $0x220] ss:$24 sps:$4 sm:$0xff]  }
 0x130   : > { %1445 = vmatprep.subr.bf16.mxu1 %v6143_v0  ;;  %v670_v0 = vld [vmem:[%s7330_s24 + $0xc0] sm:$0xff] }
 0x132   : > { %1333 = vmatpush1.bf16.msra.mxu0 %v6145_v1  ;;  %v672_v1 = vld [vmem:[%s7330_s24 + $0xd0] sm:$0xff] }
 0x133   : > { %1446 = vmatpush1.bf16.msra.mxu1 %v6146_v2  ;;  %1528 = vmatprep.subr.bf16.mxu0 %v6149_v5  ;;  %v6185_v2 = vld [vmem:[#allocation10 + $0x254] ss:$24 sps:$4 sm:$0xff]  }
 0x134   : > { %5834 = vmatprep.subr.bf16.mxu1 %v6149_v5  ;;  %v690_v5 = vpack.c.bf16 %v672_v1, %v670_v0 }
 0x135   : > { %1335 = vmatmul.mubr.bf16.vlgmr.msra.gmra.mrb[0].mxu0 %v7373_v8 }
 0x136   : > { %1448 = vmatmul.mubr.bf16.vlgmr.msra.gmra.mrb[0].mxu1 %v7373_v8  ;;  %1529 = vmatpush1.bf16.msra.mxu0 %v6147_v9 }
 0x137   : > { %1344 = vmatprep.mubr.bf16.mxu0 %v7375_v10  ;;  %1530 = vmatprep.subr.bf16.mxu0 %v6152_v11 }
 0x138   : > { %1457 = vmatprep.mubr.bf16.mxu1 %v7375_v10  ;;  %5850 = vmatpush1.bf16.msra.mxu1 %v6147_v9  ;;  %v6188_v9 = vld [vmem:[#allocation10 + $0x284] ss:$24 sps:$4 sm:$0xff]  }
 0x139   : > { %5835 = vmatprep.subr.bf16.mxu1 %v6152_v11  ;;  %v6186_v11 = vld [vmem:[#allocation10 + $0x280] ss:$24 sps:$4 sm:$0xff]  }
 0x13a   : > { %1531 = vmatpush1.bf16.msra.mxu0 %v6150_v12 }
 0x13b   : > { %1532 = vmatprep.subr.bf16.mxu0 %v6155_v15 }
 0x13c   : > { %5851 = vmatpush1.bf16.msra.mxu1 %v6150_v12  ;;  %v674_v12 = vld [vmem:[%s7330_s24 + $0xe0] sm:$0xff] }
 0x13d   : > { %1345 = vmatmul.mubr.bf16.gmra.mrb[4].mxu0 %v7385_v18  ;;  %5836 = vmatprep.subr.bf16.mxu1 %v6155_v15  ;;  %v692_v15 = vpack.c.bf16 %v676_v13, %v674_v12 }
 0x13e   : > { %1458 = vmatmul.mubr.bf16.gmra.mrb[4].mxu1 %v7385_v18  ;;  %1533 = vmatpush1.bf16.msra.mxu0 %v6153_v19 }
 0x13f   : > { %1354 = vmatprep.mubr.bf16.mxu0 %v7387_v20  ;;  %1534 = vmatprep.subr.bf16.mxu0 %v6158_v21 }
 0x140   : > { %1467 = vmatprep.mubr.bf16.mxu1 %v7387_v20  ;;  %5852 = vmatpush1.bf16.msra.mxu1 %v6153_v19  ;;  %v6192_v19 = vld [vmem:[#allocation10 + $0x2e0] ss:$24 sps:$4 sm:$0xff]  }
 0x141   : > { %5837 = vmatprep.subr.bf16.mxu1 %v6158_v21  ;;  %v7472_v21 = vld [vmem:[%s9473_s9] sm:$0x3f] }
 0x142   : > { %1535 = vmatpush1.bf16.msra.mxu0 %v6156_v22 }
 0x143   : > { %1536 = vmatprep.subr.bf16.mxu0 %v6161_v25 }
 0x144   : > { %5853 = vmatpush1.bf16.msra.mxu1 %v6156_v22 }
 0x145   : > { %1355 = vmatmul.mubr.bf16.gmra.mrb[8].mxu0 %v7397_v29  ;;  %5838 = vmatprep.subr.bf16.mxu1 %v6161_v25 }
 0x146   : > { %1468 = vmatmul.mubr.bf16.gmra.mrb[8].mxu1 %v7397_v29  ;;  %1537 = vmatpush1.bf16.msra.mxu0 %v6159_v28 }
 0x147   : > { %1364 = vmatprep.mubr.bf16.mxu0 %v7399_v31  ;;  %1538 = vmatprep.subr.bf16.mxu0 %v6164_v30 }
 0x148   : > { %1477 = vmatprep.mubr.bf16.mxu1 %v7399_v31  ;;  %5854 = vmatpush1.bf16.msra.mxu1 %v6159_v28 }
 0x149   : > { %5839 = vmatprep.subr.bf16.mxu1 %v6164_v30 }
 0x14a   : > { %1539 = vmatpush1.bf16.msra.mxu0 %v6162_v32 }
 0x14b   : > { %1540 = vmatprep.subr.bf16.mxu0 %v6167_v35 }
 0x14c   : > { %5855 = vmatpush1.bf16.msra.mxu1 %v6162_v32 }
 0x14d   : > { %1365 = vmatmul.mubr.bf16.gmra.mrb[12].mxu0 %v7409_v38  ;;  %5840 = vmatprep.subr.bf16.mxu1 %v6167_v35 }
 0x14e   : > { %1478 = vmatmul.mubr.bf16.gmra.mrb[12].mxu1 %v7409_v38  ;;  %1541 = vmatpush1.bf16.msra.mxu0 %v6165_v39 }
 0x14f   : > { %1374 = vmatprep.mubr.bf16.mxu0 %v7411_v40  ;;  %1542 = vmatprep.subr.bf16.mxu0 %v6170_v41 }
 0x150   : > { %1487 = vmatprep.mubr.bf16.mxu1 %v7411_v40  ;;  %5856 = vmatpush1.bf16.msra.mxu1 %v6165_v39 }
 0x151   : > { %5841 = vmatprep.subr.bf16.mxu1 %v6170_v41 }
 0x152   : > { %1543 = vmatpush1.bf16.msra.mxu0 %v6168_v42 }
 0x153   : > { %1544 = vmatprep.subr.bf16.mxu0 %v6173_v45 }
 0x154   : > { %5857 = vmatpush1.bf16.msra.mxu1 %v6168_v42 }
 0x155   : > { %1375 = vmatmul.mubr.bf16.gmra.mrb[16].mxu0 %v7421_v48  ;;  %5842 = vmatprep.subr.bf16.mxu1 %v6173_v45 }
 0x156   : > { %1545 = vmatpush1.bf16.msra.mxu0 %v6171_v49  ;;  %1384 = vmatprep.mubr.bf16.mxu0 %v7423_v50 }
 0x157   : > { %1546 = vmatprep.subr.bf16.mxu0 %v6176_v52  ;;  %1488 = vmatmul.mubr.bf16.gmra.mrb[16].mxu1 %v7421_v48 }
 0x158   : > { %1497 = vmatprep.mubr.bf16.mxu1 %v7423_v50  ;;  %5858 = vmatpush1.bf16.msra.mxu1 %v6171_v49 }
 0x159   : > { %5843 = vmatprep.subr.bf16.mxu1 %v6176_v52 }
 0x15a   : > { %1547 = vmatpush1.bf16.msra.mxu0 %v6174_v53 }
 0x15b   : > { %1548 = vmatprep.subr.bf16.mxu0 %v6179_v56 }
 0x15c   : > { %5859 = vmatpush1.bf16.msra.mxu1 %v6174_v53 }
 0x15d   : > { %1385 = vmatmul.mubr.bf16.gmra.mrb[20].mxu0 %v7433_v59  ;;  %5844 = vmatprep.subr.bf16.mxu1 %v6179_v56 }
 0x15e   : > { %1549 = vmatpush1.bf16.msra.mxu0 %v6177_v60  ;;  %1394 = vmatprep.mubr.bf16.mxu0 %v7435_v61 }
 0x15f   : > { %1550 = vmatprep.subr.bf16.mxu0 %v6182_v62  ;;  %1498 = vmatmul.mubr.bf16.gmra.mrb[20].mxu1 %v7433_v59 }
 0x160   : > { %1507 = vmatprep.mubr.bf16.mxu1 %v7435_v61  ;;  %5860 = vmatpush1.bf16.msra.mxu1 %v6177_v60 }
 0x161   : > { %5845 = vmatprep.subr.bf16.mxu1 %v6182_v62 }
 0x162   : > { %1551 = vmatpush1.bf16.msra.mxu0 %v6180_v63 }
 0x163   : > { %1552 = vmatprep.subr.bf16.mxu0 %v6185_v2 }
 0x164   : > { %5861 = vmatpush1.bf16.msra.mxu1 %v6180_v63 }
 0x165   : > { %1395 = vmatmul.mubr.bf16.gmra.mrb[24].mxu0 %v690_v5  ;;  %5846 = vmatprep.subr.bf16.mxu1 %v6185_v2 }
 0x166   : > { %1553 = vmatpush1.bf16.msra.mxu0 %v6183_v6  ;;  %1404 = vmatprep.mubr.bf16.mxu0 %v693_v7 }
 0x167   : > { %1554 = vmatprep.subr.bf16.mxu0 %v6188_v9  ;;  %1508 = vmatmul.mubr.bf16.gmra.mrb[24].mxu1 %v690_v5 }
 0x168   : > { %1517 = vmatprep.mubr.bf16.mxu1 %v693_v7  ;;  %5862 = vmatpush1.bf16.msra.mxu1 %v6183_v6 }
 0x169   : > { %5847 = vmatprep.subr.bf16.mxu1 %v6188_v9 }
 0x16a   : > { %1555 = vmatpush1.bf16.msra.mxu0 %v6186_v11 }
 0x16b   : > { %1556 = vmatprep.subr.bf16.mxu0 %v6191_v14 }
 0x16c   : > { %5863 = vmatpush1.bf16.msra.mxu1 %v6186_v11 }
 0x16d   : > { %1405 = vmatmul.mubr.bf16.gmra.mrb[28].mxu0 %v692_v15  ;;  %5848 = vmatprep.subr.bf16.mxu1 %v6191_v14 }
 0x16e   : > { %1557 = vmatpush1.bf16.msra.mxu0 %v6189_v16  ;;  %1560 = vmatprep.mubr.bf16.mxu0 %v7365_v51  ;;  %v792_v51 = vlaneseq }
 0x16f   : > { %1558 = vmatprep.subr.bf16.mxu0 %v6194_v17  ;;  %1518 = vmatmul.mubr.bf16.gmra.mrb[28].mxu1 %v692_v15 }
 0x170   : > { %1590 = vmatprep.mubr.bf16.mxu1 %v7399_v31  ;;  %5864 = vmatpush1.bf16.msra.mxu1 %v6189_v16 }
 0x171   : > { %5849 = vmatprep.subr.bf16.mxu1 %v6194_v17 }
 0x172   : > { %1559 = vmatpush1.bf16.msra.mxu0 %v6192_v19 }
 0x174   : > { %5865 = vmatpush1.bf16.msra.mxu1 %v6192_v19 }
 0x175   : > { %1561 = vmatmul.mubr.bf16.vlgmr.msra.gmra.mrb[32].mxu0 %v7373_v8  ;;  %v7460_v8 = vshrl.u32 %v792_v51, 7 }
 0x176   : > { %1570 = vmatprep.mubr.bf16.mxu0 %v7375_v10 }
 0x177   : > { %1591 = vmatmul.mubr.bf16.vlgmr.msra.gmra.mrb[32].mxu1 %v7409_v38  ;;  %v7463_v10 = vsub.s32 0, %v7460_v8  ;;  %v806_v22 = vsub.s32 3, %v7460_v8 }
 0x178   : > { %1600 = vmatprep.mubr.bf16.mxu1 %v7411_v40 }
 0x179   : > { %9471 = vst [vmem:[#allocation33_spill] sm:$0xff] %v7463_v10  ;;  %v7477_v23 = vrot.slane %v7472_v21, %v7463_v10  ;;  %v7487_v27 = vrot.slane %v7472_v21, %v806_v22 }
 0x17d   : > { %1571 = vmatmul.mubr.bf16.gmra.mrb[36].mxu0 %v7385_v18  ;;  %v7466_v18 = vsub.s32 1, %v7460_v8 }
 0x17e   : > { %1580 = vmatprep.mubr.bf16.mxu0 %v7387_v20  ;;  %v802_v20 = vsub.s32 2, %v7460_v8 }
 0x17f   : > { %1601 = vmatmul.mubr.bf16.gmra.mrb[36].mxu1 %v7421_v48  ;;  %9472 = vst [vmem:[#allocation34_spill] sm:$0xff] %v7466_v18  ;;  %v7481_v24 = vrot.slane %v7472_v21, %v7466_v18 }
 0x180   : > { %1610 = vmatprep.mubr.bf16.mxu1 %v7423_v50  ;;  %v7484_v25 = vrot.slane %v7472_v21, %v802_v20 }
 0x185   : > { %1581 = vmatmul.mubr.bf16.gmra.mrb[40].mxu0 %v7397_v29 }
 0x187   : > { %1611 = vmatmul.mubr.bf16.gmra.mrb[40].mxu1 %v7433_v59 }
 0x188   : > { %1620 = vmatprep.mubr.bf16.mxu1 %v7435_v61 }
 0x18f   : > { %1621 = vmatmul.mubr.bf16.gmra.mrb[44].mxu1 %v690_v5 }
 0x190   : > { %1630 = vmatprep.mubr.bf16.mxu1 %v693_v7 }
 0x197   : > { %1631 = vmatmul.mubr.bf16.gmra.mrb[48].mxu1 %v692_v15 }
 0x208   : > { %v1336_v28 = vpop.f32.mrb[0].mxu0 }
 0x209   : > { %v1449_v26 = vpop.f32.mrb[0].mxu1  ;;  %v1337_v30 = vadd.f32 %v1336_v28, %v7477_v23  ;;  %v1338_v31 = vpop.f32.mrb[1].mxu0 }
 0x20a   : > { %v1451_v29 = vpop.f32.mrb[1].mxu1  ;;  %v7491_v33 = vadd.f32 %v1338_v31, %v7481_v24  ;;  %v1340_v34 = vpop.f32.mrb[2].mxu0  ;;  %v1450_v35 = vadd.f32 %v1449_v26, %v7484_v25 }
 0x20b   : > { %v1453_v32 = vpop.f32.mrb[2].mxu1  ;;  %v1341_v38 = vadd.f32 %v1340_v34, %v7477_v23  ;;  %v1342_v39 = vpop.f32.mrb[3].mxu0  ;;  %v1452_v40 = vadd.f32 %v1451_v29, %v7487_v27 }
 0x20c   : > { %v1454_v36 = vadd.f32 %v1453_v32, %v7484_v25  ;;  %v1455_v37 = vpop.f32.mrb[3].mxu1  ;;  %v7499_v42 = vadd.f32 %v1342_v39, %v7481_v24 }
 0x20d   : > { %v1456_v41 = vadd.f32 %v1455_v37, %v7487_v27  ;;  %v1649_v44 = vpack.c.bf16 %v1341_v38, %v1337_v30  ;;  %v7733_v30 = vld [vmem:[#allocation8 + $0x20] sm:$0xff] }
 0x20e   : > { %v1653_v43 = vpack.c.bf16 %v1454_v36, %v1450_v35 }
 0x20f   : > { %v7501_v45 = vpack.c.bf16 %v1456_v41, %v1452_v40  ;;  %5714 = vmatprep.mubr.bf16.mxu1 %v1649_v44 }
 0x210   : > { %5706 = vmatprep.subr.bf16.mxu1 %v1653_v43  ;;  %v1346_v48 = vpop.f32.mrb[4].mxu0 }
 0x211   : > { %v1459_v47 = vpop.f32.mrb[4].mxu1  ;;  %5707 = vmatpush3.bf16.xpose.msra.mxu1 %v1653_v43  ;;  %v7506_v50 = vadd.f32 %v1346_v48, %v7477_v23  ;;  %v1348_v52 = vpop.f32.mrb[5].mxu0 }
 0x212   : > { %v1461_v49 = vpop.f32.mrb[5].mxu1  ;;  %v7510_v55 = vadd.f32 %v1348_v52, %v7481_v24  ;;  %v1350_v56 = vpop.f32.mrb[6].mxu0  ;;  %v1460_v57 = vadd.f32 %v1459_v47, %v7484_v25 }
 0x213   : > { %v1462_v53 = vadd.f32 %v1461_v49, %v7487_v27  ;;  %v1463_v54 = vpop.f32.mrb[6].mxu1  ;;  %v7515_v60 = vadd.f32 %v1350_v56, %v7477_v23  ;;  %v1352_v61 = vpop.f32.mrb[7].mxu0 }
 0x214   : > { %v1464_v58 = vadd.f32 %v1463_v54, %v7484_v25  ;;  %v1465_v59 = vpop.f32.mrb[7].mxu1  ;;  %v7519_v63 = vadd.f32 %v1352_v61, %v7481_v24 }
 0x215   : > { %v1466_v62 = vadd.f32 %v1465_v59, %v7487_v27  ;;  %v1650_v1 = vpack.c.bf16 %v7515_v60, %v7506_v50 }
 0x216   : > { %v1654_v0 = vpack.c.bf16 %v1464_v58, %v1460_v57 }
 0x217   : > { %v7523_v2 = vpack.c.bf16 %v1466_v62, %v1462_v53 }
 0x218   : > { %5708 = vmatprep.subr.bf16.mxu1 %v1654_v0  ;;  %v1356_v5 = vpop.f32.mrb[8].mxu0 }
 0x219   : > { %v1469_v4 = vpop.f32.mrb[8].mxu1  ;;  %5709 = vmatpush3.bf16.xpose.msra.mxu1 %v1654_v0  ;;  %v1357_v7 = vadd.f32 %v1356_v5, %v7477_v23  ;;  %v1358_v9 = vpop.f32.mrb[9].mxu0 }
 0x21a   : > { %v1471_v6 = vpop.f32.mrb[9].mxu1  ;;  %v7530_v13 = vadd.f32 %v1358_v9, %v7481_v24  ;;  %v1360_v14 = vpop.f32.mrb[10].mxu0  ;;  %v1470_v15 = vadd.f32 %v1469_v4, %v7484_v25 }
 0x21b   : > { %v1472_v11 = vadd.f32 %v1471_v6, %v7487_v27  ;;  %v1473_v12 = vpop.f32.mrb[10].mxu1  ;;  %v1361_v19 = vadd.f32 %v1360_v14, %v7477_v23  ;;  %v1362_v51 = vpop.f32.mrb[11].mxu0 }
 0x21c   : > { %v1474_v16 = vadd.f32 %v1473_v12, %v7484_v25  ;;  %v1475_v17 = vpop.f32.mrb[11].mxu1  ;;  %v7537_v22 = vadd.f32 %v1362_v51, %v7481_v24 }
 0x21d   : > { %v1476_v20 = vadd.f32 %v1475_v17, %v7487_v27  ;;  %v1651_v28 = vpack.c.bf16 %v1361_v19, %v1357_v7 }
 0x21e   : > { %v1655_v26 = vpack.c.bf16 %v1474_v16, %v1470_v15 }
 0x21f   : > { %v7539_v29 = vpack.c.bf16 %v1476_v20, %v1472_v11 }
 0x220   : > { %5710 = vmatprep.subr.bf16.mxu1 %v1655_v26  ;;  %v1366_v32 = vpop.f32.mrb[12].mxu0 }
 0x221   : > { %v1479_v31 = vpop.f32.mrb[12].mxu1  ;;  %5711 = vmatpush3.bf16.xpose.msra.mxu1 %v1655_v26  ;;  %v1367_v35 = vadd.f32 %v1366_v32, %v7477_v23  ;;  %v1368_v36 = vpop.f32.mrb[13].mxu0 }
 0x222   : > { %v1481_v34 = vpop.f32.mrb[13].mxu1  ;;  %v7546_v39 = vadd.f32 %v1368_v36, %v7481_v24  ;;  %v1370_v40 = vpop.f32.mrb[14].mxu0  ;;  %v1480_v41 = vadd.f32 %v1479_v31, %v7484_v25 }
 0x223   : > { %v1482_v37 = vadd.f32 %v1481_v34, %v7487_v27  ;;  %v1483_v38 = vpop.f32.mrb[14].mxu1  ;;  %v1371_v47 = vadd.f32 %v1370_v40, %v7477_v23  ;;  %v1372_v48 = vpop.f32.mrb[15].mxu0 }
 0x224   : > { %v1484_v43 = vadd.f32 %v1483_v38, %v7484_v25  ;;  %v1485_v44 = vpop.f32.mrb[15].mxu1  ;;  %v7553_v52 = vadd.f32 %v1372_v48, %v7481_v24 }
 0x225   : > { %v1486_v49 = vadd.f32 %v1485_v44, %v7487_v27  ;;  %v1652_v54 = vpack.c.bf16 %v1371_v47, %v1367_v35 }
 0x226   : > { %v1656_v53 = vpack.c.bf16 %v1484_v43, %v1480_v41 }
 0x227   : > { %v7555_v56 = vpack.c.bf16 %v1486_v49, %v1482_v37 }
 0x228   : > { %5712 = vmatprep.subr.bf16.mxu1 %v1656_v53  ;;  %v1376_v58 = vpop.f32.mrb[16].mxu0 }
 0x229   : > { %5713 = vmatpush3.bf16.xpose.msra.mxu1 %v1656_v53  ;;  %v7560_v59 = vadd.f32 %v1376_v58, %v7477_v23  ;;  %v1378_v61 = vpop.f32.mrb[17].mxu0 }
 0x22a   : > { %v7563_v62 = vadd.f32 %v1378_v61, %v7481_v24  ;;  %v1380_v0 = vpop.f32.mrb[18].mxu0  ;;  %v1489_v4 = vpop.f32.mrb[16].mxu1 }
 0x22b   : > { %v7566_v5 = vadd.f32 %v1380_v0, %v7477_v23  ;;  %v1382_v6 = vpop.f32.mrb[19].mxu0  ;;  %v1490_v7 = vadd.f32 %v1489_v4, %v7484_v25  ;;  %v1491_v9 = vpop.f32.mrb[17].mxu1 }
 0x22c   : > { %9474 = vst [vmem:[#allocation35_spill] sm:$0xff] %v7563_v62  ;;  %v7570_v11 = vadd.f32 %v1382_v6, %v7481_v24  ;;  %v1492_v12 = vadd.f32 %v1491_v9, %v7487_v27  ;;  %v1493_v14 = vpop.f32.mrb[18].mxu1 }
 0x22d   : > { %v1494_v16 = vadd.f32 %v1493_v14, %v7484_v25  ;;  %v1495_v17 = vpop.f32.mrb[19].mxu1 }
 0x22e   : > { %9475 = vst [vmem:[#allocation36_spill] sm:$0xff] %v7570_v11  ;;  %v1496_v51 = vadd.f32 %v1495_v17, %v7487_v27 }
 0x22f   : > { %v7582_v20 = vpack.c.bf16 %v1494_v16, %v1490_v7 }
 0x230   : > { %5715 = vmatmul.mubr.bf16.vlgmr.msra.gmra.mrb[52].mxu1 %v1650_v1  ;;  %v1386_v26 = vpop.f32.mrb[20].mxu0  ;;  %v7584_v31 = vpack.c.bf16 %v1496_v51, %v1492_v12 }
 0x231   : > { %5718 = vmatprep.mubr.bf16.mxu1 %v1651_v28  ;;  %v7587_v32 = vadd.f32 %v1386_v26, %v7477_v23  ;;  %v1388_v34 = vpop.f32.mrb[21].mxu0 }
 0x232   : > { %v7590_v35 = vadd.f32 %v1388_v34, %v7481_v24  ;;  %v1390_v36 = vpop.f32.mrb[22].mxu0  ;;  %v1499_v37 = vpop.f32.mrb[20].mxu1 }
 0x233   : > { %v7593_v38 = vadd.f32 %v1390_v36, %v7477_v23  ;;  %v1392_v50 = vpop.f32.mrb[23].mxu0  ;;  %v1500_v60 = vadd.f32 %v1499_v37, %v7484_v25  ;;  %v1501_v1 = vpop.f32.mrb[21].mxu1 }
 0x234   : > { %9476 = vst [vmem:[#allocation37_spill] sm:$0xff] %v7590_v35  ;;  %v7597_v28 = vadd.f32 %v1392_v50, %v7481_v24  ;;  %v1502_v40 = vadd.f32 %v1501_v1, %v7487_v27  ;;  %v1503_v41 = vpop.f32.mrb[22].mxu1 }
 0x235   : > { %v1504_v44 = vadd.f32 %v1503_v41, %v7484_v25  ;;  %v1505_v47 = vpop.f32.mrb[23].mxu1 }
 0x236   : > { %9477 = vst [vmem:[#allocation38_spill] sm:$0xff] %v7597_v28  ;;  %v1506_v49 = vadd.f32 %v1505_v47, %v7487_v27 }
 0x237   : > { %v7606_v53 = vpack.c.bf16 %v1504_v44, %v1500_v60 }
 0x238   : > { %5719 = vmatmul.mubr.bf16.gmra.mrb[56].mxu1 %v1652_v54  ;;  %v1396_v58 = vpop.f32.mrb[24].mxu0  ;;  %v7608_v61 = vpack.c.bf16 %v1506_v49, %v1502_v40  ;;  %v810_v49 = vsub.s32 4, %v7460_v8 }
 0x239   : > { %v7611_v0 = vadd.f32 %v1396_v58, %v7477_v23  ;;  %v1398_v4 = vpop.f32.mrb[25].mxu0 }
 0x23a   : > { %9478 = vst [vmem:[#allocation39_spill] sm:$0xff] %v7608_v61  ;;  %v7614_v6 = vadd.f32 %v1398_v4, %v7481_v24  ;;  %v1400_v7 = vpop.f32.mrb[26].mxu0  ;;  %v1509_v9 = vpop.f32.mrb[24].mxu1 }
 0x23b   : > { %v7617_v12 = vadd.f32 %v1400_v7, %v7477_v23  ;;  %v1402_v14 = vpop.f32.mrb[27].mxu0  ;;  %v1510_v54 = vadd.f32 %v1509_v9, %v7484_v25  ;;  %v1511_v16 = vpop.f32.mrb[25].mxu1  ;;  %v814_v7 = vsub.s32 5, %v7460_v8 }
 0x23c   : > { %9479 = vst [vmem:[#allocation40_spill] sm:$0xff] %v7614_v6  ;;  %v7621_v17 = vadd.f32 %v1402_v14, %v7481_v24  ;;  %v1512_v51 = vadd.f32 %v1511_v16, %v7487_v27  ;;  %v1513_v26 = vpop.f32.mrb[26].mxu1 }
 0x23d   : > { %v1514_v36 = vadd.f32 %v1513_v26, %v7484_v25  ;;  %v1515_v37 = vpop.f32.mrb[27].mxu1 }
 0x23e   : > { %9480 = vst [vmem:[#allocation41_spill] sm:$0xff] %v7621_v17  ;;  %v1516_v60 = vadd.f32 %v1515_v37, %v7487_v27 }
 0x23f   : > { %v7630_v1 = vpack.c.bf16 %v1514_v36, %v1510_v54 }
 0x240   : > { %v1406_v40 = vpop.f32.mrb[28].mxu0  ;;  %v7632_v41 = vpack.c.bf16 %v1516_v60, %v1512_v51 }
 0x241   : > { %v7635_v44 = vadd.f32 %v1406_v40, %v7477_v23  ;;  %v1408_v47 = vpop.f32.mrb[29].mxu0  ;;  %v7653_v40 = vrot.slane %v7472_v21, %v810_v49 }
 0x242   : > { %9481 = vst [vmem:[#allocation42_spill] sm:$0xff] %v7632_v41  ;;  %v7639_v58 = vadd.f32 %v1408_v47, %v7481_v24  ;;  %v1410_v4 = vpop.f32.mrb[30].mxu0  ;;  %v1519_v9 = vpop.f32.mrb[28].mxu1 }
 0x243   : > { %v7643_v14 = vadd.f32 %v1410_v4, %v7477_v23  ;;  %v1412_v54 = vpop.f32.mrb[31].mxu0  ;;  %v1520_v16 = vadd.f32 %v1519_v9, %v7484_v25  ;;  %v1521_v51 = vpop.f32.mrb[29].mxu1  ;;  %v7659_v4 = vrot.slane %v7472_v21, %v814_v7 }
 0x244   : > { %9482 = vst [vmem:[#allocation43_spill] sm:$0xff] %v7639_v58  ;;  %v7647_v26 = vadd.f32 %v1412_v54, %v7481_v24  ;;  %v1522_v36 = vadd.f32 %v1521_v51, %v7487_v27  ;;  %v1523_v37 = vpop.f32.mrb[30].mxu1 }
 0x245   : > { %v1524_v8 = vadd.f32 %v1523_v37, %v7484_v25  ;;  %v1525_v23 = vpop.f32.mrb[31].mxu1 }
 0x246   : > { %9483 = vst [vmem:[#allocation44_spill] sm:$0xff] %v7647_v26  ;;  %v1526_v24 = vadd.f32 %v1525_v23, %v7487_v27 }
 0x247   : > { %v7662_v9 = vpack.c.bf16 %v1524_v8, %v1520_v16 }
 0x248   : > { %v1562_v54 = vpop.f32.mrb[32].mxu0  ;;  %v7664_v51 = vpack.c.bf16 %v1526_v24, %v1522_v36 }
 0x249   : > { %v1563_v50 = vadd.f32 %v1562_v54, %v7653_v40  ;;  %v1564_v49 = vpop.f32.mrb[33].mxu0 }
 0x24a   : > { %9484 = vst [vmem:[#allocation45_spill] sm:$0xff] %v7664_v51  ;;  %v1565_v48 = vadd.f32 %v1564_v49, %v7659_v4  ;;  %v1566_v25 = vpop.f32.mrb[34].mxu0  ;;  %v1592_v60 = vpop.f32.mrb[32].mxu1 }
 0x24b   : > { %v1567_v37 = vadd.f32 %v1566_v25, %v7653_v40  ;;  %v1568_v19 = vpop.f32.mrb[35].mxu0  ;;  %v1593_v27 = vadd.f32 %v1592_v60, %v7653_v40  ;;  %v1594_v16 = vpop.f32.mrb[33].mxu1 }
 0x24c   : > { %v1569_v47 = vadd.f32 %v1568_v19, %v7659_v4  ;;  %v1595_v8 = vadd.f32 %v1594_v16, %v7659_v4  ;;  %v1596_v23 = vpop.f32.mrb[34].mxu1 }
 0x24d   : > { %v1657_v21 = vpack.c.bf16 %v1567_v37, %v1563_v50  ;;  %v1597_v49 = vadd.f32 %v1596_v23, %v7653_v40  ;;  %v1598_v19 = vpop.f32.mrb[35].mxu1 }
 0x24e   : > { %v1924_v7 = vpack.c.bf16 %v1569_v47, %v1565_v48  ;;  %v1599_v47 = vadd.f32 %v1598_v19, %v7659_v4 }
 0x24f   : > { %5722 = vmatprep.subr.bf16.mxu1 %v1657_v21  ;;  %v1660_v37 = vpack.c.bf16 %v1597_v49, %v1593_v27 }
 0x250   : > { %v1572_v36 = vpop.f32.mrb[36].mxu0  ;;  %5723 = vmatpush3.bf16.msra.mxu1 %v1657_v21  ;;  %5754 = vmatprep.subr.bf16.mxu0 %v1924_v7  ;;  %v1927_v16 = vpack.c.bf16 %v1599_v47, %v1595_v8 }
 0x251   : > { %v1573_v24 = vadd.f32 %v1572_v36, %v7653_v40  ;;  %v1574_v54 = vpop.f32.mrb[37].mxu0  ;;  %5755 = vmatpush3.bf16.msra.mxu0 %v1924_v7 }
 0x252   : > { %v1575_v48 = vadd.f32 %v1574_v54, %v7659_v4  ;;  %v1576_v50 = vpop.f32.mrb[38].mxu0  ;;  %v1602_v36 = vpop.f32.mrb[36].mxu1 }
 0x253   : > { %v1577_v60 = vadd.f32 %v1576_v50, %v7653_v40  ;;  %v1578_v25 = vpop.f32.mrb[39].mxu0  ;;  %v1603_v23 = vadd.f32 %v1602_v36, %v7653_v40  ;;  %v1604_v7 = vpop.f32.mrb[37].mxu1 }
 0x254   : > { %v1579_v21 = vadd.f32 %v1578_v25, %v7659_v4  ;;  %v1605_v54 = vadd.f32 %v1604_v7, %v7659_v4  ;;  %v1606_v19 = vpop.f32.mrb[38].mxu1 }
 0x255   : > { %v1658_v34 = vpack.c.bf16 %v1577_v60, %v1573_v24  ;;  %v1607_v27 = vadd.f32 %v1606_v19, %v7653_v40  ;;  %v1608_v8 = vpop.f32.mrb[39].mxu1 }
 0x256   : > { %v1925_v43 = vpack.c.bf16 %v1579_v21, %v1575_v48  ;;  %v1609_v48 = vadd.f32 %v1608_v8, %v7659_v4 }
 0x257   : > { %5724 = vmatprep.subr.bf16.mxu1 %v1658_v34 }
 0x258   : > { %v1582_v15 = vpop.f32.mrb[40].mxu0  ;;  %5725 = vmatpush3.bf16.msra.mxu1 %v1658_v34  ;;  %5756 = vmatprep.subr.bf16.mxu0 %v1925_v43  ;;  %v7685_v34 = vpack.c.bf16 %v1607_v27, %v1603_v23  ;;  %v7688_v21 = vpack.c.bf16 %v1609_v48, %v1605_v54 }
 0x259   : > { %v1583_v50 = vadd.f32 %v1582_v15, %v7653_v40  ;;  %v1584_v57 = vpop.f32.mrb[41].mxu0  ;;  %5757 = vmatpush3.bf16.msra.mxu0 %v1925_v43 }
 0x25a   : > { %v1585_v24 = vadd.f32 %v1584_v57, %v7659_v4  ;;  %v1586_v49 = vpop.f32.mrb[42].mxu0  ;;  %v1612_v43 = vpop.f32.mrb[40].mxu1 }
 0x25b   : > { %v1587_v47 = vadd.f32 %v1586_v49, %v7653_v40  ;;  %v1588_v60 = vpop.f32.mrb[43].mxu0  ;;  %v1613_v7 = vadd.f32 %v1612_v43, %v7653_v40  ;;  %v1614_v19 = vpop.f32.mrb[41].mxu1 }
 0x25c   : > { %v1589_v25 = vadd.f32 %v1588_v60, %v7659_v4  ;;  %v1615_v57 = vadd.f32 %v1614_v19, %v7659_v4  ;;  %v1616_v8 = vpop.f32.mrb[42].mxu1 }
 0x25d   : > { %v1659_v15 = vpack.c.bf16 %v1587_v47, %v1583_v50  ;;  %v1617_v23 = vadd.f32 %v1616_v8, %v7653_v40  ;;  %v1618_v27 = vpop.f32.mrb[43].mxu1 }
 0x25e   : > { %v1926_v36 = vpack.c.bf16 %v1589_v25, %v1585_v24  ;;  %v1619_v54 = vadd.f32 %v1618_v27, %v7659_v4 }
 0x25f   : > { %5726 = vmatprep.subr.bf16.mxu1 %v1659_v15  ;;  %v7694_v50 = vpack.c.bf16 %v1617_v23, %v1613_v7 }
 0x260   : > { %5727 = vmatpush3.bf16.msra.mxu1 %v1659_v15  ;;  %5758 = vmatprep.subr.bf16.mxu0 %v1926_v36  ;;  %v7696_v24 = vpack.c.bf16 %v1619_v54, %v1615_v57 }
 0x261   : > { %5728 = vmatprep.subr.bf16.mxu1 %v1660_v37  ;;  %5759 = vmatpush3.bf16.msra.mxu0 %v1926_v36 }
 0x262   : > { %5760 = vmatprep.subr.bf16.mxu0 %v1927_v16  ;;  %v1622_v49 = vpop.f32.mrb[44].mxu1 }
 0x263   : > { %v1623_v48 = vadd.f32 %v1622_v49, %v7653_v40  ;;  %v1624_v47 = vpop.f32.mrb[45].mxu1 }
 0x264   : > { %5729 = vmatpush3.bf16.msra.mxu1 %v1660_v37  ;;  %v1625_v60 = vadd.f32 %v1624_v47, %v7659_v4  ;;  %v1626_v25 = vpop.f32.mrb[46].mxu1 }
 0x265   : > { %5738 = vmatprep.subr.bf16.mxu1 %v7501_v45  ;;  %5761 = vmatpush3.bf16.msra.mxu0 %v1927_v16  ;;  %v1627_v15 = vadd.f32 %v1626_v25, %v7653_v40  ;;  %v1628_v36 = vpop.f32.mrb[47].mxu1 }
 0x266   : > { %5770 = vmatprep.subr.bf16.mxu0 %v7582_v20  ;;  %v1629_v43 = vadd.f32 %v1628_v36, %v7659_v4  ;;  %v7720_v36 = vld [vmem:[#allocation8 + $0x18] sm:$0xff] }
 0x267   : > { %v7704_v37 = vpack.c.bf16 %v1627_v15, %v1623_v48  ;;  %v7716_v48 = vld [vmem:[#allocation8 + $0x10] sm:$0xff] }
 0x268   : > { %v7706_v7 = vpack.c.bf16 %v1629_v43, %v1625_v60  ;;  %v7718_v60 = vld [vmem:[#allocation8] sm:$0xff] }
 0x26a   : > { %9485 = vst [vmem:[#allocation46_spill] sm:$0xff] %v7706_v7  ;;  %v1632_v19 = vpop.f32.mrb[48].mxu1 }
 0x26b   : > { %v1633_v16 = vadd.f32 %v1632_v19, %v7653_v40  ;;  %v1634_v57 = vpop.f32.mrb[49].mxu1 }
 0x26c   : > { %v1635_v8 = vadd.f32 %v1634_v57, %v7659_v4  ;;  %v1636_v23 = vpop.f32.mrb[50].mxu1  ;;  %v7723_v57 = vld [vmem:[#allocation8 + $0x8] sm:$0xff] }
 0x26d   : > { %v1637_v27 = vadd.f32 %v1636_v23, %v7653_v40  ;;  %v1638_v54 = vpop.f32.mrb[51].mxu1 }
 0x26e   : > { %v1639_v49 = vadd.f32 %v1638_v54, %v7659_v4 }
 0x26f   : > { %v7712_v47 = vpack.c.bf16 %v1637_v27, %v1633_v16 }
 0x270   : > { %v7714_v25 = vpack.c.bf16 %v1639_v49, %v1635_v8 }
 0x272   : > { %9486 = vst [vmem:[#allocation47_spill] sm:$0xff] %v7714_v25 }
 0x303   : > { %v5716_v15 = vpop.f32.mrb[52].mxu1 }
 0x304   : > { %v1704_v43 = vadd.f32 %v5716_v15, %v7716_v48  ;;  %v1695_v19 = vpop.f32.mrb[53].mxu1  ;;  %v7731_v15 = vld [vmem:[#allocation8 + $0x30] sm:$0xff] }
 0x305   : > { %v1696_v40 = vadd.f32 %v1695_v19, %v7718_v60  ;;  %v5717_v4 = vpop.f32.mrb[54].mxu1 }
 0x306   : > { %v1733_v16 = vsel %vm1726_vm0, %v1704_v43, -inf  ;;  %v1707_v8 = vadd.f32 %v5717_v4, %v7720_v36  ;;  %v1698_v23 = vpop.f32.mrb[55].mxu1  ;;  %v7736_v4 = vld [vmem:[#allocation8 + $0x38] sm:$0xff] }
 0x307   : > { %1734 = vmax.xlane.f32.xlu1 %v1733_v16  ;;  %v1699_v27 = vadd.f32 %v1698_v23, %v7723_v57  ;;  %v1727_v54 = vsel %vm1726_vm0, %v1696_v40, -inf  ;;  %v7738_v16 = vld [vmem:[#allocation8 + $0x28] sm:$0xff] }
 0x308   : > { %1728 = vmax.xlane.f32.xlu0 %v1727_v54  ;;  %v1736_v49 = vsel %vm1726_vm0, %v1707_v8, -inf }
 0x309   : > { %v1730_v3 = vsel %vm1726_vm0, %v1699_v27, -inf }
 0x30b   : > { %1737 = vmax.xlane.f32.xlu1 %v1736_v49  ;;  %v5720_v19 = vpop.f32.mrb[56].mxu1 }
 0x30c   : > { %v1711_v46 = vpop.f32.mrb[57].mxu1  ;;  %1731 = vmax.xlane.f32.xlu0 %v1730_v3  ;;  %v1720_v23 = vadd.f32 %v5720_v19, %v7731_v15 }
 0x30d   : > { %v1712_v54 = vadd.f32 %v1711_v46, %v7733_v30  ;;  %v5721_v18 = vpop.f32.mrb[58].mxu1 }
 0x30e   : > { %v1714_v10 = vpop.f32.mrb[59].mxu1  ;;  %v1723_v58 = vadd.f32 %v5721_v18, %v7736_v4  ;;  %v1745_v3 = vsel %vm1726_vm0, %v1720_v23, -inf }
 0x30f   : > { %v1715_v26 = vadd.f32 %v1714_v10, %v7738_v16  ;;  %v1739_v49 = vsel %vm1726_vm0, %v1712_v54, -inf }
 0x310   : > { %1740 = vmax.xlane.f32.xlu0 %v1739_v49  ;;  %v1748_v17 = vsel %vm1726_vm0, %v1723_v58, -inf }
 0x311   : > { %v1742_v6 = vsel %vm1726_vm0, %v1715_v26, -inf }
 0x312   : > { %1743 = vmax.xlane.f32.xlu1 %v1742_v6 }
 0x314   : > { %1746 = vmax.xlane.f32.xlu0 %v1745_v3 }
 0x316   : > { %1749 = vmax.xlane.f32.xlu1 %v1748_v17 }
 0x394   : > { %v1735_v19 = vpop.xlane.xlu1 %1734 }
 0x395   : > { %v1753_v46 = vsub.f32 %v1704_v43, %v1735_v19  ;;  %v1729_v35 = vpop.xlane.xlu0 %1728 }
 0x396   : > { %v1751_v28 = vsub.f32 %v1696_v40, %v1729_v35 }
 0x397   : > { %v1763_v51 = vmul.f32 1.442695, %v1753_v46 }
 0x398   : > { %v1759_v18 = vmul.f32 1.442695, %v1751_v28  ;;  %v1738_v41 = vpop.xlane.xlu1 %1737 }
 0x399   : > { %v1754_v10 = vsub.f32 %v1707_v8, %v1738_v41  ;;  %v1732_v62 = vpop.xlane.xlu0 %1731 }
 0x39a   : > { %6243 = vpow2.f32 %v1759_v18  ;;  %v1752_v49 = vsub.f32 %v1699_v27, %v1732_v62 }
 0x39b   : > { %6245 = vpow2.f32 %v1763_v51  ;;  %v1765_v11 = vmul.f32 1.442695, %v1754_v10 }
 0x39c   : > { %v1761_v61 = vmul.f32 1.442695, %v1752_v49 }
 0x39d   : > { %v1741_v25 = vpop.xlane.xlu0 %1740 }
 0x39e   : > { %6247 = vpow2.f32 %v1761_v61  ;;  %v1755_v6 = vsub.f32 %v1712_v54, %v1741_v25 }
 0x39f   : > { %v1744_v7 = vpop.xlane.xlu1 %1743  ;;  %6249 = vpow2.f32 %v1765_v11 }
 0x3a0   : > { %v1767_v17 = vmul.f32 1.442695, %v1755_v6  ;;  %v1756_v3 = vsub.f32 %v1715_v26, %v1744_v7 }
 0x3a1   : > { %v1747_v43 = vpop.xlane.xlu0 %1746 }
 0x3a2   : > { %6251 = vpow2.f32 %v1767_v17  ;;  %v1769_v35 = vmul.f32 1.442695, %v1756_v3  ;;  %v1757_v40 = vsub.f32 %v1720_v23, %v1747_v43 }
 0x3a3   : > { %v1750_v28 = vpop.xlane.xlu1 %1749 }
 0x3a4   : > { %v6244_v19 = vpop.eup %6243  ;;  %6253 = vpow2.f32 %v1769_v35  ;;  %v1771_v41 = vmul.f32 1.442695, %v1757_v40  ;;  %v1758_v8 = vsub.f32 %v1723_v58, %v1750_v28 }
 0x3a5   : > { %v1775_v62 = vsel %vm1726_vm0, %v6244_v19, 0.0  ;;  %v6246_v51 = vpop.eup %6245 }
 0x3a6   : > { %6255 = vpow2.f32 %v1771_v41  ;;  %v1773_v27 = vmul.f32 1.442695, %v1758_v8  ;;  %1776 = vadd.xlane.f32.xlu0 %v1775_v62  ;;  %v1781_v11 = vsel %vm1726_vm0, %v6246_v51, 0.0 }
 0x3a8   : > { %v6248_v61 = vpop.eup %6247  ;;  %6257 = vpow2.f32 %v1773_v27 }
 0x3a9   : > { %v1778_v26 = vsel %vm1726_vm0, %v6248_v61, 0.0  ;;  %v6250_v7 = vpop.eup %6249 }
 0x3aa   : > { %1782 = vadd.xlane.f32.xlu0 %v1781_v11  ;;  %1779 = vadd.xlane.f32.xlu1 %v1778_v26  ;;  %v1784_v23 = vsel %vm1726_vm0, %v6250_v7, 0.0 }
 0x3ac   : > { %v6252_v25 = vpop.eup %6251 }
 0x3ad   : > { %v1787_v58 = vsel %vm1726_vm0, %v6252_v25, 0.0 }
 0x3ae   : > { %v6254_v54 = vpop.eup %6253  ;;  %1785 = vadd.xlane.f32.xlu1 %v1784_v23  ;;  %1788 = vadd.xlane.f32.xlu0 %v1787_v58 }
 0x3af   : > { %v1790_v18 = vsel %vm1726_vm0, %v6254_v54, 0.0 }
 0x3b0   : > { %v6256_v46 = vpop.eup %6255 }
 0x3b1   : > { %v1793_v10 = vsel %vm1726_vm0, %v6256_v46, 0.0 }
 0x3b2   : > { %v6258_v49 = vpop.eup %6257  ;;  %1791 = vadd.xlane.f32.xlu1 %v1790_v18  ;;  %1794 = vadd.xlane.f32.xlu0 %v1793_v10 }
 0x3b3   : > { %v1796_v6 = vsel %vm1726_vm0, %v6258_v49, 0.0 }
 0x3b6   : > { %1797 = vadd.xlane.f32.xlu1 %v1796_v6 }
 0x433   : > { %v1777_v17 = vpop.xlane.xlu0 %1776 }
 0x434   : > { %6259 = vrcp.f32 %v1777_v17 }
 0x437   : > { %v1780_v3 = vpop.xlane.xlu1 %1779  ;;  %v1783_v43 = vpop.xlane.xlu0 %1782 }
 0x438   : > { %6261 = vrcp.f32 %v1780_v3 }
 0x439   : > { %6263 = vrcp.f32 %v1783_v43 }
 0x43b   : > { %v1786_v35 = vpop.xlane.xlu1 %1785  ;;  %v1789_v40 = vpop.xlane.xlu0 %1788 }
 0x43c   : > { %6265 = vrcp.f32 %v1786_v35 }
 0x43d   : > { %6267 = vrcp.f32 %v1789_v40 }
 0x43e   : > { %v6260_v8 = vpop.eup %6259 }
 0x43f   : > { %v1792_v28 = vpop.xlane.xlu1 %1791  ;;  %v1795_v41 = vpop.xlane.xlu0 %1794  ;;  %v1807_v11 = vmul.f32 %v6260_v8, %v6244_v19 }
 0x440   : > { %6269 = vrcp.f32 %v1792_v28 }
 0x441   : > { %6271 = vrcp.f32 %v1795_v41 }
 0x442   : > { %v6262_v62 = vpop.eup %6261 }
 0x443   : > { %v1798_v27 = vpop.xlane.xlu1 %1797  ;;  %v1808_v26 = vmul.f32 %v6262_v62, %v6248_v61  ;;  %v6264_v23 = vpop.eup %6263 }
 0x444   : > { %6273 = vrcp.f32 %v1798_v27  ;;  %v1809_v10 = vmul.f32 %v6264_v23, %v6246_v51 }
 0x445   : > { %v1815_v58 = vpack.c.bf16 %v1808_v26, %v1807_v11 }
 0x446   : > { %v6266_v18 = vpop.eup %6265 }
 0x447   : > { %v1810_v6 = vmul.f32 %v6266_v18, %v6250_v7  ;;  %5730 = vmatprep.mubr.msk.bf16.mxu1 %vm1726_vm0, %v1815_v58  ;;  %v6268_v17 = vpop.eup %6267 }
 0x448   : > { %v1811_v35 = vmul.f32 %v6268_v17, %v6252_v25  ;;  %v9487_v25 = vpack.c.bf16 %v7499_v42, %v7491_v33  ;;  %v9490_v33 = vpack.c.bf16 %v7553_v52, %v7546_v39 }
 0x449   : > { %v1816_v3 = vpack.c.bf16 %v1810_v6, %v1809_v10 }
 0x44a   : > { %v6270_v43 = vpop.eup %6269 }
 0x44b   : > { %5731 = vmatmul.mubr.msk.bf16.vlgmr.msra.gmra.mrb[60].mxu1 %vm1726_vm0, %v1816_v3  ;;  %v1812_v40 = vmul.f32 %v6270_v43, %v6254_v54  ;;  %v6272_v28 = vpop.eup %6271  ;;  %v9489_v54 = vpack.c.bf16 %v7537_v22, %v7530_v13 }
 0x44c   : > { %5739 = vmatpush3.bf16.xpose.msra.mxu1 %v7501_v45  ;;  %v1813_v51 = vmul.f32 %v6272_v28, %v6256_v46  ;;  %v9488_v45 = vpack.c.bf16 %v7519_v63, %v7510_v55 }
 0x44d   : > { %5740 = vmatprep.subr.bf16.mxu1 %v7523_v2  ;;  %v1817_v19 = vpack.c.bf16 %v1812_v40, %v1811_v35 }
 0x44e   : > { %v6274_v61 = vpop.eup %6273 }
 0x44f   : > { %5734 = vmatprep.mubr.msk.bf16.mxu1 %vm1726_vm0, %v1817_v19  ;;  %v1814_v7 = vmul.f32 %v6274_v61, %v6258_v49 }
 0x451   : > { %v1818_v41 = vpack.c.bf16 %v1814_v7, %v1813_v51 }
 0x453   : > { %5735 = vmatmul.mubr.msk.bf16.gmra.mrb[64].mxu1 %vm1726_vm0, %v1818_v41 }
 0x454   : > { %5741 = vmatpush3.bf16.xpose.msra.mxu1 %v7523_v2  ;;  %5746 = vmatprep.mubr.bf16.mxu1 %v9487_v25 }
 0x455   : > { %5742 = vmatprep.subr.bf16.mxu1 %v7539_v29 }
 0x45c   : > { %5743 = vmatpush3.bf16.xpose.msra.mxu1 %v7539_v29 }
 0x45d   : > { %5744 = vmatprep.subr.bf16.mxu1 %v7555_v56 }
 0x464   : > { %5745 = vmatpush3.bf16.xpose.msra.mxu1 %v7555_v56 }
 0x46b   : > { %5747 = vmatmul.mubr.bf16.vlgmr.msra.gmra.mrb[68].mxu1 %v9488_v45 }
 0x46c   : > { %5750 = vmatprep.mubr.bf16.mxu1 %v9489_v54 }
 0x473   : > { %5751 = vmatmul.mubr.bf16.gmra.mrb[72].mxu1 %v9490_v33 }
 0x51e   : > { %v7779_v42 = vpop.f32.mrb[60].mxu1 }
 0x51f   : > { %v7781_v2 = vpop.f32.mrb[61].mxu1 }
 0x520   : > { %v7783_v29 = vpop.f32.mrb[62].mxu1 }
 0x521   : > { %v7787_v46 = vpop.f32.mrb[63].mxu1 }
 0x526   : > { %v7791_v63 = vpop.f32.mrb[64].mxu1 }
 0x527   : > { %v7793_v13 = vpop.f32.mrb[65].mxu1 }
 0x528   : > { %v7795_v22 = vpop.f32.mrb[66].mxu1 }
 0x529   : > { %v7799_v52 = vpop.f32.mrb[67].mxu1 }
 0x53e   : > { %v5748_v8 = vpop.f32.mrb[68].mxu1 }
 0x53f   : > { %v1962_v62 = vpop.f32.mrb[69].mxu1  ;;  %v1971_v23 = vadd.f32 %v5748_v8, %v7716_v48 }
 0x540   : > { %v1963_v27 = vadd.f32 %v1962_v62, %v7718_v60  ;;  %v5749_v11 = vpop.f32.mrb[70].mxu1 }
 0x541   : > { %v1965_v26 = vpop.f32.mrb[71].mxu1  ;;  %v1974_v10 = vadd.f32 %v5749_v11, %v7720_v36  ;;  %v1999_v3 = vsel %vm1726_vm0, %v1971_v23, -inf }
 0x542   : > { %v1966_v58 = vadd.f32 %v1965_v26, %v7723_v57  ;;  %v1993_v18 = vsel %vm1726_vm0, %v1963_v27, -inf }
 0x543   : > { %1994 = vmax.xlane.f32.xlu0 %v1993_v18  ;;  %v2002_v28 = vsel %vm1726_vm0, %v1974_v10, -inf }
 0x544   : > { %v1996_v6 = vsel %vm1726_vm0, %v1966_v58, -inf }
 0x545   : > { %1997 = vmax.xlane.f32.xlu1 %v1996_v6 }
 0x546   : > { %v5752_v17 = vpop.f32.mrb[72].mxu1 }
 0x547   : > { %v1978_v43 = vpop.f32.mrb[73].mxu1  ;;  %2000 = vmax.xlane.f32.xlu0 %v1999_v3  ;;  %v1987_v61 = vadd.f32 %v5752_v17, %v7731_v15 }
 0x548   : > { %v1979_v35 = vadd.f32 %v1978_v43, %v7733_v30  ;;  %v5753_v40 = vpop.f32.mrb[74].mxu1 }
 0x549   : > { %v1981_v19 = vpop.f32.mrb[75].mxu1  ;;  %2003 = vmax.xlane.f32.xlu1 %v2002_v28  ;;  %v1990_v41 = vadd.f32 %v5753_v40, %v7736_v4  ;;  %v2011_v45 = vsel %vm1726_vm0, %v1987_v61, -inf }
 0x54a   : > { %v1982_v51 = vadd.f32 %v1981_v19, %v7738_v16  ;;  %v2005_v7 = vsel %vm1726_vm0, %v1979_v35, -inf }
 0x54b   : > { %2006 = vmax.xlane.f32.xlu0 %v2005_v7  ;;  %v2014_v54 = vsel %vm1726_vm0, %v1990_v41, -inf }
 0x54c   : > { %v2008_v25 = vsel %vm1726_vm0, %v1982_v51, -inf }
 0x54d   : > { %2009 = vmax.xlane.f32.xlu1 %v2008_v25 }
 0x54f   : > { %2012 = vmax.xlane.f32.xlu0 %v2011_v45 }
 0x551   : > { %2015 = vmax.xlane.f32.xlu1 %v2014_v54 }
 0x5d0   : > { %v1995_v33 = vpop.xlane.xlu0 %1994 }
 0x5d1   : > { %v2017_v8 = vsub.f32 %v1963_v27, %v1995_v33 }
 0x5d2   : > { %v1998_v62 = vpop.xlane.xlu1 %1997 }
 0x5d3   : > { %v2025_v11 = vmul.f32 1.442695, %v2017_v8  ;;  %v2018_v26 = vsub.f32 %v1966_v58, %v1998_v62 }
 0x5d4   : > { %v2001_v18 = vpop.xlane.xlu0 %2000 }
 0x5d5   : > { %6275 = vpow2.f32 %v2025_v11  ;;  %v2027_v6 = vmul.f32 1.442695, %v2018_v26  ;;  %v2019_v17 = vsub.f32 %v1971_v23, %v2001_v18 }
 0x5d6   : > { %v2004_v3 = vpop.xlane.xlu1 %2003 }
 0x5d7   : > { %6277 = vpow2.f32 %v2027_v6  ;;  %v2029_v43 = vmul.f32 1.442695, %v2019_v17  ;;  %v2020_v40 = vsub.f32 %v1974_v10, %v2004_v3 }
 0x5d8   : > { %v2007_v28 = vpop.xlane.xlu0 %2006 }
 0x5d9   : > { %6279 = vpow2.f32 %v2029_v43  ;;  %v2031_v19 = vmul.f32 1.442695, %v2020_v40  ;;  %v2021_v7 = vsub.f32 %v1979_v35, %v2007_v28 }
 0x5da   : > { %v2010_v25 = vpop.xlane.xlu1 %2009 }
 0x5db   : > { %6281 = vpow2.f32 %v2031_v19  ;;  %v2033_v45 = vmul.f32 1.442695, %v2021_v7  ;;  %v2022_v54 = vsub.f32 %v1982_v51, %v2010_v25 }
 0x5dc   : > { %v2013_v27 = vpop.xlane.xlu0 %2012 }
 0x5dd   : > { %6283 = vpow2.f32 %v2033_v45  ;;  %v2035_v33 = vmul.f32 1.442695, %v2022_v54  ;;  %v2023_v58 = vsub.f32 %v1987_v61, %v2013_v27  ;;  %v7851_v45 = vld [vmem:[#allocation11 + $0x80] ss:$8 sps:$4 sm:$0xff]   ;;  %v7853_v54 = vld [vmem:[#allocation11 + $0x84] ss:$8 sps:$4 sm:$0xff]  }
 0x5de   : > { %v2016_v8 = vpop.xlane.xlu1 %2015  ;;  %v7855_v27 = vld [vmem:[#allocation11 + $0x94] ss:$8 sps:$4 sm:$0xff]   ;;  %2263 = vmatprep.subr.bf16.mxu1 %v7853_v54 }
 0x5df   : > { %v7819_v62 = vpop.eup %6275  ;;  %6285 = vpow2.f32 %v2035_v33  ;;  %v2037_v23 = vmul.f32 1.442695, %v2023_v58  ;;  %v2024_v11 = vsub.f32 %v1990_v41, %v2016_v8  ;;  %2264 = vmatpush1.bf16.msra.mxu1 %v7851_v45  ;;  %v7859_v33 = vld [vmem:[#allocation11 + $0x90] ss:$8 sps:$4 sm:$0xff]   ;;  %v7862_v58 = vld [vmem:[#allocation11 + $0xa4] ss:$8 sps:$4 sm:$0xff]  }
 0x5e0   : > { %v2041_v10 = vsel %vm1726_vm0, %v7819_v62, 0.0  ;;  %2265 = vmatprep.subr.bf16.mxu1 %v7855_v27  ;;  %v7865_v8 = vld [vmem:[#allocation11 + $0xa0] ss:$8 sps:$4 sm:$0xff]  }
 0x5e1   : > { %v7823_v26 = vpop.eup %6277  ;;  %6287 = vpow2.f32 %v2037_v23  ;;  %v2039_v35 = vmul.f32 1.442695, %v2024_v11  ;;  %2042 = vadd.xlane.f32.xlu0 %v2041_v10  ;;  %v7868_v23 = vld [vmem:[#allocation11 + $0xb4] ss:$8 sps:$4 sm:$0xff]   ;;  %v7871_v11 = vld [vmem:[#allocation11 + $0xb0] ss:$8 sps:$4 sm:$0xff]  }
 0x5e2   : > { %v2044_v51 = vsel %vm1726_vm0, %v7823_v26, 0.0  ;;  %9491 = vst [vmem:[#allocation48_spill] sm:$0xff] %v7871_v11  ;;  %v7874_v10 = vld [vmem:[#allocation11 + $0xc4] ss:$8 sps:$4 sm:$0xff]  }
 0x5e3   : > { %v7827_v18 = vpop.eup %6279  ;;  %6289 = vpow2.f32 %v2039_v35  ;;  %2045 = vadd.xlane.f32.xlu1 %v2044_v51  ;;  %2266 = vmatpush1.bf16.msra.mxu1 %v7859_v33  ;;  %9492 = vst [vmem:[#allocation49_spill] sm:$0xff] %v7874_v10  ;;  %v7877_v35 = vld [vmem:[#allocation11 + $0xc0] ss:$8 sps:$4 sm:$0xff]   ;;  %v7880_v51 = vld [vmem:[#allocation11 + $0xd4] ss:$8 sps:$4 sm:$0xff]  }
 0x5e4   : > { %v2047_v61 = vsel %vm1726_vm0, %v7827_v18, 0.0  ;;  %2267 = vmatprep.subr.bf16.mxu1 %v7862_v58  ;;  %9493 = vst [vmem:[#allocation50_spill] sm:$0xff] %v7877_v35  ;;  %9494 = vst [vmem:[#allocation51_spill] sm:$0xff] %v7880_v51 }
 0x5e5   : > { %v7831_v6 = vpop.eup %6281  ;;  %2048 = vadd.xlane.f32.xlu0 %v2047_v61  ;;  %v7883_v61 = vld [vmem:[#allocation11 + $0xd0] ss:$8 sps:$4 sm:$0xff]  }
 0x5e6   : > { %v2050_v41 = vsel %vm1726_vm0, %v7831_v6, 0.0  ;;  %9495 = vst [vmem:[#allocation52_spill] sm:$0xff] %v7883_v61 }
 0x5e7   : > { %v7835_v17 = vpop.eup %6283  ;;  %2051 = vadd.xlane.f32.xlu1 %v2050_v41  ;;  %2268 = vmatpush1.bf16.msra.mxu1 %v7865_v8  ;;  %v7886_v41 = vld [vmem:[#allocation11 + $0xe4] ss:$8 sps:$4 sm:$0xff]  }
 0x5e8   : > { %v2053_v3 = vsel %vm1726_vm0, %v7835_v17, 0.0  ;;  %2269 = vmatprep.subr.bf16.mxu1 %v7868_v23  ;;  %9496 = vst [vmem:[#allocation53_spill] sm:$0xff] %v7886_v41 }
 0x5e9   : > { %v7839_v43 = vpop.eup %6285  ;;  %2054 = vadd.xlane.f32.xlu0 %v2053_v3  ;;  %v7889_v3 = vld [vmem:[#allocation11 + $0xe0] ss:$8 sps:$4 sm:$0xff]  }
 0x5ea   : > { %v2056_v40 = vsel %vm1726_vm0, %v7839_v43, 0.0  ;;  %9497 = vst [vmem:[#allocation54_spill] sm:$0xff] %v7889_v3 }
 0x5eb   : > { %v7843_v28 = vpop.eup %6287  ;;  %2057 = vadd.xlane.f32.xlu1 %v2056_v40  ;;  %2270 = vmatpush1.bf16.msra.mxu1 %v7871_v11 }
 0x5ec   : > { %v2059_v19 = vsel %vm1726_vm0, %v7843_v28, 0.0  ;;  %2271 = vmatprep.subr.bf16.mxu1 %v7874_v10 }
 0x5ed   : > { %v7847_v7 = vpop.eup %6289  ;;  %2060 = vadd.xlane.f32.xlu0 %v2059_v19 }
 0x5ee   : > { %v2062_v25 = vsel %vm1726_vm0, %v7847_v7, 0.0 }
 0x5ef   : > { %2063 = vadd.xlane.f32.xlu1 %v2062_v25  ;;  %2272 = vmatpush1.bf16.msra.mxu1 %v7877_v35 }
 0x5f0   : > { %2273 = vmatprep.subr.bf16.mxu1 %v7880_v51 }
 0x5f3   : > { %2274 = vmatpush1.bf16.msra.mxu1 %v7883_v61 }
 0x5f4   : > { %2275 = vmatprep.subr.bf16.mxu1 %v7886_v41 }
 0x5f7   : > { %2276 = vmatpush1.bf16.msra.mxu1 %v7889_v3 }
 0x66e   : > { %v2043_v40 = vpop.xlane.xlu0 %2042 }
 0x66f   : > { %6291 = vrcp.f32 %v2043_v40 }
 0x670   : > { %v2046_v19 = vpop.xlane.xlu1 %2045 }
 0x671   : > { %6293 = vrcp.f32 %v2046_v19 }
 0x672   : > { %v2049_v25 = vpop.xlane.xlu0 %2048 }
 0x673   : > { %6295 = vrcp.f32 %v2049_v25 }
 0x674   : > { %v2052_v39 = vpop.xlane.xlu1 %2051 }
 0x675   : > { %6297 = vrcp.f32 %v2052_v39 }
 0x676   : > { %v2055_v49 = vpop.xlane.xlu0 %2054 }
 0x677   : > { %6299 = vrcp.f32 %v2055_v49 }
 0x678   : > { %v2058_v56 = vpop.xlane.xlu1 %2057 }
 0x679   : > { %v6292_v55 = vpop.eup %6291  ;;  %6301 = vrcp.f32 %v2058_v56 }
 0x67a   : > { %v2061_v61 = vpop.xlane.xlu0 %2060  ;;  %v2073_v41 = vmul.f32 %v6292_v55, %v7819_v62 }
 0x67b   : > { %v6294_v51 = vpop.eup %6293  ;;  %6303 = vrcp.f32 %v2061_v61 }
 0x67c   : > { %v2064_v35 = vpop.xlane.xlu1 %2063  ;;  %v2074_v3 = vmul.f32 %v6294_v51, %v7823_v26 }
 0x67d   : > { %v6296_v40 = vpop.eup %6295  ;;  %6305 = vrcp.f32 %v2064_v35 }
 0x67e   : > { %v2081_v19 = vpack.c.bf16 %v2074_v3, %v2073_v41  ;;  %v2075_v25 = vmul.f32 %v6296_v40, %v7827_v18  ;;  %v7955_v3 = vld [vmem:[#allocation11 + $0x20] ss:$8 sps:$4 sm:$0xff]  }
 0x67f   : > { %v6298_v10 = vpop.eup %6297 }
 0x680   : > { %v2076_v39 = vmul.f32 %v6298_v10, %v7831_v6  ;;  %5762 = vmatprep.mubr.msk.bf16.mxu0 %vm1726_vm0, %v2081_v19  ;;  %v7958_v19 = vld [vmem:[#allocation11 + $0x34] ss:$8 sps:$4 sm:$0xff]  }
 0x681   : > { %v6300_v49 = vpop.eup %6299 }
 0x682   : > { %v2082_v56 = vpack.c.bf16 %v2076_v39, %v2075_v25  ;;  %v2077_v61 = vmul.f32 %v6300_v49, %v7835_v17  ;;  %v9498_v17 = vpack.c.bf16 %v7566_v5, %v7560_v59  ;;  %v9501_v59 = vpack.c.bf16 %v7643_v14, %v7635_v44  ;;  %v7933_v5 = vld [vmem:[#allocation11 + $0xf4] ss:$8 sps:$4 sm:$0xff]   ;;  %v7961_v25 = vld [vmem:[#allocation11 + $0x30] ss:$8 sps:$4 sm:$0xff]   ;;  %v7965_v39 = vld [vmem:[#allocation11 + $0x44] ss:$8 sps:$4 sm:$0xff]  }
 0x683   : > { %v6302_v11 = vpop.eup %6301  ;;  %2277 = vmatprep.subr.bf16.mxu1 %v7933_v5  ;;  %v7968_v49 = vld [vmem:[#allocation11 + $0x40] ss:$8 sps:$4 sm:$0xff]  }
 0x684   : > { %5763 = vmatmul.mubr.msk.bf16.vlgmr.msra.gmra.mrb[44].mxu0 %vm1726_vm0, %v2082_v56  ;;  %v2078_v55 = vmul.f32 %v6302_v11, %v7839_v43  ;;  %v7971_v56 = vld [vmem:[#allocation11 + $0x54] ss:$8 sps:$4 sm:$0xff]  }
 0x685   : > { %v6304_v62 = vpop.eup %6303  ;;  %5771 = vmatpush3.bf16.xpose.msra.mxu0 %v7582_v20  ;;  %v9499_v20 = vpack.c.bf16 %v7593_v38, %v7587_v32  ;;  %v7935_v32 = vld [vmem:[#allocation11 + $0xf0] ss:$8 sps:$4 sm:$0xff]   ;;  %v7939_v38 = vld [vmem:[#allocation11 + $0x4] ss:$8 sps:$4 sm:$0xff]  }
 0x686   : > { %5772 = vmatprep.subr.bf16.mxu0 %v7606_v53  ;;  %v2083_v26 = vpack.c.bf16 %v2078_v55, %v2077_v61  ;;  %v2079_v6 = vmul.f32 %v6304_v62, %v7843_v28  ;;  %2278 = vmatpush1.bf16.msra.mxu1 %v7935_v32  ;;  %v7952_v28 = vld [vmem:[#allocation11 + $0x24] ss:$8 sps:$4 sm:$0xff]   ;;  %v7974_v61 = vld [vmem:[#allocation11 + $0x50] ss:$8 sps:$4 sm:$0xff]   ;;  %v7981_v62 = vld [vmem:[#allocation11 + $0x60] ss:$8 sps:$4 sm:$0xff]  }
 0x687   : > { %v6306_v18 = vpop.eup %6305  ;;  %2416 = vmatprep.subr.bf16.mxu1 %v7939_v38  ;;  %v7978_v55 = vld [vmem:[#allocation11 + $0x64] ss:$8 sps:$4 sm:$0xff]  }
 0x688   : > { %5766 = vmatprep.mubr.msk.bf16.mxu0 %vm1726_vm0, %v2083_v26  ;;  %v2080_v10 = vmul.f32 %v6306_v18, %v7847_v7  ;;  %v7984_v26 = vld [vmem:[#allocation11 + $0x74] ss:$8 sps:$4 sm:$0xff]   ;;  %v7987_v18 = vld [vmem:[#allocation11 + $0x70] ss:$8 sps:$4 sm:$0xff]  }
 0x689   : > { %9502 = vst [vmem:[#allocation55_spill] sm:$0xff] %v7984_v26  ;;  %9503 = vst [vmem:[#allocation56_spill] sm:$0xff] %v7987_v18 }
 0x68a   : > { %v2084_v35 = vpack.c.bf16 %v2080_v10, %v2079_v6 }
 0x68c   : > { %5767 = vmatmul.mubr.msk.bf16.gmra.mrb[48].mxu0 %vm1726_vm0, %v2084_v35 }
 0x68d   : > { %5773 = vmatpush3.bf16.xpose.msra.mxu0 %v7606_v53  ;;  %5778 = vmatprep.mubr.bf16.mxu0 %v9498_v17  ;;  %v9500_v53 = vpack.c.bf16 %v7617_v12, %v7611_v0  ;;  %v9411_v0 = vmov 0  }
 0x68e   : > { %5774 = vmatprep.subr.bf16.mxu0 %v7630_v1  ;;  %2295 = vmatprep.mubr.bf16.mxu1 %v9411_v0 }
 0x695   : > { %5775 = vmatpush3.bf16.xpose.msra.mxu0 %v7630_v1 }
 0x696   : > { %5776 = vmatprep.subr.bf16.mxu0 %v7662_v9 }
 0x69d   : > { %5777 = vmatpush3.bf16.xpose.msra.mxu0 %v7662_v9 }
 0x69e   : > { %5786 = vmatprep.subr.bf16.mxu0 %v7685_v34 }
 0x6a4   : > { %5779 = vmatmul.mubr.bf16.vlgmr.msra.gmra.mrb[52].mxu0 %v9499_v20 }
 0x6a5   : > { %5782 = vmatprep.mubr.bf16.mxu0 %v9500_v53  ;;  %5787 = vmatpush3.bf16.msra.mxu0 %v7685_v34  ;;  %v7943_v34 = vld [vmem:[#allocation11] ss:$8 sps:$4 sm:$0xff]  }
 0x6a6   : > { %5788 = vmatprep.subr.bf16.mxu0 %v7694_v50 }
 0x6a9   : > { %5789 = vmatpush3.bf16.msra.mxu0 %v7694_v50 }
 0x6aa   : > { %5790 = vmatprep.subr.bf16.mxu0 %v7704_v37 }
 0x6ac   : > { %5783 = vmatmul.mubr.bf16.gmra.mrb[56].mxu0 %v9501_v59 }
 0x6ad   : > { %5791 = vmatpush3.bf16.msra.mxu0 %v7704_v37  ;;  %v7945_v37 = vld [vmem:[#allocation11 + $0x14] ss:$8 sps:$4 sm:$0xff]  }
 0x6ae   : > { %5792 = vmatprep.subr.bf16.mxu0 %v7712_v47 }
 0x6b1   : > { %5793 = vmatpush3.bf16.msra.mxu0 %v7712_v47  ;;  %v7948_v47 = vld [vmem:[#allocation11 + $0x10] ss:$8 sps:$4 sm:$0xff]  }
 0x6b2   : > { %5802 = vmatprep.subr.bf16.mxu0 %v7584_v31 }
 0x757   : > { %v5764_v12 = vpop.f32.mrb[44].mxu0 }
 0x758   : > { %v2131_v1 = vpop.f32.mrb[45].mxu0 }
 0x759   : > { %v5765_v44 = vpop.f32.mrb[46].mxu0 }
 0x75a   : > { %v2163_v14 = vpack.c.bf16 %v5765_v44, %v5764_v12  ;;  %v2134_v9 = vpop.f32.mrb[47].mxu0 }
 0x75b   : > { %v2162_v50 = vpack.c.bf16 %v2134_v9, %v2131_v1 }
 0x75d   : > { %2296 = vmatmul.mubr.bf16.vlgmr.msra.gmra.mrb[76].mxu1 %v2162_v50 }
 0x75e   : > { %2417 = vmatpush1.bf16.msra.mxu1 %v7943_v34  ;;  %2305 = vmatprep.mubr.bf16.mxu1 %v9411_v0 }
 0x75f   : > { %v5768_v43 = vpop.f32.mrb[48].mxu0  ;;  %2418 = vmatprep.subr.bf16.mxu1 %v7945_v37 }
 0x760   : > { %v2147_v7 = vpop.f32.mrb[49].mxu0 }
 0x761   : > { %v5769_v11 = vpop.f32.mrb[50].mxu0 }
 0x762   : > { %v2165_v51 = vpack.c.bf16 %v5769_v11, %v5768_v43  ;;  %2419 = vmatpush1.bf16.msra.mxu1 %v7948_v47  ;;  %v2150_v41 = vpop.f32.mrb[51].mxu0 }
 0x763   : > { %v2164_v40 = vpack.c.bf16 %v2150_v41, %v2147_v7  ;;  %2420 = vmatprep.subr.bf16.mxu1 %v7952_v28 }
 0x765   : > { %2306 = vmatmul.mubr.bf16.gmra.mrb[80].mxu1 %v2163_v14 }
 0x766   : > { %2421 = vmatpush1.bf16.msra.mxu1 %v7955_v3  ;;  %2315 = vmatprep.mubr.bf16.mxu1 %v9411_v0 }
 0x767   : > { %2422 = vmatprep.subr.bf16.mxu1 %v7958_v19 }
 0x76a   : > { %2423 = vmatpush1.bf16.msra.mxu1 %v7961_v25 }
 0x76b   : > { %2424 = vmatprep.subr.bf16.mxu1 %v7965_v39 }
 0x76d   : > { %2316 = vmatmul.mubr.bf16.gmra.mrb[84].mxu1 %v2164_v40 }
 0x76e   : > { %2425 = vmatpush1.bf16.msra.mxu1 %v7968_v49  ;;  %2325 = vmatprep.mubr.bf16.mxu1 %v9411_v0 }
 0x76f   : > { %2426 = vmatprep.subr.bf16.mxu1 %v7971_v56 }
 0x772   : > { %2427 = vmatpush1.bf16.msra.mxu1 %v7974_v61 }
 0x773   : > { %2428 = vmatprep.subr.bf16.mxu1 %v7978_v55 }
 0x775   : > { %2326 = vmatmul.mubr.bf16.gmra.mrb[88].mxu1 %v2165_v51  ;;  %v9506_v51 = vpack.c.bf16 %v7783_v29, %v7779_v42  ;;  %v9509_v42 = vpack.c.bf16 %v7795_v22, %v7791_v63 }
 0x776   : > { %2429 = vmatpush1.bf16.msra.mxu1 %v7981_v62  ;;  %2448 = vmatprep.mubr.bf16.mxu1 %v9411_v0 }
 0x777   : > { %v5780_v6 = vpop.f32.mrb[52].mxu0  ;;  %2430 = vmatprep.subr.bf16.mxu1 %v7984_v26 }
 0x778   : > { %v2796_v10 = vpop.f32.mrb[53].mxu0  ;;  %v2805_v53 = vadd.f32 %v5780_v6, %v7716_v48 }
 0x779   : > { %v2797_v35 = vadd.f32 %v2796_v10, %v7718_v60  ;;  %v5781_v17 = vpop.f32.mrb[54].mxu0  ;;  %v9504_v60 = vpack.c.bf16 %v7787_v46, %v7781_v2  ;;  %v9505_v46 = vld [vmem:[#allocation46_spill] sm:$0xff] }
 0x77a   : > { %2431 = vmatpush1.bf16.msra.mxu1 %v7987_v18  ;;  %v2799_v20 = vpop.f32.mrb[55].mxu0  ;;  %v2808_v1 = vadd.f32 %v5781_v17, %v7720_v36  ;;  %v2833_v48 = vsel %vm1726_vm0, %v2805_v53, -inf }
 0x77b   : > { %v2800_v59 = vadd.f32 %v2799_v20, %v7723_v57  ;;  %5818 = vmatprep.subr.bf16.mxu1 %v7688_v21  ;;  %v2827_v12 = vsel %vm1726_vm0, %v2797_v35, -inf }
 0x77c   : > { %2828 = vmax.xlane.f32.xlu0 %v2827_v12  ;;  %v2836_v50 = vsel %vm1726_vm0, %v2808_v1, -inf }
 0x77d   : > { %v2830_v44 = vsel %vm1726_vm0, %v2800_v59, -inf  ;;  %2449 = vmatmul.mubr.bf16.vlgmr.msra.gmra.mrb[76].mxu1 %v9504_v60 }
 0x77e   : > { %2831 = vmax.xlane.f32.xlu1 %v2830_v44  ;;  %5819 = vmatpush3.bf16.msra.mxu1 %v7688_v21 }
 0x77f   : > { %v5784_v14 = vpop.f32.mrb[56].mxu0  ;;  %5820 = vmatprep.subr.bf16.mxu1 %v7696_v24  ;;  %2458 = vmatprep.mubr.bf16.mxu1 %v9411_v0 }
 0x780   : > { %v2812_v57 = vpop.f32.mrb[57].mxu0  ;;  %2834 = vmax.xlane.f32.xlu0 %v2833_v48  ;;  %v2821_v21 = vadd.f32 %v5784_v14, %v7731_v15 }
 0x781   : > { %v2813_v36 = vadd.f32 %v2812_v57, %v7733_v30  ;;  %v5785_v9 = vpop.f32.mrb[58].mxu0 }
 0x782   : > { %v2815_v43 = vpop.f32.mrb[59].mxu0  ;;  %2837 = vmax.xlane.f32.xlu1 %v2836_v50  ;;  %5821 = vmatpush3.bf16.msra.mxu1 %v7696_v24  ;;  %v2824_v11 = vadd.f32 %v5785_v9, %v7736_v4  ;;  %v9507_v24 = vld [vmem:[#allocation47_spill] sm:$0xff]  ;;  %v2845_v15 = vsel %vm1726_vm0, %v2821_v21, -inf  ;;  %v9508_v4 = vpack.c.bf16 %v7799_v52, %v7793_v13 }
 0x783   : > { %v2816_v2 = vadd.f32 %v2815_v43, %v7738_v16  ;;  %5822 = vmatprep.subr.bf16.mxu1 %v9505_v46  ;;  %v2839_v7 = vsel %vm1726_vm0, %v2813_v36, -inf }
 0x784   : > { %2840 = vmax.xlane.f32.xlu0 %v2839_v7  ;;  %v2848_v16 = vsel %vm1726_vm0, %v2824_v11, -inf }
 0x785   : > { %v2842_v30 = vsel %vm1726_vm0, %v2816_v2, -inf  ;;  %2459 = vmatmul.mubr.bf16.gmra.mrb[80].mxu1 %v9506_v51 }
 0x786   : > { %2843 = vmax.xlane.f32.xlu1 %v2842_v30  ;;  %5823 = vmatpush3.bf16.msra.mxu1 %v9505_v46 }
 0x787   : > { %5824 = vmatprep.subr.bf16.mxu1 %v9507_v24  ;;  %2468 = vmatprep.mubr.bf16.mxu1 %v9411_v0 }
 0x788   : > { %2846 = vmax.xlane.f32.xlu0 %v2845_v15 }
 0x78a   : > { %2849 = vmax.xlane.f32.xlu1 %v2848_v16  ;;  %5825 = vmatpush3.bf16.msra.mxu1 %v9507_v24 }
 0x78d   : > { %2469 = vmatmul.mubr.bf16.gmra.mrb[84].mxu1 %v9508_v4 }
 0x78e   : > { %2478 = vmatprep.mubr.bf16.mxu1 %v9411_v0 }
 0x795   : > { %2479 = vmatmul.mubr.bf16.gmra.mrb[88].mxu1 %v9509_v42 }
 0x809   : > { %v2829_v29 = vpop.xlane.xlu0 %2828 }
 0x80a   : > { %v2851_v41 = vsub.f32 %v2797_v35, %v2829_v29 }
 0x80b   : > { %v2832_v40 = vpop.xlane.xlu1 %2831 }
 0x80c   : > { %v2859_v6 = vmul.f32 1.442695, %v2851_v41  ;;  %v2852_v10 = vsub.f32 %v2800_v59, %v2832_v40 }
 0x80d   : > { %v2835_v17 = vpop.xlane.xlu0 %2834 }
 0x80e   : > { %6307 = vpow2.f32 %v2859_v6  ;;  %v2861_v20 = vmul.f32 1.442695, %v2852_v10  ;;  %v2853_v12 = vsub.f32 %v2805_v53, %v2835_v17 }
 0x80f   : > { %v2838_v44 = vpop.xlane.xlu1 %2837 }
 0x810   : > { %6309 = vpow2.f32 %v2861_v20  ;;  %v2863_v60 = vmul.f32 1.442695, %v2853_v12  ;;  %v2854_v13 = vsub.f32 %v2808_v1, %v2838_v44 }
 0x811   : > { %v2841_v52 = vpop.xlane.xlu0 %2840 }
 0x812   : > { %6311 = vpow2.f32 %v2863_v60  ;;  %v2865_v14 = vmul.f32 1.442695, %v2854_v13  ;;  %v2855_v48 = vsub.f32 %v2813_v36, %v2841_v52 }
 0x813   : > { %v2844_v57 = vpop.xlane.xlu1 %2843 }
 0x814   : > { %6313 = vpow2.f32 %v2865_v14  ;;  %v2867_v63 = vmul.f32 1.442695, %v2855_v48  ;;  %v2856_v22 = vsub.f32 %v2816_v2, %v2844_v57 }
 0x815   : > { %v2847_v35 = vpop.xlane.xlu0 %2846 }
 0x816   : > { %6315 = vpow2.f32 %v2867_v63  ;;  %v2869_v9 = vmul.f32 1.442695, %v2856_v22  ;;  %v2857_v59 = vsub.f32 %v2821_v21, %v2847_v35 }
 0x817   : > { %v2850_v50 = vpop.xlane.xlu1 %2849 }
 0x818   : > { %v8031_v43 = vpop.eup %6307  ;;  %6317 = vpow2.f32 %v2869_v9  ;;  %v2871_v53 = vmul.f32 1.442695, %v2857_v59  ;;  %v2858_v46 = vsub.f32 %v2824_v11, %v2850_v50 }
 0x819   : > { %v2875_v1 = vsel %vm1726_vm0, %v8031_v43, 0.0 }
 0x81a   : > { %v6310_v7 = vpop.eup %6309  ;;  %6319 = vpow2.f32 %v2871_v53  ;;  %v2873_v36 = vmul.f32 1.442695, %v2858_v46  ;;  %2876 = vadd.xlane.f32.xlu0 %v2875_v1 }
 0x81b   : > { %v2878_v30 = vsel %vm1726_vm0, %v6310_v7, 0.0 }
 0x81c   : > { %v6312_v2 = vpop.eup %6311  ;;  %6321 = vpow2.f32 %v2873_v36  ;;  %2879 = vadd.xlane.f32.xlu1 %v2878_v30 }
 0x81d   : > { %v2881_v21 = vsel %vm1726_vm0, %v6312_v2, 0.0 }
 0x81e   : > { %v6314_v51 = vpop.eup %6313  ;;  %2882 = vadd.xlane.f32.xlu0 %v2881_v21 }
 0x81f   : > { %v2884_v24 = vsel %vm1726_vm0, %v6314_v51, 0.0 }
 0x820   : > { %v6316_v15 = vpop.eup %6315  ;;  %2885 = vadd.xlane.f32.xlu1 %v2884_v24 }
 0x821   : > { %v2887_v11 = vsel %vm1726_vm0, %v6316_v15, 0.0 }
 0x822   : > { %v6318_v16 = vpop.eup %6317  ;;  %2888 = vadd.xlane.f32.xlu0 %v2887_v11 }
 0x823   : > { %v2890_v4 = vsel %vm1726_vm0, %v6318_v16, 0.0 }
 0x824   : > { %v6320_v42 = vpop.eup %6319  ;;  %2891 = vadd.xlane.f32.xlu1 %v2890_v4 }
 0x825   : > { %v2893_v29 = vsel %vm1726_vm0, %v6320_v42, 0.0 }
 0x826   : > { %v6322_v41 = vpop.eup %6321  ;;  %2894 = vadd.xlane.f32.xlu0 %v2893_v29 }
 0x827   : > { %v2896_v40 = vsel %vm1726_vm0, %v6322_v41, 0.0 }
 0x828   : > { %2897 = vadd.xlane.f32.xlu1 %v2896_v40 }
 0x850   : > { %v8042_v6 = vpop.f32.mrb[76].mxu1 }
 0x851   : > { %v8044_v10 = vpop.f32.mrb[77].mxu1 }
 0x852   : > { %v8046_v17 = vpop.f32.mrb[78].mxu1 }
 0x853   : > { %v8048_v20 = vpop.f32.mrb[79].mxu1 }
 0x858   : > { %v8050_v12 = vpop.f32.mrb[80].mxu1 }
 0x859   : > { %v8052_v44 = vpop.f32.mrb[81].mxu1 }
 0x85a   : > { %v8054_v60 = vpop.f32.mrb[82].mxu1 }
 0x85b   : > { %v8056_v13 = vpop.f32.mrb[83].mxu1 }
 0x860   : > { %v8058_v52 = vpop.f32.mrb[84].mxu1 }
 0x861   : > { %v8060_v14 = vpop.f32.mrb[85].mxu1 }
 0x862   : > { %v8062_v48 = vpop.f32.mrb[86].mxu1 }
 0x863   : > { %v8064_v57 = vpop.f32.mrb[87].mxu1 }
 0x868   : > { %v8066_v63 = vpop.f32.mrb[88].mxu1 }
 0x869   : > { %v8068_v22 = vpop.f32.mrb[89].mxu1 }
 0x86a   : > { %v8070_v35 = vpop.f32.mrb[90].mxu1 }
 0x86b   : > { %v8072_v9 = vpop.f32.mrb[91].mxu1 }
 0x8a7   : > { %v2877_v59 = vpop.xlane.xlu0 %2876 }
 0x8a8   : > { %6323 = vrcp.f32 %v2877_v59 }
 0x8a9   : > { %v2880_v50 = vpop.xlane.xlu1 %2879 }
 0x8aa   : > { %6325 = vrcp.f32 %v2880_v50 }
 0x8ab   : > { %v2883_v53 = vpop.xlane.xlu0 %2882 }
 0x8ac   : > { %6327 = vrcp.f32 %v2883_v53 }
 0x8ad   : > { %v2886_v46 = vpop.xlane.xlu1 %2885 }
 0x8ae   : > { %6329 = vrcp.f32 %v2886_v46 }
 0x8af   : > { %v2889_v1 = vpop.xlane.xlu0 %2888 }
 0x8b0   : > { %6331 = vrcp.f32 %v2889_v1 }
 0x8b1   : > { %v2892_v36 = vpop.xlane.xlu1 %2891 }
 0x8b2   : > { %v6324_v30 = vpop.eup %6323  ;;  %6333 = vrcp.f32 %v2892_v36 }
 0x8b3   : > { %v2895_v21 = vpop.xlane.xlu0 %2894  ;;  %v2907_v4 = vmul.f32 %v6324_v30, %v8031_v43  ;;  %v9510_v43 = vld [vmem:[#allocation39_spill] sm:$0xff] }
 0x8b4   : > { %v6326_v24 = vpop.eup %6325  ;;  %6335 = vrcp.f32 %v2895_v21 }
 0x8b5   : > { %v2898_v11 = vpop.xlane.xlu1 %2897  ;;  %v2908_v29 = vmul.f32 %v6326_v24, %v6310_v7 }
 0x8b6   : > { %v6328_v40 = vpop.eup %6327  ;;  %6337 = vrcp.f32 %v2898_v11  ;;  %v9512_v11 = vld [vmem:[#allocation35_spill] sm:$0xff] }
 0x8b7   : > { %v2915_v59 = vpack.c.bf16 %v2908_v29, %v2907_v4  ;;  %v2909_v0 = vmul.f32 %v6328_v40, %v6312_v2  ;;  %v9520_v4 = vld [vmem:[#allocation40_spill] sm:$0xff] }
 0x8b8   : > { %v6330_v50 = vpop.eup %6329  ;;  %v9522_v40 = vld [vmem:[#allocation44_spill] sm:$0xff] }
 0x8b9   : > { %v2910_v53 = vmul.f32 %v6330_v50, %v6314_v51  ;;  %5794 = vmatprep.mubr.msk.bf16.mxu0 %vm1726_vm0, %v2915_v59  ;;  %v9523_v59 = vld [vmem:[#allocation43_spill] sm:$0xff] }
 0x8ba   : > { %v6332_v46 = vpop.eup %6331  ;;  %v9524_v50 = vpack.c.bf16 %v9522_v40, %v9523_v59 }
 0x8bb   : > { %v2916_v1 = vpack.c.bf16 %v2910_v53, %v2909_v0  ;;  %v2911_v36 = vmul.f32 %v6332_v46, %v6316_v15  ;;  %v9511_v0 = vld [vmem:[#allocation36_spill] sm:$0xff]  ;;  %v9527_v46 = vld [vmem:[#allocation49_spill] sm:$0xff] }
 0x8bc   : > { %v6334_v18 = vpop.eup %6333  ;;  %v9513_v15 = vpack.c.bf16 %v9511_v0, %v9512_v11  ;;  %v9526_v53 = vld [vmem:[#allocation48_spill] sm:$0xff]  ;;  %v6403_v11 = vld [vmem:[#allocation8] sm:$0xff] }
 0x8bd   : > { %5795 = vmatmul.mubr.msk.bf16.vlgmr.msra.gmra.mrb[60].mxu0 %vm1726_vm0, %v2916_v1  ;;  %v2912_v26 = vmul.f32 %v6334_v18, %v6318_v16  ;;  %v9514_v18 = vld [vmem:[#allocation42_spill] sm:$0xff]  ;;  %v9517_v16 = vld [vmem:[#allocation37_spill] sm:$0xff] }
 0x8be   : > { %v6336_v21 = vpop.eup %6335  ;;  %5803 = vmatpush3.bf16.xpose.msra.mxu0 %v7584_v31  ;;  %v9515_v31 = vld [vmem:[#allocation45_spill] sm:$0xff]  ;;  %v9532_v1 = vld [vmem:[#allocation54_spill] sm:$0xff] }
 0x8bf   : > { %5804 = vmatprep.subr.bf16.mxu0 %v9510_v43  ;;  %v2917_v7 = vpack.c.bf16 %v2912_v26, %v2911_v36  ;;  %v2913_v2 = vmul.f32 %v6336_v21, %v6320_v42  ;;  %v9516_v26 = vld [vmem:[#allocation38_spill] sm:$0xff] }
 0x8c0   : > { %v6338_v30 = vpop.eup %6337  ;;  %v9518_v42 = vpack.c.bf16 %v9516_v26, %v9517_v16  ;;  %v6404_v26 = vld [vmem:[#allocation8 + $0x10] sm:$0xff] }
 0x8c1   : > { %5798 = vmatprep.mubr.msk.bf16.mxu0 %vm1726_vm0, %v2917_v7  ;;  %v2914_v51 = vmul.f32 %v6338_v30, %v6322_v41  ;;  %v9519_v41 = vld [vmem:[#allocation41_spill] sm:$0xff] }
 0x8c2   : > { %v9521_v29 = vpack.c.bf16 %v9519_v41, %v9520_v4 }
 0x8c3   : > { %v2918_v24 = vpack.c.bf16 %v2914_v51, %v2913_v2 }
 0x8c5   : > { %5799 = vmatmul.mubr.msk.bf16.gmra.mrb[64].mxu0 %vm1726_vm0, %v2918_v24 }
 0x8c6   : > { %5805 = vmatpush3.bf16.xpose.msra.mxu0 %v9510_v43  ;;  %5810 = vmatprep.mubr.bf16.mxu0 %v9513_v15 }
 0x8c7   : > { %5806 = vmatprep.subr.bf16.mxu0 %v9514_v18 }
 0x8ce   : > { %5807 = vmatpush3.bf16.xpose.msra.mxu0 %v9514_v18 }
 0x8cf   : > { %5808 = vmatprep.subr.bf16.mxu0 %v9515_v31 }
 0x8d6   : > { %5809 = vmatpush3.bf16.xpose.msra.mxu0 %v9515_v31 }
 0x8d7   : > { %3362 = vmatprep.subr.bf16.mxu0 %v7853_v54  ;;  %v9525_v54 = vmov 0  }
 0x8dd   : > { %5811 = vmatmul.mubr.bf16.vlgmr.msra.gmra.mrb[68].mxu0 %v9518_v42  ;;  %v6405_v42 = vld [vmem:[#allocation8 + $0x8] sm:$0xff] }
 0x8de   : > { %5814 = vmatprep.mubr.bf16.mxu0 %v9521_v29  ;;  %3363 = vmatpush1.bf16.msra.mxu0 %v7851_v45  ;;  %v9528_v45 = vld [vmem:[#allocation50_spill] sm:$0xff]  ;;  %v6406_v29 = vld [vmem:[#allocation8 + $0x18] sm:$0xff] }
 0x8df   : > { %3364 = vmatprep.subr.bf16.mxu0 %v7855_v27  ;;  %v9529_v27 = vld [vmem:[#allocation51_spill] sm:$0xff] }
 0x8e2   : > { %3365 = vmatpush1.bf16.msra.mxu0 %v7859_v33  ;;  %v9530_v33 = vld [vmem:[#allocation52_spill] sm:$0xff] }
 0x8e3   : > { %3366 = vmatprep.subr.bf16.mxu0 %v7862_v58  ;;  %v9531_v58 = vld [vmem:[#allocation53_spill] sm:$0xff] }
 0x8e5   : > { %5815 = vmatmul.mubr.bf16.gmra.mrb[72].mxu0 %v9524_v50 }
 0x8e6   : > { %3367 = vmatpush1.bf16.msra.mxu0 %v7865_v8  ;;  %3394 = vmatprep.mubr.bf16.mxu0 %v9525_v54 }
 0x8e7   : > { %3368 = vmatprep.subr.bf16.mxu0 %v7868_v23 }
 0x8ea   : > { %3369 = vmatpush1.bf16.msra.mxu0 %v9526_v53 }
 0x8eb   : > { %3370 = vmatprep.subr.bf16.mxu0 %v9527_v46 }
 0x8ee   : > { %3371 = vmatpush1.bf16.msra.mxu0 %v9528_v45  ;;  %v6407_v45 = vld [vmem:[#allocation8 + $0x20] sm:$0xff] }
 0x8ef   : > { %3372 = vmatprep.subr.bf16.mxu0 %v9529_v27 }
 0x8f2   : > { %3373 = vmatpush1.bf16.msra.mxu0 %v9530_v33 }
 0x8f3   : > { %3374 = vmatprep.subr.bf16.mxu0 %v9531_v58 }
 0x8f6   : > { %3375 = vmatpush1.bf16.msra.mxu0 %v9532_v1 }
 0x8f7   : > { %3376 = vmatprep.subr.bf16.mxu0 %v7933_v5 }
 0x8fa   : > { %3377 = vmatpush1.bf16.msra.mxu0 %v7935_v32 }
 0x8fb   : > { %3515 = vmatprep.subr.bf16.mxu0 %v7939_v38 }
 0x990   : > { %v8116_v8 = vpop.f32.mrb[60].mxu0 }
 0x991   : > { %v8118_v23 = vpop.f32.mrb[61].mxu0 }
 0x992   : > { %v8120_v36 = vpop.f32.mrb[62].mxu0 }
 0x993   : > { %v8124_v43 = vpop.f32.mrb[63].mxu0 }
 0x994   : > { %v2996_v7 = vpack.c.bf16 %v8124_v43, %v8118_v23 }
 0x998   : > { %v8128_v30 = vpop.f32.mrb[64].mxu0 }
 0x999   : > { %v8130_v5 = vpop.f32.mrb[65].mxu0 }
 0x99a   : > { %v8132_v32 = vpop.f32.mrb[66].mxu0 }
 0x99b   : > { %v8136_v2 = vpop.f32.mrb[67].mxu0 }
 0x9b0   : > { %v5812_v24 = vpop.f32.mrb[68].mxu0 }
 0x9b1   : > { %v3062_v0 = vpop.f32.mrb[69].mxu0  ;;  %v3071_v16 = vadd.f32 %v6404_v26, %v5812_v24  ;;  %v6408_v24 = vld [vmem:[#allocation8 + $0x30] sm:$0xff]  ;;  %v6410_v26 = vld [vmem:[#allocation8 + $0x38] sm:$0xff] }
 0x9b2   : > { %v3063_v15 = vadd.f32 %v6403_v11, %v3062_v0  ;;  %v5813_v18 = vpop.f32.mrb[70].mxu0  ;;  %v6409_v11 = vld [vmem:[#allocation8 + $0x28] sm:$0xff] }
 0x9b3   : > { %v3065_v31 = vpop.f32.mrb[71].mxu0  ;;  %v3074_v40 = vadd.f32 %v6406_v29, %v5813_v18  ;;  %v3099_v53 = vsel %vm1726_vm0, %v3071_v16, -inf }
 0x9b4   : > { %v3066_v41 = vadd.f32 %v6405_v42, %v3065_v31  ;;  %v3093_v4 = vsel %vm1726_vm0, %v3063_v15, -inf }
 0x9b5   : > { %3094 = vmax.xlane.f32.xlu0 %v3093_v4  ;;  %v3102_v58 = vsel %vm1726_vm0, %v3074_v40, -inf }
 0x9b6   : > { %v3096_v59 = vsel %vm1726_vm0, %v3066_v41, -inf }
 0x9b7   : > { %3097 = vmax.xlane.f32.xlu1 %v3096_v59 }
 0x9b8   : > { %v5816_v50 = vpop.f32.mrb[72].mxu0 }
 0x9b9   : > { %v3078_v46 = vpop.f32.mrb[73].mxu0  ;;  %3100 = vmax.xlane.f32.xlu0 %v3099_v53  ;;  %v3087_v0 = vadd.f32 %v6408_v24, %v5816_v50 }
 0x9ba   : > { %v3079_v27 = vadd.f32 %v6407_v45, %v3078_v46  ;;  %v5817_v33 = vpop.f32.mrb[74].mxu0 }
 0x9bb   : > { %v3081_v1 = vpop.f32.mrb[75].mxu0  ;;  %3103 = vmax.xlane.f32.xlu1 %v3102_v58  ;;  %v3090_v42 = vadd.f32 %v6410_v26, %v5817_v33  ;;  %v3111_v29 = vsel %vm1726_vm0, %v3087_v0, -inf }
 0x9bc   : > { %v3082_v31 = vadd.f32 %v6409_v11, %v3081_v1  ;;  %v3105_v18 = vsel %vm1726_vm0, %v3079_v27, -inf }
 0x9bd   : > { %3106 = vmax.xlane.f32.xlu0 %v3105_v18  ;;  %v3114_v59 = vsel %vm1726_vm0, %v3090_v42, -inf }
 0x9be   : > { %v3108_v4 = vsel %vm1726_vm0, %v3082_v31, -inf }
 0x9bf   : > { %3109 = vmax.xlane.f32.xlu1 %v3108_v4 }
 0x9c1   : > { %3112 = vmax.xlane.f32.xlu0 %v3111_v29 }
 0x9c3   : > { %3115 = vmax.xlane.f32.xlu1 %v3114_v59 }
 0xa42   : > { %v3095_v53 = vpop.xlane.xlu0 %3094 }
 0xa43   : > { %v3117_v46 = vsub.f32 %v3063_v15, %v3095_v53 }
 0xa44   : > { %v3098_v45 = vpop.xlane.xlu1 %3097 }
 0xa45   : > { %v3125_v50 = vmul.f32 1.442695, %v3117_v46  ;;  %v3118_v58 = vsub.f32 %v3066_v41, %v3098_v45 }
 0xa46   : > { %v3101_v1 = vpop.xlane.xlu0 %3100 }
 0xa47   : > { %6339 = vpow2.f32 %v3125_v50  ;;  %v3127_v24 = vmul.f32 1.442695, %v3118_v58  ;;  %v3119_v11 = vsub.f32 %v3071_v16, %v3101_v1 }
 0xa48   : > { %v3104_v18 = vpop.xlane.xlu1 %3103 }
 0xa49   : > { %6341 = vpow2.f32 %v3127_v24  ;;  %v3129_v33 = vmul.f32 1.442695, %v3119_v11  ;;  %v3120_v26 = vsub.f32 %v3074_v40, %v3104_v18  ;;  %v6411_v24 = vld [vmem:[%s7330_s24] sm:$0xff] }
 0xa4a   : > { %v3107_v4 = vpop.xlane.xlu0 %3106  ;;  %v2489_v11 = vadd.f32 %v6411_v24, %v8042_v6  ;;  %v9534_v18 = vld [vmem:[#allocation33_spill] sm:$0xff] }
 0xa4b   : > { %6343 = vpow2.f32 %v3129_v33  ;;  %v3131_v38 = vmul.f32 1.442695, %v3120_v26  ;;  %v3121_v29 = vsub.f32 %v3079_v27, %v3107_v4  ;;  %v2505_v27 = vld [vmem:[%s9533_s0] sm:$0x3]  ;;  %v6412_v26 = vld [vmem:[%s7330_s24 + $0x8] sm:$0xff] }
 0xa4c   : > { %v3110_v51 = vpop.xlane.xlu1 %3109  ;;  %v8172_v33 = vrot.slane %v2505_v27, %v9534_v18  ;;  %v2490_v4 = vadd.f32 %v6412_v26, %v8044_v10 }
 0xa4d   : > { %6345 = vpow2.f32 %v3131_v38  ;;  %v3133_v59 = vmul.f32 1.442695, %v3121_v29  ;;  %v3122_v21 = vsub.f32 %v3082_v31, %v3110_v51  ;;  %v9535_v29 = vld [vmem:[#allocation34_spill] sm:$0xff] }
 0xa4e   : > { %v3113_v15 = vpop.xlane.xlu0 %3112 }
 0xa4f   : > { %6347 = vpow2.f32 %v3133_v59  ;;  %v3135_v53 = vmul.f32 1.442695, %v3122_v21  ;;  %v3123_v41 = vsub.f32 %v3087_v0, %v3113_v15  ;;  %v8177_v59 = vrot.slane %v2505_v27, %v9535_v29 }
 0xa50   : > { %v3116_v46 = vpop.xlane.xlu1 %3115 }
 0xa51   : > { %v8148_v45 = vpop.eup %6339  ;;  %6349 = vpow2.f32 %v3135_v53  ;;  %v3137_v16 = vmul.f32 1.442695, %v3123_v41  ;;  %v3124_v50 = vsub.f32 %v3090_v42, %v3116_v46  ;;  %v6413_v41 = vld [vmem:[%s7330_s24 + $0x10] sm:$0xff]  ;;  %v6414_v46 = vld [vmem:[%s7330_s24 + $0x18] sm:$0xff] }
 0xa52   : > { %v3141_v40 = vsel %vm1726_vm0, %v8148_v45, 0.0  ;;  %v2491_v6 = vadd.f32 %v6413_v41, %v8046_v17  ;;  %v8199_v17 = vadd.f32 %v8177_v59, %v2490_v4  ;;  %v6419_v41 = vld [vmem:[%s7330_s24 + $0x40] sm:$0xff] }
 0xa53   : > { %v8152_v58 = vpop.eup %6341  ;;  %6351 = vpow2.f32 %v3137_v16  ;;  %v3139_v38 = vmul.f32 1.442695, %v3124_v50  ;;  %3142 = vadd.xlane.f32.xlu0 %v3141_v40  ;;  %v2492_v16 = vadd.f32 %v6414_v46, %v8048_v20  ;;  %v6415_v50 = vld [vmem:[%s7330_s24 + $0x20] sm:$0xff]  ;;  %v6416_v40 = vld [vmem:[%s7330_s24 + $0x28] sm:$0xff]  ;;  %v6417_v20 = vld [vmem:[%s7330_s24 + $0x30] sm:$0xff]  ;;  %v2497_v46 = vadd.f32 %v6419_v41, %v8058_v52 }
 0xa54   : > { %v3144_v21 = vsel %vm1726_vm0, %v8152_v58, 0.0  ;;  %v2493_v10 = vadd.f32 %v6415_v50, %v8050_v12  ;;  %v2495_v12 = vadd.f32 %v6417_v20, %v8054_v60  ;;  %v6422_v52 = vld [vmem:[%s7330_s24 + $0x58] sm:$0xff] }
 0xa55   : > { %v8156_v51 = vpop.eup %6343  ;;  %6353 = vpow2.f32 %v3139_v38  ;;  %3145 = vadd.xlane.f32.xlu1 %v3144_v21  ;;  %v2494_v38 = vadd.f32 %v6416_v40, %v8052_v44  ;;  %v8213_v4 = vadd.f32 %v8177_v59, %v2492_v16  ;;  %v2500_v20 = vadd.f32 %v6422_v52, %v8064_v57 }
 0xa56   : > { %v3147_v0 = vsel %vm1726_vm0, %v8156_v51, 0.0 }
 0xa57   : > { %v8163_v31 = vpop.eup %6345  ;;  %3148 = vadd.xlane.f32.xlu0 %v3147_v0  ;;  %v8196_v0 = vadd.f32 %v8172_v33, %v2489_v11  ;;  %v8210_v11 = vadd.f32 %v8172_v33, %v2491_v6  ;;  %v8219_v60 = vadd.f32 %v8177_v59, %v2494_v38  ;;  %v6420_v6 = vld [vmem:[%s7330_s24 + $0x48] sm:$0xff]  ;;  %v6421_v38 = vld [vmem:[%s7330_s24 + $0x50] sm:$0xff] }
 0xa58   : > { %v3150_v42 = vsel %vm1726_vm0, %v8163_v31, 0.0  ;;  %v2498_v50 = vadd.f32 %v6420_v6, %v8060_v14 }
 0xa59   : > { %v8167_v1 = vpop.eup %6347  ;;  %3151 = vadd.xlane.f32.xlu1 %v3150_v42  ;;  %v6418_v42 = vld [vmem:[%s7330_s24 + $0x38] sm:$0xff]  ;;  %v2535_v16 = vadd.f32 %v8199_v17, %v8196_v0  ;;  %v2538_v14 = vadd.f32 %v8213_v4, %v8210_v11 }
 0xa5a   : > { %v3153_v15 = vsel %vm1726_vm0, %v8167_v1, 0.0  ;;  %v2496_v44 = vadd.f32 %v6418_v42, %v8056_v13 }
 0xa5b   : > { %v8181_v53 = vpop.eup %6349  ;;  %3154 = vadd.xlane.f32.xlu0 %v3153_v15  ;;  %v8216_v15 = vadd.f32 %v8172_v33, %v2493_v10  ;;  %v8230_v10 = vadd.f32 %v8172_v33, %v2495_v12  ;;  %v8244_v12 = vadd.f32 %v8172_v33, %v2497_v46  ;;  %v6425_v46 = vld [vmem:[%s7330_s24 + $0x70] sm:$0xff] }
 0xa5c   : > { %v3156_v21 = vsel %vm1726_vm0, %v8181_v53, 0.0  ;;  %v8233_v40 = vadd.f32 %v8177_v59, %v2496_v44  ;;  %v8247_v44 = vadd.f32 %v8177_v59, %v2498_v50  ;;  %v2503_v50 = vadd.f32 %v6425_v46, %v8070_v35 }
 0xa5d   : > { %v8193_v27 = vpop.eup %6351  ;;  %3157 = vadd.xlane.f32.xlu1 %v3156_v21  ;;  %v2499_v21 = vadd.f32 %v6421_v38, %v8062_v48  ;;  %v2541_v42 = vadd.f32 %v8219_v60, %v8216_v15  ;;  %v6426_v38 = vld [vmem:[%s7330_s24 + $0x78] sm:$0xff] }
 0xa5e   : > { %v3159_v24 = vsel %vm1726_vm0, %v8193_v27, 0.0  ;;  %v2544_v41 = vadd.f32 %v8233_v40, %v8230_v10  ;;  %v2504_v52 = vadd.f32 %v6426_v38, %v8072_v9 }
 0xa5f   : > { %v8207_v26 = vpop.eup %6353  ;;  %3160 = vadd.xlane.f32.xlu0 %v3159_v24  ;;  %v6423_v24 = vld [vmem:[%s7330_s24 + $0x60] sm:$0xff]  ;;  %v8256_v6 = vadd.f32 %v8172_v33, %v2499_v21  ;;  %v2547_v21 = vadd.f32 %v8247_v44, %v8244_v12 }
 0xa60   : > { %v3162_v13 = vsel %vm1726_vm0, %v8207_v26, 0.0  ;;  %v2501_v48 = vadd.f32 %v6423_v24, %v8066_v63 }
 0xa61   : > { %3163 = vadd.xlane.f32.xlu1 %v3162_v13  ;;  %v6424_v13 = vld [vmem:[%s7330_s24 + $0x68] sm:$0xff] }
 0xa62   : > { %v2502_v57 = vadd.f32 %v6424_v13, %v8068_v22  ;;  %v8266_v63 = vadd.f32 %v8172_v33, %v2501_v48 }
 0xa63   : > { %2536 = vadd.xlane.f32.xlu0 %v2535_v16  ;;  %v8259_v16 = vadd.f32 %v8177_v59, %v2500_v20  ;;  %v8274_v20 = vadd.f32 %v8172_v33, %v2503_v50 }
 0xa64   : > { %v8269_v22 = vadd.f32 %v8177_v59, %v2502_v57 }
 0xa65   : > { %2539 = vadd.xlane.f32.xlu1 %v2538_v14  ;;  %v8277_v14 = vadd.f32 %v8177_v59, %v2504_v52  ;;  %v2550_v35 = vadd.f32 %v8259_v16, %v8256_v6 }
 0xa66   : > { %v2553_v9 = vadd.f32 %v8269_v22, %v8266_v63 }
 0xa67   : > { %2542 = vadd.xlane.f32.xlu0 %v2541_v42  ;;  %v2556_v42 = vadd.f32 %v8277_v14, %v8274_v20 }
 0xa69   : > { %2545 = vadd.xlane.f32.xlu1 %v2544_v41 }
 0xa6b   : > { %2548 = vadd.xlane.f32.xlu0 %v2547_v21 }
 0xa6d   : > { %2551 = vadd.xlane.f32.xlu1 %v2550_v35 }
 0xa6f   : > { %2554 = vadd.xlane.f32.xlu0 %v2553_v9 }
 0xa71   : > { %2557 = vadd.xlane.f32.xlu1 %v2556_v42 }
 0xae0   : > { %v3143_v24 = vpop.xlane.xlu0 %3142 }
 0xae1   : > { %6355 = vrcp.f32 %v3143_v24 }
 0xae2   : > { %v3146_v33 = vpop.xlane.xlu1 %3145 }
 0xae3   : > { %6357 = vrcp.f32 %v3146_v33 }
 0xae4   : > { %v3149_v48 = vpop.xlane.xlu0 %3148 }
 0xae5   : > { %6359 = vrcp.f32 %v3149_v48 }
 0xae6   : > { %v3152_v59 = vpop.xlane.xlu1 %3151 }
 0xae7   : > { %6361 = vrcp.f32 %v3152_v59 }
 0xae8   : > { %v3155_v13 = vpop.xlane.xlu0 %3154 }
 0xae9   : > { %6363 = vrcp.f32 %v3155_v13 }
 0xaea   : > { %v3158_v57 = vpop.xlane.xlu1 %3157 }
 0xaeb   : > { %v6356_v41 = vpop.eup %6355  ;;  %6365 = vrcp.f32 %v3158_v57 }
 0xaec   : > { %v3161_v46 = vpop.xlane.xlu0 %3160  ;;  %v3173_v52 = vmul.f32 %v6356_v41, %v8148_v45 }
 0xaed   : > { %v6358_v50 = vpop.eup %6357  ;;  %6367 = vrcp.f32 %v3161_v46 }
 0xaee   : > { %v3164_v38 = vpop.xlane.xlu1 %3163  ;;  %v3174_v21 = vmul.f32 %v6358_v50, %v8152_v58 }
 0xaef   : > { %v6360_v35 = vpop.eup %6359  ;;  %6369 = vrcp.f32 %v3164_v38 }
 0xaf0   : > { %v3181_v9 = vpack.c.bf16 %v3174_v21, %v3173_v52  ;;  %v3175_v24 = vmul.f32 %v6360_v35, %v8156_v51 }
 0xaf1   : > { %v6362_v42 = vpop.eup %6361 }
 0xaf2   : > { %v3176_v33 = vmul.f32 %v6362_v42, %v8163_v31  ;;  %5826 = vmatprep.mubr.msk.bf16.mxu1 %vm1726_vm0, %v3181_v9 }
 0xaf3   : > { %v6364_v48 = vpop.eup %6363 }
 0xaf4   : > { %v3182_v59 = vpack.c.bf16 %v3176_v33, %v3175_v24  ;;  %v3177_v57 = vmul.f32 %v6364_v48, %v8167_v1 }
 0xaf5   : > { %v6366_v13 = vpop.eup %6365 }
 0xaf6   : > { %5827 = vmatmul.mubr.msk.bf16.vlgmr.msra.gmra.mrb[92].mxu1 %vm1726_vm0, %v3182_v59  ;;  %v3178_v45 = vmul.f32 %v6366_v13, %v8181_v53 }
 0xaf7   : > { %v6368_v58 = vpop.eup %6367 }
 0xaf8   : > { %v3183_v41 = vpack.c.bf16 %v3178_v45, %v3177_v57  ;;  %v3179_v51 = vmul.f32 %v6368_v58, %v8193_v27  ;;  %v6431_v45 = vld [vmem:[%s7330_s24 + $0xa0] sm:$0xff] }
 0xaf9   : > { %v6370_v46 = vpop.eup %6369 }
 0xafa   : > { %5830 = vmatprep.mubr.msk.bf16.mxu1 %vm1726_vm0, %v3183_v41  ;;  %v3180_v31 = vmul.f32 %v6370_v46, %v8207_v26  ;;  %v6432_v46 = vld [vmem:[%s7330_s24 + $0xa8] sm:$0xff] }
 0xafc   : > { %v3184_v50 = vpack.c.bf16 %v3180_v31, %v3179_v51 }
 0xafe   : > { %5831 = vmatmul.mubr.msk.bf16.gmra.mrb[96].mxu1 %vm1726_vm0, %v3184_v50 }
 0xbc9   : > { %v5828_v38 = vpop.f32.mrb[92].mxu1 }
 0xbca   : > { %v3231_v52 = vpop.f32.mrb[93].mxu1 }
 0xbcb   : > { %v5829_v21 = vpop.f32.mrb[94].mxu1 }
 0xbcc   : > { %v3263_v35 = vpack.c.bf16 %v5829_v21, %v5828_v38  ;;  %v3234_v9 = vpop.f32.mrb[95].mxu1  ;;  %v6433_v38 = vld [vmem:[%s7330_s24 + $0xb0] sm:$0xff] }
 0xbcd   : > { %v3262_v1 = vpack.c.bf16 %v3234_v9, %v3231_v52  ;;  %v6434_v9 = vld [vmem:[%s7330_s24 + $0xb8] sm:$0xff] }
 0xbcf   : > { %3395 = vmatmul.mubr.bf16.vlgmr.msra.gmra.mrb[76].mxu0 %v3262_v1 }
 0xbd0   : > { %3516 = vmatpush1.bf16.msra.mxu0 %v7943_v34  ;;  %3404 = vmatprep.mubr.bf16.mxu0 %v9525_v54  ;;  %v9536_v34 = vld [vmem:[#allocation55_spill] sm:$0xff] }
 0xbd1   : > { %v5832_v53 = vpop.f32.mrb[96].mxu1  ;;  %3517 = vmatprep.subr.bf16.mxu0 %v7945_v37  ;;  %v9537_v37 = vld [vmem:[#allocation56_spill] sm:$0xff] }
 0xbd2   : > { %v3247_v27 = vpop.f32.mrb[97].mxu1 }
 0xbd3   : > { %v5833_v42 = vpop.f32.mrb[98].mxu1 }
 0xbd4   : > { %v3265_v26 = vpack.c.bf16 %v5833_v42, %v5832_v53  ;;  %v3250_v24 = vpop.f32.mrb[99].mxu1  ;;  %3518 = vmatpush1.bf16.msra.mxu0 %v7948_v47  ;;  %v9538_v47 = vpack.c.bf16 %v8120_v36, %v8116_v8  ;;  %v6429_v36 = vld [vmem:[%s7330_s24 + $0x90] sm:$0xff]  ;;  %v2537_v53 = vpop.xlane.xlu0 %2536 }
 0xbd5   : > { %v3264_v33 = vpack.c.bf16 %v3250_v24, %v3247_v27  ;;  %3519 = vmatprep.subr.bf16.mxu0 %v7952_v28  ;;  %v9539_v28 = vpack.c.bf16 %v8136_v2, %v8130_v5  ;;  %v6430_v5 = vld [vmem:[%s7330_s24 + $0x98] sm:$0xff]  ;;  %v2540_v24 = vpop.xlane.xlu1 %2539 }
 0xbd7   : > { %3405 = vmatmul.mubr.bf16.gmra.mrb[80].mxu0 %v3263_v35 }
 0xbd8   : > { %3520 = vmatpush1.bf16.msra.mxu0 %v7955_v3  ;;  %3414 = vmatprep.mubr.bf16.mxu0 %v9525_v54  ;;  %v9540_v3 = vpack.c.bf16 %v8132_v32, %v8128_v30 }
 0xbd9   : > { %3521 = vmatprep.subr.bf16.mxu0 %v7958_v19  ;;  %v3604_v19 = vld [vmem:[%s9533_s0] sm:$0x3] }
 0xbdc   : > { %3522 = vmatpush1.bf16.msra.mxu0 %v7961_v25  ;;  %v8335_v25 = vrot.slane %v3604_v19, %v9534_v18 }
 0xbdd   : > { %3523 = vmatprep.subr.bf16.mxu0 %v7965_v39 }
 0xbdf   : > { %3415 = vmatmul.mubr.bf16.gmra.mrb[84].mxu0 %v3264_v33 }
 0xbe0   : > { %3524 = vmatpush1.bf16.msra.mxu0 %v7968_v49  ;;  %3424 = vmatprep.mubr.bf16.mxu0 %v9525_v54  ;;  %v8338_v49 = vrot.slane %v3604_v19, %v9535_v29 }
 0xbe1   : > { %3525 = vmatprep.subr.bf16.mxu0 %v7971_v56  ;;  %v6427_v56 = vld [vmem:[%s7330_s24 + $0x80] sm:$0xff] }
 0xbe4   : > { %3526 = vmatpush1.bf16.msra.mxu0 %v7974_v61 }
 0xbe5   : > { %3527 = vmatprep.subr.bf16.mxu0 %v7978_v55 }
 0xbe7   : > { %3425 = vmatmul.mubr.bf16.gmra.mrb[88].mxu0 %v3265_v26 }
 0xbe8   : > { %3528 = vmatpush1.bf16.msra.mxu0 %v7981_v62  ;;  %3547 = vmatprep.mubr.bf16.mxu0 %v9525_v54  ;;  %v6428_v62 = vld [vmem:[%s7330_s24 + $0x88] sm:$0xff] }
 0xbe9   : > { %3529 = vmatprep.subr.bf16.mxu0 %v9536_v34 }
 0xbec   : > { %3530 = vmatpush1.bf16.msra.mxu0 %v9537_v37  ;;  %v6435_v37 = vld [vmem:[%s7330_s24 + $0xc0] sm:$0xff] }
 0xbef   : > { %3548 = vmatmul.mubr.bf16.vlgmr.msra.gmra.mrb[76].mxu0 %v2996_v7 }
 0xbf0   : > { %3557 = vmatprep.mubr.bf16.mxu0 %v9525_v54 }
 0xbf7   : > { %3558 = vmatmul.mubr.bf16.gmra.mrb[80].mxu0 %v9538_v47 }
 0xbf8   : > { %3567 = vmatprep.mubr.bf16.mxu0 %v9525_v54 }
 0xbff   : > { %3568 = vmatmul.mubr.bf16.gmra.mrb[84].mxu0 %v9539_v28 }
 0xc00   : > { %3577 = vmatprep.mubr.bf16.mxu0 %v9525_v54 }
 0xc07   : > { %3578 = vmatmul.mubr.bf16.gmra.mrb[88].mxu0 %v9540_v3  ;;  %v6436_v3 = vld [vmem:[%s7330_s24 + $0xc8] sm:$0xff] }
 0xcc2   : > { %v3549_v39 = vpop.f32.mrb[76].mxu0 }
 0xcc3   : > { %v3588_v61 = vadd.f32 %v6427_v56, %v3549_v39  ;;  %v3551_v55 = vpop.f32.mrb[77].mxu0  ;;  %v2543_v56 = vpop.xlane.xlu0 %2542 }
 0xcc4   : > { %v3589_v54 = vadd.f32 %v6428_v62, %v3551_v55  ;;  %v3553_v8 = vpop.f32.mrb[78].mxu0  ;;  %v6437_v55 = vld [vmem:[%s7330_s24 + $0xd0] sm:$0xff] }
 0xcc5   : > { %v8343_v23 = vadd.f32 %v8335_v25, %v3588_v61  ;;  %v3590_v43 = vadd.f32 %v6429_v36, %v3553_v8  ;;  %v3555_v7 = vpop.f32.mrb[79].mxu0  ;;  %v6438_v36 = vld [vmem:[%s7330_s24 + $0xd8] sm:$0xff] }
 0xcc6   : > { %v8347_v30 = vadd.f32 %v8338_v49, %v3589_v54  ;;  %v3591_v32 = vadd.f32 %v6430_v5, %v3555_v7  ;;  %v2560_v7 = vmul.f32 0.00390625, %v2537_v53  ;;  %v2546_v5 = vpop.xlane.xlu1 %2545 }
 0xcc7   : > { %v8351_v2 = vadd.f32 %v8335_v25, %v3590_v43 }
 0xcc8   : > { %v8354_v48 = vadd.f32 %v8338_v49, %v3591_v32  ;;  %v3634_v59 = vadd.f32 %v8347_v30, %v8343_v23 }
 0xcca   : > { %3635 = vadd.xlane.f32.xlu0 %v3634_v59  ;;  %v3559_v13 = vpop.f32.mrb[80].mxu0  ;;  %v3637_v57 = vadd.f32 %v8354_v48, %v8351_v2 }
 0xccb   : > { %v3592_v58 = vadd.f32 %v6431_v45, %v3559_v13  ;;  %v3561_v41 = vpop.f32.mrb[81].mxu0 }
 0xccc   : > { %v3593_v51 = vadd.f32 %v6432_v46, %v3561_v41  ;;  %v3563_v31 = vpop.f32.mrb[82].mxu0  ;;  %3638 = vadd.xlane.f32.xlu1 %v3637_v57  ;;  %v2561_v57 = vmul.f32 0.00390625, %v2540_v24  ;;  %v8401_v41 = vsub.f32 %v8196_v0, %v2560_v7  ;;  %v2562_v46 = vmul.f32 0.00390625, %v2543_v56  ;;  %v2552_v24 = vpop.xlane.xlu1 %2551  ;;  %v6441_v0 = vld [vmem:[%s7330_s24 + $0xf0] sm:$0xff] }
 0xccd   : > { %v8363_v50 = vadd.f32 %v8335_v25, %v3592_v58  ;;  %v3594_v52 = vadd.f32 %v6433_v38, %v3563_v31  ;;  %v3565_v21 = vpop.f32.mrb[83].mxu0  ;;  %v6439_v31 = vld [vmem:[%s7330_s24 + $0xe0] sm:$0xff] }
 0xcce   : > { %v8367_v35 = vadd.f32 %v8338_v49, %v3593_v51  ;;  %v3595_v1 = vadd.f32 %v6434_v9, %v3565_v21  ;;  %v2549_v51 = vpop.xlane.xlu0 %2548  ;;  %v8405_v21 = vsub.f32 %v8199_v17, %v2560_v7  ;;  %v6440_v9 = vld [vmem:[%s7330_s24 + $0xe8] sm:$0xff]  ;;  %v8426_v56 = vsub.f32 %v8219_v60, %v2562_v46 }
 0xccf   : > { %v8371_v27 = vadd.f32 %v8335_v25, %v3594_v52 }
 0xcd0   : > { %v8374_v42 = vadd.f32 %v8338_v49, %v3595_v1  ;;  %v3640_v26 = vadd.f32 %v8367_v35, %v8363_v50 }
 0xcd2   : > { %3641 = vadd.xlane.f32.xlu0 %v3640_v26  ;;  %v3569_v33 = vpop.f32.mrb[84].mxu0  ;;  %v3643_v34 = vadd.f32 %v8374_v42, %v8371_v27  ;;  %v2563_v26 = vmul.f32 0.00390625, %v2546_v5 }
 0xcd3   : > { %v3596_v47 = vadd.f32 %v6435_v37, %v3569_v33  ;;  %v3571_v28 = vpop.f32.mrb[85].mxu0 }
 0xcd4   : > { %v3597_v19 = vadd.f32 %v6436_v3, %v3571_v28  ;;  %v3573_v39 = vpop.f32.mrb[86].mxu0  ;;  %3644 = vadd.xlane.f32.xlu1 %v3643_v34  ;;  %v8416_v28 = vsub.f32 %v8213_v4, %v2561_v57  ;;  %v6442_v3 = vld [vmem:[%s7330_s24 + $0xf8] sm:$0xff]  ;;  %v8444_v60 = vsub.f32 %v8233_v40, %v2563_v26  ;;  %v2589_v40 = vmul.f32 %v8426_v56, %v8426_v56 }
 0xcd5   : > { %v8383_v61 = vadd.f32 %v8335_v25, %v3596_v47  ;;  %v3598_v62 = vadd.f32 %v6437_v55, %v3573_v39  ;;  %v3575_v54 = vpop.f32.mrb[87].mxu0  ;;  %v8413_v47 = vsub.f32 %v8210_v11, %v2561_v57  ;;  %v8423_v39 = vsub.f32 %v8216_v15, %v2562_v46 }
 0xcd6   : > { %v8387_v8 = vadd.f32 %v8338_v49, %v3597_v19  ;;  %v3599_v43 = vadd.f32 %v6438_v36, %v3575_v54  ;;  %v2584_v11 = vmul.f32 %v8401_v41, %v8401_v41  ;;  %v2585_v15 = vmul.f32 %v8405_v21, %v8405_v21 }
 0xcd7   : > { %v8391_v32 = vadd.f32 %v8335_v25, %v3598_v62  ;;  %v2564_v62 = vmul.f32 0.00390625, %v2549_v51  ;;  %v8441_v36 = vsub.f32 %v8230_v10, %v2563_v26  ;;  %v2587_v5 = vmul.f32 %v8416_v28, %v8416_v28 }
 0xcd8   : > { %v8394_v59 = vadd.f32 %v8338_v49, %v3599_v43  ;;  %v3646_v13 = vadd.f32 %v8387_v8, %v8383_v61  ;;  %v2565_v43 = vmul.f32 0.00390625, %v2552_v24  ;;  %v2588_v10 = vmul.f32 %v8423_v39, %v8423_v39 }
 0xcd9   : > { %v8457_v57 = vsub.f32 %v8244_v12, %v2564_v62  ;;  %v2600_v46 = vadd.f32 %v2585_v15, %v2584_v11  ;;  %v2590_v51 = vmul.f32 %v8441_v36, %v8441_v36 }
 0xcda   : > { %3647 = vadd.xlane.f32.xlu0 %v3646_v13  ;;  %v3579_v45 = vpop.f32.mrb[88].mxu0  ;;  %v3649_v58 = vadd.f32 %v8394_v59, %v8391_v32  ;;  %v2558_v13 = vpop.xlane.xlu1 %2557 }
 0xcdb   : > { %v3600_v38 = vadd.f32 %v6439_v31, %v3579_v45  ;;  %v3581_v52 = vpop.f32.mrb[89].mxu0  ;;  %v8460_v45 = vsub.f32 %v8247_v44, %v2564_v62  ;;  %v2591_v31 = vmul.f32 %v8444_v60, %v8444_v60  ;;  %v2567_v12 = vmul.f32 0.00390625, %v2558_v13 }
 0xcdc   : > { %v3601_v1 = vadd.f32 %v6440_v9, %v3581_v52  ;;  %v3583_v53 = vpop.f32.mrb[90].mxu0  ;;  %3650 = vadd.xlane.f32.xlu1 %v3649_v58  ;;  %v8470_v52 = vsub.f32 %v8259_v16, %v2565_v43  ;;  %v2606_v44 = vadd.f32 %v2589_v40, %v2588_v10  ;;  %v2592_v26 = vmul.f32 %v8457_v57, %v8457_v57 }
 0xcdd   : > { %v8409_v33 = vadd.f32 %v8335_v25, %v3600_v38  ;;  %v3602_v34 = vadd.f32 %v6441_v0, %v3583_v53  ;;  %v3585_v37 = vpop.f32.mrb[91].mxu0  ;;  %v8467_v38 = vsub.f32 %v8256_v6, %v2565_v43  ;;  %v2593_v6 = vmul.f32 %v8460_v45, %v8460_v45 }
 0xcde   : > { %v8419_v17 = vadd.f32 %v8338_v49, %v3601_v1  ;;  %v3603_v19 = vadd.f32 %v6442_v3, %v3585_v37  ;;  %v2609_v24 = vadd.f32 %v2591_v31, %v2590_v51  ;;  %v8483_v16 = vsub.f32 %v8274_v20, %v2567_v12 }
 0xcdf   : > { %v8429_v55 = vadd.f32 %v8335_v25, %v3602_v34  ;;  %v2555_v25 = vpop.xlane.xlu0 %2554  ;;  %v8486_v0 = vsub.f32 %v8277_v14, %v2567_v12  ;;  %v2612_v34 = vadd.f32 %v2593_v6, %v2592_v26 }
 0xce0   : > { %v8434_v4 = vadd.f32 %v8338_v49, %v3603_v19  ;;  %v3652_v54 = vadd.f32 %v8419_v17, %v8409_v33  ;;  %v2586_v49 = vmul.f32 %v8413_v47, %v8413_v47  ;;  %v2566_v58 = vmul.f32 0.00390625, %v2555_v25 }
 0xce1   : > { %v2598_v14 = vmul.f32 %v8483_v16, %v8483_v16  ;;  %v2599_v19 = vmul.f32 %v8486_v0, %v8486_v0 }
 0xce2   : > { %3653 = vadd.xlane.f32.xlu0 %v3652_v54  ;;  %v3655_v7 = vadd.f32 %v8434_v4, %v8429_v55  ;;  %v2603_v9 = vadd.f32 %v2587_v5, %v2586_v49  ;;  %v8473_v1 = vsub.f32 %v8266_v63, %v2566_v58  ;;  %v8476_v53 = vsub.f32 %v8269_v22, %v2566_v58 }
 0xce3   : > { %v2594_v63 = vmul.f32 %v8467_v38, %v8467_v38  ;;  %v2595_v22 = vmul.f32 %v8470_v52, %v8470_v52  ;;  %v2621_v62 = vadd.f32 %v2599_v19, %v2598_v14 }
 0xce4   : > { %3656 = vadd.xlane.f32.xlu1 %v3655_v7  ;;  %v2596_v37 = vmul.f32 %v8473_v1, %v8473_v1  ;;  %v2597_v3 = vmul.f32 %v8476_v53, %v8476_v53 }
 0xce5   : > { %v2615_v20 = vadd.f32 %v2595_v22, %v2594_v63 }
 0xce6   : > { %2601 = vadd.xlane.f32.xlu0 %v2600_v46  ;;  %v2618_v11 = vadd.f32 %v2597_v3, %v2596_v37 }
 0xce8   : > { %2604 = vadd.xlane.f32.xlu1 %v2603_v9 }
 0xcea   : > { %2607 = vadd.xlane.f32.xlu0 %v2606_v44 }
 0xcec   : > { %2610 = vadd.xlane.f32.xlu1 %v2609_v24 }
 0xcee   : > { %2613 = vadd.xlane.f32.xlu0 %v2612_v34 }
 0xcf0   : > { %2616 = vadd.xlane.f32.xlu1 %v2615_v20 }
 0xcf2   : > { %2619 = vadd.xlane.f32.xlu0 %v2618_v11 }
 0xcf4   : > { %2622 = vadd.xlane.f32.xlu1 %v2621_v62 }
 0xd57   : > { %v3636_v54 = vpop.xlane.xlu0 %3635 }
 0xd58   : > { %v3658_v15 = vmul.f32 0.00390625, %v3636_v54 }
 0xd59   : > { %v3639_v25 = vpop.xlane.xlu1 %3638 }
 0xd5a   : > { %v8501_v43 = vsub.f32 %v8343_v23, %v3658_v15  ;;  %v8504_v7 = vsub.f32 %v8347_v30, %v3658_v15  ;;  %v3659_v49 = vmul.f32 0.00390625, %v3639_v25 }
 0xd5c   : > { %v8507_v5 = vsub.f32 %v8351_v2, %v3659_v49  ;;  %v8510_v13 = vsub.f32 %v8354_v48, %v3659_v49  ;;  %v3682_v10 = vmul.f32 %v8501_v43, %v8501_v43  ;;  %v3683_v40 = vmul.f32 %v8504_v7, %v8504_v7 }
 0xd5e   : > { %v3698_v58 = vadd.f32 %v3683_v40, %v3682_v10  ;;  %v3684_v23 = vmul.f32 %v8507_v5, %v8507_v5  ;;  %v3685_v30 = vmul.f32 %v8510_v13, %v8510_v13 }
 0xd5f   : > { %v3642_v46 = vpop.xlane.xlu0 %3641 }
 0xd60   : > { %v3660_v51 = vmul.f32 0.00390625, %v3642_v46  ;;  %3699 = vadd.xlane.f32.xlu0 %v3698_v58  ;;  %v3701_v2 = vadd.f32 %v3685_v30, %v3684_v23 }
 0xd61   : > { %v3645_v31 = vpop.xlane.xlu1 %3644 }
 0xd62   : > { %v8521_v48 = vsub.f32 %v8363_v50, %v3660_v51  ;;  %v8524_v12 = vsub.f32 %v8367_v35, %v3660_v51  ;;  %v3661_v9 = vmul.f32 0.00390625, %v3645_v31  ;;  %3702 = vadd.xlane.f32.xlu1 %v3701_v2 }
 0xd64   : > { %v8527_v44 = vsub.f32 %v8371_v27, %v3661_v9  ;;  %v8530_v26 = vsub.f32 %v8374_v42, %v3661_v9  ;;  %v3686_v6 = vmul.f32 %v8521_v48, %v8521_v48  ;;  %v3687_v24 = vmul.f32 %v8524_v12, %v8524_v12 }
 0xd66   : > { %v3704_v63 = vadd.f32 %v3687_v24, %v3686_v6  ;;  %v3688_v50 = vmul.f32 %v8527_v44, %v8527_v44  ;;  %v3689_v35 = vmul.f32 %v8530_v26, %v8530_v26 }
 0xd67   : > { %v3648_v22 = vpop.xlane.xlu0 %3647 }
 0xd68   : > { %v3662_v34 = vmul.f32 0.00390625, %v3648_v22  ;;  %3705 = vadd.xlane.f32.xlu0 %v3704_v63  ;;  %v3707_v27 = vadd.f32 %v3689_v35, %v3688_v50 }
 0xd69   : > { %v3651_v37 = vpop.xlane.xlu1 %3650 }
 0xd6a   : > { %v8541_v42 = vsub.f32 %v8383_v61, %v3662_v34  ;;  %v8544_v3 = vsub.f32 %v8387_v8, %v3662_v34  ;;  %v3663_v20 = vmul.f32 0.00390625, %v3651_v37  ;;  %3708 = vadd.xlane.f32.xlu1 %v3707_v27 }
 0xd6c   : > { %v8547_v14 = vsub.f32 %v8391_v32, %v3663_v20  ;;  %v8550_v19 = vsub.f32 %v8394_v59, %v3663_v20  ;;  %v3690_v11 = vmul.f32 %v8541_v42, %v8541_v42  ;;  %v3691_v62 = vmul.f32 %v8544_v3, %v8544_v3 }
 0xd6e   : > { %v3710_v54 = vadd.f32 %v3691_v62, %v3690_v11  ;;  %v3692_v61 = vmul.f32 %v8547_v14, %v8547_v14  ;;  %v3693_v8 = vmul.f32 %v8550_v19, %v8550_v19  ;;  %v2533_v62 = vld [vmem:[%s9541_s16] sm:$0x3] }
 0xd6f   : > { %v3654_v15 = vpop.xlane.xlu0 %3653 }
 0xd70   : > { %v3664_v25 = vmul.f32 0.00390625, %v3654_v15  ;;  %3711 = vadd.xlane.f32.xlu0 %v3710_v54  ;;  %v3713_v32 = vadd.f32 %v3693_v8, %v3692_v61  ;;  %v2534_v15 = vld [vmem:[%s9543_s29] sm:$0x3] }
 0xd71   : > { %v3657_v49 = vpop.xlane.xlu1 %3656 }
 0xd72   : > { %v8561_v59 = vsub.f32 %v8409_v33, %v3664_v25  ;;  %v8564_v10 = vsub.f32 %v8419_v17, %v3664_v25  ;;  %v3665_v40 = vmul.f32 0.00390625, %v3657_v49  ;;  %3714 = vadd.xlane.f32.xlu1 %v3713_v32  ;;  %v8587_v49 = vrot.slane %v2533_v62, %v9534_v18 }
 0xd73   : > { %v2602_v58 = vpop.xlane.xlu0 %2601 }
 0xd74   : > { %v8567_v23 = vsub.f32 %v8429_v55, %v3665_v40  ;;  %v8570_v30 = vsub.f32 %v8434_v4, %v3665_v40  ;;  %v2624_v46 = vmul.f32 0.00390625, %v2602_v58  ;;  %v3694_v51 = vmul.f32 %v8561_v59, %v8561_v59 }
 0xd75   : > { %v2605_v2 = vpop.xlane.xlu1 %2604  ;;  %v3695_v33 = vmul.f32 %v8564_v10, %v8564_v10  ;;  %v8590_v40 = vrot.slane %v2533_v62, %v9535_v29 }
 0xd76   : > { %v2632_v31 = vadd.f32 1e-05, %v2624_v46  ;;  %v2625_v17 = vmul.f32 0.00390625, %v2605_v2  ;;  %v3696_v9 = vmul.f32 %v8567_v23, %v8567_v23  ;;  %v3697_v55 = vmul.f32 %v8570_v30, %v8570_v30 }
 0xd77   : > { %v2608_v6 = vpop.xlane.xlu0 %2607  ;;  %v3716_v24 = vadd.f32 %v3695_v33, %v3694_v51  ;;  %v8593_v33 = vrot.slane %v2534_v15, %v9534_v18 }
 0xd78   : > { %6371 = vrsqrt.f32 %v2632_v31  ;;  %v2633_v4 = vadd.f32 1e-05, %v2625_v17  ;;  %v2626_v63 = vmul.f32 0.00390625, %v2608_v6  ;;  %v3719_v50 = vadd.f32 %v3697_v55, %v3696_v9 }
 0xd79   : > { %3717 = vadd.xlane.f32.xlu0 %v3716_v24  ;;  %v2611_v35 = vpop.xlane.xlu1 %2610  ;;  %v8596_v31 = vrot.slane %v2534_v15, %v9535_v29 }
 0xd7a   : > { %6373 = vrsqrt.f32 %v2633_v4  ;;  %v2634_v22 = vadd.f32 1e-05, %v2626_v63  ;;  %v2627_v34 = vmul.f32 0.00390625, %v2611_v35  ;;  %3720 = vadd.xlane.f32.xlu1 %v3719_v50 }
 0xd7b   : > { %v2614_v27 = vpop.xlane.xlu0 %2613 }
 0xd7c   : > { %6375 = vrsqrt.f32 %v2634_v22  ;;  %v2635_v37 = vadd.f32 1e-05, %v2627_v34  ;;  %v2628_v20 = vmul.f32 0.00390625, %v2614_v27 }
 0xd7d   : > { %v2617_v11 = vpop.xlane.xlu1 %2616 }
 0xd7e   : > { %6377 = vrsqrt.f32 %v2635_v37  ;;  %v2636_v54 = vadd.f32 1e-05, %v2628_v20  ;;  %v2629_v61 = vmul.f32 0.00390625, %v2617_v11 }
 0xd7f   : > { %v2620_v8 = vpop.xlane.xlu0 %2619 }
 0xd80   : > { %6379 = vrsqrt.f32 %v2636_v54  ;;  %v2637_v25 = vadd.f32 1e-05, %v2629_v61  ;;  %v2630_v32 = vmul.f32 0.00390625, %v2620_v8 }
 0xd81   : > { %v2623_v58 = vpop.xlane.xlu1 %2622 }
 0xd82   : > { %v6372_v46 = vpop.eup %6371  ;;  %6381 = vrsqrt.f32 %v2637_v25  ;;  %v2638_v51 = vadd.f32 1e-05, %v2630_v32  ;;  %v2631_v2 = vmul.f32 0.00390625, %v2623_v58 }
 0xd83   : > { %v2648_v17 = vmul.f32 %v6372_v46, %v8401_v41  ;;  %v2649_v9 = vmul.f32 %v6372_v46, %v8405_v21 }
 0xd84   : > { %v6374_v55 = vpop.eup %6373  ;;  %6383 = vrsqrt.f32 %v2638_v51  ;;  %v2639_v6 = vadd.f32 1e-05, %v2631_v2 }
 0xd85   : > { %v2675_v24 = vmul.f32 %v8587_v49, %v2648_v17  ;;  %v2676_v4 = vmul.f32 %v8590_v40, %v2649_v9  ;;  %v2650_v63 = vmul.f32 %v6374_v55, %v8413_v47  ;;  %v2651_v50 = vmul.f32 %v6374_v55, %v8416_v28 }
 0xd86   : > { %v6376_v35 = vpop.eup %6375  ;;  %6385 = vrsqrt.f32 %v2639_v6 }
 0xd87   : > { %v2702_v22 = vadd.f32 %v8593_v33, %v2675_v24  ;;  %v2703_v34 = vadd.f32 %v8596_v31, %v2676_v4  ;;  %v2677_v41 = vmul.f32 %v8587_v49, %v2650_v63  ;;  %v2678_v21 = vmul.f32 %v8590_v40, %v2651_v50 }
 0xd88   : > { %v6378_v27 = vpop.eup %6377  ;;  %v2652_v37 = vmul.f32 %v6376_v35, %v8423_v39  ;;  %v2653_v20 = vmul.f32 %v6376_v35, %v8426_v56 }
 0xd89   : > { %2718 = vst [vmem:[#allocation2] sm:$0xff] %v2702_v22  ;;  %2719 = vst [vmem:[#allocation2 + $0x8] sm:$0xff] %v2703_v34  ;;  %v2704_v47 = vadd.f32 %v8593_v33, %v2677_v41  ;;  %v2705_v28 = vadd.f32 %v8596_v31, %v2678_v21  ;;  %v2654_v11 = vmul.f32 %v6378_v27, %v8441_v36 }
 0xd8a   : > { %v2655_v62 = vmul.f32 %v6378_v27, %v8444_v60  ;;  %v6380_v54 = vpop.eup %6379  ;;  %v2679_v61 = vmul.f32 %v8587_v49, %v2652_v37  ;;  %v2680_v8 = vmul.f32 %v8590_v40, %v2653_v20 }
 0xd8b   : > { %2720 = vst [vmem:[#allocation2 + $0x10] sm:$0xff] %v2704_v47  ;;  %2721 = vst [vmem:[#allocation2 + $0x18] sm:$0xff] %v2705_v28  ;;  %v2734_v39 = vpack.c.bf16 %v2704_v47, %v2702_v22  ;;  %v2735_v15 = vpack.c.bf16 %v2705_v28, %v2703_v34  ;;  %v2681_v56 = vmul.f32 %v8587_v49, %v2654_v11 }
 0xd8c   : > { %v2682_v25 = vmul.f32 %v8590_v40, %v2655_v62  ;;  %v6382_v32 = vpop.eup %6381  ;;  %v2706_v58 = vadd.f32 %v8593_v33, %v2679_v61  ;;  %v2707_v36 = vadd.f32 %v8596_v31, %v2680_v8  ;;  %v2656_v60 = vmul.f32 %v6380_v54, %v8457_v57 }
 0xd8d   : > { %v2657_v46 = vmul.f32 %v6380_v54, %v8460_v45  ;;  %2742 = vst [vmem:[#allocation3] sm:$0xff] %v2734_v39  ;;  %2743 = vst [vmem:[#allocation3 + $0x8] sm:$0xff] %v2735_v15  ;;  %v2708_v51 = vadd.f32 %v8593_v33, %v2681_v56  ;;  %v2658_v17 = vmul.f32 %v6382_v32, %v8467_v38 }
 0xd8e   : > { %v2709_v2 = vadd.f32 %v8596_v31, %v2682_v25  ;;  %v2659_v9 = vmul.f32 %v6382_v32, %v8470_v52  ;;  %v6384_v55 = vpop.eup %6383  ;;  %2722 = vst [vmem:[#allocation2 + $0x20] sm:$0xff] %v2706_v58  ;;  %2723 = vst [vmem:[#allocation2 + $0x28] sm:$0xff] %v2707_v36  ;;  %v2683_v6 = vmul.f32 %v8587_v49, %v2656_v60 }
 0xd8f   : > { %v2684_v24 = vmul.f32 %v8590_v40, %v2657_v46  ;;  %2724 = vst [vmem:[#allocation2 + $0x30] sm:$0xff] %v2708_v51  ;;  %v2736_v57 = vpack.c.bf16 %v2708_v51, %v2706_v58  ;;  %v2685_v4 = vmul.f32 %v8587_v49, %v2658_v17  ;;  %v2660_v35 = vmul.f32 %v6384_v55, %v8473_v1  ;;  %v3632_v58 = vld [vmem:[%s9542_s28] sm:$0x3] }
 0xd90   : > { %2725 = vst [vmem:[#allocation2 + $0x38] sm:$0xff] %v2709_v2  ;;  %v2737_v45 = vpack.c.bf16 %v2709_v2, %v2707_v36  ;;  %v2686_v63 = vmul.f32 %v8590_v40, %v2659_v9  ;;  %v6386_v50 = vpop.eup %6385  ;;  %v2710_v38 = vadd.f32 %v8593_v33, %v2683_v6  ;;  %v2661_v22 = vmul.f32 %v6384_v55, %v8476_v53  ;;  %v3633_v46 = vld [vmem:[%s9544_s26] sm:$0x3] }
 0xd91   : > { %v2711_v52 = vadd.f32 %v8596_v31, %v2684_v24  ;;  %2744 = vst [vmem:[#allocation3 + $0x10] sm:$0xff] %v2736_v57  ;;  %v2712_v34 = vadd.f32 %v8593_v33, %v2685_v4  ;;  %v2662_v21 = vmul.f32 %v6386_v50, %v8483_v16  ;;  %v2663_v27 = vmul.f32 %v6386_v50, %v8486_v0 }
 0xd92   : > { %2745 = vst [vmem:[#allocation3 + $0x18] sm:$0xff] %v2737_v45  ;;  %v2713_v41 = vadd.f32 %v8596_v31, %v2686_v63  ;;  %2726 = vst [vmem:[#allocation2 + $0x40] sm:$0xff] %v2710_v38  ;;  %v2687_v37 = vmul.f32 %v8587_v49, %v2660_v35  ;;  %v2688_v20 = vmul.f32 %v8590_v40, %v2661_v22 }
 0xd93   : > { %2727 = vst [vmem:[#allocation2 + $0x48] sm:$0xff] %v2711_v52  ;;  %2728 = vst [vmem:[#allocation2 + $0x50] sm:$0xff] %v2712_v34  ;;  %v2738_v1 = vpack.c.bf16 %v2712_v34, %v2710_v38  ;;  %v2689_v47 = vmul.f32 %v8587_v49, %v2662_v21  ;;  %v2690_v28 = vmul.f32 %v8590_v40, %v2663_v27  ;;  %v6894_v49 = vmov 0.0  }
 0xd94   : > { %2729 = vst [vmem:[#allocation2 + $0x58] sm:$0xff] %v2713_v41  ;;  %v2739_v53 = vpack.c.bf16 %v2713_v41, %v2711_v52  ;;  %v2714_v11 = vadd.f32 %v8593_v33, %v2687_v37  ;;  %v2715_v16 = vadd.f32 %v8596_v31, %v2688_v20  ;;  %3848 = vst [vmem:[#allocation4] sm:$0xff] %v6894_v49 }
 0xd95   : > { %2746 = vst [vmem:[#allocation3 + $0x20] sm:$0xff] %v2738_v1  ;;  %v2716_v0 = vadd.f32 %v8593_v33, %v2689_v47  ;;  %v2717_v62 = vadd.f32 %v8596_v31, %v2690_v28  ;;  %3849 = vst [vmem:[#allocation4 + $0x8] sm:$0xff] %v6894_v49  ;;  %v8653_v2 = vrot.slane %v3632_v58, %v9534_v18 }
 0xd96   : > { %2747 = vst [vmem:[#allocation3 + $0x28] sm:$0xff] %v2739_v53  ;;  %2730 = vst [vmem:[#allocation2 + $0x60] sm:$0xff] %v2714_v11  ;;  %v8656_v17 = vrot.slane %v3632_v58, %v9535_v29  ;;  %v8659_v55 = vrot.slane %v3633_v46, %v9534_v18  ;;  %v8662_v6 = vrot.slane %v3633_v46, %v9535_v29 }
 0xd97   : > { %2731 = vst [vmem:[#allocation2 + $0x68] sm:$0xff] %v2715_v16  ;;  %2732 = vst [vmem:[#allocation2 + $0x70] sm:$0xff] %v2716_v0  ;;  %v2740_v54 = vpack.c.bf16 %v2716_v0, %v2714_v11  ;;  %v2741_v61 = vpack.c.bf16 %v2717_v62, %v2715_v16 }
 0xd98   : > { %2733 = vst [vmem:[#allocation2 + $0x78] sm:$0xff] %v2717_v62  ;;  %3850 = vst [vmem:[#allocation4 + $0x10] sm:$0xff] %v6894_v49 }
 0xd99   : > { %2748 = vst [vmem:[#allocation3 + $0x30] sm:$0xff] %v2740_v54  ;;  %2749 = vst [vmem:[#allocation3 + $0x38] sm:$0xff] %v2741_v61 }
 0xd9a   : > { %3851 = vst [vmem:[#allocation4 + $0x18] sm:$0xff] %v6894_v49  ;;  %3852 = vst [vmem:[#allocation4 + $0x20] sm:$0xff] %v6894_v49 }
 0xd9b   : > { %3853 = vst [vmem:[#allocation4 + $0x28] sm:$0xff] %v6894_v49  ;;  %3854 = vst [vmem:[#allocation4 + $0x30] sm:$0xff] %v6894_v49 }
 0xd9c   : > { %3855 = vst [vmem:[#allocation4 + $0x38] sm:$0xff] %v6894_v49  ;;  %3856 = vst [vmem:[#allocation4 + $0x40] sm:$0xff] %v6894_v49 }
 0xd9d   : > { %3857 = vst [vmem:[#allocation4 + $0x48] sm:$0xff] %v6894_v49  ;;  %3858 = vst [vmem:[#allocation4 + $0x50] sm:$0xff] %v6894_v49 }
 0xd9e   : > { %3859 = vst [vmem:[#allocation4 + $0x58] sm:$0xff] %v6894_v49  ;;  %3860 = vst [vmem:[#allocation4 + $0x60] sm:$0xff] %v6894_v49 }
 0xd9f   : > { %3861 = vst [vmem:[#allocation4 + $0x68] sm:$0xff] %v6894_v49  ;;  %3862 = vst [vmem:[#allocation4 + $0x70] sm:$0xff] %v6894_v49 }
 0xda0   : > { %3863 = vst [vmem:[#allocation4 + $0x78] sm:$0xff] %v6894_v49  ;;  %3864 = vst [vmem:[#allocation4 + $0x80] sm:$0xff] %v6894_v49 }
 0xda1   : > { %3865 = vst [vmem:[#allocation4 + $0x88] sm:$0xff] %v6894_v49  ;;  %3866 = vst [vmem:[#allocation4 + $0x90] sm:$0xff] %v6894_v49 }
 0xda2   : > { %3867 = vst [vmem:[#allocation4 + $0x98] sm:$0xff] %v6894_v49  ;;  %3868 = vst [vmem:[#allocation4 + $0xa0] sm:$0xff] %v6894_v49 }
 0xda3   : > { %3869 = vst [vmem:[#allocation4 + $0xa8] sm:$0xff] %v6894_v49  ;;  %3870 = vst [vmem:[#allocation4 + $0xb0] sm:$0xff] %v6894_v49 }
 0xda4   : > { %3871 = vst [vmem:[#allocation4 + $0xb8] sm:$0xff] %v6894_v49  ;;  %3872 = vst [vmem:[#allocation4 + $0xc0] sm:$0xff] %v6894_v49 }
 0xda5   : > { %3873 = vst [vmem:[#allocation4 + $0xc8] sm:$0xff] %v6894_v49  ;;  %3874 = vst [vmem:[#allocation4 + $0xd0] sm:$0xff] %v6894_v49 }
 0xda6   : > { %3875 = vst [vmem:[#allocation4 + $0xd8] sm:$0xff] %v6894_v49  ;;  %3876 = vst [vmem:[#allocation4 + $0xe0] sm:$0xff] %v6894_v49 }
 0xda7   : > { %3877 = vst [vmem:[#allocation4 + $0xe8] sm:$0xff] %v6894_v49  ;;  %3878 = vst [vmem:[#allocation4 + $0xf0] sm:$0xff] %v6894_v49 }
 0xda8   : > { %3879 = vst [vmem:[#allocation4 + $0xf8] sm:$0xff] %v6894_v49 }
 0xded   : > { %v3700_v40 = vpop.xlane.xlu0 %3699 }
 0xdee   : > { %v3722_v33 = vmul.f32 0.00390625, %v3700_v40 }
 0xdef   : > { %v3703_v31 = vpop.xlane.xlu1 %3702 }
 0xdf0   : > { %v3730_v8 = vadd.f32 1e-05, %v3722_v33  ;;  %v3723_v39 = vmul.f32 0.00390625, %v3703_v31 }
 0xdf2   : > { %6387 = vrsqrt.f32 %v3730_v8  ;;  %v3731_v15 = vadd.f32 1e-05, %v3723_v39 }
 0xdf4   : > { %6389 = vrsqrt.f32 %v3731_v15 }
 0xdf5   : > { %v3706_v56 = vpop.xlane.xlu0 %3705 }
 0xdf6   : > { %v3724_v25 = vmul.f32 0.00390625, %v3706_v56 }
 0xdf7   : > { %v3709_v32 = vpop.xlane.xlu1 %3708 }
 0xdf8   : > { %v3732_v36 = vadd.f32 1e-05, %v3724_v25  ;;  %v3725_v60 = vmul.f32 0.00390625, %v3709_v32 }
 0xdfa   : > { %6391 = vrsqrt.f32 %v3732_v36  ;;  %v3733_v51 = vadd.f32 1e-05, %v3725_v60 }
 0xdfc   : > { %v6388_v9 = vpop.eup %6387  ;;  %6393 = vrsqrt.f32 %v3733_v51 }
 0xdfd   : > { %v3746_v24 = vmul.f32 %v6388_v9, %v8501_v43  ;;  %v3747_v57 = vmul.f32 %v6388_v9, %v8504_v7  ;;  %v3712_v45 = vpop.xlane.xlu0 %3711 }
 0xdfe   : > { %v6390_v4 = vpop.eup %6389  ;;  %v3726_v63 = vmul.f32 0.00390625, %v3712_v45 }
 0xdff   : > { %v3773_v50 = vmul.f32 %v8653_v2, %v3746_v24  ;;  %v3774_v38 = vmul.f32 %v8656_v17, %v3747_v57  ;;  %v3748_v52 = vmul.f32 %v6390_v4, %v8507_v5  ;;  %v3749_v35 = vmul.f32 %v6390_v4, %v8510_v13  ;;  %v3715_v18 = vpop.xlane.xlu1 %3714 }
 0xe00   : > { %v3734_v22 = vadd.f32 1e-05, %v3726_v63  ;;  %v3727_v34 = vmul.f32 0.00390625, %v3715_v18 }
 0xe01   : > { %v3800_v29 = vadd.f32 %v8659_v55, %v3773_v50  ;;  %v3801_v43 = vadd.f32 %v8662_v6, %v3774_v38  ;;  %v3775_v7 = vmul.f32 %v8653_v2, %v3748_v52  ;;  %v3776_v41 = vmul.f32 %v8656_v17, %v3749_v35 }
 0xe02   : > { %6395 = vrsqrt.f32 %v3734_v22  ;;  %v3735_v21 = vadd.f32 1e-05, %v3727_v34 }
 0xe03   : > { %3816 = vst [vmem:[#allocation2 + $0x80] sm:$0xff] %v3800_v29  ;;  %3817 = vst [vmem:[#allocation2 + $0x88] sm:$0xff] %v3801_v43  ;;  %v3802_v27 = vadd.f32 %v8659_v55, %v3775_v7  ;;  %v3803_v5 = vadd.f32 %v8662_v6, %v3776_v41 }
 0xe04   : > { %v6392_v13 = vpop.eup %6391  ;;  %6397 = vrsqrt.f32 %v3735_v21 }
 0xe05   : > { %3818 = vst [vmem:[#allocation2 + $0x90] sm:$0xff] %v3802_v27  ;;  %3819 = vst [vmem:[#allocation2 + $0x98] sm:$0xff] %v3803_v5  ;;  %v3832_v37 = vpack.c.bf16 %v3802_v27, %v3800_v29  ;;  %v3833_v20 = vpack.c.bf16 %v3803_v5, %v3801_v43  ;;  %v3750_v1 = vmul.f32 %v6392_v13, %v8521_v48 }
 0xe06   : > { %v3751_v53 = vmul.f32 %v6392_v13, %v8524_v12  ;;  %v6394_v47 = vpop.eup %6393  ;;  %v3718_v28 = vpop.xlane.xlu0 %3717 }
 0xe07   : > { %3840 = vst [vmem:[#allocation3 + $0x40] sm:$0xff] %v3832_v37  ;;  %3841 = vst [vmem:[#allocation3 + $0x48] sm:$0xff] %v3833_v20  ;;  %v3777_v11 = vmul.f32 %v8653_v2, %v3750_v1  ;;  %v3752_v0 = vmul.f32 %v6394_v47, %v8527_v44  ;;  %v3753_v62 = vmul.f32 %v6394_v47, %v8530_v26  ;;  %v3721_v54 = vpop.xlane.xlu1 %3720  ;;  %v3728_v61 = vmul.f32 0.00390625, %v3718_v28 }
 0xe08   : > { %v3778_v16 = vmul.f32 %v8656_v17, %v3751_v53  ;;  %v3729_v49 = vmul.f32 0.00390625, %v3721_v54 }
 0xe09   : > { %v3804_v40 = vadd.f32 %v8659_v55, %v3777_v11  ;;  %v3779_v12 = vmul.f32 %v8653_v2, %v3752_v0  ;;  %v3780_v33 = vmul.f32 %v8656_v17, %v3753_v62  ;;  %v3736_v31 = vadd.f32 1e-05, %v3728_v61 }
 0xe0a   : > { %v3805_v48 = vadd.f32 %v8662_v6, %v3778_v16  ;;  %v3737_v8 = vadd.f32 1e-05, %v3729_v49 }
 0xe0b   : > { %3820 = vst [vmem:[#allocation2 + $0xa0] sm:$0xff] %v3804_v40  ;;  %v3806_v39 = vadd.f32 %v8659_v55, %v3779_v12  ;;  %v3807_v44 = vadd.f32 %v8662_v6, %v3780_v33  ;;  %6399 = vrsqrt.f32 %v3736_v31 }
 0xe0c   : > { %3821 = vst [vmem:[#allocation2 + $0xa8] sm:$0xff] %v3805_v48  ;;  %v6396_v26 = vpop.eup %6395  ;;  %6401 = vrsqrt.f32 %v3737_v8 }
 0xe0d   : > { %3822 = vst [vmem:[#allocation2 + $0xb0] sm:$0xff] %v3806_v39  ;;  %3823 = vst [vmem:[#allocation2 + $0xb8] sm:$0xff] %v3807_v44  ;;  %v3834_v15 = vpack.c.bf16 %v3806_v39, %v3804_v40  ;;  %v3835_v56 = vpack.c.bf16 %v3807_v44, %v3805_v48  ;;  %v3754_v25 = vmul.f32 %v6396_v26, %v8541_v42 }
 0xe0e   : > { %v3755_v32 = vmul.f32 %v6396_v26, %v8544_v3  ;;  %v6398_v58 = vpop.eup %6397 }
 0xe0f   : > { %3842 = vst [vmem:[#allocation3 + $0x50] sm:$0xff] %v3834_v15  ;;  %3843 = vst [vmem:[#allocation3 + $0x58] sm:$0xff] %v3835_v56  ;;  %v3781_v36 = vmul.f32 %v8653_v2, %v3754_v25  ;;  %v3756_v46 = vmul.f32 %v6398_v58, %v8547_v14  ;;  %v3757_v51 = vmul.f32 %v6398_v58, %v8550_v19 }
 0xe10   : > { %v3782_v60 = vmul.f32 %v8656_v17, %v3755_v32 }
 0xe11   : > { %v3808_v9 = vadd.f32 %v8659_v55, %v3781_v36  ;;  %v3783_v42 = vmul.f32 %v8653_v2, %v3756_v46  ;;  %v3784_v3 = vmul.f32 %v8656_v17, %v3757_v51 }
 0xe12   : > { %v3809_v24 = vadd.f32 %v8662_v6, %v3782_v60 }
 0xe13   : > { %3824 = vst [vmem:[#allocation2 + $0xc0] sm:$0xff] %v3808_v9  ;;  %v3810_v57 = vadd.f32 %v8659_v55, %v3783_v42  ;;  %v3811_v45 = vadd.f32 %v8662_v6, %v3784_v3 }
 0xe14   : > { %3825 = vst [vmem:[#allocation2 + $0xc8] sm:$0xff] %v3809_v24 }
 0xe15   : > { %3826 = vst [vmem:[#allocation2 + $0xd0] sm:$0xff] %v3810_v57  ;;  %3827 = vst [vmem:[#allocation2 + $0xd8] sm:$0xff] %v3811_v45  ;;  %v3836_v4 = vpack.c.bf16 %v3810_v57, %v3808_v9  ;;  %v3837_v14 = vpack.c.bf16 %v3811_v45, %v3809_v24  ;;  %v6400_v63 = vpop.eup %6399 }
 0xe16   : > { %v3758_v19 = vmul.f32 %v6400_v63, %v8561_v59  ;;  %v3759_v50 = vmul.f32 %v6400_v63, %v8564_v10  ;;  %v6402_v38 = vpop.eup %6401 }
 0xe17   : > { %3844 = vst [vmem:[#allocation3 + $0x60] sm:$0xff] %v3836_v4  ;;  %3845 = vst [vmem:[#allocation3 + $0x68] sm:$0xff] %v3837_v14  ;;  %v3760_v18 = vmul.f32 %v6402_v38, %v8567_v23  ;;  %v3761_v22 = vmul.f32 %v6402_v38, %v8570_v30 }
 0xe18   : > { %v3785_v52 = vmul.f32 %v8653_v2, %v3758_v19  ;;  %v3786_v35 = vmul.f32 %v8656_v17, %v3759_v50 }
 0xe19   : > { %v3787_v43 = vmul.f32 %v8653_v2, %v3760_v18  ;;  %v3788_v7 = vmul.f32 %v8656_v17, %v3761_v22 }
 0xe1a   : > { %v3812_v34 = vadd.f32 %v8659_v55, %v3785_v52  ;;  %v3813_v29 = vadd.f32 %v8662_v6, %v3786_v35 }
 0xe1b   : > { %v3814_v59 = vadd.f32 %v8659_v55, %v3787_v43  ;;  %v3815_v10 = vadd.f32 %v8662_v6, %v3788_v7 }
 0xe1c   : > { %3828 = vst [vmem:[#allocation2 + $0xe0] sm:$0xff] %v3812_v34  ;;  %3829 = vst [vmem:[#allocation2 + $0xe8] sm:$0xff] %v3813_v29 }
 0xe1d   : > { %3830 = vst [vmem:[#allocation2 + $0xf0] sm:$0xff] %v3814_v59  ;;  %3831 = vst [vmem:[#allocation2 + $0xf8] sm:$0xff] %v3815_v10  ;;  %v3838_v41 = vpack.c.bf16 %v3814_v59, %v3812_v34  ;;  %v3839_v23 = vpack.c.bf16 %v3815_v10, %v3813_v29 }
 0xe1f   : > { %3846 = vst [vmem:[#allocation3 + $0x70] sm:$0xff] %v3838_v41  ;;  %3847 = vst [vmem:[#allocation3 + $0x78] sm:$0xff] %v3839_v23 }
 0xe20 PF: > { %v6443_v30 = vld [vmem:[%s7345_s15 + $0x4] ss:$8 sps:$4 sm:$0xff]   ;;  %v6445_v2 = vld [vmem:[%s7345_s15] ss:$8 sps:$4 sm:$0xff]   ;;  %v6446_v17 = vld [vmem:[%s7345_s15 + $0x14] ss:$8 sps:$4 sm:$0xff]  }
 0xe21   : > { %4100 = vmatprep.subr.bf16.mxu0 %v6443_v30  ;;  %v6448_v55 = vld [vmem:[%s7345_s15 + $0x10] ss:$8 sps:$4 sm:$0xff]   ;;  %v6449_v6 = vld [vmem:[%s7345_s15 + $0x24] ss:$8 sps:$4 sm:$0xff]   ;;  %v6451_v21 = vld [vmem:[%s7345_s15 + $0x20] ss:$8 sps:$4 sm:$0xff]  }
 0xe22   : > { %4101 = vmatpush1.bf16.msra.mxu0 %v6445_v2  ;;  %v6452_v27 = vld [vmem:[%s7345_s15 + $0x34] ss:$8 sps:$4 sm:$0xff]   ;;  %v6454_v5 = vld [vmem:[%s7345_s15 + $0x30] ss:$8 sps:$4 sm:$0xff]   ;;  %v6455_v13 = vld [vmem:[%s7345_s15 + $0x44] ss:$8 sps:$4 sm:$0xff]  }
 0xe23   : > { %4102 = vmatprep.subr.bf16.mxu0 %v6446_v17  ;;  %v6457_v37 = vld [vmem:[%s7345_s15 + $0x40] ss:$8 sps:$4 sm:$0xff]   ;;  %v6458_v20 = vld [vmem:[%s7345_s15 + $0x54] ss:$8 sps:$4 sm:$0xff]   ;;  %v6460_v1 = vld [vmem:[%s7345_s15 + $0x50] ss:$8 sps:$4 sm:$0xff]  }
 0xe24   : > { %v6461_v53 = vld [vmem:[%s7345_s15 + $0x64] ss:$8 sps:$4 sm:$0xff]   ;;  %v6463_v28 = vld [vmem:[%s7345_s15 + $0x60] ss:$8 sps:$4 sm:$0xff]   ;;  %v6464_v11 = vld [vmem:[%s7345_s15 + $0x74] ss:$8 sps:$4 sm:$0xff]  }
 0xe25   : > { %v3881_v47 = vld [vmem:[#allocation3 + $0x8] sm:$0xff]  ;;  %v6466_v16 = vld [vmem:[%s7345_s15 + $0x70] ss:$8 sps:$4 sm:$0xff]   ;;  %v6494_v61 = vld [vmem:[%s7358_s11 + $0x14] ss:$8 sps:$4 sm:$0xff]   ;;  %p5628_p12 = scmp.ne.s32.totalorder %s6863_s19, 1 }
 0xe26   : > { %4103 = vmatpush1.bf16.msra.mxu0 %v6448_v55  ;;  %4132 = vmatprep.mubr.bf16.mxu0 %v3881_v47  ;;  %v6467_v0 = vld [vmem:[%s7345_s15 + $0x84] ss:$8 sps:$4 sm:$0xff]   ;;  %v6493_v54 = vld [vmem:[%s7358_s11] ss:$8 sps:$4 sm:$0xff]   ;;  %v6496_v49 = vld [vmem:[%s7358_s11 + $0x10] ss:$8 sps:$4 sm:$0xff]  }
 0xe27   : > { %4104 = vmatprep.subr.bf16.mxu0 %v6449_v6  ;;  %v6491_v62 = vld [vmem:[%s7358_s11 + $0x4] ss:$8 sps:$4 sm:$0xff]   ;;  %v6469_v40 = vld [vmem:[%s7345_s15 + $0x80] ss:$8 sps:$4 sm:$0xff]   ;;  %v6470_v12 = vld [vmem:[%s7345_s15 + $0x94] ss:$8 sps:$4 sm:$0xff]  }
 0xe28   : > { %4485 = vmatprep.subr.bf16.mxu1 %v6491_v62  ;;  %v6497_v48 = vld [vmem:[%s7358_s11 + $0x24] ss:$8 sps:$4 sm:$0xff]   ;;  %v6499_v33 = vld [vmem:[%s7358_s11 + $0x20] ss:$8 sps:$4 sm:$0xff]   ;;  %v6472_v31 = vld [vmem:[%s7345_s15 + $0x90] ss:$8 sps:$4 sm:$0xff]  }
 0xe29   : > { %4486 = vmatpush1.bf16.msra.mxu1 %v6493_v54  ;;  %v6500_v8 = vld [vmem:[%s7358_s11 + $0x34] ss:$8 sps:$4 sm:$0xff]   ;;  %v6473_v39 = vld [vmem:[%s7345_s15 + $0xa4] ss:$8 sps:$4 sm:$0xff]   ;;  %v6502_v44 = vld [vmem:[%s7358_s11 + $0x30] ss:$8 sps:$4 sm:$0xff]  }
 0xe2a   : > { %4105 = vmatpush1.bf16.msra.mxu0 %v6451_v21  ;;  %4487 = vmatprep.subr.bf16.mxu1 %v6494_v61  ;;  %v6475_v26 = vld [vmem:[%s7345_s15 + $0xa0] ss:$8 sps:$4 sm:$0xff]   ;;  %v6503_v15 = vld [vmem:[%s7358_s11 + $0x44] ss:$8 sps:$4 sm:$0xff]   ;;  %v6476_v56 = vld [vmem:[%s7345_s15 + $0xb4] ss:$8 sps:$4 sm:$0xff]  }
 0xe2b   : > { %4106 = vmatprep.subr.bf16.mxu0 %v6452_v27  ;;  %v6505_v25 = vld [vmem:[%s7358_s11 + $0x40] ss:$8 sps:$4 sm:$0xff]   ;;  %v6478_v32 = vld [vmem:[%s7345_s15 + $0xb0] ss:$8 sps:$4 sm:$0xff]   ;;  %v6506_v58 = vld [vmem:[%s7358_s11 + $0x54] ss:$8 sps:$4 sm:$0xff]  }
 0xe2c   : > { %v6479_v36 = vld [vmem:[%s7345_s15 + $0xc4] ss:$8 sps:$4 sm:$0xff]   ;;  %v6508_v60 = vld [vmem:[%s7358_s11 + $0x50] ss:$8 sps:$4 sm:$0xff]   ;;  %v6481_v46 = vld [vmem:[%s7345_s15 + $0xc0] ss:$8 sps:$4 sm:$0xff]  }
 0xe2d   : > { %4488 = vmatpush1.bf16.msra.mxu1 %v6496_v49  ;;  %v6509_v51 = vld [vmem:[%s7358_s11 + $0x64] ss:$8 sps:$4 sm:$0xff]   ;;  %v6482_v9 = vld [vmem:[%s7345_s15 + $0xd4] ss:$8 sps:$4 sm:$0xff]   ;;  %v6511_v24 = vld [vmem:[%s7358_s11 + $0x60] ss:$8 sps:$4 sm:$0xff]  }
 0xe2e   : > { %4107 = vmatpush1.bf16.msra.mxu0 %v6454_v5  ;;  %4489 = vmatprep.subr.bf16.mxu1 %v6497_v48  ;;  %v6484_v42 = vld [vmem:[%s7345_s15 + $0xd0] ss:$8 sps:$4 sm:$0xff]   ;;  %v6512_v3 = vld [vmem:[%s7358_s11 + $0x74] ss:$8 sps:$4 sm:$0xff]   ;;  %v6485_v57 = vld [vmem:[%s7345_s15 + $0xe4] ss:$8 sps:$4 sm:$0xff]  }
 0xe2f   : > { %4108 = vmatprep.subr.bf16.mxu0 %v6455_v13  ;;  %v6514_v45 = vld [vmem:[%s7358_s11 + $0x70] ss:$8 sps:$4 sm:$0xff]   ;;  %v6487_v4 = vld [vmem:[%s7345_s15 + $0xe0] ss:$8 sps:$4 sm:$0xff]   ;;  %v6515_v14 = vld [vmem:[%s7358_s11 + $0x84] ss:$8 sps:$4 sm:$0xff]  }
 0xe30   : > { %v6488_v63 = vld [vmem:[%s7345_s15 + $0xf4] ss:$8 sps:$4 sm:$0xff]   ;;  %v6517_v19 = vld [vmem:[%s7358_s11 + $0x80] ss:$8 sps:$4 sm:$0xff]   ;;  %v6490_v50 = vld [vmem:[%s7345_s15 + $0xf0] ss:$8 sps:$4 sm:$0xff]  }
 0xe31   : > { %4490 = vmatpush1.bf16.msra.mxu1 %v6499_v33  ;;  %v6518_v38 = vld [vmem:[%s7358_s11 + $0x94] ss:$8 sps:$4 sm:$0xff]   ;;  %v6520_v52 = vld [vmem:[%s7358_s11 + $0x90] ss:$8 sps:$4 sm:$0xff]   ;;  %v3880_v35 = vld [vmem:[#allocation3] sm:$0xff]  ;;  %s9547_s25 = sld [smem:[#allocation66_spill]] (!%p5628_p12) }
 0xe32   : > { %4109 = vmatpush1.bf16.msra.mxu0 %v6457_v37  ;;  %4491 = vmatprep.subr.bf16.mxu1 %v6500_v8  ;;  %v6521_v18 = vld [vmem:[%s7358_s11 + $0xa4] ss:$8 sps:$4 sm:$0xff]   ;;  %v3883_v22 = vld [vmem:[#allocation3 + $0x18] sm:$0xff]  ;;  %v6523_v34 = vld [vmem:[%s7358_s11 + $0xa0] ss:$8 sps:$4 sm:$0xff]   ;;  %s9548_s18 = sld [smem:[#allocation67_spill]] (!%p5628_p12) }
 0xe33   : > { %4110 = vmatprep.subr.bf16.mxu0 %v6458_v20  ;;  %v6524_v29 = vld [vmem:[%s7358_s11 + $0xb4] ss:$8 sps:$4 sm:$0xff]   ;;  %v6526_v43 = vld [vmem:[%s7358_s11 + $0xb0] ss:$8 sps:$4 sm:$0xff]   ;;  %v6527_v59 = vld [vmem:[%s7358_s11 + $0xc4] ss:$8 sps:$4 sm:$0xff]  }
 0xe34   : > { %v3882_v7 = vld [vmem:[#allocation3 + $0x10] sm:$0xff]  ;;  %v3885_v10 = vld [vmem:[#allocation3 + $0x28] sm:$0xff]  ;;  %v3884_v30 = vld [vmem:[#allocation3 + $0x20] sm:$0xff] }
 0xe35   : > { %4492 = vmatpush1.bf16.msra.mxu1 %v6502_v44  ;;  %v6529_v41 = vld [vmem:[%s7358_s11 + $0xc0] ss:$8 sps:$4 sm:$0xff]   ;;  %v6530_v23 = vld [vmem:[%s7358_s11 + $0xd4] ss:$8 sps:$4 sm:$0xff]  }
 0xe36   : > { %4111 = vmatpush1.bf16.msra.mxu0 %v6460_v1  ;;  %4493 = vmatprep.subr.bf16.mxu1 %v6503_v15  ;;  %v3887_v2 = vld [vmem:[#allocation3 + $0x38] sm:$0xff]  ;;  %v3886_v17 = vld [vmem:[#allocation3 + $0x30] sm:$0xff]  ;;  %v3889_v55 = vld [vmem:[#allocation3 + $0x48] sm:$0xff] }
 0xe37   : > { %4112 = vmatprep.subr.bf16.mxu0 %v6461_v53  ;;  %v3888_v6 = vld [vmem:[#allocation3 + $0x40] sm:$0xff]  ;;  %v3891_v21 = vld [vmem:[#allocation3 + $0x58] sm:$0xff]  ;;  %v3890_v27 = vld [vmem:[#allocation3 + $0x50] sm:$0xff] }
 0xe38   : > { %v3893_v5 = vld [vmem:[#allocation3 + $0x68] sm:$0xff]  ;;  %v3892_v13 = vld [vmem:[#allocation3 + $0x60] sm:$0xff]  ;;  %v3895_v37 = vld [vmem:[#allocation3 + $0x78] sm:$0xff] }
 0xe39   : > { %4494 = vmatpush1.bf16.msra.mxu1 %v6505_v25  ;;  %v3894_v20 = vld [vmem:[#allocation3 + $0x70] sm:$0xff]  ;;  %v6533_v53 = vld [vmem:[%s7358_s11 + $0xe4] ss:$8 sps:$4 sm:$0xff]   ;;  %v6535_v47 = vld [vmem:[%s7358_s11 + $0xe0] ss:$8 sps:$4 sm:$0xff]  }
 0xe3a   : > { %4113 = vmatpush1.bf16.msra.mxu0 %v6463_v28  ;;  %4495 = vmatprep.subr.bf16.mxu1 %v6506_v58  ;;  %v6532_v1 = vld [vmem:[%s7358_s11 + $0xd0] ss:$8 sps:$4 sm:$0xff]   ;;  %v6536_v28 = vld [vmem:[%s7358_s11 + $0xf4] ss:$8 sps:$4 sm:$0xff]   ;;  %v3928_v54 = vld [vmem:[%s637_s5] sm:$0x3] }
 0xe3b   : > { %4114 = vmatprep.subr.bf16.mxu0 %v6464_v11  ;;  %v6538_v11 = vld [vmem:[%s7358_s11 + $0xf0] ss:$8 sps:$4 sm:$0xff]   ;;  %s9546_s11 = sld [smem:[#allocation65_spill]] (!%p5628_p12) }
 0xe3d   : > { %4496 = vmatpush1.bf16.msra.mxu1 %v6508_v60 }
 0xe3e   : > { %4115 = vmatpush1.bf16.msra.mxu0 %v6466_v16  ;;  %4497 = vmatprep.subr.bf16.mxu1 %v6509_v51  ;;  %v3930_v16 = vlaneseq }
 0xe3f   : > { %4116 = vmatprep.subr.bf16.mxu0 %v6467_v0 }
 0xe40   : > { %v3931_v0 = vshrl.u32 %v3930_v16, 7 }
 0xe41   : > { %4498 = vmatpush1.bf16.msra.mxu1 %v6511_v24 }
 0xe42   : > { %4117 = vmatpush1.bf16.msra.mxu0 %v6469_v40  ;;  %4499 = vmatprep.subr.bf16.mxu1 %v6512_v3  ;;  %v8776_v62 = vsub.s32 0, %v3931_v0  ;;  %v8783_v61 = vsub.s32 1, %v3931_v0 }
 0xe43   : > { %4118 = vmatprep.subr.bf16.mxu0 %v6470_v12 }
 0xe44   : > { %v8786_v49 = vrot.slane %v3928_v54, %v8776_v62  ;;  %v8789_v40 = vrot.slane %v3928_v54, %v8783_v61 }
 0xe45   : > { %4500 = vmatpush1.bf16.msra.mxu1 %v6514_v45 }
 0xe46   : > { %4119 = vmatpush1.bf16.msra.mxu0 %v6472_v31  ;;  %4501 = vmatprep.subr.bf16.mxu1 %v6515_v14 }
 0xe47   : > { %4120 = vmatprep.subr.bf16.mxu0 %v6473_v39 }
 0xe49   : > { %4502 = vmatpush1.bf16.msra.mxu1 %v6517_v19 }
 0xe4a   : > { %4121 = vmatpush1.bf16.msra.mxu0 %v6475_v26  ;;  %4503 = vmatprep.subr.bf16.mxu1 %v6518_v38 }
 0xe4b   : > { %4122 = vmatprep.subr.bf16.mxu0 %v6476_v56 }
 0xe4d   : > { %4504 = vmatpush1.bf16.msra.mxu1 %v6520_v52 }
 0xe4e   : > { %4123 = vmatpush1.bf16.msra.mxu0 %v6478_v32  ;;  %4505 = vmatprep.subr.bf16.mxu1 %v6521_v18 }
 0xe4f   : > { %4124 = vmatprep.subr.bf16.mxu0 %v6479_v36 }
 0xe51   : > { %4506 = vmatpush1.bf16.msra.mxu1 %v6523_v34 }
 0xe52   : > { %4125 = vmatpush1.bf16.msra.mxu0 %v6481_v46  ;;  %4507 = vmatprep.subr.bf16.mxu1 %v6524_v29 }
 0xe53   : > { %4126 = vmatprep.subr.bf16.mxu0 %v6482_v9 }
 0xe55   : > { %4508 = vmatpush1.bf16.msra.mxu1 %v6526_v43 }
 0xe56   : > { %4127 = vmatpush1.bf16.msra.mxu0 %v6484_v42  ;;  %4509 = vmatprep.subr.bf16.mxu1 %v6527_v59 }
 0xe57   : > { %4128 = vmatprep.subr.bf16.mxu0 %v6485_v57 }
 0xe59   : > { %4510 = vmatpush1.bf16.msra.mxu1 %v6529_v41 }
 0xe5a   : > { %4129 = vmatpush1.bf16.msra.mxu0 %v6487_v4  ;;  %4511 = vmatprep.subr.bf16.mxu1 %v6530_v23 }
 0xe5b   : > { %4130 = vmatprep.subr.bf16.mxu0 %v6488_v63 }
 0xe5d   : > { %4512 = vmatpush1.bf16.msra.mxu1 %v6532_v1 }
 0xe5e   : > { %4131 = vmatpush1.bf16.msra.mxu0 %v6490_v50  ;;  %4513 = vmatprep.subr.bf16.mxu1 %v6533_v53 }
 0xe61   : > { %4133 = vmatmul.mubr.bf16.vlgmr.msra.gmra.mrb[0].mxu0 %v3880_v35  ;;  %4514 = vmatpush1.bf16.msra.mxu1 %v6535_v47 }
 0xe62   : > { %4142 = vmatprep.mubr.bf16.mxu0 %v3883_v22  ;;  %4515 = vmatprep.subr.bf16.mxu1 %v6536_v28 }
 0xe65   : > { %4516 = vmatpush1.bf16.msra.mxu1 %v6538_v11 }
 0xe69   : > { %4143 = vmatmul.mubr.bf16.gmra.mrb[4].mxu0 %v3882_v7 }
 0xe6a   : > { %4152 = vmatprep.mubr.bf16.mxu0 %v3885_v10 }
 0xe71   : > { %4153 = vmatmul.mubr.bf16.gmra.mrb[8].mxu0 %v3884_v30 }
 0xe72   : > { %4162 = vmatprep.mubr.bf16.mxu0 %v3887_v2 }
 0xe79   : > { %4163 = vmatmul.mubr.bf16.gmra.mrb[12].mxu0 %v3886_v17 }
 0xe7a   : > { %4172 = vmatprep.mubr.bf16.mxu0 %v3889_v55 }
 0xe81   : > { %4173 = vmatmul.mubr.bf16.gmra.mrb[16].mxu0 %v3888_v6 }
 0xe82   : > { %4182 = vmatprep.mubr.bf16.mxu0 %v3891_v21 }
 0xe89   : > { %4183 = vmatmul.mubr.bf16.gmra.mrb[20].mxu0 %v3890_v27 }
 0xe8a   : > { %4192 = vmatprep.mubr.bf16.mxu0 %v3893_v5 }
 0xe91   : > { %4193 = vmatmul.mubr.bf16.gmra.mrb[24].mxu0 %v3892_v13 }
 0xe92   : > { %4202 = vmatprep.mubr.bf16.mxu0 %v3895_v37 }
 0xe99   : > { %4203 = vmatmul.mubr.bf16.gmra.mrb[28].mxu0 %v3894_v20 }
 0xf34   : > { %v4134_v48 = vpop.f32.mrb[0].mxu0 }
 0xf35   : > { %v4135_v12 = vadd.f32 %v4134_v48, %v8786_v49  ;;  %v4136_v33 = vpop.f32.mrb[1].mxu0 }
 0xf36   : > { %v4137_v31 = vadd.f32 %v4136_v33, %v8789_v40  ;;  %v4138_v8 = vpop.f32.mrb[2].mxu0 }
 0xf37   : > { %v4139_v39 = vadd.f32 %v4138_v8, %v8786_v49  ;;  %v4140_v44 = vpop.f32.mrb[3].mxu0  ;;  %v4213_v15 = vmax.f32 %v4135_v12, 0.0 }
 0xf38   : > { %v4141_v26 = vadd.f32 %v4140_v44, %v8789_v40  ;;  %v4214_v25 = vmax.f32 %v4137_v31, 0.0 }
 0xf39   : > { %v4215_v56 = vmax.f32 %v4139_v39, 0.0 }
 0xf3a   : > { %v4216_v32 = vmax.f32 %v4141_v26, 0.0 }
 0xf3b   : > { %v4277_v58 = vpack.c.bf16 %v4215_v56, %v4213_v15 }
 0xf3c   : > { %v4144_v36 = vpop.f32.mrb[4].mxu0  ;;  %v4278_v60 = vpack.c.bf16 %v4216_v32, %v4214_v25 }
 0xf3d   : > { %v4145_v46 = vadd.f32 %v4144_v36, %v8786_v49  ;;  %v4146_v51 = vpop.f32.mrb[5].mxu0 }
 0xf3e   : > { %v4147_v9 = vadd.f32 %v4146_v51, %v8789_v40  ;;  %v4148_v24 = vpop.f32.mrb[6].mxu0  ;;  %4517 = vmatprep.mubr.bf16.mxu1 %v4278_v60 }
 0xf3f   : > { %v4149_v42 = vadd.f32 %v4148_v24, %v8786_v49  ;;  %v4150_v3 = vpop.f32.mrb[7].mxu0  ;;  %4518 = vmatmul.mubr.bf16.vlgmr.msra.gmra.mrb[0].mxu1 %v4277_v58  ;;  %v4217_v45 = vmax.f32 %v4145_v46, 0.0 }
 0xf40   : > { %v4151_v57 = vadd.f32 %v4150_v3, %v8789_v40  ;;  %v4218_v14 = vmax.f32 %v4147_v9, 0.0 }
 0xf41   : > { %v4219_v4 = vmax.f32 %v4149_v42, 0.0 }
 0xf42   : > { %v4220_v63 = vmax.f32 %v4151_v57, 0.0 }
 0xf43   : > { %v4279_v19 = vpack.c.bf16 %v4219_v4, %v4217_v45 }
 0xf44   : > { %v4280_v50 = vpack.c.bf16 %v4220_v63, %v4218_v14  ;;  %v4154_v38 = vpop.f32.mrb[8].mxu0 }
 0xf45   : > { %v4155_v52 = vadd.f32 %v4154_v38, %v8786_v49  ;;  %v4156_v35 = vpop.f32.mrb[9].mxu0 }
 0xf46   : > { %v4157_v18 = vadd.f32 %v4156_v35, %v8789_v40  ;;  %v4158_v22 = vpop.f32.mrb[10].mxu0  ;;  %4527 = vmatprep.mubr.bf16.mxu1 %v4280_v50 }
 0xf47   : > { %v4159_v34 = vadd.f32 %v4158_v22, %v8786_v49  ;;  %v4160_v29 = vpop.f32.mrb[11].mxu0  ;;  %4528 = vmatmul.mubr.bf16.gmra.mrb[4].mxu1 %v4279_v19  ;;  %v4221_v7 = vmax.f32 %v4155_v52, 0.0 }
 0xf48   : > { %v4161_v43 = vadd.f32 %v4160_v29, %v8789_v40  ;;  %v4222_v10 = vmax.f32 %v4157_v18, 0.0 }
 0xf49   : > { %v4223_v59 = vmax.f32 %v4159_v34, 0.0 }
 0xf4a   : > { %v4224_v41 = vmax.f32 %v4161_v43, 0.0 }
 0xf4b   : > { %v4281_v23 = vpack.c.bf16 %v4223_v59, %v4221_v7 }
 0xf4c   : > { %v4282_v30 = vpack.c.bf16 %v4224_v41, %v4222_v10  ;;  %v4164_v2 = vpop.f32.mrb[12].mxu0 }
 0xf4d   : > { %v4165_v17 = vadd.f32 %v4164_v2, %v8786_v49  ;;  %v4166_v55 = vpop.f32.mrb[13].mxu0 }
 0xf4e   : > { %v4167_v6 = vadd.f32 %v4166_v55, %v8789_v40  ;;  %v4168_v21 = vpop.f32.mrb[14].mxu0  ;;  %4537 = vmatprep.mubr.bf16.mxu1 %v4282_v30 }
 0xf4f   : > { %v4169_v27 = vadd.f32 %v4168_v21, %v8786_v49  ;;  %v4170_v5 = vpop.f32.mrb[15].mxu0  ;;  %4538 = vmatmul.mubr.bf16.gmra.mrb[8].mxu1 %v4281_v23  ;;  %v4225_v37 = vmax.f32 %v4165_v17, 0.0 }
 0xf50   : > { %v4171_v13 = vadd.f32 %v4170_v5, %v8789_v40  ;;  %v4226_v1 = vmax.f32 %v4167_v6, 0.0 }
 0xf51   : > { %v4227_v20 = vmax.f32 %v4169_v27, 0.0 }
 0xf52   : > { %v4228_v53 = vmax.f32 %v4171_v13, 0.0 }
 0xf53   : > { %v4283_v47 = vpack.c.bf16 %v4227_v20, %v4225_v37 }
 0xf54   : > { %v4284_v28 = vpack.c.bf16 %v4228_v53, %v4226_v1  ;;  %v4174_v11 = vpop.f32.mrb[16].mxu0  ;;  %v4245_v1 = vld [vmem:[#allocation4] sm:$0xff]  ;;  %v4246_v53 = vld [vmem:[#allocation4 + $0x8] sm:$0xff] }
 0xf55   : > { %v4175_v16 = vadd.f32 %v4174_v11, %v8786_v49  ;;  %v4176_v0 = vpop.f32.mrb[17].mxu0 }
 0xf56   : > { %v4177_v54 = vadd.f32 %v4176_v0, %v8789_v40  ;;  %v4178_v48 = vpop.f32.mrb[18].mxu0  ;;  %4547 = vmatprep.mubr.bf16.mxu1 %v4284_v28  ;;  %v4247_v28 = vld [vmem:[#allocation4 + $0x10] sm:$0xff]  ;;  %v4248_v0 = vld [vmem:[#allocation4 + $0x18] sm:$0xff] }
 0xf57   : > { %v4179_v12 = vadd.f32 %v4178_v48, %v8786_v49  ;;  %v4180_v33 = vpop.f32.mrb[19].mxu0  ;;  %4548 = vmatmul.mubr.bf16.gmra.mrb[12].mxu1 %v4283_v47  ;;  %v4229_v8 = vmax.f32 %v4175_v16, 0.0 }
 0xf58   : > { %v4181_v31 = vadd.f32 %v4180_v33, %v8789_v40  ;;  %v4230_v44 = vmax.f32 %v4177_v54, 0.0  ;;  %v4249_v33 = vld [vmem:[#allocation4 + $0x20] sm:$0xff] }
 0xf59   : > { %v4231_v39 = vmax.f32 %v4179_v12, 0.0 }
 0xf5a   : > { %v4232_v26 = vmax.f32 %v4181_v31, 0.0  ;;  %v4250_v31 = vld [vmem:[#allocation4 + $0x28] sm:$0xff] }
 0xf5b   : > { %v4285_v15 = vpack.c.bf16 %v4231_v39, %v4229_v8  ;;  %v4251_v39 = vld [vmem:[#allocation4 + $0x30] sm:$0xff] }
 0xf5c   : > { %v4286_v56 = vpack.c.bf16 %v4232_v26, %v4230_v44  ;;  %v4184_v25 = vpop.f32.mrb[20].mxu0 }
 0xf5d   : > { %v4185_v32 = vadd.f32 %v4184_v25, %v8786_v49  ;;  %v4186_v58 = vpop.f32.mrb[21].mxu0 }
 0xf5e   : > { %v4187_v36 = vadd.f32 %v4186_v58, %v8789_v40  ;;  %v4188_v60 = vpop.f32.mrb[22].mxu0  ;;  %4557 = vmatprep.mubr.bf16.mxu1 %v4286_v56 }
 0xf5f   : > { %v4189_v46 = vadd.f32 %v4188_v60, %v8786_v49  ;;  %v4190_v51 = vpop.f32.mrb[23].mxu0  ;;  %4558 = vmatmul.mubr.bf16.gmra.mrb[16].mxu1 %v4285_v15  ;;  %v4233_v24 = vmax.f32 %v4185_v32, 0.0  ;;  %v4252_v15 = vld [vmem:[#allocation4 + $0x38] sm:$0xff]  ;;  %v4253_v60 = vld [vmem:[#allocation4 + $0x40] sm:$0xff] }
 0xf60   : > { %v4191_v9 = vadd.f32 %v4190_v51, %v8789_v40  ;;  %v4234_v3 = vmax.f32 %v4187_v36, 0.0 }
 0xf61   : > { %v4235_v42 = vmax.f32 %v4189_v46, 0.0  ;;  %v4254_v46 = vld [vmem:[#allocation4 + $0x48] sm:$0xff] }
 0xf62   : > { %v4236_v57 = vmax.f32 %v4191_v9, 0.0  ;;  %v4255_v9 = vld [vmem:[#allocation4 + $0x50] sm:$0xff] }
 0xf63   : > { %v4287_v45 = vpack.c.bf16 %v4235_v42, %v4233_v24 }
 0xf64   : > { %v4288_v4 = vpack.c.bf16 %v4236_v57, %v4234_v3  ;;  %v4194_v14 = vpop.f32.mrb[24].mxu0  ;;  %v4256_v3 = vld [vmem:[#allocation4 + $0x58] sm:$0xff] }
 0xf65   : > { %v4195_v63 = vadd.f32 %v4194_v14, %v8786_v49  ;;  %v4196_v19 = vpop.f32.mrb[25].mxu0 }
 0xf66   : > { %v4197_v50 = vadd.f32 %v4196_v19, %v8789_v40  ;;  %v4198_v38 = vpop.f32.mrb[26].mxu0  ;;  %4567 = vmatprep.mubr.bf16.mxu1 %v4288_v4  ;;  %v4257_v19 = vld [vmem:[#allocation4 + $0x60] sm:$0xff] }
 0xf67   : > { %v4199_v52 = vadd.f32 %v4198_v38, %v8786_v49  ;;  %v4200_v35 = vpop.f32.mrb[27].mxu0  ;;  %4568 = vmatmul.mubr.bf16.gmra.mrb[20].mxu1 %v4287_v45  ;;  %v4237_v22 = vmax.f32 %v4195_v63, 0.0 }
 0xf68   : > { %v4201_v18 = vadd.f32 %v4200_v35, %v8789_v40  ;;  %v4238_v29 = vmax.f32 %v4197_v50, 0.0  ;;  %v4258_v50 = vld [vmem:[#allocation4 + $0x68] sm:$0xff] }
 0xf69   : > { %v4239_v34 = vmax.f32 %v4199_v52, 0.0  ;;  %v4259_v52 = vld [vmem:[#allocation4 + $0x70] sm:$0xff] }
 0xf6a   : > { %v4240_v43 = vmax.f32 %v4201_v18, 0.0 }
 0xf6b   : > { %v4289_v7 = vpack.c.bf16 %v4239_v34, %v4237_v22  ;;  %v4260_v22 = vld [vmem:[#allocation4 + $0x78] sm:$0xff] }
 0xf6c   : > { %v4290_v59 = vpack.c.bf16 %v4240_v43, %v4238_v29  ;;  %v4204_v10 = vpop.f32.mrb[28].mxu0 }
 0xf6d   : > { %v4205_v41 = vadd.f32 %v4204_v10, %v8786_v49  ;;  %v4206_v23 = vpop.f32.mrb[29].mxu0  ;;  %v4261_v10 = vld [vmem:[#allocation4 + $0x80] sm:$0xff] }
 0xf6e   : > { %v4207_v30 = vadd.f32 %v4206_v23, %v8789_v40  ;;  %v4208_v2 = vpop.f32.mrb[30].mxu0  ;;  %4577 = vmatprep.mubr.bf16.mxu1 %v4290_v59 }
 0xf6f   : > { %v4209_v17 = vadd.f32 %v4208_v2, %v8786_v49  ;;  %v4210_v55 = vpop.f32.mrb[31].mxu0  ;;  %4578 = vmatmul.mubr.bf16.gmra.mrb[24].mxu1 %v4289_v7  ;;  %v4241_v21 = vmax.f32 %v4205_v41, 0.0  ;;  %v4262_v41 = vld [vmem:[#allocation4 + $0x88] sm:$0xff] }
 0xf70   : > { %v4211_v6 = vadd.f32 %v4210_v55, %v8789_v40  ;;  %v4242_v5 = vmax.f32 %v4207_v30, 0.0  ;;  %v4263_v30 = vld [vmem:[#allocation4 + $0x90] sm:$0xff]  ;;  %v4264_v55 = vld [vmem:[#allocation4 + $0x98] sm:$0xff] }
 0xf71   : > { %v4243_v27 = vmax.f32 %v4209_v17, 0.0 }
 0xf72   : > { %v4244_v13 = vmax.f32 %v4211_v6, 0.0 }
 0xf73   : > { %v4291_v37 = vpack.c.bf16 %v4243_v27, %v4241_v21 }
 0xf74   : > { %v4292_v20 = vpack.c.bf16 %v4244_v13, %v4242_v5 }
 0xf76   : > { %4587 = vmatprep.mubr.bf16.mxu1 %v4292_v20  ;;  %v4266_v20 = vld [vmem:[#allocation4 + $0xa8] sm:$0xff] }
 0xf77   : > { %4588 = vmatmul.mubr.bf16.gmra.mrb[28].mxu1 %v4291_v37  ;;  %v4265_v37 = vld [vmem:[#allocation4 + $0xa0] sm:$0xff] }
0x1012   : > { %v4519_v47 = vpop.f32.mrb[0].mxu1 }
0x1013   : > { %v4598_v11 = vadd.f32 %v4519_v47, %v4245_v1  ;;  %v4521_v16 = vpop.f32.mrb[1].mxu1 }
0x1014   : > { %v4599_v49 = vadd.f32 %v4521_v16, %v4246_v53  ;;  %v4523_v54 = vpop.f32.mrb[2].mxu1  ;;  %v4267_v53 = vld [vmem:[#allocation4 + $0xb0] sm:$0xff] }
0x1015   : > { %4630 = vst [vmem:[#allocation4] sm:$0xff] %v4598_v11  ;;  %v4600_v48 = vadd.f32 %v4523_v54, %v4247_v28  ;;  %v4525_v40 = vpop.f32.mrb[3].mxu1  ;;  %v4268_v11 = vld [vmem:[#allocation4 + $0xb8] sm:$0xff] }
0x1016   : > { %4631 = vst [vmem:[#allocation4 + $0x8] sm:$0xff] %v4599_v49  ;;  %v4601_v12 = vadd.f32 %v4525_v40, %v4248_v0  ;;  %v4269_v40 = vld [vmem:[#allocation4 + $0xc0] sm:$0xff] }
0x1017   : > { %4632 = vst [vmem:[#allocation4 + $0x10] sm:$0xff] %v4600_v48 }
0x1018   : > { %4633 = vst [vmem:[#allocation4 + $0x18] sm:$0xff] %v4601_v12  ;;  %v4270_v12 = vld [vmem:[#allocation4 + $0xc8] sm:$0xff] }
0x101a   : > { %v4529_v8 = vpop.f32.mrb[4].mxu1 }
0x101b   : > { %v4602_v44 = vadd.f32 %v4529_v8, %v4249_v33  ;;  %v4531_v26 = vpop.f32.mrb[5].mxu1 }
0x101c   : > { %v4603_v56 = vadd.f32 %v4531_v26, %v4250_v31  ;;  %v4533_v25 = vpop.f32.mrb[6].mxu1  ;;  %v4271_v31 = vld [vmem:[#allocation4 + $0xd0] sm:$0xff] }
0x101d   : > { %4634 = vst [vmem:[#allocation4 + $0x20] sm:$0xff] %v4602_v44  ;;  %v4604_v32 = vadd.f32 %v4533_v25, %v4251_v39  ;;  %v4535_v58 = vpop.f32.mrb[7].mxu1  ;;  %v4272_v44 = vld [vmem:[#allocation4 + $0xd8] sm:$0xff] }
0x101e   : > { %4635 = vst [vmem:[#allocation4 + $0x28] sm:$0xff] %v4603_v56  ;;  %v4605_v36 = vadd.f32 %v4535_v58, %v4252_v15  ;;  %v4273_v58 = vld [vmem:[#allocation4 + $0xe0] sm:$0xff] }
0x101f   : > { %4636 = vst [vmem:[#allocation4 + $0x30] sm:$0xff] %v4604_v32 }
0x1020   : > { %4637 = vst [vmem:[#allocation4 + $0x38] sm:$0xff] %v4605_v36  ;;  %v4274_v36 = vld [vmem:[#allocation4 + $0xe8] sm:$0xff] }
0x1022   : > { %v4539_v51 = vpop.f32.mrb[8].mxu1 }
0x1023   : > { %v4606_v24 = vadd.f32 %v4539_v51, %v4253_v60  ;;  %v4541_v42 = vpop.f32.mrb[9].mxu1 }
0x1024   : > { %v4607_v57 = vadd.f32 %v4541_v42, %v4254_v46  ;;  %v4543_v45 = vpop.f32.mrb[10].mxu1  ;;  %v4275_v46 = vld [vmem:[#allocation4 + $0xf0] sm:$0xff] }
0x1025   : > { %4638 = vst [vmem:[#allocation4 + $0x40] sm:$0xff] %v4606_v24  ;;  %v4608_v4 = vadd.f32 %v4543_v45, %v4255_v9  ;;  %v4545_v14 = vpop.f32.mrb[11].mxu1  ;;  %v4276_v24 = vld [vmem:[#allocation4 + $0xf8] sm:$0xff] }
0x1026   : > { %4639 = vst [vmem:[#allocation4 + $0x48] sm:$0xff] %v4607_v57  ;;  %v4609_v63 = vadd.f32 %v4545_v14, %v4256_v3  ;;  %v4666_v14 = vld [vmem:[#allocation4] sm:$0xff] (!%p5628_p12) }
0x1027   : > { %4640 = vst [vmem:[#allocation4 + $0x50] sm:$0xff] %v4608_v4 }
0x1028   : > { %4641 = vst [vmem:[#allocation4 + $0x58] sm:$0xff] %v4609_v63  ;;  %v4667_v63 = vld [vmem:[#allocation4 + $0x8] sm:$0xff] (!%p5628_p12) }
0x102a   : > { %v4549_v38 = vpop.f32.mrb[12].mxu1 }
0x102b   : > { %v4610_v35 = vadd.f32 %v4549_v38, %v4257_v19  ;;  %v4551_v18 = vpop.f32.mrb[13].mxu1  ;;  %v4698_v19 = vld [vmem:[%s9546_s11] sm:$0x3] (!%p5628_p12) }
0x102c   : > { %v4611_v34 = vadd.f32 %v4551_v18, %v4258_v50  ;;  %v4553_v29 = vpop.f32.mrb[14].mxu1  ;;  %v8828_v50 = vrot.slane (!%p5628_p12), %v4698_v19, %v8776_v62  ;;  %v8831_v38 = vrot.slane (!%p5628_p12), %v4698_v19, %v8783_v61  ;;  %v4670_v18 = vld [vmem:[#allocation4 + $0x20] sm:$0xff] (!%p5628_p12) }
0x102d   : > { %4642 = vst [vmem:[#allocation4 + $0x60] sm:$0xff] %v4610_v35  ;;  %v4612_v43 = vadd.f32 %v4553_v29, %v4259_v52  ;;  %v4555_v7 = vpop.f32.mrb[15].mxu1  ;;  %v4742_v52 = vld [vmem:[#allocation2] sm:$0xff] (!%p5628_p12)  ;;  %v4743_v35 = vld [vmem:[#allocation2 + $0x8] sm:$0xff] (!%p5628_p12) }
0x102e   : > { %4643 = vst [vmem:[#allocation4 + $0x68] sm:$0xff] %v4611_v34  ;;  %v4613_v59 = vadd.f32 %v4555_v7, %v4260_v22  ;;  %v4671_v22 = vld [vmem:[#allocation4 + $0x28] sm:$0xff] (!%p5628_p12)  ;;  %v4746_v34 = vld [vmem:[#allocation2 + $0x20] sm:$0xff] (!%p5628_p12)  ;;  %v4711_v7 = vadd.f32 (!%p5628_p12), %v8831_v38, %v4667_v63  ;;  %v4757_v63 = vld [vmem:[#allocation2 + $0x78] sm:$0xff] (!%p5628_p12) }
0x102f   : > { %4644 = vst [vmem:[#allocation4 + $0x70] sm:$0xff] %v4612_v43  ;;  %v4747_v29 = vld [vmem:[#allocation2 + $0x28] sm:$0xff] (!%p5628_p12)  ;;  %v4710_v43 = vadd.f32 (!%p5628_p12), %v8828_v50, %v4666_v14  ;;  %v4756_v14 = vld [vmem:[#allocation2 + $0x70] sm:$0xff] (!%p5628_p12) }
0x1030   : > { %4645 = vst [vmem:[#allocation4 + $0x78] sm:$0xff] %v4613_v59  ;;  %v4714_v59 = vadd.f32 (!%p5628_p12), %v8828_v50, %v4670_v18 }
0x1032   : > { %v4559_v23 = vpop.f32.mrb[16].mxu1 }
0x1033   : > { %v4614_v2 = vadd.f32 %v4559_v23, %v4261_v10  ;;  %v4561_v17 = vpop.f32.mrb[17].mxu1  ;;  %v4715_v10 = vadd.f32 (!%p5628_p12), %v8831_v38, %v4671_v22  ;;  %v4669_v23 = vld [vmem:[#allocation4 + $0x18] sm:$0xff] (!%p5628_p12) }
0x1034   : > { %v4615_v6 = vadd.f32 %v4561_v17, %v4262_v41  ;;  %v4563_v21 = vpop.f32.mrb[18].mxu1  ;;  %v4668_v41 = vld [vmem:[#allocation4 + $0x10] sm:$0xff] (!%p5628_p12)  ;;  %v4713_v17 = vadd.f32 (!%p5628_p12), %v8831_v38, %v4669_v23 }
0x1035   : > { %4646 = vst [vmem:[#allocation4 + $0x80] sm:$0xff] %v4614_v2  ;;  %v4616_v27 = vadd.f32 %v4563_v21, %v4263_v30  ;;  %v4565_v5 = vpop.f32.mrb[19].mxu1  ;;  %v4744_v30 = vld [vmem:[#allocation2 + $0x10] sm:$0xff] (!%p5628_p12)  ;;  %v4712_v2 = vadd.f32 (!%p5628_p12), %v8828_v50, %v4668_v41  ;;  %v4673_v21 = vld [vmem:[#allocation4 + $0x38] sm:$0xff] (!%p5628_p12) }
0x1036   : > { %4647 = vst [vmem:[#allocation4 + $0x88] sm:$0xff] %v4615_v6  ;;  %v4617_v13 = vadd.f32 %v4565_v5, %v4264_v55  ;;  %v4745_v55 = vld [vmem:[#allocation2 + $0x18] sm:$0xff] (!%p5628_p12)  ;;  %v4672_v6 = vld [vmem:[#allocation4 + $0x30] sm:$0xff] (!%p5628_p12)  ;;  %v8841_v5 = vadd.f32 (!%p5628_p12), %v4743_v35, %v4711_v7 }
0x1037   : > { %4648 = vst [vmem:[#allocation4 + $0x90] sm:$0xff] %v4616_v27  ;;  %v8839_v27 = vadd.f32 (!%p5628_p12), %v4742_v52, %v4710_v43 }
0x1038   : > { %4649 = vst [vmem:[#allocation4 + $0x98] sm:$0xff] %v4617_v13  ;;  %v8843_v13 = vadd.f32 (!%p5628_p12), %v4746_v34, %v4714_v59 }
0x103a   : > { %v4569_v1 = vpop.f32.mrb[20].mxu1 }
0x103b   : > { %v4618_v47 = vadd.f32 %v4569_v1, %v4265_v37  ;;  %v4571_v28 = vpop.f32.mrb[21].mxu1  ;;  %v8845_v37 = vadd.f32 (!%p5628_p12), %v4747_v29, %v4715_v10  ;;  %v4749_v1 = vld [vmem:[#allocation2 + $0x38] sm:$0xff] (!%p5628_p12)  ;;  %v4758_v10 = vld [vmem:[#allocation2 + $0x80] sm:$0xff] (!%p5628_p12) }
0x103c   : > { %v4619_v16 = vadd.f32 %v4571_v28, %v4266_v20  ;;  %v4573_v0 = vpop.f32.mrb[22].mxu1  ;;  %v4748_v20 = vld [vmem:[#allocation2 + $0x30] sm:$0xff] (!%p5628_p12)  ;;  %v8849_v28 = vadd.f32 (!%p5628_p12), %v4745_v55, %v4713_v17  ;;  %v4682_v22 = vld [vmem:[#allocation4 + $0x80] sm:$0xff] (!%p5628_p12)  ;;  %v4759_v55 = vld [vmem:[#allocation2 + $0x88] sm:$0xff] (!%p5628_p12) }
0x103d   : > { %4650 = vst [vmem:[#allocation4 + $0xa0] sm:$0xff] %v4618_v47  ;;  %v4620_v49 = vadd.f32 %v4573_v0, %v4267_v53  ;;  %v4575_v54 = vpop.f32.mrb[23].mxu1  ;;  %v4674_v53 = vld [vmem:[#allocation4 + $0x40] sm:$0xff] (!%p5628_p12)  ;;  %v8847_v47 = vadd.f32 (!%p5628_p12), %v4744_v30, %v4712_v2  ;;  %v4675_v0 = vld [vmem:[#allocation4 + $0x48] sm:$0xff] (!%p5628_p12)  ;;  %v4726_v7 = vadd.f32 (!%p5628_p12), %v8828_v50, %v4682_v22 }
0x103e   : > { %4651 = vst [vmem:[#allocation4 + $0xa8] sm:$0xff] %v4619_v16  ;;  %v4621_v48 = vadd.f32 %v4575_v54, %v4268_v11  ;;  %v4716_v11 = vadd.f32 (!%p5628_p12), %v8828_v50, %v4672_v6  ;;  %v4717_v16 = vadd.f32 (!%p5628_p12), %v8831_v38, %v4673_v21  ;;  %v4751_v54 = vld [vmem:[#allocation2 + $0x48] sm:$0xff] (!%p5628_p12)  ;;  %v4684_v41 = vld [vmem:[#allocation4 + $0x90] sm:$0xff] (!%p5628_p12) }
0x103f   : > { %4652 = vst [vmem:[#allocation4 + $0xb0] sm:$0xff] %v4620_v49  ;;  %v4750_v49 = vld [vmem:[#allocation2 + $0x40] sm:$0xff] (!%p5628_p12)  ;;  %v4683_v34 = vld [vmem:[#allocation4 + $0x88] sm:$0xff] (!%p5628_p12)  ;;  %v4685_v23 = vld [vmem:[#allocation4 + $0x98] sm:$0xff] (!%p5628_p12) }
0x1040   : > { %4653 = vst [vmem:[#allocation4 + $0xb8] sm:$0xff] %v4621_v48  ;;  %v4808_v48 = vadd.f32 (!%p5628_p12), %v8841_v5, %v8839_v27  ;;  %v4727_v59 = vadd.f32 (!%p5628_p12), %v8831_v38, %v4683_v34  ;;  %v4760_v6 = vld [vmem:[#allocation2 + $0x90] sm:$0xff] (!%p5628_p12) }
0x1042   : > { %v4579_v33 = vpop.f32.mrb[24].mxu1  ;;  %4809 = vadd.xlane.f32.xlu0 (!%p5628_p12), %v4808_v48  ;;  %v4763_v48 = vld [vmem:[#allocation2 + $0xa8] sm:$0xff] (!%p5628_p12) }
0x1043   : > { %v4622_v8 = vadd.f32 %v4579_v33, %v4269_v40  ;;  %v4581_v39 = vpop.f32.mrb[25].mxu1  ;;  %v4814_v40 = vadd.f32 (!%p5628_p12), %v8845_v37, %v8843_v13  ;;  %v4719_v33 = vadd.f32 (!%p5628_p12), %v8831_v38, %v4675_v0  ;;  %v4729_v0 = vadd.f32 (!%p5628_p12), %v8831_v38, %v4685_v23 }
0x1044   : > { %v4623_v26 = vadd.f32 %v4581_v39, %v4270_v12  ;;  %v4583_v15 = vpop.f32.mrb[26].mxu1  ;;  %v4718_v12 = vadd.f32 (!%p5628_p12), %v8828_v50, %v4674_v53  ;;  %v4752_v39 = vld [vmem:[#allocation2 + $0x50] sm:$0xff] (!%p5628_p12)  ;;  %v4686_v21 = vld [vmem:[#allocation4 + $0xa0] sm:$0xff] (!%p5628_p12) }
0x1045   : > { %4654 = vst [vmem:[#allocation4 + $0xc0] sm:$0xff] %v4622_v8  ;;  %v4624_v56 = vadd.f32 %v4583_v15, %v4271_v31  ;;  %v4585_v25 = vpop.f32.mrb[27].mxu1  ;;  %v4676_v31 = vld [vmem:[#allocation4 + $0x50] sm:$0xff] (!%p5628_p12)  ;;  %v4677_v8 = vld [vmem:[#allocation4 + $0x58] sm:$0xff] (!%p5628_p12)  ;;  %v8863_v15 = vadd.f32 (!%p5628_p12), %v4749_v1, %v4717_v16  ;;  %4815 = vadd.xlane.f32.xlu1 (!%p5628_p12), %v4814_v40  ;;  %v4687_v53 = vld [vmem:[#allocation4 + $0xa8] sm:$0xff] (!%p5628_p12) }
0x1046   : > { %4655 = vst [vmem:[#allocation4 + $0xc8] sm:$0xff] %v4623_v26  ;;  %v4625_v32 = vadd.f32 %v4585_v25, %v4272_v44  ;;  %v4811_v44 = vadd.f32 (!%p5628_p12), %v8849_v28, %v8847_v47  ;;  %v8861_v26 = vadd.f32 (!%p5628_p12), %v4748_v20, %v4716_v11  ;;  %v4753_v25 = vld [vmem:[#allocation2 + $0x58] sm:$0xff] (!%p5628_p12)  ;;  %v4728_v20 = vadd.f32 (!%p5628_p12), %v8828_v50, %v4684_v41  ;;  %v4762_v11 = vld [vmem:[#allocation2 + $0xa0] sm:$0xff] (!%p5628_p12)  ;;  %v4688_v40 = vld [vmem:[#allocation4 + $0xb0] sm:$0xff] (!%p5628_p12) }
0x1047   : > { %4656 = vst [vmem:[#allocation4 + $0xd0] sm:$0xff] %v4624_v56  ;;  %v4720_v56 = vadd.f32 (!%p5628_p12), %v8828_v50, %v4676_v31  ;;  %v4761_v1 = vld [vmem:[#allocation2 + $0x98] sm:$0xff] (!%p5628_p12)  ;;  %v8903_v31 = vadd.f32 (!%p5628_p12), %v4759_v55, %v4727_v59  ;;  %v4768_v59 = vld [vmem:[#allocation2 + $0xd0] sm:$0xff] (!%p5628_p12) }
0x1048   : > { %4657 = vst [vmem:[#allocation4 + $0xd8] sm:$0xff] %v4625_v32  ;;  %v4678_v32 = vld [vmem:[#allocation4 + $0x60] sm:$0xff] (!%p5628_p12)  ;;  %4812 = vadd.xlane.f32.xlu0 (!%p5628_p12), %v4811_v44  ;;  %v4764_v44 = vld [vmem:[#allocation2 + $0xb0] sm:$0xff] (!%p5628_p12) }
0x104a   : > { %v4589_v60 = vpop.f32.mrb[28].mxu1  ;;  %4665 = sbr.rel (%p5628_p12) target bundleno = 4518 (0x11a6), region = 108 }
0x104b   : > { %v4626_v51 = vadd.f32 %v4589_v60, %v4273_v58  ;;  %v4591_v9 = vpop.f32.mrb[29].mxu1  ;;  %v4679_v58 = vld [vmem:[#allocation4 + $0x68] sm:$0xff] (!%p5628_p12)  ;;  %v8868_v60 = vadd.f32 (!%p5628_p12), %v4751_v54, %v4719_v33  ;;  %v4731_v54 = vadd.f32 (!%p5628_p12), %v8831_v38, %v4687_v53  ;;  %v8901_v33 = vadd.f32 (!%p5628_p12), %v4758_v10, %v4726_v7  ;;  %v4769_v10 = vld [vmem:[#allocation2 + $0xd8] sm:$0xff] (!%p5628_p12) }
0x104c   : > { %v4627_v42 = vadd.f32 %v4591_v9, %v4274_v36  ;;  %v4593_v3 = vpop.f32.mrb[30].mxu1  ;;  %v8866_v36 = vadd.f32 (!%p5628_p12), %v4750_v49, %v4718_v12  ;;  %v4755_v9 = vld [vmem:[#allocation2 + $0x68] sm:$0xff] (!%p5628_p12)  ;;  %v4730_v49 = vadd.f32 (!%p5628_p12), %v8828_v50, %v4686_v21  ;;  %v4689_v12 = vld [vmem:[#allocation4 + $0xb8] sm:$0xff] (!%p5628_p12) }
0x104d   : > { %4658 = vst [vmem:[#allocation4 + $0xe0] sm:$0xff] %v4626_v51  ;;  %v4628_v57 = vadd.f32 %v4593_v3, %v4275_v46  ;;  %v4595_v45 = vpop.f32.mrb[31].mxu1  ;;  %v4721_v46 = vadd.f32 (!%p5628_p12), %v8831_v38, %v4677_v8  ;;  %v4754_v51 = vld [vmem:[#allocation2 + $0x60] sm:$0xff] (!%p5628_p12)  ;;  %v8873_v3 = vadd.f32 (!%p5628_p12), %v4752_v39, %v4720_v56  ;;  %v4732_v8 = vadd.f32 (!%p5628_p12), %v8828_v50, %v4688_v40  ;;  %v4765_v56 = vld [vmem:[#allocation2 + $0xb8] sm:$0xff] (!%p5628_p12)  ;;  %v4771_v40 = vld [vmem:[#allocation2 + $0xe8] sm:$0xff] (!%p5628_p12) }
0x104e   : > { %4659 = vst [vmem:[#allocation4 + $0xe8] sm:$0xff] %v4627_v42  ;;  %v4629_v4 = vadd.f32 %v4595_v45, %v4276_v24  ;;  %v4680_v24 = vld [vmem:[#allocation4 + $0x70] sm:$0xff] (!%p5628_p12)  ;;  %v4817_v42 = vadd.f32 (!%p5628_p12), %v8863_v15, %v8861_v26  ;;  %v4723_v45 = vadd.f32 (!%p5628_p12), %v8831_v38, %v4679_v58  ;;  %v4820_v19 = vadd.f32 (!%p5628_p12), %v8868_v60, %v8866_v36 }
0x104f   : > { %4660 = vst [vmem:[#allocation4 + $0xf0] sm:$0xff] %v4628_v57  ;;  %v4722_v57 = vadd.f32 (!%p5628_p12), %v8828_v50, %v4678_v32  ;;  %v8879_v52 = vadd.f32 (!%p5628_p12), %v4753_v25, %v4721_v46  ;;  %v4724_v35 = vadd.f32 (!%p5628_p12), %v8828_v50, %v4680_v24  ;;  %v4733_v39 = vadd.f32 (!%p5628_p12), %v8831_v38, %v4689_v12  ;;  %v4690_v25 = vld [vmem:[#allocation4 + $0xc0] sm:$0xff] (!%p5628_p12)  ;;  %v4772_v12 = vld [vmem:[#allocation2 + $0xf0] sm:$0xff] (!%p5628_p12) }
0x1050   : > { %4661 = vst [vmem:[#allocation4 + $0xf8] sm:$0xff] %v4629_v4  ;;  %v4681_v4 = vld [vmem:[#allocation4 + $0x78] sm:$0xff] (!%p5628_p12)  ;;  %v8885_v43 = vadd.f32 (!%p5628_p12), %v4755_v9, %v4723_v45  ;;  %4818 = vadd.xlane.f32.xlu1 (!%p5628_p12), %v4817_v42  ;;  %4821 = vadd.xlane.f32.xlu0 (!%p5628_p12), %v4820_v19  ;;  %v8909_v58 = vadd.f32 (!%p5628_p12), %v4760_v6, %v4728_v20  ;;  %v4692_v9 = vld [vmem:[#allocation4 + $0xd0] sm:$0xff] (!%p5628_p12)  ;;  %v4766_v19 = vld [vmem:[#allocation2 + $0xc0] sm:$0xff] (!%p5628_p12) }
0x1051   : > { %v4725_v18 = vadd.f32 %v8831_v38, %v4681_v4  ;;  %v8883_v29 = vadd.f32 %v4754_v51, %v4722_v57  ;;  %v4823_v30 = vadd.f32 %v8879_v52, %v8873_v3  ;;  %v8891_v2 = vadd.f32 %v4756_v14, %v4724_v35  ;;  %v4691_v51 = vld [vmem:[#allocation4 + $0xc8] sm:$0xff]  ;;  %v4693_v42 = vld [vmem:[#allocation4 + $0xd8] sm:$0xff] }
0x1052   : > { %v8911_v46 = vadd.f32 %v4761_v1, %v4729_v0  ;;  %v8913_v24 = vadd.f32 %v4762_v11, %v4730_v49  ;;  %v8915_v57 = vadd.f32 %v4763_v48, %v4731_v54  ;;  %v8917_v45 = vadd.f32 %v4764_v44, %v4732_v8  ;;  %v4767_v35 = vld [vmem:[#allocation2 + $0xc8] sm:$0xff]  ;;  %v4770_v49 = vld [vmem:[#allocation2 + $0xe0] sm:$0xff]  ;;  %v4773_v8 = vld [vmem:[#allocation2 + $0xf8] sm:$0xff] }
0x1053   : > { %v8893_v17 = vadd.f32 %v4757_v63, %v4725_v18  ;;  %v4826_v16 = vadd.f32 %v8885_v43, %v8883_v29  ;;  %v8919_v4 = vadd.f32 %v4765_v56, %v4733_v39  ;;  %v4734_v14 = vadd.f32 %v8828_v50, %v4690_v25 }
0x1054   : > { %4824 = vadd.xlane.f32.xlu1 %v4823_v30  ;;  %v4735_v63 = vadd.f32 %v8831_v38, %v4691_v51  ;;  %v4736_v18 = vadd.f32 %v8828_v50, %v4692_v9  ;;  %v4737_v22 = vadd.f32 %v8831_v38, %v4693_v42  ;;  %v4832_v34 = vadd.f32 %v8903_v31, %v8901_v33  ;;  %v4694_v41 = vld [vmem:[#allocation4 + $0xe0] sm:$0xff] }
0x1055   : > { %v4829_v32 = vadd.f32 %v8893_v17, %v8891_v2  ;;  %4827 = vadd.xlane.f32.xlu0 %v4826_v16  ;;  %v4835_v7 = vadd.f32 %v8911_v46, %v8909_v58  ;;  %v4695_v23 = vld [vmem:[#allocation4 + $0xe8] sm:$0xff]  ;;  %v4838_v6 = vadd.f32 %v8915_v57, %v8913_v24  ;;  %v4841_v21 = vadd.f32 %v8919_v4, %v8917_v45 }
0x1056   : > { %v4696_v30 = vld [vmem:[#allocation4 + $0xf0] sm:$0xff]  ;;  %v8933_v20 = vadd.f32 %v4766_v19, %v4734_v14  ;;  %v8935_v1 = vadd.f32 %v4767_v35, %v4735_v63  ;;  %v8937_v53 = vadd.f32 %v4768_v59, %v4736_v18  ;;  %v8939_v11 = vadd.f32 %v4769_v10, %v4737_v22 }
0x1057   : > { %v4697_v55 = vld [vmem:[#allocation4 + $0xf8] sm:$0xff]  ;;  %v4738_v16 = vadd.f32 %v8828_v50, %v4694_v41  ;;  %v4739_v0 = vadd.f32 %v8831_v38, %v4695_v23  ;;  %v4740_v54 = vadd.f32 %v8828_v50, %v4696_v30 }
0x1058   : > { %4830 = vadd.xlane.f32.xlu1 %v4829_v32  ;;  %v4741_v48 = vadd.f32 %v8831_v38, %v4697_v55  ;;  %v4844_v39 = vadd.f32 %v8935_v1, %v8933_v20  ;;  %v4847_v44 = vadd.f32 %v8939_v11, %v8937_v53 }
0x1059   : > { %4833 = vadd.xlane.f32.xlu0 %v4832_v34  ;;  %v8949_v56 = vadd.f32 %v4770_v49, %v4738_v16  ;;  %v8951_v25 = vadd.f32 %v4771_v40, %v4739_v0  ;;  %v8953_v32 = vadd.f32 %v4772_v12, %v4740_v54 }
0x105a   : > { %v8955_v50 = vadd.f32 %v4773_v8, %v4741_v48 }
0x105b   : > { %v4850_v38 = vadd.f32 %v8951_v25, %v8949_v56 }
0x105c   : > { %4836 = vadd.xlane.f32.xlu1 %v4835_v7  ;;  %v4853_v51 = vadd.f32 %v8955_v50, %v8953_v32 }
0x105d   : > { %4839 = vadd.xlane.f32.xlu0 %v4838_v6 }
0x1060   : > { %4842 = vadd.xlane.f32.xlu1 %v4841_v21 }
0x1061   : > { %4845 = vadd.xlane.f32.xlu0 %v4844_v39 }
0x1064   : > { %4848 = vadd.xlane.f32.xlu1 %v4847_v44 }
0x1065   : > { %4851 = vadd.xlane.f32.xlu0 %v4850_v38 }
0x1068   : > { %4854 = vadd.xlane.f32.xlu1 %v4853_v51 }
0x10cf   : > { %v4810_v9 = vpop.xlane.xlu0 %4809 }
0x10d0   : > { %v4857_v14 = vmul.f32 0.00390625, %v4810_v9 }
0x10d2   : > { %v4816_v42 = vpop.xlane.xlu1 %4815  ;;  %v8962_v19 = vsub.f32 %v8839_v27, %v4857_v14  ;;  %v8965_v35 = vsub.f32 %v8841_v5, %v4857_v14 }
0x10d3   : > { %v4859_v63 = vmul.f32 0.00390625, %v4816_v42 }
0x10d4   : > { %v4905_v41 = vmul.f32 %v8962_v19, %v8962_v19  ;;  %v4906_v27 = vmul.f32 %v8965_v35, %v8965_v35 }
0x10d5   : > { %v8968_v18 = vsub.f32 %v8843_v13, %v4859_v63  ;;  %v8971_v22 = vsub.f32 %v8845_v37, %v4859_v63  ;;  %v4813_v34 = vpop.xlane.xlu0 %4812 }
0x10d6   : > { %v4858_v59 = vmul.f32 0.00390625, %v4813_v34  ;;  %v4937_v21 = vadd.f32 %v4906_v27, %v4905_v41 }
0x10d7   : > { %v4909_v5 = vmul.f32 %v8968_v18, %v8968_v18  ;;  %v4910_v13 = vmul.f32 %v8971_v22, %v8971_v22 }
0x10d8   : > { %v8982_v23 = vsub.f32 %v8847_v47, %v4858_v59  ;;  %v8985_v37 = vsub.f32 %v8849_v28, %v4858_v59  ;;  %4938 = vadd.xlane.f32.xlu0 %v4937_v21 }
0x10d9   : > { %v4943_v28 = vadd.f32 %v4910_v13, %v4909_v5 }
0x10da   : > { %v4907_v54 = vmul.f32 %v8982_v23, %v8982_v23  ;;  %v4908_v47 = vmul.f32 %v8985_v37, %v8985_v37 }
0x10dc   : > { %v4940_v44 = vadd.f32 %v4908_v47, %v4907_v54  ;;  %4944 = vadd.xlane.f32.xlu0 %v4943_v28 }
0x10dd   : > { %v4819_v7 = vpop.xlane.xlu1 %4818  ;;  %v4822_v6 = vpop.xlane.xlu0 %4821 }
0x10de   : > { %v4860_v10 = vmul.f32 0.00390625, %v4819_v7  ;;  %v4861_v0 = vmul.f32 0.00390625, %v4822_v6  ;;  %4941 = vadd.xlane.f32.xlu1 %v4940_v44 }
0x10e0   : > { %v8988_v30 = vsub.f32 %v8861_v26, %v4860_v10  ;;  %v8991_v55 = vsub.f32 %v8863_v15, %v4860_v10  ;;  %v9002_v48 = vsub.f32 %v8866_v36, %v4861_v0  ;;  %v9005_v40 = vsub.f32 %v8868_v60, %v4861_v0 }
0x10e1   : > { %v4825_v16 = vpop.xlane.xlu1 %4824 }
0x10e2   : > { %v4862_v49 = vmul.f32 0.00390625, %v4825_v16  ;;  %v4911_v26 = vmul.f32 %v8988_v30, %v8988_v30  ;;  %v4912_v15 = vmul.f32 %v8991_v55, %v8991_v55  ;;  %v4828_v39 = vpop.xlane.xlu0 %4827  ;;  %v4913_v42 = vmul.f32 %v9002_v48, %v9002_v48 }
0x10e3   : > { %v4863_v51 = vmul.f32 0.00390625, %v4828_v39  ;;  %v4914_v36 = vmul.f32 %v9005_v40, %v9005_v40 }
0x10e4   : > { %v9008_v12 = vsub.f32 %v8873_v3, %v4862_v49  ;;  %v9011_v8 = vsub.f32 %v8879_v52, %v4862_v49  ;;  %v4946_v60 = vadd.f32 %v4912_v15, %v4911_v26 }
0x10e5   : > { %v4831_v38 = vpop.xlane.xlu1 %4830  ;;  %v9022_v14 = vsub.f32 %v8883_v29, %v4863_v51  ;;  %v9025_v63 = vsub.f32 %v8885_v43, %v4863_v51  ;;  %v4949_v10 = vadd.f32 %v4914_v36, %v4913_v42 }
0x10e6   : > { %v4864_v9 = vmul.f32 0.00390625, %v4831_v38  ;;  %v4915_v3 = vmul.f32 %v9008_v12, %v9008_v12  ;;  %v4916_v52 = vmul.f32 %v9011_v8, %v9011_v8  ;;  %v4834_v59 = vpop.xlane.xlu0 %4833  ;;  %4947 = vadd.xlane.f32.xlu1 %v4946_v60 }
0x10e7   : > { %v4865_v27 = vmul.f32 0.00390625, %v4834_v59  ;;  %v4917_v13 = vmul.f32 %v9022_v14, %v9022_v14  ;;  %v4918_v29 = vmul.f32 %v9025_v63, %v9025_v63  ;;  %4950 = vadd.xlane.f32.xlu0 %v4949_v10 }
0x10e8   : > { %v9028_v34 = vsub.f32 %v8891_v2, %v4864_v9  ;;  %v9031_v7 = vsub.f32 %v8893_v17, %v4864_v9  ;;  %v4952_v43 = vadd.f32 %v4916_v52, %v4915_v3 }
0x10e9   : > { %v4837_v41 = vpop.xlane.xlu1 %4836  ;;  %v9042_v6 = vsub.f32 %v8901_v33, %v4865_v27  ;;  %v9045_v21 = vsub.f32 %v8903_v31, %v4865_v27  ;;  %v4955_v54 = vadd.f32 %v4918_v29, %v4917_v13 }
0x10ea   : > { %v4866_v5 = vmul.f32 0.00390625, %v4837_v41  ;;  %v4919_v2 = vmul.f32 %v9028_v34, %v9028_v34  ;;  %v4920_v17 = vmul.f32 %v9031_v7, %v9031_v7  ;;  %v4840_v49 = vpop.xlane.xlu0 %4839  ;;  %4953 = vadd.xlane.f32.xlu1 %v4952_v43 }
0x10eb   : > { %v4867_v28 = vmul.f32 0.00390625, %v4840_v49  ;;  %v4921_v15 = vmul.f32 %v9042_v6, %v9042_v6  ;;  %v4922_v33 = vmul.f32 %v9045_v21, %v9045_v21  ;;  %4956 = vadd.xlane.f32.xlu0 %v4955_v54 }
0x10ec   : > { %v9048_v16 = vsub.f32 %v8909_v58, %v4866_v5  ;;  %v9051_v0 = vsub.f32 %v8911_v46, %v4866_v5  ;;  %v4958_v31 = vadd.f32 %v4920_v17, %v4919_v2 }
0x10ed   : > { %v4843_v47 = vpop.xlane.xlu1 %4842  ;;  %v9062_v39 = vsub.f32 %v8913_v24, %v4867_v28  ;;  %v9065_v44 = vsub.f32 %v8915_v57, %v4867_v28  ;;  %v4961_v42 = vadd.f32 %v4922_v33, %v4921_v15 }
0x10ee   : > { %v4868_v26 = vmul.f32 0.00390625, %v4843_v47  ;;  %v4923_v58 = vmul.f32 %v9048_v16, %v9048_v16  ;;  %v4924_v46 = vmul.f32 %v9051_v0, %v9051_v0  ;;  %v4846_v9 = vpop.xlane.xlu0 %4845  ;;  %4959 = vadd.xlane.f32.xlu1 %v4958_v31 }
0x10ef   : > { %v4869_v60 = vmul.f32 0.00390625, %v4846_v9  ;;  %v4925_v52 = vmul.f32 %v9062_v39, %v9062_v39  ;;  %v4926_v24 = vmul.f32 %v9065_v44, %v9065_v44  ;;  %4962 = vadd.xlane.f32.xlu0 %v4961_v42 }
0x10f0   : > { %v9068_v38 = vsub.f32 %v8917_v45, %v4868_v26  ;;  %v9071_v51 = vsub.f32 %v8919_v4, %v4868_v26  ;;  %v4964_v57 = vadd.f32 %v4924_v46, %v4923_v58 }
0x10f1   : > { %v4849_v36 = vpop.xlane.xlu1 %4848  ;;  %v9082_v59 = vsub.f32 %v8933_v20, %v4869_v60  ;;  %v9085_v10 = vsub.f32 %v8935_v1, %v4869_v60  ;;  %v4967_v13 = vadd.f32 %v4926_v24, %v4925_v52 }
0x10f2   : > { %v4870_v3 = vmul.f32 0.00390625, %v4849_v36  ;;  %v4927_v45 = vmul.f32 %v9068_v38, %v9068_v38  ;;  %v4928_v4 = vmul.f32 %v9071_v51, %v9071_v51  ;;  %v4852_v5 = vpop.xlane.xlu0 %4851  ;;  %4965 = vadd.xlane.f32.xlu1 %v4964_v57 }
0x10f3   : > { %v4871_v43 = vmul.f32 0.00390625, %v4852_v5  ;;  %v4929_v17 = vmul.f32 %v9082_v59, %v9082_v59  ;;  %v4930_v20 = vmul.f32 %v9085_v10, %v9085_v10  ;;  %4968 = vadd.xlane.f32.xlu0 %v4967_v13  ;;  %v4806_v13 = vld [vmem:[%s9547_s25] sm:$0x3] }
0x10f4   : > { %v9088_v41 = vsub.f32 %v8937_v53, %v4870_v3  ;;  %v9091_v27 = vsub.f32 %v8939_v11, %v4870_v3  ;;  %v4970_v1 = vadd.f32 %v4928_v4, %v4927_v45 }
0x10f5   : > { %v4855_v29 = vpop.xlane.xlu1 %4854  ;;  %v9102_v49 = vsub.f32 %v8949_v56, %v4871_v43  ;;  %v9105_v54 = vsub.f32 %v8951_v25, %v4871_v43  ;;  %v4973_v26 = vadd.f32 %v4930_v20, %v4929_v17  ;;  %v4807_v20 = vld [vmem:[%s9548_s18] sm:$0x3] }
0x10f6   : > { %v4872_v2 = vmul.f32 0.00390625, %v4855_v29  ;;  %v4931_v53 = vmul.f32 %v9088_v41, %v9088_v41  ;;  %v4932_v11 = vmul.f32 %v9091_v27, %v9091_v27  ;;  %4971 = vadd.xlane.f32.xlu1 %v4970_v1 }
0x10f7   : > { %v4933_v15 = vmul.f32 %v9102_v49, %v9102_v49  ;;  %v4934_v33 = vmul.f32 %v9105_v54, %v9105_v54  ;;  %4974 = vadd.xlane.f32.xlu0 %v4973_v26  ;;  %v9131_v26 = vrot.slane %v4806_v13, %v8783_v61 }
0x10f8   : > { %v9108_v47 = vsub.f32 %v8953_v32, %v4872_v2  ;;  %v9111_v28 = vsub.f32 %v8955_v50, %v4872_v2  ;;  %v4976_v56 = vadd.f32 %v4932_v11, %v4931_v53  ;;  %v9128_v11 = vrot.slane %v4806_v13, %v8776_v62 }
0x10f9   : > { %v4979_v31 = vadd.f32 %v4934_v33, %v4933_v15 }
0x10fa   : > { %v4935_v25 = vmul.f32 %v9108_v47, %v9108_v47  ;;  %v4936_v32 = vmul.f32 %v9111_v28, %v9111_v28  ;;  %4977 = vadd.xlane.f32.xlu1 %v4976_v56 }
0x10fb   : > { %4980 = vadd.xlane.f32.xlu0 %v4979_v31 }
0x10fc   : > { %v4982_v50 = vadd.f32 %v4936_v32, %v4935_v25  ;;  %v9134_v25 = vrot.slane %v4807_v20, %v8776_v62  ;;  %v9137_v32 = vrot.slane %v4807_v20, %v8783_v61 }
0x10fe   : > { %4983 = vadd.xlane.f32.xlu1 %v4982_v50 }
0x1165   : > { %v4939_v58 = vpop.xlane.xlu0 %4938 }
0x1166   : > { %v4985_v46 = vmul.f32 0.00390625, %v4939_v58 }
0x1168   : > { %v5001_v9 = vadd.f32 1e-05, %v4985_v46 }
0x1169   : > { %v4945_v36 = vpop.xlane.xlu0 %4944 }
0x116a   : > { %6539 = vrsqrt.f32 %v5001_v9  ;;  %v4987_v3 = vmul.f32 0.00390625, %v4945_v36 }
0x116b   : > { %v4942_v42 = vpop.xlane.xlu1 %4941 }
0x116c   : > { %v4986_v60 = vmul.f32 0.00390625, %v4942_v42  ;;  %v5003_v24 = vadd.f32 1e-05, %v4987_v3 }
0x116e   : > { %v5002_v52 = vadd.f32 1e-05, %v4986_v60 }
0x1170   : > { %6541 = vrsqrt.f32 %v5002_v52 }
0x1171   : > { %6543 = vrsqrt.f32 %v5003_v24 }
0x1173   : > { %v4948_v57 = vpop.xlane.xlu1 %4947 }
0x1174   : > { %v4951_v45 = vpop.xlane.xlu0 %4950  ;;  %v4988_v4 = vmul.f32 0.00390625, %v4948_v57  ;;  %v6540_v15 = vpop.eup %6539 }
0x1175   : > { %v4989_v5 = vmul.f32 0.00390625, %v4951_v45  ;;  %v5033_v31 = vmul.f32 %v6540_v15, %v8962_v19  ;;  %v5034_v50 = vmul.f32 %v6540_v15, %v8965_v35 }
0x1176   : > { %v5004_v29 = vadd.f32 1e-05, %v4988_v4 }
0x1177   : > { %v5005_v43 = vadd.f32 1e-05, %v4989_v5  ;;  %v4954_v2 = vpop.xlane.xlu1 %4953  ;;  %v5076_v36 = vmul.f32 %v9128_v11, %v5033_v31  ;;  %v5077_v60 = vmul.f32 %v9131_v26, %v5034_v50 }
0x1178   : > { %v4957_v17 = vpop.xlane.xlu0 %4956  ;;  %6545 = vrsqrt.f32 %v5004_v29  ;;  %v4990_v1 = vmul.f32 0.00390625, %v4954_v2 }
0x1179   : > { %v4991_v53 = vmul.f32 0.00390625, %v4957_v17  ;;  %6547 = vrsqrt.f32 %v5005_v43  ;;  %v5119_v19 = vadd.f32 %v9134_v25, %v5076_v36  ;;  %v5120_v35 = vadd.f32 %v9137_v32, %v5077_v60 }
0x117a   : > { %v5006_v33 = vadd.f32 1e-05, %v4990_v1  ;;  %v6542_v62 = vpop.eup %6541 }
0x117b   : > { %v5007_v56 = vadd.f32 1e-05, %v4991_v53  ;;  %v4960_v58 = vpop.xlane.xlu1 %4959  ;;  %v6544_v52 = vpop.eup %6543  ;;  %v5035_v24 = vmul.f32 %v6542_v62, %v8982_v23  ;;  %v5036_v57 = vmul.f32 %v6542_v62, %v8985_v37  ;;  %5151 = vst [vmem:[%s7360_s14] sm:$0xff] %v5119_v19  ;;  %5152 = vst [vmem:[%s7360_s14 + $0x8] sm:$0xff] %v5120_v35 }
0x117c   : > { %v4963_v46 = vpop.xlane.xlu0 %4962  ;;  %6549 = vrsqrt.f32 %v5006_v33  ;;  %v4992_v9 = vmul.f32 0.00390625, %v4960_v58  ;;  %v5037_v5 = vmul.f32 %v6544_v52, %v8968_v18  ;;  %v5038_v13 = vmul.f32 %v6544_v52, %v8971_v22 }
0x117d   : > { %v4993_v42 = vmul.f32 0.00390625, %v4963_v46  ;;  %6551 = vrsqrt.f32 %v5007_v56  ;;  %v5078_v43 = vmul.f32 %v9128_v11, %v5035_v24  ;;  %v5079_v2 = vmul.f32 %v9131_v26, %v5036_v57 }
0x117e   : > { %v5008_v3 = vadd.f32 1e-05, %v4992_v9  ;;  %v5080_v37 = vmul.f32 %v9128_v11, %v5037_v5  ;;  %v5081_v20 = vmul.f32 %v9131_v26, %v5038_v13 }
0x117f   : > { %v5009_v61 = vadd.f32 1e-05, %v4993_v42  ;;  %v4966_v45 = vpop.xlane.xlu1 %4965  ;;  %v5121_v22 = vadd.f32 %v9134_v25, %v5078_v43  ;;  %v5122_v53 = vadd.f32 %v9137_v32, %v5079_v2 }
0x1180   : > { %v4969_v4 = vpop.xlane.xlu0 %4968  ;;  %6553 = vrsqrt.f32 %v5008_v3  ;;  %v4994_v29 = vmul.f32 0.00390625, %v4966_v45  ;;  %v5123_v50 = vadd.f32 %v9134_v25, %v5080_v37  ;;  %v5124_v58 = vadd.f32 %v9137_v32, %v5081_v20 }
0x1181   : > { %6555 = vrsqrt.f32 %v5009_v61  ;;  %v4995_v17 = vmul.f32 0.00390625, %v4969_v4  ;;  %5153 = vst [vmem:[%s7360_s14 + $0x10] sm:$0xff] %v5121_v22  ;;  %5154 = vst [vmem:[%s7360_s14 + $0x18] sm:$0xff] %v5122_v53 }
0x1182   : > { %v6546_v23 = vpop.eup %6545  ;;  %v5010_v18 = vadd.f32 1e-05, %v4994_v29  ;;  %5155 = vst [vmem:[%s7360_s14 + $0x20] sm:$0xff] %v5123_v50  ;;  %5156 = vst [vmem:[%s7360_s14 + $0x28] sm:$0xff] %v5124_v58 }
0x1183   : > { %v6548_v1 = vpop.eup %6547  ;;  %v5039_v15 = vmul.f32 %v6546_v23, %v8988_v30  ;;  %v5040_v33 = vmul.f32 %v6546_v23, %v8991_v55  ;;  %v4972_v56 = vpop.xlane.xlu1 %4971  ;;  %v5011_v30 = vadd.f32 1e-05, %v4995_v17 }
0x1184   : > { %v4975_v31 = vpop.xlane.xlu0 %4974  ;;  %v5041_v46 = vmul.f32 %v6548_v1, %v9002_v48  ;;  %v5042_v9 = vmul.f32 %v6548_v1, %v9005_v40  ;;  %6557 = vrsqrt.f32 %v5010_v18  ;;  %v4996_v48 = vmul.f32 0.00390625, %v4972_v56 }
0x1185   : > { %v5082_v42 = vmul.f32 %v9128_v11, %v5039_v15  ;;  %v5083_v36 = vmul.f32 %v9131_v26, %v5040_v33  ;;  %v4997_v3 = vmul.f32 0.00390625, %v4975_v31  ;;  %6559 = vrsqrt.f32 %v5011_v30 }
0x1186   : > { %v6550_v60 = vpop.eup %6549  ;;  %v5084_v55 = vmul.f32 %v9128_v11, %v5041_v46  ;;  %v5085_v62 = vmul.f32 %v9131_v26, %v5042_v9  ;;  %v5012_v43 = vadd.f32 1e-05, %v4996_v48 }
0x1187   : > { %v6552_v40 = vpop.eup %6551  ;;  %v5125_v61 = vadd.f32 %v9134_v25, %v5082_v42  ;;  %v5126_v52 = vadd.f32 %v9137_v32, %v5083_v36  ;;  %v5043_v19 = vmul.f32 %v6550_v60, %v9008_v12  ;;  %v5044_v35 = vmul.f32 %v6550_v60, %v9011_v8  ;;  %v4978_v24 = vpop.xlane.xlu1 %4977 }
0x1188   : > { %v5127_v57 = vadd.f32 %v9134_v25, %v5084_v55  ;;  %v5128_v45 = vadd.f32 %v9137_v32, %v5085_v62  ;;  %v5045_v4 = vmul.f32 %v6552_v40, %v9022_v14  ;;  %v5046_v5 = vmul.f32 %v6552_v40, %v9025_v63  ;;  %v4981_v1 = vpop.xlane.xlu0 %4980 }
0x1189   : > { %5157 = vst [vmem:[%s7360_s14 + $0x30] sm:$0xff] %v5125_v61  ;;  %5158 = vst [vmem:[%s7360_s14 + $0x38] sm:$0xff] %v5126_v52  ;;  %v5086_v13 = vmul.f32 %v9128_v11, %v5043_v19  ;;  %v5087_v29 = vmul.f32 %v9131_v26, %v5044_v35  ;;  %v5013_v14 = vadd.f32 1e-05, %v4997_v3  ;;  %v4998_v17 = vmul.f32 0.00390625, %v4978_v24 }
0x118a   : > { %v6554_v12 = vpop.eup %6553  ;;  %5159 = vst [vmem:[%s7360_s14 + $0x40] sm:$0xff] %v5127_v57  ;;  %5160 = vst [vmem:[%s7360_s14 + $0x48] sm:$0xff] %v5128_v45  ;;  %v5088_v8 = vmul.f32 %v9128_v11, %v5045_v4  ;;  %v5089_v2 = vmul.f32 %v9131_v26, %v5046_v5  ;;  %6561 = vrsqrt.f32 %v5012_v43 }
0x118b   : > { %v6556_v63 = vpop.eup %6555  ;;  %v5129_v23 = vadd.f32 %v9134_v25, %v5086_v13  ;;  %v5130_v37 = vadd.f32 %v9137_v32, %v5087_v29  ;;  %v5047_v20 = vmul.f32 %v6554_v12, %v9028_v34  ;;  %v5048_v18 = vmul.f32 %v6554_v12, %v9031_v7  ;;  %v4984_v56 = vpop.xlane.xlu1 %4983 }
0x118c   : > { %v5131_v22 = vadd.f32 %v9134_v25, %v5088_v8  ;;  %v5132_v53 = vadd.f32 %v9137_v32, %v5089_v2  ;;  %v5049_v15 = vmul.f32 %v6556_v63, %v9042_v6  ;;  %v5050_v33 = vmul.f32 %v6556_v63, %v9045_v21 }
0x118d   : > { %5161 = vst [vmem:[%s7360_s14 + $0x50] sm:$0xff] %v5129_v23  ;;  %5162 = vst [vmem:[%s7360_s14 + $0x58] sm:$0xff] %v5130_v37  ;;  %v5090_v31 = vmul.f32 %v9128_v11, %v5047_v20  ;;  %v5091_v50 = vmul.f32 %v9131_v26, %v5048_v18  ;;  %v5014_v34 = vadd.f32 1e-05, %v4998_v17  ;;  %6563 = vrsqrt.f32 %v5013_v14 }
0x118e   : > { %5163 = vst [vmem:[%s7360_s14 + $0x60] sm:$0xff] %v5131_v22  ;;  %5164 = vst [vmem:[%s7360_s14 + $0x68] sm:$0xff] %v5132_v53  ;;  %v5092_v7 = vmul.f32 %v9128_v11, %v5049_v15  ;;  %v5093_v58 = vmul.f32 %v9131_v26, %v5050_v33  ;;  %v4999_v6 = vmul.f32 0.00390625, %v4981_v1  ;;  %v6558_v21 = vpop.eup %6557  ;;  %v5000_v42 = vmul.f32 0.00390625, %v4984_v56 }
0x118f   : > { %v5133_v46 = vadd.f32 %v9134_v25, %v5090_v31  ;;  %v5134_v9 = vadd.f32 %v9137_v32, %v5091_v50  ;;  %6565 = vrsqrt.f32 %v5014_v34  ;;  %v5051_v60 = vmul.f32 %v6558_v21, %v9048_v16  ;;  %v6560_v61 = vpop.eup %6559 }
0x1190   : > { %v5135_v36 = vadd.f32 %v9134_v25, %v5092_v7  ;;  %v5136_v30 = vadd.f32 %v9137_v32, %v5093_v58  ;;  %v5052_v55 = vmul.f32 %v6558_v21, %v9051_v0  ;;  %v5015_v62 = vadd.f32 1e-05, %v4999_v6 }
0x1191   : > { %5165 = vst [vmem:[%s7360_s14 + $0x70] sm:$0xff] %v5133_v46  ;;  %5166 = vst [vmem:[%s7360_s14 + $0x78] sm:$0xff] %v5134_v9  ;;  %v5016_v48 = vadd.f32 1e-05, %v5000_v42  ;;  %v5094_v3 = vmul.f32 %v9128_v11, %v5051_v60  ;;  %v5053_v0 = vmul.f32 %v6560_v61, %v9062_v39  ;;  %v5054_v19 = vmul.f32 %v6560_v61, %v9065_v44 }
0x1192   : > { %5167 = vst [vmem:[%s7360_s14 + $0x80] sm:$0xff] %v5135_v36  ;;  %5168 = vst [vmem:[%s7360_s14 + $0x88] sm:$0xff] %v5136_v30  ;;  %v5095_v40 = vmul.f32 %v9131_v26, %v5052_v55  ;;  %6567 = vrsqrt.f32 %v5015_v62 }
0x1193   : > { %v5137_v52 = vadd.f32 %v9134_v25, %v5094_v3  ;;  %6569 = vrsqrt.f32 %v5016_v48  ;;  %v5096_v35 = vmul.f32 %v9128_v11, %v5053_v0  ;;  %v5097_v24 = vmul.f32 %v9131_v26, %v5054_v19 }
0x1194   : > { %v5138_v16 = vadd.f32 %v9137_v32, %v5095_v40  ;;  %v6562_v57 = vpop.eup %6561 }
0x1195   : > { %5169 = vst [vmem:[%s7360_s14 + $0x90] sm:$0xff] %v5137_v52  ;;  %v5139_v4 = vadd.f32 %v9134_v25, %v5096_v35  ;;  %v5140_v5 = vadd.f32 %v9137_v32, %v5097_v24  ;;  %v5055_v13 = vmul.f32 %v6562_v57, %v9068_v38  ;;  %v5056_v39 = vmul.f32 %v6562_v57, %v9071_v51 }
0x1196   : > { %5170 = vst [vmem:[%s7360_s14 + $0x98] sm:$0xff] %v5138_v16 }
0x1197   : > { %v6564_v45 = vpop.eup %6563  ;;  %5171 = vst [vmem:[%s7360_s14 + $0xa0] sm:$0xff] %v5139_v4  ;;  %5172 = vst [vmem:[%s7360_s14 + $0xa8] sm:$0xff] %v5140_v5  ;;  %v5098_v12 = vmul.f32 %v9128_v11, %v5055_v13  ;;  %v5099_v8 = vmul.f32 %v9131_v26, %v5056_v39 }
0x1198   : > { %v5057_v44 = vmul.f32 %v6564_v45, %v9082_v59  ;;  %v5058_v43 = vmul.f32 %v6564_v45, %v9085_v10 }
0x1199   : > { %v6566_v29 = vpop.eup %6565  ;;  %v5141_v59 = vadd.f32 %v9134_v25, %v5098_v12  ;;  %v5142_v10 = vadd.f32 %v9137_v32, %v5099_v8 }
0x119a   : > { %v5059_v2 = vmul.f32 %v6566_v29, %v9088_v41  ;;  %v5060_v14 = vmul.f32 %v6566_v29, %v9091_v27  ;;  %v5100_v38 = vmul.f32 %v9128_v11, %v5057_v44  ;;  %v5101_v51 = vmul.f32 %v9131_v26, %v5058_v43 }
0x119b   : > { %5173 = vst [vmem:[%s7360_s14 + $0xb0] sm:$0xff] %v5141_v59  ;;  %5174 = vst [vmem:[%s7360_s14 + $0xb8] sm:$0xff] %v5142_v10 }
0x119c   : > { %v5102_v17 = vmul.f32 %v9128_v11, %v5059_v2  ;;  %v5103_v63 = vmul.f32 %v9131_v26, %v5060_v14  ;;  %v6568_v23 = vpop.eup %6567  ;;  %v5143_v41 = vadd.f32 %v9134_v25, %v5100_v38  ;;  %v5144_v27 = vadd.f32 %v9137_v32, %v5101_v51 }
0x119d   : > { %v5061_v18 = vmul.f32 %v6568_v23, %v9102_v49  ;;  %v5062_v1 = vmul.f32 %v6568_v23, %v9105_v54  ;;  %v6570_v22 = vpop.eup %6569 }
0x119e   : > { %v5145_v37 = vadd.f32 %v9134_v25, %v5102_v17  ;;  %v5146_v20 = vadd.f32 %v9137_v32, %v5103_v63  ;;  %5175 = vst [vmem:[%s7360_s14 + $0xc0] sm:$0xff] %v5143_v41  ;;  %5176 = vst [vmem:[%s7360_s14 + $0xc8] sm:$0xff] %v5144_v27  ;;  %v5063_v33 = vmul.f32 %v6570_v22, %v9108_v47 }
0x119f   : > { %v5104_v53 = vmul.f32 %v9128_v11, %v5061_v18  ;;  %v5105_v15 = vmul.f32 %v9131_v26, %v5062_v1  ;;  %v5064_v56 = vmul.f32 %v6570_v22, %v9111_v28 }
0x11a0   : > { %5177 = vst [vmem:[%s7360_s14 + $0xd0] sm:$0xff] %v5145_v37  ;;  %5178 = vst [vmem:[%s7360_s14 + $0xd8] sm:$0xff] %v5146_v20  ;;  %v5106_v54 = vmul.f32 %v9128_v11, %v5063_v33 }
0x11a1   : > { %v5147_v49 = vadd.f32 %v9134_v25, %v5104_v53  ;;  %v5148_v31 = vadd.f32 %v9137_v32, %v5105_v15  ;;  %v5107_v50 = vmul.f32 %v9131_v26, %v5064_v56 }
0x11a2   : > { %v5149_v34 = vadd.f32 %v9134_v25, %v5106_v54 }
0x11a3   : > { %5179 = vst [vmem:[%s7360_s14 + $0xe0] sm:$0xff] %v5147_v49  ;;  %5180 = vst [vmem:[%s7360_s14 + $0xe8] sm:$0xff] %v5148_v31  ;;  %v5150_v7 = vadd.f32 %v9137_v32, %v5107_v50 }
0x11a4   : > { %5181 = vst [vmem:[%s7360_s14 + $0xf0] sm:$0xff] %v5149_v34 }
0x11a5   : > { %5182 = vst [vmem:[%s7360_s14 + $0xf8] sm:$0xff] %v5150_v7 }
0x11a6 PF: > { %s9549_s16 = sld [smem:[#allocation24_spill]]  ;;  %s9550_s24 = sld [smem:[#allocation31_spill]] }
0x11a7   : > { %s9551_s6 = sld [smem:[#allocation68_spill]]  ;;  %s5198_s23 = sshll.u32 %s7360_s14, 4  ;;  %s9274_s23 = int_to_ptr.vmem [resolvable:$true] %s5198_s23 }
0x11a8   : > { %s9278_s15 = scalar_lea.sflag [#allocation7], %s541_s7  ;;  %s6745_s9 = scalar_lea.vmem %s9274_s23, 4096 }
0x11a9   : > { %p6746_p11 = scmp.ne.s32.totalorder %s9274_s23, %s6745_s9  ;;  %s6895_s20 = smov [#allocation15]  }
0x11aa   : > { %s6749_s12 = sshll.u32 %s6895_s20, 4  ;;  %s6750_s12 = int_to_ptr.vmem [resolvable:$false] %s6749_s12 }
0x11ab   : > { %s6751_s5 = scalar_lea.vmem %s6750_s12, 8192  ;;  %p6752_p0 = scmp.lt.s32.totalorder %s9274_s23, %s6750_s12 }
0x11ac   : > { %s5641_s13 = sshll.u32 %s9549_s16, 12  ;;  %p9552_p1 = scmp.ne.s32.totalorder %s9550_s24, 0 }
0x11ad   : > { %s9271_s3 = scalar_lea.hbm %s9551_s6, %s5641_s13  ;;  %p6753_p6 = scmp.lt.s32.totalorder %s6751_s5, %s6745_s9 }
0x11ae   : > { %p6747_p4 = pnand %p6746_p11, %p9552_p1 }
0x11af   : > { %p6754_p7 = por %p6753_p6, %p6752_p0 }
0x11b0   : > { %p6748_p10 = pneg %p6747_p4 }
0x11b2   : > { %p6755_p9 = pnand %p6754_p7, %p6748_p10 }
0x11b4   : > { %6758 = shalt.err (!%p6755_p9)
}
0x11b5   : > { %s6759_s7 = scalar_lea.hbm %s9271_s3, 4096  ;;  %s6763_s19 = scalar_lea.hbm %s9551_s6, 8192 }
0x11b6   : > { %p6760_p2 = scmp.ne.s32.totalorder %s9271_s3, %s6759_s7  ;;  %p6764_p3 = scmp.lt.u32.totalorder %s9271_s3, %s9551_s6 }
0x11b7   : > { %p6765_p8 = scmp.lt.u32.totalorder %s6763_s19, %s6759_s7  ;;  %p6767_p11 = scmp.lt.u32.totalorder %s6759_s7, %s9271_s3 }
0x11b8   : > { %p6761_p13 = pnand %p6760_p2, %p9552_p1 }
0x11b9   : > { %p6766_p12 = por %p6765_p8, %p6764_p3 }
0x11ba   : > { %p6762_p5 = pneg %p6761_p13 }
0x11bb   : > { %p6768_p4 = por %p6767_p11, %p6766_p12 }
0x11bd   : > { %p6769_p10 = pnand %p6768_p4, %p6762_p5 }
0x11bf   : > { %6772 = shalt.err (!%p6769_p10)
}
0x11c0   : > { %s6896_s27 = smov 256   ;;  %s6897_s8 = smov 16  }
0x11c1   : > { %5916 = dma.vmem_to_hbm [thread:$0]  (%p9552_p1), %s9274_s23, 4096, %s9271_s3, %s9278_s15, %s6896_s27, %s6896_s27, %s6897_s8  }
0x11c2 PF: > { %s9553_s18 = sld [smem:[#allocation26_spill]]  ;;  %s9554_s16 = sld [smem:[#allocation22_spill]] }
0x11c3   : > { %s9555_s13 = sld [smem:[#allocation32_spill]] }
0x11c8   : > { %p5949_p0 = scmp.ge.s32.totalorder %s9553_s18, 2  ;;  %s5213_s29 = sand.u32 1, %s9554_s16  }
0x11c9   : > { %p9556_p6 = scmp.ne.s32.totalorder %s9555_s13, 0  ;;  %s5214_s22 = scalar_lea.sflag [#allocation7], %s5213_s29 }
0x11cb   : > { %p5939_p7 = pnand %p5949_p0, %p9556_p6 }
0x11cd   : > { %6834 = dma.done.wait (!%p5939_p7), %s5214_s22, 4096  }
0x11ce   : > { %6836 = vsyncadd (!%p5939_p7), %s5214_s22, 4294963200  ;;  %s32_s23 = sadd.s32 1, %s9553_s18   ;;  %s9557_s9 = sld [smem:[#allocation21_spill]] }
0x11cf   : > { %p29_p9 = scmp.ge.s32.totalorder %s32_s23, 6   ;;  %s9558_s15 = sld [smem:[#allocation30_spill]] }
0x11d0   : > { %s9559_s24 = sld [smem:[#allocation23_spill]]  ;;  %s9560_s18 = sld [smem:[#allocation29_spill]] }
0x11d1   : > { %s9561_s20 = sld [smem:[#allocation25_spill]]  ;;  %s9562_s3 = sld [smem:[#allocation27_spill]] }
0x11d2   : > { %s9563_s22 = sld [smem:[#allocation28_spill]]  ;;  %s9564_s29 = smov %s6843_s30 }
0x11d3   : > { %s9566_s16 = smov %s6855_s17  ;;  %s9568_s19 = smov %s6871_s21 }
0x11d4   : > { %s9565_s30 = smov %s9557_s9  ;;  %31 = sbr.rel (!%p29_p9) target bundleno = 24 (0x18), region = 167 }
0x11d6   : > { %s9567_s17 = smov %s9559_s24 }
0x11d7   : > { %s9569_s21 = smov %s9562_s3 }
0x11db   :  { %5219 = vsyncpa [#allocation6], 1 }
0x11dc   :  { %5221 = vsyncpa [#allocation6 + $0x1], 1 }
0x11dd   :  { %5222 = vsyncpa [#allocation9], 1 }
0x11de   :  { %5223 = vsyncpa [#allocation12], 1 }
0x11df   :  { %5224 = vsyncpa [#allocation7], 1 }
0x11e0   :  { %5226 = vsyncpa [#allocation7 + $0x1], 1 }

</bundles_post_ra>
